<compile_context>
chip_gen: v7x
topology: tpu7x:2x2x1
jax: 0.10.0
libtpu: 0.0.40
codegen_flags: <defaults>
</compile_context>

<pallas_src>
import jax
import jax.numpy as jnp
from jax import lax
from jax.experimental import pallas as pl
from jax.experimental.pallas import tpu as pltpu

DIM = 513          # self.dim
DIM_PAD = 640      # 513 padded up to a lane multiple (5 * 128)
MEM_DIM = 256      # self.memory_dim
HEAD_DIM = 100     # linear2 output (true width)
HEAD_PAD = 128     # lane-padded head width


# ----------------------------------------------------------------------------
# Fused kernel: input projection -> LSTM recurrence (+ReLU) -> gather -> head
# ----------------------------------------------------------------------------
def _memorizer_kernel(idx_ref, b3_ref,                       # SMEM
                      x_ref, wc_ref, bc_ref, whh_ref,        # VMEM inputs
                      w2_ref, b2_ref, w3_ref,
                      o_ref,                                 # VMEM out (n_idx*Bp, 1)
                      gx_ref, hs_ref):                       # VMEM scratch
    T, Bp, H4 = gx_ref.shape
    H = hs_ref.shape[2]
    n_idx = idx_ref.shape[0]

    # 1) Hoisted input projection (linear1 folded into W_ih, bias folded in):
    #    one big bf16 MXU matmul (f32 accumulate) off the serial critical path.
    #    x_ref is time-major (T*Bp, DIM_PAD), so the reshape below is a pure
    #    major-dim split (no relayout).  Gate layout: [i | f | g | o].
    gates_x = (
        jnp.dot(x_ref[...], wc_ref[...], preferred_element_type=jnp.float32)
        + bc_ref[...]
    )                                                        # (T*Bp, 4H) f32
    gx_ref[...] = gates_x.reshape(T, Bp, H4)
    # NOTE(prod/v7x): chunk this matmul over T (grid axis / emit_pipeline) or
    # store gx in bf16 and set vmem_limit_bytes once B*T grows.

    # 2) LSTM recurrence, fully unrolled over the static (small) T.  h/c live
    #    in vregs; only h @ W_hh stays on the serial critical path, with bf16
    #    operands (~3x fewer MXU passes than f32xf32).  Gate math stays f32.
    #    NOTE(prod): for long T switch to lax.fori_loop(..., unroll=2..4).
    whh = whh_ref[...]                                       # (H, 4H) bf16
    h = jnp.zeros((Bp, H), jnp.float32)
    c = jnp.zeros((Bp, H), jnp.float32)
    for t in range(T):
        g = gx_ref[t] + jnp.dot(h.astype(jnp.bfloat16), whh,
                                preferred_element_type=jnp.float32)
        i_g = jax.nn.sigmoid(g[:, 0 * H:1 * H])
        f_g = jax.nn.sigmoid(g[:, 1 * H:2 * H])
        g_g = jnp.tanh(g[:, 2 * H:3 * H])
        o_g = jax.nn.sigmoid(g[:, 3 * H:4 * H])
        c = f_g * c + i_g * g_g
        h = o_g * jnp.tanh(c)
        hs_ref[t] = jnp.maximum(h, 0.0)                      # fused post-LSTM ReLU
        # NOTE(prod): store relu(h) only at classifier steps via a prefetched
        # slot map + pl.when to cut per-step vst traffic and hs VMEM.

    # 3) Batched gather + head.  Gather the n_idx selected time steps (indices
    #    live in SMEM) into ONE (n_idx*Bp, H) block, then a single linear2
    #    matmul + ReLU, a single VPU mul + lane reduction for linear3 (N=1),
    #    one sigmoid, one store.
    gath = jnp.concatenate([hs_ref[idx_ref[j]] for j in range(n_idx)], axis=0)
    z = jnp.maximum(
        jnp.dot(gath.astype(jnp.bfloat16), w2_ref[...],
                preferred_element_type=jnp.float32) + b2_ref[...], 0.0)
    y = jnp.sum(z * w3_ref[...], axis=-1, keepdims=True) + b3_ref[0]
    o_ref[...] = jax.nn.sigmoid(y)                           # (n_idx*Bp, 1)


# ----------------------------------------------------------------------------
# Wrapper
# ----------------------------------------------------------------------------
@jax.jit
def memorizer_forward(prep, x, indices_classifier):
    """x: (B, T, DIM) float32; indices_classifier: (n_idx,) int.
    Returns sigmoid scores, shape (B * n_idx,), batch-major like the PyTorch
    module (x[:, idx, :].reshape(-1, H) ordering)."""
    B, T, D = x.shape
    n_idx = indices_classifier.shape[0]
    Bp = ((B + 7) // 8) * 8                       # pad batch to full sublanes

    # Pad batch (sublanes) + feature dim (lanes), go time-major and cast to
    # bf16 — XLA fuses all of this into the single unavoidable copy.
    x_p = jnp.pad(x, ((0, Bp - B), (0, 0), (0, DIM_PAD - D)))
    x_tm = x_p.transpose(1, 0, 2).reshape(T * Bp, DIM_PAD).astype(jnp.bfloat16)

    # Clip indices: dynamic VMEM reads have no runtime bounds check.
    idx = jnp.clip(indices_classifier.astype(jnp.int32), 0, T - 1)

    smem = pl.BlockSpec(memory_space=pltpu.MemorySpace.SMEM)
    vmem = pl.BlockSpec(memory_space=pltpu.MemorySpace.VMEM)
    out = pl.pallas_call(
        _memorizer_kernel,
        out_shape=jax.ShapeDtypeStruct((n_idx * Bp, 1), jnp.float32),
        in_specs=[smem, smem] + [vmem] * 7,
        out_specs=vmem,
        scratch_shapes=[
            pltpu.VMEM((T, Bp, 4 * MEM_DIM), jnp.float32),   # time-major gates_x
            pltpu.VMEM((T, Bp, MEM_DIM), jnp.float32),       # relu(h_t) sequence
        ],
        # NOTE(prod/v7x): add a batch grid axis with
        # dimension_semantics=("parallel",) so the 2nd TensorCore gets half the
        # rows, and set vmem_limit_bytes via pltpu.CompilerParams when scaling.
    )(idx, prep["b3"], x_tm, prep["w_comb"], prep["b_comb"], prep["w_hh"],
      prep["w2"], prep["b2"], prep["w3"])

    # (n_idx, Bp) -> torch's batch-major flattening, dropping padded rows.
    return out.reshape(n_idx, Bp)[:, :B].T.reshape(-1)


def prepare_params(p):
    """One-time weight preprocessing (off the per-call critical path).
    linear1 is folded into the LSTM input projection (no nonlinearity between
    them); matmul operand weights are cast to bf16 once here."""
    w_comb = p["w1"] @ p["w_ih"]                                     # (DIM, 4H)
    w_comb_p = jnp.zeros((DIM_PAD, 4 * MEM_DIM), jnp.float32).at[:DIM].set(w_comb)
    b_comb = (p["b1"] @ p["w_ih"] + p["b_lstm"]).reshape(1, -1)      # (1, 4H)
    w2p = jnp.zeros((MEM_DIM, HEAD_PAD), jnp.float32).at[:, :HEAD_DIM].set(p["w2"])
    b2p = jnp.zeros((1, HEAD_PAD), jnp.float32).at[0, :HEAD_DIM].set(p["b2"])
    w3p = jnp.zeros((1, HEAD_PAD), jnp.float32).at[0, :HEAD_DIM].set(p["w3"][:, 0])
    return {"w_comb": w_comb_p.astype(jnp.bfloat16),
            "b_comb": b_comb,
            "w_hh": p["w_hh"].astype(jnp.bfloat16),
            "w2": w2p.astype(jnp.bfloat16),
            "b2": b2p,
            "w3": w3p,
            "b3": p["b3"].astype(jnp.float32)}


def init_params(key):
    ks = jax.random.split(key, 8)
    scale = 0.05
    return {
        # linear1: dim -> memory_dim
        "w1": scale * jax.random.normal(ks[0], (DIM, MEM_DIM), jnp.float32),
        "b1": scale * jax.random.normal(ks[1], (MEM_DIM,), jnp.float32),
        # nn.LSTM(memory_dim, memory_dim): weights stored pre-transposed
        # (input, 4*hidden), gate order i,f,g,o; b = b_ih + b_hh combined.
        # (Map carefully from a real torch checkpoint, which stores (4H, in)
        # weights and separate b_ih / b_hh.)
        "w_ih": scale * jax.random.normal(ks[2], (MEM_DIM, 4 * MEM_DIM), jnp.float32),
        "w_hh": scale * jax.random.normal(ks[3], (MEM_DIM, 4 * MEM_DIM), jnp.float32),
        "b_lstm": scale * jax.random.normal(ks[4], (4 * MEM_DIM,), jnp.float32),
        # linear2: memory_dim -> 100
        "w2": scale * jax.random.normal(ks[5], (MEM_DIM, HEAD_DIM), jnp.float32),
        "b2": scale * jax.random.normal(ks[6], (HEAD_DIM,), jnp.float32),
        # linear3: 100 -> 1
        "w3": scale * jax.random.normal(ks[7], (HEAD_DIM, 1), jnp.float32),
        "b3": jnp.zeros((1,), jnp.float32),
    }


# ----------------------------------------------------------------------------
# Pure-JAX f32 reference (unfolded, unpadded) for correctness validation
# ----------------------------------------------------------------------------
def memorizer_reference(params, x, idx):
    B, T, D = x.shape
    H = MEM_DIM
    h1 = (x.reshape(B * T, D) @ params["w1"] + params["b1"]).reshape(B, T, H)

    def step(carry, xt):
        h, c = carry
        g = xt @ params["w_ih"] + h @ params["w_hh"] + params["b_lstm"]
        i = jax.nn.sigmoid(g[:, 0 * H:1 * H])
        f = jax.nn.sigmoid(g[:, 1 * H:2 * H])
        gg = jnp.tanh(g[:, 2 * H:3 * H])
        o = jax.nn.sigmoid(g[:, 3 * H:4 * H])
        c = f * c + i * gg
        h = o * jnp.tanh(c)
        return (h, c), h

    init = (jnp.zeros((B, H), jnp.float32), jnp.zeros((B, H), jnp.float32))
    _, hs = lax.scan(step, init, jnp.transpose(h1, (1, 0, 2)))
    hs = jnp.maximum(jnp.transpose(hs, (1, 0, 2)), 0.0)          # (B, T, H), ReLU
    g = hs[:, idx, :].reshape(-1, H)
    z = jnp.maximum(g @ params["w2"] + params["b2"], 0.0)
    y = jax.nn.sigmoid(z @ params["w3"] + params["b3"])
    return jnp.squeeze(y)


if __name__ == "__main__":
    key = jax.random.PRNGKey(0)
    pkey, xkey = jax.random.split(key)
    params = init_params(pkey)
    prep = prepare_params(params)

    B, T = 2, 8
    x = jax.random.normal(xkey, (B, T, DIM), jnp.float32)
    indices_classifier = jnp.array([1, 3, 5], dtype=jnp.int32)

    out = memorizer_forward(prep, x, indices_classifier)
    jax.block_until_ready(out)

    ref = memorizer_reference(params, x, indices_classifier)
    assert out.shape == (B * indices_classifier.shape[0],)
    assert bool(jnp.all(jnp.isfinite(out)))
    # Tolerance covers bf16 MXU operand rounding + linear1 folding vs the pure
    # f32 reference; a structural bug (gate order, gather, ordering) would blow
    # far past this.
    assert bool(jnp.allclose(out, ref, atol=3e-3, rtol=3e-3)), (out, ref)
    print("KERNEL_OK")
</pallas_src>

<mosaic_0001>
module attributes {stable_mosaic.version = 11 : i64} {
  func.func @_memorizer_kernel(%arg0: memref<3xi32, #tpu.memory_space<smem>>, %arg1: memref<1xf32, #tpu.memory_space<smem>>, %arg2: memref<64x640xbf16, #tpu.memory_space<vmem>>, %arg3: memref<640x1024xbf16, #tpu.memory_space<vmem>>, %arg4: memref<1x1024xf32, #tpu.memory_space<vmem>>, %arg5: memref<256x1024xbf16, #tpu.memory_space<vmem>>, %arg6: memref<256x128xbf16, #tpu.memory_space<vmem>>, %arg7: memref<1x128xf32, #tpu.memory_space<vmem>>, %arg8: memref<1x128xf32, #tpu.memory_space<vmem>>, %arg9: memref<24x1xf32, #tpu.memory_space<vmem>>, %arg10: memref<8x8x1024xf32, #tpu.memory_space<vmem>>, %arg11: memref<8x8x256xf32, #tpu.memory_space<vmem>>) attributes {dimension_semantics = [], scalar_prefetch = 0 : i64, scratch_operands = 2 : i64, tpu.core_type = #tpu.core_type<tc>} {
    %c0 = arith.constant 0 : index
    %c0_0 = arith.constant 0 : index
    %0 = vector.load %arg2[%c0, %c0_0] : memref<64x640xbf16, #tpu.memory_space<vmem>>, vector<64x640xbf16>
    %c0_1 = arith.constant 0 : index
    %c0_2 = arith.constant 0 : index
    %1 = vector.load %arg3[%c0_1, %c0_2] : memref<640x1024xbf16, #tpu.memory_space<vmem>>, vector<640x1024xbf16>
    %cst = arith.constant dense<0.000000e+00> : vector<64x1024xf32>
    %2 = tpu.matmul %0, %1, %cst {dimension_numbers = #tpu.dot_dimension_numbers<[1], [0], [0], [1], [0, 0, 1, 1], [], []>} : vector<64x640xbf16>, vector<640x1024xbf16>, vector<64x1024xf32> -> vector<64x1024xf32>
    %c0_3 = arith.constant 0 : index
    %c0_4 = arith.constant 0 : index
    %3 = vector.load %arg4[%c0_3, %c0_4] : memref<1x1024xf32, #tpu.memory_space<vmem>>, vector<1x1024xf32>
    %4 = vector.broadcast %3 : vector<1x1024xf32> to vector<64x1024xf32>
    %5 = arith.addf %2, %4 : vector<64x1024xf32>
    %6 = vector.shape_cast %5 : vector<64x1024xf32> to vector<8x8x1024xf32>
    %c0_5 = arith.constant 0 : index
    %c0_6 = arith.constant 0 : index
    %c0_7 = arith.constant 0 : index
    %7 = vector.load %arg10[%c0_5, %c0_6, %c0_7] : memref<8x8x1024xf32, #tpu.memory_space<vmem>>, vector<8x8x1024xf32>
    tpu.vector_store %arg10[%c0_5, %c0_6, %c0_7], %6 {strides = array<i32>} : memref<8x8x1024xf32, #tpu.memory_space<vmem>>, vector<8x8x1024xf32>,
    %c0_8 = arith.constant 0 : index
    %c0_9 = arith.constant 0 : index
    %8 = vector.load %arg5[%c0_8, %c0_9] : memref<256x1024xbf16, #tpu.memory_space<vmem>>, vector<256x1024xbf16>
    %cst_10 = arith.constant 0.000000e+00 : f32
    %9 = vector.broadcast %cst_10 : f32 to vector<8x256xf32>
    %cst_11 = arith.constant 0.000000e+00 : f32
    %10 = vector.broadcast %cst_11 : f32 to vector<8x256xf32>
    %c0_12 = arith.constant 0 : index
    %c0_13 = arith.constant 0 : index
    %c0_14 = arith.constant 0 : index
    %11 = vector.load %arg10[%c0_12, %c0_13, %c0_14] : memref<8x8x1024xf32, #tpu.memory_space<vmem>>, vector<1x8x1024xf32>
    %12 = vector.shape_cast %11 : vector<1x8x1024xf32> to vector<8x1024xf32>
    %13 = arith.truncf %9 : vector<8x256xf32> to vector<8x256xbf16>
    %cst_15 = arith.constant dense<0.000000e+00> : vector<8x1024xf32>
    %14 = tpu.matmul %13, %8, %cst_15 {dimension_numbers = #tpu.dot_dimension_numbers<[1], [0], [0], [1], [0, 0, 1, 1], [], []>} : vector<8x256xbf16>, vector<256x1024xbf16>, vector<8x1024xf32> -> vector<8x1024xf32>
    %15 = arith.addf %12, %14 : vector<8x1024xf32>
    %16 = vector.extract_strided_slice %15 {offsets = [0, 0], sizes = [8, 256], strides = [1, 1]} : vector<8x1024xf32> to vector<8x256xf32>
    %17 = arith.negf %16 : vector<8x256xf32>
    %18 = math.exp %17 : vector<8x256xf32>
    %cst_16 = arith.constant 1.000000e+00 : f32
    %19 = vector.broadcast %cst_16 : f32 to vector<8x256xf32>
    %20 = arith.addf %19, %18 : vector<8x256xf32>
    %21 = arith.divf %19, %20 : vector<8x256xf32>
    %22 = vector.extract_strided_slice %15 {offsets = [0, 256], sizes = [8, 256], strides = [1, 1]} : vector<8x1024xf32> to vector<8x256xf32>
    %23 = arith.negf %22 : vector<8x256xf32>
    %24 = math.exp %23 : vector<8x256xf32>
    %cst_17 = arith.constant 1.000000e+00 : f32
    %25 = vector.broadcast %cst_17 : f32 to vector<8x256xf32>
    %26 = arith.addf %25, %24 : vector<8x256xf32>
    %27 = arith.divf %25, %26 : vector<8x256xf32>
    %28 = vector.extract_strided_slice %15 {offsets = [0, 512], sizes = [8, 256], strides = [1, 1]} : vector<8x1024xf32> to vector<8x256xf32>
    %29 = math.tanh %28 : vector<8x256xf32>
    %30 = vector.extract_strided_slice %15 {offsets = [0, 768], sizes = [8, 256], strides = [1, 1]} : vector<8x1024xf32> to vector<8x256xf32>
    %31 = arith.negf %30 : vector<8x256xf32>
    %32 = math.exp %31 : vector<8x256xf32>
    %cst_18 = arith.constant 1.000000e+00 : f32
    %33 = vector.broadcast %cst_18 : f32 to vector<8x256xf32>
    %34 = arith.addf %33, %32 : vector<8x256xf32>
    %35 = arith.divf %33, %34 : vector<8x256xf32>
    %36 = arith.mulf %27, %10 : vector<8x256xf32>
    %37 = arith.mulf %21, %29 : vector<8x256xf32>
    %38 = arith.addf %36, %37 : vector<8x256xf32>
    %39 = math.tanh %38 : vector<8x256xf32>
    %40 = arith.mulf %35, %39 : vector<8x256xf32>
    %cst_19 = arith.constant 0.000000e+00 : f32
    %41 = vector.broadcast %cst_19 : f32 to vector<8x256xf32>
    %42 = arith.maximumf %40, %41 : vector<8x256xf32>
    %c0_20 = arith.constant 0 : index
    %c0_21 = arith.constant 0 : index
    %c0_22 = arith.constant 0 : index
    %43 = vector.load %arg11[%c0_20, %c0_21, %c0_22] : memref<8x8x256xf32, #tpu.memory_space<vmem>>, vector<1x8x256xf32>
    %44 = vector.shape_cast %43 : vector<1x8x256xf32> to vector<8x256xf32>
    %45 = vector.shape_cast %42 : vector<8x256xf32> to vector<1x8x256xf32>
    tpu.vector_store %arg11[%c0_20, %c0_21, %c0_22], %45 {strides = array<i32>} : memref<8x8x256xf32, #tpu.memory_space<vmem>>, vector<1x8x256xf32>,
    %c1 = arith.constant 1 : index
    %c0_23 = arith.constant 0 : index
    %c0_24 = arith.constant 0 : index
    %46 = vector.load %arg10[%c1, %c0_23, %c0_24] : memref<8x8x1024xf32, #tpu.memory_space<vmem>>, vector<1x8x1024xf32>
    %47 = vector.shape_cast %46 : vector<1x8x1024xf32> to vector<8x1024xf32>
    %48 = arith.truncf %40 : vector<8x256xf32> to vector<8x256xbf16>
    %cst_25 = arith.constant dense<0.000000e+00> : vector<8x1024xf32>
    %49 = tpu.matmul %48, %8, %cst_25 {dimension_numbers = #tpu.dot_dimension_numbers<[1], [0], [0], [1], [0, 0, 1, 1], [], []>} : vector<8x256xbf16>, vector<256x1024xbf16>, vector<8x1024xf32> -> vector<8x1024xf32>
    %50 = arith.addf %47, %49 : vector<8x1024xf32>
    %51 = vector.extract_strided_slice %50 {offsets = [0, 0], sizes = [8, 256], strides = [1, 1]} : vector<8x1024xf32> to vector<8x256xf32>
    %52 = arith.negf %51 : vector<8x256xf32>
    %53 = math.exp %52 : vector<8x256xf32>
    %cst_26 = arith.constant 1.000000e+00 : f32
    %54 = vector.broadcast %cst_26 : f32 to vector<8x256xf32>
    %55 = arith.addf %54, %53 : vector<8x256xf32>
    %56 = arith.divf %54, %55 : vector<8x256xf32>
    %57 = vector.extract_strided_slice %50 {offsets = [0, 256], sizes = [8, 256], strides = [1, 1]} : vector<8x1024xf32> to vector<8x256xf32>
    %58 = arith.negf %57 : vector<8x256xf32>
    %59 = math.exp %58 : vector<8x256xf32>
    %cst_27 = arith.constant 1.000000e+00 : f32
    %60 = vector.broadcast %cst_27 : f32 to vector<8x256xf32>
    %61 = arith.addf %60, %59 : vector<8x256xf32>
    %62 = arith.divf %60, %61 : vector<8x256xf32>
    %63 = vector.extract_strided_slice %50 {offsets = [0, 512], sizes = [8, 256], strides = [1, 1]} : vector<8x1024xf32> to vector<8x256xf32>
    %64 = math.tanh %63 : vector<8x256xf32>
    %65 = vector.extract_strided_slice %50 {offsets = [0, 768], sizes = [8, 256], strides = [1, 1]} : vector<8x1024xf32> to vector<8x256xf32>
    %66 = arith.negf %65 : vector<8x256xf32>
    %67 = math.exp %66 : vector<8x256xf32>
    %cst_28 = arith.constant 1.000000e+00 : f32
    %68 = vector.broadcast %cst_28 : f32 to vector<8x256xf32>
    %69 = arith.addf %68, %67 : vector<8x256xf32>
    %70 = arith.divf %68, %69 : vector<8x256xf32>
    %71 = arith.mulf %62, %38 : vector<8x256xf32>
    %72 = arith.mulf %56, %64 : vector<8x256xf32>
    %73 = arith.addf %71, %72 : vector<8x256xf32>
    %74 = math.tanh %73 : vector<8x256xf32>
    %75 = arith.mulf %70, %74 : vector<8x256xf32>
    %cst_29 = arith.constant 0.000000e+00 : f32
    %76 = vector.broadcast %cst_29 : f32 to vector<8x256xf32>
    %77 = arith.maximumf %75, %76 : vector<8x256xf32>
    %c1_30 = arith.constant 1 : index
    %c0_31 = arith.constant 0 : index
    %c0_32 = arith.constant 0 : index
    %78 = vector.load %arg11[%c1_30, %c0_31, %c0_32] : memref<8x8x256xf32, #tpu.memory_space<vmem>>, vector<1x8x256xf32>
    %79 = vector.shape_cast %78 : vector<1x8x256xf32> to vector<8x256xf32>
    %80 = vector.shape_cast %77 : vector<8x256xf32> to vector<1x8x256xf32>
    tpu.vector_store %arg11[%c1_30, %c0_31, %c0_32], %80 {strides = array<i32>} : memref<8x8x256xf32, #tpu.memory_space<vmem>>, vector<1x8x256xf32>,
    %c2 = arith.constant 2 : index
    %c0_33 = arith.constant 0 : index
    %c0_34 = arith.constant 0 : index
    %81 = vector.load %arg10[%c2, %c0_33, %c0_34] : memref<8x8x1024xf32, #tpu.memory_space<vmem>>, vector<1x8x1024xf32>
    %82 = vector.shape_cast %81 : vector<1x8x1024xf32> to vector<8x1024xf32>
    %83 = arith.truncf %75 : vector<8x256xf32> to vector<8x256xbf16>
    %cst_35 = arith.constant dense<0.000000e+00> : vector<8x1024xf32>
    %84 = tpu.matmul %83, %8, %cst_35 {dimension_numbers = #tpu.dot_dimension_numbers<[1], [0], [0], [1], [0, 0, 1, 1], [], []>} : vector<8x256xbf16>, vector<256x1024xbf16>, vector<8x1024xf32> -> vector<8x1024xf32>
    %85 = arith.addf %82, %84 : vector<8x1024xf32>
    %86 = vector.extract_strided_slice %85 {offsets = [0, 0], sizes = [8, 256], strides = [1, 1]} : vector<8x1024xf32> to vector<8x256xf32>
    %87 = arith.negf %86 : vector<8x256xf32>
    %88 = math.exp %87 : vector<8x256xf32>
    %cst_36 = arith.constant 1.000000e+00 : f32
    %89 = vector.broadcast %cst_36 : f32 to vector<8x256xf32>
    %90 = arith.addf %89, %88 : vector<8x256xf32>
    %91 = arith.divf %89, %90 : vector<8x256xf32>
    %92 = vector.extract_strided_slice %85 {offsets = [0, 256], sizes = [8, 256], strides = [1, 1]} : vector<8x1024xf32> to vector<8x256xf32>
    %93 = arith.negf %92 : vector<8x256xf32>
    %94 = math.exp %93 : vector<8x256xf32>
    %cst_37 = arith.constant 1.000000e+00 : f32
    %95 = vector.broadcast %cst_37 : f32 to vector<8x256xf32>
    %96 = arith.addf %95, %94 : vector<8x256xf32>
    %97 = arith.divf %95, %96 : vector<8x256xf32>
    %98 = vector.extract_strided_slice %85 {offsets = [0, 512], sizes = [8, 256], strides = [1, 1]} : vector<8x1024xf32> to vector<8x256xf32>
    %99 = math.tanh %98 : vector<8x256xf32>
    %100 = vector.extract_strided_slice %85 {offsets = [0, 768], sizes = [8, 256], strides = [1, 1]} : vector<8x1024xf32> to vector<8x256xf32>
    %101 = arith.negf %100 : vector<8x256xf32>
    %102 = math.exp %101 : vector<8x256xf32>
    %cst_38 = arith.constant 1.000000e+00 : f32
    %103 = vector.broadcast %cst_38 : f32 to vector<8x256xf32>
    %104 = arith.addf %103, %102 : vector<8x256xf32>
    %105 = arith.divf %103, %104 : vector<8x256xf32>
    %106 = arith.mulf %97, %73 : vector<8x256xf32>
    %107 = arith.mulf %91, %99 : vector<8x256xf32>
    %108 = arith.addf %106, %107 : vector<8x256xf32>
    %109 = math.tanh %108 : vector<8x256xf32>
    %110 = arith.mulf %105, %109 : vector<8x256xf32>
    %cst_39 = arith.constant 0.000000e+00 : f32
    %111 = vector.broadcast %cst_39 : f32 to vector<8x256xf32>
    %112 = arith.maximumf %110, %111 : vector<8x256xf32>
    %c2_40 = arith.constant 2 : index
    %c0_41 = arith.constant 0 : index
    %c0_42 = arith.constant 0 : index
    %113 = vector.load %arg11[%c2_40, %c0_41, %c0_42] : memref<8x8x256xf32, #tpu.memory_space<vmem>>, vector<1x8x256xf32>
    %114 = vector.shape_cast %113 : vector<1x8x256xf32> to vector<8x256xf32>
    %115 = vector.shape_cast %112 : vector<8x256xf32> to vector<1x8x256xf32>
    tpu.vector_store %arg11[%c2_40, %c0_41, %c0_42], %115 {strides = array<i32>} : memref<8x8x256xf32, #tpu.memory_space<vmem>>, vector<1x8x256xf32>,
    %c3 = arith.constant 3 : index
    %c0_43 = arith.constant 0 : index
    %c0_44 = arith.constant 0 : index
    %116 = vector.load %arg10[%c3, %c0_43, %c0_44] : memref<8x8x1024xf32, #tpu.memory_space<vmem>>, vector<1x8x1024xf32>
    %117 = vector.shape_cast %116 : vector<1x8x1024xf32> to vector<8x1024xf32>
    %118 = arith.truncf %110 : vector<8x256xf32> to vector<8x256xbf16>
    %cst_45 = arith.constant dense<0.000000e+00> : vector<8x1024xf32>
    %119 = tpu.matmul %118, %8, %cst_45 {dimension_numbers = #tpu.dot_dimension_numbers<[1], [0], [0], [1], [0, 0, 1, 1], [], []>} : vector<8x256xbf16>, vector<256x1024xbf16>, vector<8x1024xf32> -> vector<8x1024xf32>
    %120 = arith.addf %117, %119 : vector<8x1024xf32>
    %121 = vector.extract_strided_slice %120 {offsets = [0, 0], sizes = [8, 256], strides = [1, 1]} : vector<8x1024xf32> to vector<8x256xf32>
    %122 = arith.negf %121 : vector<8x256xf32>
    %123 = math.exp %122 : vector<8x256xf32>
    %cst_46 = arith.constant 1.000000e+00 : f32
    %124 = vector.broadcast %cst_46 : f32 to vector<8x256xf32>
    %125 = arith.addf %124, %123 : vector<8x256xf32>
    %126 = arith.divf %124, %125 : vector<8x256xf32>
    %127 = vector.extract_strided_slice %120 {offsets = [0, 256], sizes = [8, 256], strides = [1, 1]} : vector<8x1024xf32> to vector<8x256xf32>
    %128 = arith.negf %127 : vector<8x256xf32>
    %129 = math.exp %128 : vector<8x256xf32>
    %cst_47 = arith.constant 1.000000e+00 : f32
    %130 = vector.broadcast %cst_47 : f32 to vector<8x256xf32>
    %131 = arith.addf %130, %129 : vector<8x256xf32>
    %132 = arith.divf %130, %131 : vector<8x256xf32>
    %133 = vector.extract_strided_slice %120 {offsets = [0, 512], sizes = [8, 256], strides = [1, 1]} : vector<8x1024xf32> to vector<8x256xf32>
    %134 = math.tanh %133 : vector<8x256xf32>
    %135 = vector.extract_strided_slice %120 {offsets = [0, 768], sizes = [8, 256], strides = [1, 1]} : vector<8x1024xf32> to vector<8x256xf32>
    %136 = arith.negf %135 : vector<8x256xf32>
    %137 = math.exp %136 : vector<8x256xf32>
    %cst_48 = arith.constant 1.000000e+00 : f32
    %138 = vector.broadcast %cst_48 : f32 to vector<8x256xf32>
    %139 = arith.addf %138, %137 : vector<8x256xf32>
    %140 = arith.divf %138, %139 : vector<8x256xf32>
    %141 = arith.mulf %132, %108 : vector<8x256xf32>
    %142 = arith.mulf %126, %134 : vector<8x256xf32>
    %143 = arith.addf %141, %142 : vector<8x256xf32>
    %144 = math.tanh %143 : vector<8x256xf32>
    %145 = arith.mulf %140, %144 : vector<8x256xf32>
    %cst_49 = arith.constant 0.000000e+00 : f32
    %146 = vector.broadcast %cst_49 : f32 to vector<8x256xf32>
    %147 = arith.maximumf %145, %146 : vector<8x256xf32>
    %c3_50 = arith.constant 3 : index
    %c0_51 = arith.constant 0 : index
    %c0_52 = arith.constant 0 : index
    %148 = vector.load %arg11[%c3_50, %c0_51, %c0_52] : memref<8x8x256xf32, #tpu.memory_space<vmem>>, vector<1x8x256xf32>
    %149 = vector.shape_cast %148 : vector<1x8x256xf32> to vector<8x256xf32>
    %150 = vector.shape_cast %147 : vector<8x256xf32> to vector<1x8x256xf32>
    tpu.vector_store %arg11[%c3_50, %c0_51, %c0_52], %150 {strides = array<i32>} : memref<8x8x256xf32, #tpu.memory_space<vmem>>, vector<1x8x256xf32>,
    %c4 = arith.constant 4 : index
    %c0_53 = arith.constant 0 : index
    %c0_54 = arith.constant 0 : index
    %151 = vector.load %arg10[%c4, %c0_53, %c0_54] : memref<8x8x1024xf32, #tpu.memory_space<vmem>>, vector<1x8x1024xf32>
    %152 = vector.shape_cast %151 : vector<1x8x1024xf32> to vector<8x1024xf32>
    %153 = arith.truncf %145 : vector<8x256xf32> to vector<8x256xbf16>
    %cst_55 = arith.constant dense<0.000000e+00> : vector<8x1024xf32>
    %154 = tpu.matmul %153, %8, %cst_55 {dimension_numbers = #tpu.dot_dimension_numbers<[1], [0], [0], [1], [0, 0, 1, 1], [], []>} : vector<8x256xbf16>, vector<256x1024xbf16>, vector<8x1024xf32> -> vector<8x1024xf32>
    %155 = arith.addf %152, %154 : vector<8x1024xf32>
    %156 = vector.extract_strided_slice %155 {offsets = [0, 0], sizes = [8, 256], strides = [1, 1]} : vector<8x1024xf32> to vector<8x256xf32>
    %157 = arith.negf %156 : vector<8x256xf32>
    %158 = math.exp %157 : vector<8x256xf32>
    %cst_56 = arith.constant 1.000000e+00 : f32
    %159 = vector.broadcast %cst_56 : f32 to vector<8x256xf32>
    %160 = arith.addf %159, %158 : vector<8x256xf32>
    %161 = arith.divf %159, %160 : vector<8x256xf32>
    %162 = vector.extract_strided_slice %155 {offsets = [0, 256], sizes = [8, 256], strides = [1, 1]} : vector<8x1024xf32> to vector<8x256xf32>
    %163 = arith.negf %162 : vector<8x256xf32>
    %164 = math.exp %163 : vector<8x256xf32>
    %cst_57 = arith.constant 1.000000e+00 : f32
    %165 = vector.broadcast %cst_57 : f32 to vector<8x256xf32>
    %166 = arith.addf %165, %164 : vector<8x256xf32>
    %167 = arith.divf %165, %166 : vector<8x256xf32>
    %168 = vector.extract_strided_slice %155 {offsets = [0, 512], sizes = [8, 256], strides = [1, 1]} : vector<8x1024xf32> to vector<8x256xf32>
    %169 = math.tanh %168 : vector<8x256xf32>
    %170 = vector.extract_strided_slice %155 {offsets = [0, 768], sizes = [8, 256], strides = [1, 1]} : vector<8x1024xf32> to vector<8x256xf32>
    %171 = arith.negf %170 : vector<8x256xf32>
    %172 = math.exp %171 : vector<8x256xf32>
    %cst_58 = arith.constant 1.000000e+00 : f32
    %173 = vector.broadcast %cst_58 : f32 to vector<8x256xf32>
    %174 = arith.addf %173, %172 : vector<8x256xf32>
    %175 = arith.divf %173, %174 : vector<8x256xf32>
    %176 = arith.mulf %167, %143 : vector<8x256xf32>
    %177 = arith.mulf %161, %169 : vector<8x256xf32>
    %178 = arith.addf %176, %177 : vector<8x256xf32>
    %179 = math.tanh %178 : vector<8x256xf32>
    %180 = arith.mulf %175, %179 : vector<8x256xf32>
    %cst_59 = arith.constant 0.000000e+00 : f32
    %181 = vector.broadcast %cst_59 : f32 to vector<8x256xf32>
    %182 = arith.maximumf %180, %181 : vector<8x256xf32>
    %c4_60 = arith.constant 4 : index
    %c0_61 = arith.constant 0 : index
    %c0_62 = arith.constant 0 : index
    %183 = vector.load %arg11[%c4_60, %c0_61, %c0_62] : memref<8x8x256xf32, #tpu.memory_space<vmem>>, vector<1x8x256xf32>
    %184 = vector.shape_cast %183 : vector<1x8x256xf32> to vector<8x256xf32>
    %185 = vector.shape_cast %182 : vector<8x256xf32> to vector<1x8x256xf32>
    tpu.vector_store %arg11[%c4_60, %c0_61, %c0_62], %185 {strides = array<i32>} : memref<8x8x256xf32, #tpu.memory_space<vmem>>, vector<1x8x256xf32>,
    %c5 = arith.constant 5 : index
    %c0_63 = arith.constant 0 : index
    %c0_64 = arith.constant 0 : index
    %186 = vector.load %arg10[%c5, %c0_63, %c0_64] : memref<8x8x1024xf32, #tpu.memory_space<vmem>>, vector<1x8x1024xf32>
    %187 = vector.shape_cast %186 : vector<1x8x1024xf32> to vector<8x1024xf32>
    %188 = arith.truncf %180 : vector<8x256xf32> to vector<8x256xbf16>
    %cst_65 = arith.constant dense<0.000000e+00> : vector<8x1024xf32>
    %189 = tpu.matmul %188, %8, %cst_65 {dimension_numbers = #tpu.dot_dimension_numbers<[1], [0], [0], [1], [0, 0, 1, 1], [], []>} : vector<8x256xbf16>, vector<256x1024xbf16>, vector<8x1024xf32> -> vector<8x1024xf32>
    %190 = arith.addf %187, %189 : vector<8x1024xf32>
    %191 = vector.extract_strided_slice %190 {offsets = [0, 0], sizes = [8, 256], strides = [1, 1]} : vector<8x1024xf32> to vector<8x256xf32>
    %192 = arith.negf %191 : vector<8x256xf32>
    %193 = math.exp %192 : vector<8x256xf32>
    %cst_66 = arith.constant 1.000000e+00 : f32
    %194 = vector.broadcast %cst_66 : f32 to vector<8x256xf32>
    %195 = arith.addf %194, %193 : vector<8x256xf32>
    %196 = arith.divf %194, %195 : vector<8x256xf32>
    %197 = vector.extract_strided_slice %190 {offsets = [0, 256], sizes = [8, 256], strides = [1, 1]} : vector<8x1024xf32> to vector<8x256xf32>
    %198 = arith.negf %197 : vector<8x256xf32>
    %199 = math.exp %198 : vector<8x256xf32>
    %cst_67 = arith.constant 1.000000e+00 : f32
    %200 = vector.broadcast %cst_67 : f32 to vector<8x256xf32>
    %201 = arith.addf %200, %199 : vector<8x256xf32>
    %202 = arith.divf %200, %201 : vector<8x256xf32>
    %203 = vector.extract_strided_slice %190 {offsets = [0, 512], sizes = [8, 256], strides = [1, 1]} : vector<8x1024xf32> to vector<8x256xf32>
    %204 = math.tanh %203 : vector<8x256xf32>
    %205 = vector.extract_strided_slice %190 {offsets = [0, 768], sizes = [8, 256], strides = [1, 1]} : vector<8x1024xf32> to vector<8x256xf32>
    %206 = arith.negf %205 : vector<8x256xf32>
    %207 = math.exp %206 : vector<8x256xf32>
    %cst_68 = arith.constant 1.000000e+00 : f32
    %208 = vector.broadcast %cst_68 : f32 to vector<8x256xf32>
    %209 = arith.addf %208, %207 : vector<8x256xf32>
    %210 = arith.divf %208, %209 : vector<8x256xf32>
    %211 = arith.mulf %202, %178 : vector<8x256xf32>
    %212 = arith.mulf %196, %204 : vector<8x256xf32>
    %213 = arith.addf %211, %212 : vector<8x256xf32>
    %214 = math.tanh %213 : vector<8x256xf32>
    %215 = arith.mulf %210, %214 : vector<8x256xf32>
    %cst_69 = arith.constant 0.000000e+00 : f32
    %216 = vector.broadcast %cst_69 : f32 to vector<8x256xf32>
    %217 = arith.maximumf %215, %216 : vector<8x256xf32>
    %c5_70 = arith.constant 5 : index
    %c0_71 = arith.constant 0 : index
    %c0_72 = arith.constant 0 : index
    %218 = vector.load %arg11[%c5_70, %c0_71, %c0_72] : memref<8x8x256xf32, #tpu.memory_space<vmem>>, vector<1x8x256xf32>
    %219 = vector.shape_cast %218 : vector<1x8x256xf32> to vector<8x256xf32>
    %220 = vector.shape_cast %217 : vector<8x256xf32> to vector<1x8x256xf32>
    tpu.vector_store %arg11[%c5_70, %c0_71, %c0_72], %220 {strides = array<i32>} : memref<8x8x256xf32, #tpu.memory_space<vmem>>, vector<1x8x256xf32>,
    %c6 = arith.constant 6 : index
    %c0_73 = arith.constant 0 : index
    %c0_74 = arith.constant 0 : index
    %221 = vector.load %arg10[%c6, %c0_73, %c0_74] : memref<8x8x1024xf32, #tpu.memory_space<vmem>>, vector<1x8x1024xf32>
    %222 = vector.shape_cast %221 : vector<1x8x1024xf32> to vector<8x1024xf32>
    %223 = arith.truncf %215 : vector<8x256xf32> to vector<8x256xbf16>
    %cst_75 = arith.constant dense<0.000000e+00> : vector<8x1024xf32>
    %224 = tpu.matmul %223, %8, %cst_75 {dimension_numbers = #tpu.dot_dimension_numbers<[1], [0], [0], [1], [0, 0, 1, 1], [], []>} : vector<8x256xbf16>, vector<256x1024xbf16>, vector<8x1024xf32> -> vector<8x1024xf32>
    %225 = arith.addf %222, %224 : vector<8x1024xf32>
    %226 = vector.extract_strided_slice %225 {offsets = [0, 0], sizes = [8, 256], strides = [1, 1]} : vector<8x1024xf32> to vector<8x256xf32>
    %227 = arith.negf %226 : vector<8x256xf32>
    %228 = math.exp %227 : vector<8x256xf32>
    %cst_76 = arith.constant 1.000000e+00 : f32
    %229 = vector.broadcast %cst_76 : f32 to vector<8x256xf32>
    %230 = arith.addf %229, %228 : vector<8x256xf32>
    %231 = arith.divf %229, %230 : vector<8x256xf32>
    %232 = vector.extract_strided_slice %225 {offsets = [0, 256], sizes = [8, 256], strides = [1, 1]} : vector<8x1024xf32> to vector<8x256xf32>
    %233 = arith.negf %232 : vector<8x256xf32>
    %234 = math.exp %233 : vector<8x256xf32>
    %cst_77 = arith.constant 1.000000e+00 : f32
    %235 = vector.broadcast %cst_77 : f32 to vector<8x256xf32>
    %236 = arith.addf %235, %234 : vector<8x256xf32>
    %237 = arith.divf %235, %236 : vector<8x256xf32>
    %238 = vector.extract_strided_slice %225 {offsets = [0, 512], sizes = [8, 256], strides = [1, 1]} : vector<8x1024xf32> to vector<8x256xf32>
    %239 = math.tanh %238 : vector<8x256xf32>
    %240 = vector.extract_strided_slice %225 {offsets = [0, 768], sizes = [8, 256], strides = [1, 1]} : vector<8x1024xf32> to vector<8x256xf32>
    %241 = arith.negf %240 : vector<8x256xf32>
    %242 = math.exp %241 : vector<8x256xf32>
    %cst_78 = arith.constant 1.000000e+00 : f32
    %243 = vector.broadcast %cst_78 : f32 to vector<8x256xf32>
    %244 = arith.addf %243, %242 : vector<8x256xf32>
    %245 = arith.divf %243, %244 : vector<8x256xf32>
    %246 = arith.mulf %237, %213 : vector<8x256xf32>
    %247 = arith.mulf %231, %239 : vector<8x256xf32>
    %248 = arith.addf %246, %247 : vector<8x256xf32>
    %249 = math.tanh %248 : vector<8x256xf32>
    %250 = arith.mulf %245, %249 : vector<8x256xf32>
    %cst_79 = arith.constant 0.000000e+00 : f32
    %251 = vector.broadcast %cst_79 : f32 to vector<8x256xf32>
    %252 = arith.maximumf %250, %251 : vector<8x256xf32>
    %c6_80 = arith.constant 6 : index
    %c0_81 = arith.constant 0 : index
    %c0_82 = arith.constant 0 : index
    %253 = vector.load %arg11[%c6_80, %c0_81, %c0_82] : memref<8x8x256xf32, #tpu.memory_space<vmem>>, vector<1x8x256xf32>
    %254 = vector.shape_cast %253 : vector<1x8x256xf32> to vector<8x256xf32>
    %255 = vector.shape_cast %252 : vector<8x256xf32> to vector<1x8x256xf32>
    tpu.vector_store %arg11[%c6_80, %c0_81, %c0_82], %255 {strides = array<i32>} : memref<8x8x256xf32, #tpu.memory_space<vmem>>, vector<1x8x256xf32>,
    %c7 = arith.constant 7 : index
    %c0_83 = arith.constant 0 : index
    %c0_84 = arith.constant 0 : index
    %256 = vector.load %arg10[%c7, %c0_83, %c0_84] : memref<8x8x1024xf32, #tpu.memory_space<vmem>>, vector<1x8x1024xf32>
    %257 = vector.shape_cast %256 : vector<1x8x1024xf32> to vector<8x1024xf32>
    %258 = arith.truncf %250 : vector<8x256xf32> to vector<8x256xbf16>
    %cst_85 = arith.constant dense<0.000000e+00> : vector<8x1024xf32>
    %259 = tpu.matmul %258, %8, %cst_85 {dimension_numbers = #tpu.dot_dimension_numbers<[1], [0], [0], [1], [0, 0, 1, 1], [], []>} : vector<8x256xbf16>, vector<256x1024xbf16>, vector<8x1024xf32> -> vector<8x1024xf32>
    %260 = arith.addf %257, %259 : vector<8x1024xf32>
    %261 = vector.extract_strided_slice %260 {offsets = [0, 0], sizes = [8, 256], strides = [1, 1]} : vector<8x1024xf32> to vector<8x256xf32>
    %262 = arith.negf %261 : vector<8x256xf32>
    %263 = math.exp %262 : vector<8x256xf32>
    %cst_86 = arith.constant 1.000000e+00 : f32
    %264 = vector.broadcast %cst_86 : f32 to vector<8x256xf32>
    %265 = arith.addf %264, %263 : vector<8x256xf32>
    %266 = arith.divf %264, %265 : vector<8x256xf32>
    %267 = vector.extract_strided_slice %260 {offsets = [0, 256], sizes = [8, 256], strides = [1, 1]} : vector<8x1024xf32> to vector<8x256xf32>
    %268 = arith.negf %267 : vector<8x256xf32>
    %269 = math.exp %268 : vector<8x256xf32>
    %cst_87 = arith.constant 1.000000e+00 : f32
    %270 = vector.broadcast %cst_87 : f32 to vector<8x256xf32>
    %271 = arith.addf %270, %269 : vector<8x256xf32>
    %272 = arith.divf %270, %271 : vector<8x256xf32>
    %273 = vector.extract_strided_slice %260 {offsets = [0, 512], sizes = [8, 256], strides = [1, 1]} : vector<8x1024xf32> to vector<8x256xf32>
    %274 = math.tanh %273 : vector<8x256xf32>
    %275 = vector.extract_strided_slice %260 {offsets = [0, 768], sizes = [8, 256], strides = [1, 1]} : vector<8x1024xf32> to vector<8x256xf32>
    %276 = arith.negf %275 : vector<8x256xf32>
    %277 = math.exp %276 : vector<8x256xf32>
    %cst_88 = arith.constant 1.000000e+00 : f32
    %278 = vector.broadcast %cst_88 : f32 to vector<8x256xf32>
    %279 = arith.addf %278, %277 : vector<8x256xf32>
    %280 = arith.divf %278, %279 : vector<8x256xf32>
    %281 = arith.mulf %272, %248 : vector<8x256xf32>
    %282 = arith.mulf %266, %274 : vector<8x256xf32>
    %283 = arith.addf %281, %282 : vector<8x256xf32>
    %284 = math.tanh %283 : vector<8x256xf32>
    %285 = arith.mulf %280, %284 : vector<8x256xf32>
    %cst_89 = arith.constant 0.000000e+00 : f32
    %286 = vector.broadcast %cst_89 : f32 to vector<8x256xf32>
    %287 = arith.maximumf %285, %286 : vector<8x256xf32>
    %c7_90 = arith.constant 7 : index
    %c0_91 = arith.constant 0 : index
    %c0_92 = arith.constant 0 : index
    %288 = vector.load %arg11[%c7_90, %c0_91, %c0_92] : memref<8x8x256xf32, #tpu.memory_space<vmem>>, vector<1x8x256xf32>
    %289 = vector.shape_cast %288 : vector<1x8x256xf32> to vector<8x256xf32>
    %290 = vector.shape_cast %287 : vector<8x256xf32> to vector<1x8x256xf32>
    tpu.vector_store %arg11[%c7_90, %c0_91, %c0_92], %290 {strides = array<i32>} : memref<8x8x256xf32, #tpu.memory_space<vmem>>, vector<1x8x256xf32>,
    %c0_93 = arith.constant 0 : index
    %291 = memref.load %arg0[%c0_93] : memref<3xi32, #tpu.memory_space<smem>>
    %292 = arith.index_cast %291 : i32 to index
    %c0_94 = arith.constant 0 : index
    %c0_95 = arith.constant 0 : index
    %293 = vector.load %arg11[%292, %c0_94, %c0_95] : memref<8x8x256xf32, #tpu.memory_space<vmem>>, vector<1x8x256xf32>
    %294 = vector.shape_cast %293 : vector<1x8x256xf32> to vector<8x256xf32>
    %c1_96 = arith.constant 1 : index
    %295 = memref.load %arg0[%c1_96] : memref<3xi32, #tpu.memory_space<smem>>
    %296 = arith.index_cast %295 : i32 to index
    %c0_97 = arith.constant 0 : index
    %c0_98 = arith.constant 0 : index
    %297 = vector.load %arg11[%296, %c0_97, %c0_98] : memref<8x8x256xf32, #tpu.memory_space<vmem>>, vector<1x8x256xf32>
    %298 = vector.shape_cast %297 : vector<1x8x256xf32> to vector<8x256xf32>
    %c2_99 = arith.constant 2 : index
    %299 = memref.load %arg0[%c2_99] : memref<3xi32, #tpu.memory_space<smem>>
    %300 = arith.index_cast %299 : i32 to index
    %c0_100 = arith.constant 0 : index
    %c0_101 = arith.constant 0 : index
    %301 = vector.load %arg11[%300, %c0_100, %c0_101] : memref<8x8x256xf32, #tpu.memory_space<vmem>>, vector<1x8x256xf32>
    %302 = vector.shape_cast %301 : vector<1x8x256xf32> to vector<8x256xf32>
    %303 = tpu.concatenate %294, %298, %302 in 0 : vector<8x256xf32>, vector<8x256xf32>, vector<8x256xf32> -> vector<24x256xf32>
    %304 = arith.truncf %303 : vector<24x256xf32> to vector<24x256xbf16>
    %c0_102 = arith.constant 0 : index
    %c0_103 = arith.constant 0 : index
    %305 = vector.load %arg6[%c0_102, %c0_103] : memref<256x128xbf16, #tpu.memory_space<vmem>>, vector<256x128xbf16>
    %cst_104 = arith.constant dense<0.000000e+00> : vector<24x128xf32>
    %306 = tpu.matmul %304, %305, %cst_104 {dimension_numbers = #tpu.dot_dimension_numbers<[1], [0], [0], [1], [0, 0, 1, 1], [], []>} : vector<24x256xbf16>, vector<256x128xbf16>, vector<24x128xf32> -> vector<24x128xf32>
    %c0_105 = arith.constant 0 : index
    %c0_106 = arith.constant 0 : index
    %307 = vector.load %arg7[%c0_105, %c0_106] : memref<1x128xf32, #tpu.memory_space<vmem>>, vector<1x128xf32>
    %308 = vector.broadcast %307 : vector<1x128xf32> to vector<24x128xf32>
    %309 = arith.addf %306, %308 : vector<24x128xf32>
    %cst_107 = arith.constant 0.000000e+00 : f32
    %310 = vector.broadcast %cst_107 : f32 to vector<24x128xf32>
    %311 = arith.maximumf %309, %310 : vector<24x128xf32>
    %c0_108 = arith.constant 0 : index
    %c0_109 = arith.constant 0 : index
    %312 = vector.load %arg8[%c0_108, %c0_109] : memref<1x128xf32, #tpu.memory_space<vmem>>, vector<1x128xf32>
    %313 = vector.broadcast %312 : vector<1x128xf32> to vector<24x128xf32>
    %314 = arith.mulf %311, %313 : vector<24x128xf32>
    %cst_110 = arith.constant dense<0.000000e+00> : vector<24xf32>
    %315 = vector.multi_reduction <add>, %314, %cst_110 [1] : vector<24x128xf32> to vector<24xf32>
    %316 = vector.shape_cast %315 : vector<24xf32> to vector<24x1xf32>
    %c0_111 = arith.constant 0 : index
    %317 = memref.load %arg1[%c0_111] : memref<1xf32, #tpu.memory_space<smem>>
    %318 = vector.broadcast %317 : f32 to vector<24x1xf32>
    %319 = arith.addf %316, %318 : vector<24x1xf32>
    %320 = arith.negf %319 : vector<24x1xf32>
    %321 = math.exp %320 : vector<24x1xf32>
    %cst_112 = arith.constant 1.000000e+00 : f32
    %322 = vector.broadcast %cst_112 : f32 to vector<24x1xf32>
    %323 = arith.addf %322, %321 : vector<24x1xf32>
    %324 = arith.divf %322, %323 : vector<24x1xf32>
    %c0_113 = arith.constant 0 : index
    %c0_114 = arith.constant 0 : index
    %325 = vector.load %arg9[%c0_113, %c0_114] : memref<24x1xf32, #tpu.memory_space<vmem>>, vector<24x1xf32>
    tpu.vector_store %arg9[%c0_113, %c0_114], %324 {strides = array<i32>} : memref<24x1xf32, #tpu.memory_space<vmem>>, vector<24x1xf32>,
    return
  }
}

</mosaic_0001>

<bundles_post_ra>
// kernel: memorizer_forward.1
= control target key start
LH: loop header
LB: loop body
LE: loop exit
PB: predicated region body
PF: predicated region fallthrough
CT: control target
= control target key end

     0   :  { %15 = vsyncpa [#allocation7], 0  ;;  %s9466_s0 = inlined_call_operand.vmem [shape: s32[3], index: 0, kind: input, shape index: {}]   ;;  %s9467_s1 = inlined_call_operand.<no memory space> [shape: f32[1], index: 1, kind: input, shape index: {}]   ;;  %s9468_s2 = inlined_call_operand.vmem [shape: bf16[64,640], index: 2, kind: input, shape index: {}]   ;;  %s9469_s3 = inlined_call_operand.hbm [shape: bf16[640,1024], index: 3, kind: input, shape index: {}]   ;;  %s9470_s4 = inlined_call_operand.hbm [shape: f32[1,1024], index: 4, kind: input, shape index: {}]   ;;  %s9471_s5 = inlined_call_operand.hbm [shape: bf16[256,1024], index: 5, kind: input, shape index: {}]   ;;  %s9472_s6 = inlined_call_operand.hbm [shape: bf16[256,128], index: 6, kind: input, shape index: {}]   ;;  %s9473_s7 = inlined_call_operand.hbm [shape: f32[1,128], index: 7, kind: input, shape index: {}]   ;;  %s9474_s8 = inlined_call_operand.hbm [shape: f32[1,128], index: 8, kind: input, shape index: {}]   ;;  %s9475_s9 = inlined_call_operand.vmem [shape: f32[24,1], index: 9, kind: output, shape index: {}]  }
   0x1   :  { %16 = vsyncpa [#allocation6], 0 }
   0x2   :  { %17 = vsyncpa [#allocation10], 0 }
   0x3   :  { %18 = vsyncpa [#allocation13], 0 }
   0x4   :  { %19 = vsyncpa [#allocation16], 0  ;;  %s7342_s30 = smov [#allocation9]   ;;  %s7343_s11 = smov [#allocation12]  }
   0x5   :  { %s52_s10 = sshll.u32 %s7342_s30, 4  ;;  %s73_s12 = sshll.u32 %s7343_s11, 4  ;;  %s53_s10 = int_to_ptr.vmem [resolvable:$true] %s52_s10  ;;  %s7404_s12 = int_to_ptr.vmem [resolvable:$true] %s73_s12 }
   0x6   :  { %s7188_s15 = scalar_lea.hbm %s9470_s4, 128 }
   0x7   :  { %p7189_p0 = scmp.ne.s32.totalorder %s9470_s4, %s7188_s15  ;;  %p7192_p1 = scmp.lt.u32.totalorder %s7188_s15, %s9470_s4 }
   0x9   :  { %p7194_p2 = pnand %p7192_p1, %p7189_p0 }
   0xb   :  { %7197 = shalt.err (!%p7194_p2)
}
   0xc   :  { %s7198_s20 = scalar_lea.vmem %s53_s10, 128  ;;  %p7203_p4 = scmp.lt.s32.totalorder %s53_s10, %s53_s10 }
   0xd   :  { %p7199_p3 = scmp.ne.s32.totalorder %s53_s10, %s7198_s20  ;;  %p7204_p5 = scmp.lt.s32.totalorder %s7198_s20, %s7198_s20 }
   0xf   :  { %p7205_p6 = por %p7204_p5, %p7203_p4 }
  0x11   :  { %p7206_p7 = pnand %p7205_p6, %p7199_p3 }
  0x13   :  { %7209 = shalt.err (!%p7206_p7)
}
  0x14   :  { %55 = dma.hbm_to_vmem [thread:$0]  %s9470_s4, 128, %s53_s10, [#allocation10]  }
  0x15   :  { %s7210_s25 = scalar_lea.hbm %s9472_s6, 2048 }
  0x16   :  { %p7211_p8 = scmp.ne.s32.totalorder %s9472_s6, %s7210_s25  ;;  %p7214_p9 = scmp.lt.u32.totalorder %s7210_s25, %s9472_s6 }
  0x18   :  { %p7216_p10 = pnand %p7214_p9, %p7211_p8 }
  0x1a   :  { %7219 = shalt.err (!%p7216_p10)
}
  0x1b   :  { %s7220_s30 = scalar_lea.vmem %s7404_s12, 2048  ;;  %p7225_p12 = scmp.lt.s32.totalorder %s7404_s12, %s7404_s12 }
  0x1c   :  { %p7221_p11 = scmp.ne.s32.totalorder %s7404_s12, %s7220_s30  ;;  %p7226_p13 = scmp.lt.s32.totalorder %s7220_s30, %s7220_s30 }
  0x1e   :  { %p7227_p0 = por %p7226_p13, %p7225_p12 }
  0x20   :  { %p7228_p1 = pnand %p7227_p0, %p7221_p11 }
  0x22   :  { %7231 = shalt.err (!%p7228_p1)
}
  0x23   :  { %s7344_s4 = smov 64   ;;  %s7345_s10 = smov 4  }
  0x24   :  { %79 = dma.hbm_to_vmem [thread:$0]  %s9472_s6, 2048, %s7404_s12, [#allocation13], %s7344_s4, %s7344_s4, %s7345_s10  }
  0x25   :  { %s26_s16 = sshll.u32 %s9466_s0, 4  ;;  %s27_s16 = int_to_ptr.vmem [resolvable:$true] %s26_s16 }
  0x26   :  { %s7232_s17 = scalar_lea.vmem %s27_s16, 16  ;;  %p7237_p3 = scmp.lt.s32.totalorder %s27_s16, %s27_s16 }
  0x27   :  { %p7233_p2 = scmp.ne.s32.totalorder %s27_s16, %s7232_s17  ;;  %p7238_p4 = scmp.lt.s32.totalorder %s7232_s17, %s7232_s17 }
  0x29   :  { %p7239_p5 = por %p7238_p4, %p7237_p3 }
  0x2b   :  { %p7240_p6 = pnand %p7239_p5, %p7233_p2 }
  0x2d   :  { %7243 = shalt.err (!%p7240_p6)
}
  0x2e   :  { %s7346_s18 = smov [#allocation5]   ;;  %s7347_s19 = smov [#allocation8]  }
  0x2f   :  { %29 = dma.vmem_to_smem %s27_s16, 16, %s7346_s18, [#allocation7]  }
  0x30   :  { %s39_s20 = sshll.u32 %s7347_s19, 4  ;;  %s7244_s6 = scalar_lea.hbm %s9469_s3, 40960  ;;  %s40_s20 = int_to_ptr.vmem [resolvable:$true] %s39_s20 }
  0x31   :  { %p7245_p7 = scmp.ne.s32.totalorder %s9469_s3, %s7244_s6  ;;  %p7248_p8 = scmp.lt.u32.totalorder %s7244_s6, %s9469_s3 }
  0x33   :  { %p7250_p9 = pnand %p7248_p8, %p7245_p7 }
  0x35   :  { %7253 = shalt.err (!%p7250_p9)
}
  0x36   :  { %s7254_s25 = scalar_lea.vmem %s40_s20, 40960  ;;  %p7259_p11 = scmp.lt.s32.totalorder %s40_s20, %s40_s20 }
  0x37   :  { %p7255_p10 = scmp.ne.s32.totalorder %s40_s20, %s7254_s25  ;;  %p7260_p12 = scmp.lt.s32.totalorder %s7254_s25, %s7254_s25 }
  0x39   :  { %p7261_p13 = por %p7260_p12, %p7259_p11 }
  0x3b   :  { %p7262_p0 = pnand %p7261_p13, %p7255_p10 }
  0x3d   :  { %7265 = shalt.err (!%p7262_p0)
}
  0x3e   :  { %s7348_s26 = smov 512   ;;  %s7349_s27 = smov 32  }
  0x3f   :  { %45 = dma.hbm_to_vmem [thread:$0]  %s9469_s3, 40960, %s40_s20, [#allocation6], %s7348_s26, %s7348_s26, %s7349_s27  }
  0x40   :  { %s7350_s30 = smov [#allocation11]   ;;  %s7351_s10 = smov [#allocation14]  }
  0x41   :  { %s61_s4 = sshll.u32 %s7350_s30, 4  ;;  %s86_s11 = sshll.u32 %s7351_s10, 4  ;;  %s62_s4 = int_to_ptr.vmem [resolvable:$true] %s61_s4  ;;  %s87_s11 = int_to_ptr.vmem [resolvable:$true] %s86_s11 }
  0x42   :  { %s7266_s15 = scalar_lea.hbm %s9471_s5, 16384 }
  0x43   :  { %p7267_p1 = scmp.ne.s32.totalorder %s9471_s5, %s7266_s15  ;;  %p7270_p2 = scmp.lt.u32.totalorder %s7266_s15, %s9471_s5 }
  0x45   :  { %p7272_p3 = pnand %p7270_p2, %p7267_p1 }
  0x47   :  { %7275 = shalt.err (!%p7272_p3)
}
  0x48   :  { %s7276_s3 = scalar_lea.vmem %s62_s4, 16384  ;;  %p7281_p5 = scmp.lt.s32.totalorder %s62_s4, %s62_s4 }
  0x49   :  { %p7277_p4 = scmp.ne.s32.totalorder %s62_s4, %s7276_s3  ;;  %p7282_p6 = scmp.lt.s32.totalorder %s7276_s3, %s7276_s3 }
  0x4b   :  { %p7283_p7 = por %p7282_p6, %p7281_p5 }
  0x4d   :  { %p7284_p8 = pnand %p7283_p7, %p7277_p4 }
  0x4f   :  { %7287 = shalt.err (!%p7284_p8)
}
  0x50   :  { %67 = dma.hbm_to_vmem [thread:$0]  %s9471_s5, 16384, %s62_s4, [#allocation10], %s7348_s26, %s7348_s26, %s7349_s27  }
  0x51   :  { %s7288_s12 = scalar_lea.hbm %s9473_s7, 16 }
  0x52   :  { %p7289_p9 = scmp.ne.s32.totalorder %s9473_s7, %s7288_s12  ;;  %p7292_p10 = scmp.lt.u32.totalorder %s7288_s12, %s9473_s7 }
  0x54   :  { %p7294_p11 = pnand %p7292_p10, %p7289_p9 }
  0x56   :  { %7297 = shalt.err (!%p7294_p11)
}
  0x57   :  { %s7298_s28 = scalar_lea.vmem %s87_s11, 16  ;;  %s7302_s29 = scalar_lea.vmem %s87_s11, 32 }
  0x58   :  { %p7299_p12 = scmp.ne.s32.totalorder %s87_s11, %s7298_s28  ;;  %p7303_p13 = scmp.lt.s32.totalorder %s87_s11, %s87_s11 }
  0x59   :  { %p7304_p0 = scmp.lt.s32.totalorder %s7302_s29, %s7298_s28 }
  0x5b   :  { %p7305_p1 = por %p7304_p0, %p7303_p13 }
  0x5d   :  { %p7306_p2 = pnand %p7305_p1, %p7299_p12 }
  0x5f   :  { %7309 = shalt.err (!%p7306_p2)
}
  0x60   :  { %89 = dma.hbm_to_vmem [thread:$0]  %s9473_s7, 16, %s87_s11, [#allocation13]  }
  0x61   :  { %s7352_s27 = smov [#allocation15]   ;;  %s7310_s13 = scalar_lea.hbm %s9474_s8, 16 }
  0x62   :  { %s96_s30 = sshll.u32 %s7352_s27, 4  ;;  %p7311_p3 = scmp.ne.s32.totalorder %s9474_s8, %s7310_s13  ;;  %s97_s30 = int_to_ptr.vmem [resolvable:$true] %s96_s30 }
  0x63   :  { %p7314_p4 = scmp.lt.u32.totalorder %s7310_s13, %s9474_s8 }
  0x65   :  { %p7316_p5 = pnand %p7314_p4, %p7311_p3 }
  0x67   :  { %7319 = shalt.err (!%p7316_p5)
}
  0x68   :  { %s7320_s18 = scalar_lea.vmem %s97_s30, 16  ;;  %s7324_s7 = scalar_lea.vmem %s97_s30, 32 }
  0x69   :  { %p7321_p6 = scmp.ne.s32.totalorder %s97_s30, %s7320_s18  ;;  %p7325_p7 = scmp.lt.s32.totalorder %s97_s30, %s97_s30 }
  0x6a   :  { %p7326_p8 = scmp.lt.s32.totalorder %s7324_s7, %s7320_s18 }
  0x6c   :  { %p7327_p9 = por %p7326_p8, %p7325_p7 }
  0x6e   :  { %p7328_p10 = pnand %p7327_p9, %p7321_p6 }
  0x70   :  { %7331 = shalt.err (!%p7328_p10)
}
  0x71   :  { %99 = dma.hbm_to_vmem [thread:$0]  %s9474_s8, 16, %s97_s30, [#allocation16]  }
  0x72   :  { %7332 = dma.done.wait [#allocation7], 16  }
  0x73   :  { %7333 = vsyncadd [#allocation7], 4294967280 }
  0x74   :  { %7334 = dma.done.wait [#allocation6], 40960  }
  0x75   :  { %7335 = vsyncadd [#allocation6], 4294926336 }
  0x76   :  { %7336 = dma.done.wait [#allocation10], 16512  }
  0x77   :  { %7337 = vsyncadd [#allocation10], 4294950784 }
  0x78   :  { %7338 = dma.done.wait [#allocation13], 2064  }
  0x79   :  { %7339 = vsyncadd [#allocation13], 4294965232 }
  0x7a   :  { %7340 = dma.done.wait [#allocation16], 16  }
  0x7b   :  { %7341 = vsyncadd [#allocation16], 4294967280 }
  0x7c   :  { %121 = sfence }
  0x7d   :  { %v147_v0 = vld [vmem:[#allocation8] sm:$0xff]  ;;  %v9476_v8 = vmov 0   ;;  %s6589_s22 = sld [smem:[#allocation5 + $0x1]]  ;;  %s6592_s6 = sld [smem:[#allocation5 + $0x2]]  ;;  %vm6052_vm0 = vcmask 7168  }
  0x7e   :  { %v151_v1 = vld [vmem:[#allocation8 + $0x20] sm:$0xff]  ;;  %2391 = vmatprep.mubr.bf16.mxu1 %v9476_v8 }
  0x7f   :  { %v403_v2 = vld [vmem:[#allocation8 + $0x800] sm:$0xff]  ;;  %v6092_v3 = vcombine.high %v147_v0, %v151_v1  ;;  %v6091_v5 = vcombine.low %v147_v0, %v151_v1 }
  0x80   :  { %v407_v4 = vld [vmem:[#allocation8 + $0x820] sm:$0xff] }
  0x81   :  { %v155_v6 = vld [vmem:[#allocation8 + $0x40] sm:$0xff]  ;;  %v6348_v9 = vcombine.high %v403_v2, %v407_v4  ;;  %v6347_v10 = vcombine.low %v403_v2, %v407_v4  ;;  %2213 = vmatprep.subr.bf16.mxu0 %v6092_v3  ;;  %v148_v2 = vld [vmem:[#allocation8 + $0x8] sm:$0xff] }
  0x82   :  { %v159_v7 = vld [vmem:[#allocation8 + $0x60] sm:$0xff]  ;;  %2214 = vmatpush1.bf16.msra.mxu0 %v6091_v5  ;;  %v152_v3 = vld [vmem:[#allocation8 + $0x28] sm:$0xff] }
  0x83   :  { %v6100_v11 = vcombine.high %v155_v6, %v159_v7  ;;  %v411_v12 = vld [vmem:[#allocation8 + $0x840] sm:$0xff]  ;;  %2359 = vmatprep.subr.bf16.mxu1 %v6348_v9  ;;  %v6099_v19 = vcombine.low %v155_v6, %v159_v7  ;;  %v6094_v9 = vcombine.high %v148_v2, %v152_v3  ;;  %s6617_s23 = sshll.u32 %s6589_s22, 4  ;;  %s6618_s0 = sshll.u32 %s6592_s6, 4 }
  0x84   :  { %v415_v13 = vld [vmem:[#allocation8 + $0x860] sm:$0xff]  ;;  %2360 = vmatpush1.bf16.msra.mxu1 %v6347_v10  ;;  %s5814_s25 = scalar_lea.vmem [#allocation3], %s6617_s23  ;;  %s5820_s28 = scalar_lea.vmem [#allocation3], %s6618_s0 }
  0x85   :  { %v163_v14 = vld [vmem:[#allocation8 + $0x80] sm:$0xff]  ;;  %v6356_v15 = vcombine.high %v411_v12, %v415_v13  ;;  %2215 = vmatprep.subr.bf16.mxu0 %v6100_v11  ;;  %v6355_v20 = vcombine.low %v411_v12, %v415_v13  ;;  %v156_v11 = vld [vmem:[#allocation8 + $0x48] sm:$0xff] }
  0x86   :  { %v167_v16 = vld [vmem:[#allocation8 + $0xa0] sm:$0xff]  ;;  %2216 = vmatpush1.bf16.msra.mxu0 %v6099_v19  ;;  %v160_v12 = vld [vmem:[#allocation8 + $0x68] sm:$0xff] }
  0x87   :  { %v419_v17 = vld [vmem:[#allocation8 + $0x880] sm:$0xff]  ;;  %v6108_v21 = vcombine.high %v163_v14, %v167_v16  ;;  %2361 = vmatprep.subr.bf16.mxu1 %v6356_v15  ;;  %v6107_v27 = vcombine.low %v163_v14, %v167_v16  ;;  %v6093_v15 = vcombine.low %v148_v2, %v152_v3  ;;  %v6857_v2 = vld [vmem:[%s9468_s2 + $0x88] ss:$20 sps:$4 sm:$0xff]  }
  0x88   :  { %v423_v18 = vld [vmem:[#allocation8 + $0x8a0] sm:$0xff]  ;;  %2362 = vmatpush1.bf16.msra.mxu1 %v6355_v20  ;;  %v164_v20 = vld [vmem:[#allocation8 + $0x88] sm:$0xff] }
  0x89   :  { %v6364_v22 = vcombine.high %v419_v17, %v423_v18  ;;  %v171_v23 = vld [vmem:[#allocation8 + $0xc0] sm:$0xff]  ;;  %2217 = vmatprep.subr.bf16.mxu0 %v6108_v21  ;;  %v6363_v28 = vcombine.low %v419_v17, %v423_v18  ;;  %v6102_v17 = vcombine.high %v156_v11, %v160_v12  ;;  %v168_v21 = vld [vmem:[#allocation8 + $0xa8] sm:$0xff] }
  0x8a   :  { %v175_v24 = vld [vmem:[#allocation8 + $0xe0] sm:$0xff]  ;;  %2218 = vmatpush1.bf16.msra.mxu0 %v6107_v27 }
  0x8b   :  { %v427_v25 = vld [vmem:[#allocation8 + $0x8c0] sm:$0xff]  ;;  %v6116_v29 = vcombine.high %v171_v23, %v175_v24  ;;  %2363 = vmatprep.subr.bf16.mxu1 %v6364_v22  ;;  %v6115_v35 = vcombine.low %v171_v23, %v175_v24  ;;  %v6101_v23 = vcombine.low %v156_v11, %v160_v12 }
  0x8c   :  { %v431_v26 = vld [vmem:[#allocation8 + $0x8e0] sm:$0xff]  ;;  %2364 = vmatpush1.bf16.msra.mxu1 %v6363_v28  ;;  %v172_v28 = vld [vmem:[#allocation8 + $0xc8] sm:$0xff] }
  0x8d   :  { %v6372_v30 = vcombine.high %v427_v25, %v431_v26  ;;  %v179_v31 = vld [vmem:[#allocation8 + $0x100] sm:$0xff]  ;;  %2219 = vmatprep.subr.bf16.mxu0 %v6116_v29  ;;  %v6371_v36 = vcombine.low %v427_v25, %v431_v26  ;;  %v6110_v25 = vcombine.high %v164_v20, %v168_v21  ;;  %v176_v29 = vld [vmem:[#allocation8 + $0xe8] sm:$0xff] }
  0x8e   :  { %v183_v32 = vld [vmem:[#allocation8 + $0x120] sm:$0xff]  ;;  %2220 = vmatpush1.bf16.msra.mxu0 %v6115_v35 }
  0x8f   :  { %v435_v33 = vld [vmem:[#allocation8 + $0x900] sm:$0xff]  ;;  %v6124_v37 = vcombine.high %v179_v31, %v183_v32  ;;  %2365 = vmatprep.subr.bf16.mxu1 %v6372_v30  ;;  %v6123_v43 = vcombine.low %v179_v31, %v183_v32  ;;  %v6855_v31 = vld [vmem:[%s9468_s2 + $0x38] ss:$20 sps:$4 sm:$0xff]   ;;  %v6109_v32 = vcombine.low %v164_v20, %v168_v21 }
  0x90   :  { %v439_v34 = vld [vmem:[#allocation8 + $0x920] sm:$0xff]  ;;  %2366 = vmatpush1.bf16.msra.mxu1 %v6371_v36 }
  0x91   :  { %v6380_v38 = vcombine.high %v435_v33, %v439_v34  ;;  %v187_v39 = vld [vmem:[#allocation8 + $0x140] sm:$0xff]  ;;  %2221 = vmatprep.subr.bf16.mxu0 %v6124_v37  ;;  %v6379_v44 = vcombine.low %v435_v33, %v439_v34  ;;  %v6118_v34 = vcombine.high %v172_v28, %v176_v29  ;;  %v180_v37 = vld [vmem:[#allocation8 + $0x108] sm:$0xff] }
  0x92   :  { %v191_v40 = vld [vmem:[#allocation8 + $0x160] sm:$0xff]  ;;  %2222 = vmatpush1.bf16.msra.mxu0 %v6123_v43 }
  0x93   :  { %v443_v41 = vld [vmem:[#allocation8 + $0x940] sm:$0xff]  ;;  %v6132_v45 = vcombine.high %v187_v39, %v191_v40  ;;  %2367 = vmatprep.subr.bf16.mxu1 %v6380_v38  ;;  %v6131_v51 = vcombine.low %v187_v39, %v191_v40  ;;  %v184_v38 = vld [vmem:[#allocation8 + $0x128] sm:$0xff]  ;;  %v6117_v40 = vcombine.low %v172_v28, %v176_v29 }
  0x94   :  { %v447_v42 = vld [vmem:[#allocation8 + $0x960] sm:$0xff]  ;;  %2368 = vmatpush1.bf16.msra.mxu1 %v6379_v44  ;;  %v232_v28 = vld [vmem:[#allocation8 + $0x2a8] sm:$0xff] }
  0x95   :  { %v6388_v46 = vcombine.high %v443_v41, %v447_v42  ;;  %v195_v47 = vld [vmem:[#allocation8 + $0x180] sm:$0xff]  ;;  %2223 = vmatprep.subr.bf16.mxu0 %v6132_v45  ;;  %v6387_v52 = vcombine.low %v443_v41, %v447_v42  ;;  %v6126_v42 = vcombine.high %v180_v37, %v184_v38  ;;  %v188_v45 = vld [vmem:[#allocation8 + $0x148] sm:$0xff] }
  0x96   :  { %v199_v48 = vld [vmem:[#allocation8 + $0x1a0] sm:$0xff]  ;;  %2224 = vmatpush1.bf16.msra.mxu0 %v6131_v51 }
  0x97   :  { %v451_v49 = vld [vmem:[#allocation8 + $0x980] sm:$0xff]  ;;  %v6140_v53 = vcombine.high %v195_v47, %v199_v48  ;;  %2369 = vmatprep.subr.bf16.mxu1 %v6388_v46  ;;  %v6139_v60 = vcombine.low %v195_v47, %v199_v48  ;;  %v192_v46 = vld [vmem:[#allocation8 + $0x168] sm:$0xff] }
  0x98   :  { %v455_v50 = vld [vmem:[#allocation8 + $0x9a0] sm:$0xff]  ;;  %2370 = vmatpush1.bf16.msra.mxu1 %v6387_v52  ;;  %v6134_v51 = vcombine.high %v188_v45, %v192_v46 }
  0x99   :  { %v203_v54 = vld [vmem:[#allocation8 + $0x1c0] sm:$0xff]  ;;  %v6396_v55 = vcombine.high %v451_v49, %v455_v50  ;;  %2225 = vmatprep.subr.bf16.mxu0 %v6140_v53  ;;  %v6395_v61 = vcombine.low %v451_v49, %v455_v50  ;;  %v6125_v49 = vcombine.low %v180_v37, %v184_v38  ;;  %v7524_v37 = vld [vmem:[%s9468_s2 + $0x28] ss:$20 sps:$4 sm:$0xff]  }
  0x9a   :  { %v207_v56 = vld [vmem:[#allocation8 + $0x1e0] sm:$0xff]  ;;  %2226 = vmatpush1.bf16.msra.mxu0 %v6139_v60 }
  0x9b   :  { %v459_v57 = vld [vmem:[#allocation8 + $0x9c0] sm:$0xff]  ;;  %v6148_v62 = vcombine.high %v203_v54, %v207_v56  ;;  %2371 = vmatprep.subr.bf16.mxu1 %v6396_v55  ;;  %v6147_v4 = vcombine.low %v203_v54, %v207_v56  ;;  %v196_v54 = vld [vmem:[#allocation8 + $0x188] sm:$0xff] }
  0x9c   :  { %v463_v58 = vld [vmem:[#allocation8 + $0x9e0] sm:$0xff]  ;;  %2372 = vmatpush1.bf16.msra.mxu1 %v6395_v61  ;;  %v200_v55 = vld [vmem:[#allocation8 + $0x1a8] sm:$0xff] }
  0x9d   :  { %v7490_v59 = vld [vmem:[%s9468_s2 + $0x4] ss:$20 sps:$4 sm:$0xff]   ;;  %v6404_v0 = vcombine.high %v459_v57, %v463_v58  ;;  %2227 = vmatprep.subr.bf16.mxu0 %v6148_v62  ;;  %v6403_v5 = vcombine.low %v459_v57, %v463_v58  ;;  %v6856_v48 = vld [vmem:[%s9468_s2 + $0x60] ss:$20 sps:$4 sm:$0xff]   ;;  %v6133_v57 = vcombine.low %v188_v45, %v192_v46  ;;  %v6142_v60 = vcombine.high %v196_v54, %v200_v55  ;;  %v244_v45 = vld [vmem:[#allocation8 + $0x308] sm:$0xff] }
  0x9e   :  { %v211_v63 = vld [vmem:[#allocation8 + $0x200] sm:$0xff]  ;;  %2245 = vmatprep.mubr.bf16.mxu0 %v7490_v59  ;;  %2228 = vmatpush1.bf16.msra.mxu0 %v6147_v4  ;;  %v6141_v3 = vcombine.low %v196_v54, %v200_v55  ;;  %v248_v46 = vld [vmem:[#allocation8 + $0x328] sm:$0xff] }
  0x9f   :  { %v215_v1 = vld [vmem:[#allocation8 + $0x220] sm:$0xff]  ;;  %2373 = vmatprep.subr.bf16.mxu1 %v6404_v0  ;;  %v208_v0 = vld [vmem:[#allocation8 + $0x1e8] sm:$0xff] }
  0xa0   :  { %v6156_v6 = vcombine.high %v211_v63, %v215_v1  ;;  %v219_v7 = vld [vmem:[#allocation8 + $0x240] sm:$0xff]  ;;  %v6155_v14 = vcombine.low %v211_v63, %v215_v1  ;;  %2374 = vmatpush1.bf16.msra.mxu1 %v6403_v5  ;;  %v204_v63 = vld [vmem:[#allocation8 + $0x1c8] sm:$0xff] }
  0xa1   :  { %v223_v10 = vld [vmem:[#allocation8 + $0x260] sm:$0xff]  ;;  %2432 = vmatprep.subr.bf16.mxu1 %v6094_v9  ;;  %v6150_v5 = vcombine.high %v204_v63, %v208_v0  ;;  %v212_v9 = vld [vmem:[#allocation8 + $0x208] sm:$0xff]  ;;  %v6149_v12 = vcombine.low %v204_v63, %v208_v0 }
  0xa2   :  { %v6851_v13 = vld [vmem:[%s9468_s2 + $0x10] ss:$20 sps:$4 sm:$0xff]   ;;  %2229 = vmatprep.subr.bf16.mxu0 %v6156_v6  ;;  %v6164_v16 = vcombine.high %v219_v7, %v223_v10  ;;  %v6163_v22 = vcombine.low %v219_v7, %v223_v10  ;;  %v216_v10 = vld [vmem:[#allocation8 + $0x228] sm:$0xff] }
  0xa3   :  { %v227_v18 = vld [vmem:[#allocation8 + $0x280] sm:$0xff]  ;;  %2392 = vmatmul.mubr.bf16.vlgmr.msra.gmra.mrb[0].mxu1 %v6851_v13  ;;  %2230 = vmatpush1.bf16.msra.mxu0 %v6155_v14  ;;  %v6158_v14 = vcombine.high %v212_v9, %v216_v10  ;;  %v256_v54 = vld [vmem:[#allocation8 + $0x368] sm:$0xff] }
  0xa4   :  { %v231_v19 = vld [vmem:[#allocation8 + $0x2a0] sm:$0xff]  ;;  %2433 = vmatpush1.bf16.msra.mxu1 %v6093_v15  ;;  %2231 = vmatprep.subr.bf16.mxu0 %v6164_v16  ;;  %v260_v0 = vld [vmem:[#allocation8 + $0x388] sm:$0xff] }
  0xa5   :  { %v6172_v24 = vcombine.high %v227_v18, %v231_v19  ;;  %2434 = vmatprep.subr.bf16.mxu1 %v6102_v17  ;;  %v235_v26 = vld [vmem:[#allocation8 + $0x2c0] sm:$0xff]  ;;  %2401 = vmatprep.mubr.bf16.mxu1 %v9476_v8  ;;  %v6171_v30 = vcombine.low %v227_v18, %v231_v19  ;;  %v220_v18 = vld [vmem:[#allocation8 + $0x248] sm:$0xff] }
  0xa6   :  { %v239_v27 = vld [vmem:[#allocation8 + $0x2e0] sm:$0xff]  ;;  %v224_v19 = vld [vmem:[#allocation8 + $0x268] sm:$0xff] }
  0xa7   :  { %2232 = vmatpush1.bf16.msra.mxu0 %v6163_v22  ;;  %v6180_v33 = vcombine.high %v235_v26, %v239_v27  ;;  %v243_v35 = vld [vmem:[#allocation8 + $0x300] sm:$0xff]  ;;  %v6179_v39 = vcombine.low %v235_v26, %v239_v27  ;;  %v6157_v22 = vcombine.low %v212_v9, %v216_v10  ;;  %v228_v27 = vld [vmem:[#allocation8 + $0x288] sm:$0xff] }
  0xa8   :  { %2435 = vmatpush1.bf16.msra.mxu1 %v6101_v23  ;;  %2233 = vmatprep.subr.bf16.mxu0 %v6172_v24  ;;  %v247_v36 = vld [vmem:[#allocation8 + $0x320] sm:$0xff]  ;;  %v6166_v24 = vcombine.high %v220_v18, %v224_v19  ;;  %v272_v9 = vld [vmem:[#allocation8 + $0x3e8] sm:$0xff] }
  0xa9   :  { %2436 = vmatprep.subr.bf16.mxu1 %v6110_v25  ;;  %v6188_v41 = vcombine.high %v243_v35, %v247_v36  ;;  %v251_v43 = vld [vmem:[#allocation8 + $0x340] sm:$0xff]  ;;  %v6187_v47 = vcombine.low %v243_v35, %v247_v36  ;;  %v236_v35 = vld [vmem:[#allocation8 + $0x2c8] sm:$0xff] }
  0xaa   :  { %v255_v44 = vld [vmem:[#allocation8 + $0x360] sm:$0xff]  ;;  %v240_v36 = vld [vmem:[#allocation8 + $0x2e8] sm:$0xff] }
  0xab   :  { %2234 = vmatpush1.bf16.msra.mxu0 %v6171_v30  ;;  %2402 = vmatmul.mubr.bf16.gmra.mrb[4].mxu1 %v6855_v31  ;;  %v6196_v50 = vcombine.high %v251_v43, %v255_v44  ;;  %v259_v52 = vld [vmem:[#allocation8 + $0x380] sm:$0xff]  ;;  %v6195_v56 = vcombine.low %v251_v43, %v255_v44  ;;  %v6165_v30 = vcombine.low %v220_v18, %v224_v19  ;;  %v276_v19 = vld [vmem:[#allocation8 + $0x408] sm:$0xff] }
  0xac   :  { %2437 = vmatpush1.bf16.msra.mxu1 %v6109_v32  ;;  %2235 = vmatprep.subr.bf16.mxu0 %v6180_v33  ;;  %v263_v53 = vld [vmem:[#allocation8 + $0x3a0] sm:$0xff]  ;;  %v6174_v32 = vcombine.high %v228_v27, %v232_v28 }
  0xad   :  { %2438 = vmatprep.subr.bf16.mxu1 %v6118_v34  ;;  %2411 = vmatprep.mubr.bf16.mxu1 %v9476_v8  ;;  %v6204_v58 = vcombine.high %v259_v52, %v263_v53  ;;  %v267_v61 = vld [vmem:[#allocation8 + $0x3c0] sm:$0xff]  ;;  %v6203_v1 = vcombine.low %v259_v52, %v263_v53  ;;  %v252_v53 = vld [vmem:[#allocation8 + $0x348] sm:$0xff] }
  0xae   :  { %v271_v62 = vld [vmem:[#allocation8 + $0x3e0] sm:$0xff] }
  0xaf   :  { %2236 = vmatpush1.bf16.msra.mxu0 %v6179_v39  ;;  %v6212_v4 = vcombine.high %v267_v61, %v271_v62  ;;  %v275_v6 = vld [vmem:[#allocation8 + $0x400] sm:$0xff]  ;;  %v6211_v11 = vcombine.low %v267_v61, %v271_v62  ;;  %v7529_v39 = vld [vmem:[%s9468_s2 + $0x54] ss:$20 sps:$4 sm:$0xff]   ;;  %v6198_v61 = vcombine.high %v252_v53, %v256_v54 }
  0xb0   :  { %2439 = vmatpush1.bf16.msra.mxu1 %v6117_v40  ;;  %2237 = vmatprep.subr.bf16.mxu0 %v6188_v41  ;;  %v279_v7 = vld [vmem:[#allocation8 + $0x420] sm:$0xff]  ;;  %v6173_v40 = vcombine.low %v228_v27, %v232_v28  ;;  %v284_v28 = vld [vmem:[#allocation8 + $0x448] sm:$0xff] }
  0xb1   :  { %2440 = vmatprep.subr.bf16.mxu1 %v6126_v42  ;;  %v6220_v13 = vcombine.high %v275_v6, %v279_v7  ;;  %v283_v15 = vld [vmem:[#allocation8 + $0x440] sm:$0xff]  ;;  %v6219_v20 = vcombine.low %v275_v6, %v279_v7  ;;  %v6182_v42 = vcombine.high %v236_v35, %v240_v36  ;;  %v268_v7 = vld [vmem:[#allocation8 + $0x3c8] sm:$0xff] }
  0xb2   :  { %v287_v16 = vld [vmem:[#allocation8 + $0x460] sm:$0xff] }
  0xb3   :  { %2238 = vmatpush1.bf16.msra.mxu0 %v6187_v47  ;;  %2412 = vmatmul.mubr.bf16.gmra.mrb[8].mxu1 %v6856_v48  ;;  %v7512_v17 = vld [vmem:[%s9468_s2] ss:$20 sps:$4 sm:$0xff]   ;;  %v6228_v23 = vcombine.high %v283_v15, %v287_v16  ;;  %v6227_v29 = vcombine.low %v283_v15, %v287_v16  ;;  %v6181_v48 = vcombine.low %v236_v35, %v240_v36  ;;  %v7536_v55 = vld [vmem:[%s9468_s2 + $0x50] ss:$20 sps:$4 sm:$0xff]   ;;  %v292_v36 = vld [vmem:[#allocation8 + $0x488] sm:$0xff] }
  0xb4   :  { %2441 = vmatpush1.bf16.msra.mxu1 %v6125_v49  ;;  %2239 = vmatprep.subr.bf16.mxu0 %v6196_v50  ;;  %v7517_v21 = vld [vmem:[%s9468_s2 + $0x2c] ss:$20 sps:$4 sm:$0xff]   ;;  %v6190_v50 = vcombine.high %v244_v45, %v248_v46 }
  0xb5   :  { %2442 = vmatprep.subr.bf16.mxu1 %v6134_v51  ;;  %2421 = vmatprep.mubr.bf16.mxu1 %v9476_v8  ;;  %v291_v25 = vld [vmem:[#allocation8 + $0x480] sm:$0xff] }
  0xb6   :  { %v295_v26 = vld [vmem:[#allocation8 + $0x4a0] sm:$0xff] }
  0xb7   :  { %2240 = vmatpush1.bf16.msra.mxu0 %v6195_v56  ;;  %v6236_v31 = vcombine.high %v291_v25, %v295_v26  ;;  %v299_v33 = vld [vmem:[#allocation8 + $0x4c0] sm:$0xff]  ;;  %v6235_v38 = vcombine.low %v291_v25, %v295_v26 }
  0xb8   :  { %2443 = vmatpush1.bf16.msra.mxu1 %v6133_v57  ;;  %2241 = vmatprep.subr.bf16.mxu0 %v6204_v58  ;;  %v303_v34 = vld [vmem:[#allocation8 + $0x4e0] sm:$0xff]  ;;  %v7541_v57 = vld [vmem:[%s9468_s2 + $0x7c] ss:$20 sps:$4 sm:$0xff]   ;;  %v6189_v58 = vcombine.low %v244_v45, %v248_v46 }
  0xb9   :  { %2444 = vmatprep.subr.bf16.mxu1 %v6142_v60  ;;  %v6244_v41 = vcombine.high %v299_v33, %v303_v34  ;;  %v307_v43 = vld [vmem:[#allocation8 + $0x500] sm:$0xff]  ;;  %v6243_v47 = vcombine.low %v299_v33, %v303_v34 }
  0xba   :  { %v311_v44 = vld [vmem:[#allocation8 + $0x520] sm:$0xff] }
  0xbb   :  { %2242 = vmatpush1.bf16.msra.mxu0 %v6203_v1  ;;  %2422 = vmatmul.mubr.bf16.gmra.mrb[12].mxu1 %v6857_v2  ;;  %v6252_v49 = vcombine.high %v307_v43, %v311_v44  ;;  %v315_v51 = vld [vmem:[#allocation8 + $0x540] sm:$0xff]  ;;  %v6251_v56 = vcombine.low %v307_v43, %v311_v44  ;;  %v264_v1 = vld [vmem:[#allocation8 + $0x3a8] sm:$0xff] }
  0xbc   :  { %2445 = vmatpush1.bf16.msra.mxu1 %v6141_v3  ;;  %2243 = vmatprep.subr.bf16.mxu0 %v6212_v4  ;;  %v319_v52 = vld [vmem:[#allocation8 + $0x560] sm:$0xff]  ;;  %v6197_v4 = vcombine.low %v252_v53, %v256_v54  ;;  %v6206_v10 = vcombine.high %v260_v0, %v264_v1 }
  0xbd   :  { %2446 = vmatprep.subr.bf16.mxu1 %v6150_v5  ;;  %2464 = vmatprep.mubr.bf16.mxu1 %v7490_v59  ;;  %v6260_v60 = vcombine.high %v315_v51, %v319_v52  ;;  %v323_v62 = vld [vmem:[#allocation8 + $0x580] sm:$0xff]  ;;  %v6259_v2 = vcombine.low %v315_v51, %v319_v52 }
  0xbe   :  { %v327_v63 = vld [vmem:[#allocation8 + $0x5a0] sm:$0xff] }
  0xbf   :  { %2244 = vmatpush1.bf16.msra.mxu0 %v6211_v11  ;;  %v331_v3 = vld [vmem:[#allocation8 + $0x5c0] sm:$0xff]  ;;  %v6268_v5 = vcombine.high %v323_v62, %v327_v63  ;;  %v7548_v11 = vld [vmem:[%s9468_s2 + $0x78] ss:$20 sps:$4 sm:$0xff]  }
  0xc0   :  { %2447 = vmatpush1.bf16.msra.mxu1 %v6149_v12  ;;  %2286 = vmatprep.subr.bf16.mxu0 %v6220_v13  ;;  %v335_v6 = vld [vmem:[#allocation8 + $0x5e0] sm:$0xff]  ;;  %v6267_v13 = vcombine.low %v323_v62, %v327_v63 }
  0xc1   :  { %2448 = vmatprep.subr.bf16.mxu1 %v6158_v14  ;;  %v7553_v12 = vld [vmem:[%s9468_s2 + $0xc] ss:$20 sps:$4 sm:$0xff]   ;;  %v6205_v14 = vcombine.low %v260_v0, %v264_v1  ;;  %v6276_v15 = vcombine.high %v331_v3, %v335_v6 }
  0xc2   :  { %2246 = vmatmul.mubr.bf16.vlgmr.msra.gmra.mrb[0].mxu0 %v7512_v17  ;;  %v339_v16 = vld [vmem:[#allocation8 + $0x600] sm:$0xff] }
  0xc3   :  { %2287 = vmatpush1.bf16.msra.mxu0 %v6219_v20  ;;  %2255 = vmatprep.mubr.bf16.mxu0 %v7517_v21  ;;  %v343_v18 = vld [vmem:[#allocation8 + $0x620] sm:$0xff]  ;;  %v6214_v20 = vcombine.high %v268_v7, %v272_v9 }
  0xc4   :  { %2449 = vmatpush1.bf16.msra.mxu1 %v6157_v22  ;;  %2288 = vmatprep.subr.bf16.mxu0 %v6228_v23  ;;  %v280_v22 = vld [vmem:[#allocation8 + $0x428] sm:$0xff]  ;;  %v6275_v23 = vcombine.low %v331_v3, %v335_v6  ;;  %v6284_v25 = vcombine.high %v339_v16, %v343_v18  ;;  %v347_v26 = vld [vmem:[#allocation8 + $0x640] sm:$0xff] }
  0xc5   :  { %2450 = vmatprep.subr.bf16.mxu1 %v6166_v24  ;;  %v6213_v24 = vcombine.low %v268_v7, %v272_v9  ;;  %v351_v27 = vld [vmem:[#allocation8 + $0x660] sm:$0xff]  ;;  %v320_v3 = vld [vmem:[#allocation8 + $0x568] sm:$0xff] }
  0xc6   :  { %v6292_v33 = vcombine.high %v347_v26, %v351_v27  ;;  %v355_v34 = vld [vmem:[#allocation8 + $0x680] sm:$0xff] }
  0xc7   :  { %2289 = vmatpush1.bf16.msra.mxu0 %v6227_v29  ;;  %v6222_v29 = vcombine.high %v276_v19, %v280_v22  ;;  %v359_v35 = vld [vmem:[#allocation8 + $0x6a0] sm:$0xff] }
  0xc8   :  { %2451 = vmatpush1.bf16.msra.mxu1 %v6165_v30  ;;  %2290 = vmatprep.subr.bf16.mxu0 %v6236_v31  ;;  %v288_v30 = vld [vmem:[#allocation8 + $0x468] sm:$0xff]  ;;  %v6283_v31 = vcombine.low %v339_v16, %v343_v18  ;;  %v6300_v43 = vcombine.high %v355_v34, %v359_v35  ;;  %v363_v45 = vld [vmem:[#allocation8 + $0x6c0] sm:$0xff] }
  0xc9   :  { %2452 = vmatprep.subr.bf16.mxu1 %v6174_v32  ;;  %v6221_v32 = vcombine.low %v276_v19, %v280_v22  ;;  %v367_v46 = vld [vmem:[#allocation8 + $0x6e0] sm:$0xff] }
  0xca   :  { %2256 = vmatmul.mubr.bf16.gmra.mrb[4].mxu0 %v7524_v37  ;;  %v6308_v51 = vcombine.high %v363_v45, %v367_v46  ;;  %v371_v53 = vld [vmem:[#allocation8 + $0x700] sm:$0xff] }
  0xcb   :  { %2291 = vmatpush1.bf16.msra.mxu0 %v6235_v38  ;;  %2265 = vmatprep.mubr.bf16.mxu0 %v7529_v39  ;;  %v6230_v38 = vcombine.high %v284_v28, %v288_v30  ;;  %v375_v54 = vld [vmem:[#allocation8 + $0x720] sm:$0xff] }
  0xcc   :  { %2453 = vmatpush1.bf16.msra.mxu1 %v6173_v40  ;;  %2292 = vmatprep.subr.bf16.mxu0 %v6244_v41  ;;  %v296_v40 = vld [vmem:[#allocation8 + $0x4a8] sm:$0xff]  ;;  %v6291_v41 = vcombine.low %v347_v26, %v351_v27  ;;  %v6316_v62 = vcombine.high %v371_v53, %v375_v54  ;;  %v379_v0 = vld [vmem:[#allocation8 + $0x740] sm:$0xff] }
  0xcd   :  { %2454 = vmatprep.subr.bf16.mxu1 %v6182_v42  ;;  %v6229_v42 = vcombine.low %v284_v28, %v288_v30  ;;  %v6238_v44 = vcombine.high %v292_v36, %v296_v40  ;;  %v383_v1 = vld [vmem:[#allocation8 + $0x760] sm:$0xff]  ;;  %v153_v30 = vld [vmem:[#allocation8 + $0x30] sm:$0xff] }
  0xce   :  { %v6324_v6 = vcombine.high %v379_v0, %v383_v1  ;;  %v387_v9 = vld [vmem:[#allocation8 + $0x780] sm:$0xff] }
  0xcf   :  { %2293 = vmatpush1.bf16.msra.mxu0 %v6243_v47  ;;  %v300_v47 = vld [vmem:[#allocation8 + $0x4c8] sm:$0xff]  ;;  %v399_v22 = vld [vmem:[#allocation8 + $0x7e0] sm:$0xff] }
  0xd0   :  { %2455 = vmatpush1.bf16.msra.mxu1 %v6181_v48  ;;  %2294 = vmatprep.subr.bf16.mxu0 %v6252_v49  ;;  %v304_v48 = vld [vmem:[#allocation8 + $0x4e8] sm:$0xff]  ;;  %v6299_v49 = vcombine.low %v355_v34, %v359_v35 }
  0xd1   :  { %2456 = vmatprep.subr.bf16.mxu1 %v6190_v50  ;;  %v6237_v50 = vcombine.low %v292_v36, %v296_v40  ;;  %v6246_v52 = vcombine.high %v300_v47, %v304_v48  ;;  %v161_v40 = vld [vmem:[#allocation8 + $0x70] sm:$0xff] }
  0xd2   :  { %2266 = vmatmul.mubr.bf16.gmra.mrb[8].mxu0 %v7536_v55 }
  0xd3   :  { %2295 = vmatpush1.bf16.msra.mxu0 %v6251_v56  ;;  %2275 = vmatprep.mubr.bf16.mxu0 %v7541_v57  ;;  %v308_v56 = vld [vmem:[#allocation8 + $0x508] sm:$0xff] }
  0xd4   :  { %2457 = vmatpush1.bf16.msra.mxu1 %v6189_v58  ;;  %2296 = vmatprep.subr.bf16.mxu0 %v6260_v60  ;;  %v312_v58 = vld [vmem:[#allocation8 + $0x528] sm:$0xff]  ;;  %v6307_v60 = vcombine.low %v363_v45, %v367_v46 }
  0xd5   :  { %2458 = vmatprep.subr.bf16.mxu1 %v6198_v61  ;;  %v6245_v61 = vcombine.low %v300_v47, %v304_v48  ;;  %v6254_v63 = vcombine.high %v308_v56, %v312_v58  ;;  %v7573_v45 = vld [vmem:[%s9468_s2 + $0x34] ss:$20 sps:$4 sm:$0xff]  }
  0xd7   :  { %2297 = vmatpush1.bf16.msra.mxu0 %v6259_v2  ;;  %v316_v2 = vld [vmem:[#allocation8 + $0x548] sm:$0xff] }
  0xd8   :  { %2459 = vmatpush1.bf16.msra.mxu1 %v6197_v4  ;;  %2298 = vmatprep.subr.bf16.mxu0 %v6268_v5  ;;  %v6315_v4 = vcombine.low %v371_v53, %v375_v54  ;;  %v6253_v5 = vcombine.low %v308_v56, %v312_v58  ;;  %v6262_v7 = vcombine.high %v316_v2, %v320_v3 }
  0xd9   :  { %2460 = vmatprep.subr.bf16.mxu1 %v6206_v10  ;;  %v391_v10 = vld [vmem:[#allocation8 + $0x7a0] sm:$0xff]  ;;  %v6261_v16 = vcombine.low %v316_v2, %v320_v3  ;;  %v7585_v2 = vld [vmem:[%s9468_s2 + $0x5c] ss:$20 sps:$4 sm:$0xff]  }
  0xda   :  { %2276 = vmatmul.mubr.bf16.gmra.mrb[12].mxu0 %v7548_v11  ;;  %v6332_v18 = vcombine.high %v387_v9, %v391_v10 }
  0xdb   :  { %2299 = vmatpush1.bf16.msra.mxu0 %v6267_v13  ;;  %2318 = vmatprep.mubr.bf16.mxu0 %v7553_v12  ;;  %v324_v13 = vld [vmem:[#allocation8 + $0x588] sm:$0xff] }
  0xdc   :  { %2461 = vmatpush1.bf16.msra.mxu1 %v6205_v14  ;;  %2300 = vmatprep.subr.bf16.mxu0 %v6276_v15  ;;  %v328_v14 = vld [vmem:[#allocation8 + $0x5a8] sm:$0xff]  ;;  %v6323_v15 = vcombine.low %v379_v0, %v383_v1 }
  0xdd   :  { %2462 = vmatprep.subr.bf16.mxu1 %v6214_v20  ;;  %v6270_v19 = vcombine.high %v324_v13, %v328_v14  ;;  %v395_v20 = vld [vmem:[#allocation8 + $0x7c0] sm:$0xff]  ;;  %v6269_v26 = vcombine.low %v324_v13, %v328_v14  ;;  %v368_v0 = vld [vmem:[#allocation8 + $0x6e8] sm:$0xff] }
  0xde   :  { %v6340_v27 = vcombine.high %v395_v20, %v399_v22 }
  0xdf   :  { %2301 = vmatpush1.bf16.msra.mxu0 %v6275_v23  ;;  %v332_v23 = vld [vmem:[#allocation8 + $0x5c8] sm:$0xff] }
  0xe0   :  { %2463 = vmatpush1.bf16.msra.mxu1 %v6213_v24  ;;  %2302 = vmatprep.subr.bf16.mxu0 %v6284_v25  ;;  %v336_v24 = vld [vmem:[#allocation8 + $0x5e8] sm:$0xff]  ;;  %v6331_v25 = vcombine.low %v387_v9, %v391_v10 }
  0xe1   :  { %2505 = vmatprep.subr.bf16.mxu1 %v6222_v29  ;;  %v6278_v28 = vcombine.high %v332_v23, %v336_v24  ;;  %v149_v29 = vld [vmem:[#allocation8 + $0x10] sm:$0xff]  ;;  %v6277_v34 = vcombine.low %v332_v23, %v336_v24  ;;  %v372_v9 = vld [vmem:[#allocation8 + $0x708] sm:$0xff] }
  0xe2   :  { %v6096_v35 = vcombine.high %v149_v29, %v153_v30  ;;  %v376_v10 = vld [vmem:[#allocation8 + $0x728] sm:$0xff] }
  0xe3   :  { %2303 = vmatpush1.bf16.msra.mxu0 %v6283_v31  ;;  %2465 = vmatmul.mubr.bf16.vlgmr.msra.gmra.mrb[16].mxu1 %v7512_v17  ;;  %v340_v31 = vld [vmem:[#allocation8 + $0x608] sm:$0xff] }
  0xe4   :  { %2506 = vmatpush1.bf16.msra.mxu1 %v6221_v32  ;;  %2304 = vmatprep.subr.bf16.mxu0 %v6292_v33  ;;  %v344_v32 = vld [vmem:[#allocation8 + $0x628] sm:$0xff]  ;;  %v6339_v33 = vcombine.low %v395_v20, %v399_v22 }
  0xe5   :  { %2507 = vmatprep.subr.bf16.mxu1 %v6230_v38  ;;  %2474 = vmatprep.mubr.bf16.mxu1 %v7517_v21  ;;  %v6286_v36 = vcombine.high %v340_v31, %v344_v32  ;;  %v157_v38 = vld [vmem:[#allocation8 + $0x50] sm:$0xff]  ;;  %v6285_v46 = vcombine.low %v340_v31, %v344_v32  ;;  %v7592_v20 = vld [vmem:[%s9468_s2 + $0x58] ss:$20 sps:$4 sm:$0xff]  }
  0xe6   :  { %v6104_v47 = vcombine.high %v157_v38, %v161_v40  ;;  %v6103_v53 = vcombine.low %v157_v38, %v161_v40  ;;  %v380_v22 = vld [vmem:[#allocation8 + $0x748] sm:$0xff]  ;;  %v205_v38 = vld [vmem:[#allocation8 + $0x1d0] sm:$0xff] }
  0xe7   :  { %2305 = vmatpush1.bf16.msra.mxu0 %v6291_v41  ;;  %v7568_v41 = vld [vmem:[%s9468_s2 + $0x8] ss:$20 sps:$4 sm:$0xff]   ;;  %v209_v40 = vld [vmem:[#allocation8 + $0x1f0] sm:$0xff] }
  0xe8   :  { %2508 = vmatpush1.bf16.msra.mxu1 %v6229_v42  ;;  %2306 = vmatprep.subr.bf16.mxu0 %v6300_v43  ;;  %v348_v42 = vld [vmem:[#allocation8 + $0x648] sm:$0xff] }
  0xe9   :  { %2509 = vmatprep.subr.bf16.mxu1 %v6238_v44  ;;  %v352_v43 = vld [vmem:[#allocation8 + $0x668] sm:$0xff]  ;;  %v6095_v44 = vcombine.low %v149_v29, %v153_v30  ;;  %v197_v29 = vld [vmem:[#allocation8 + $0x190] sm:$0xff] }
  0xea   :  { %v6294_v48 = vcombine.high %v348_v42, %v352_v43  ;;  %v6293_v54 = vcombine.low %v348_v42, %v352_v43  ;;  %v384_v23 = vld [vmem:[#allocation8 + $0x768] sm:$0xff]  ;;  %v201_v30 = vld [vmem:[#allocation8 + $0x1b0] sm:$0xff] }
  0xeb   :  { %2307 = vmatpush1.bf16.msra.mxu0 %v6299_v49  ;;  %2475 = vmatmul.mubr.bf16.gmra.mrb[20].mxu1 %v7524_v37  ;;  %v165_v49 = vld [vmem:[#allocation8 + $0x90] sm:$0xff]  ;;  %v388_v31 = vld [vmem:[#allocation8 + $0x788] sm:$0xff] }
  0xec   :  { %2510 = vmatpush1.bf16.msra.mxu1 %v6237_v50  ;;  %2308 = vmatprep.subr.bf16.mxu0 %v6308_v51  ;;  %v169_v50 = vld [vmem:[#allocation8 + $0xb0] sm:$0xff]  ;;  %v356_v51 = vld [vmem:[#allocation8 + $0x688] sm:$0xff] }
  0xed   :  { %2511 = vmatprep.subr.bf16.mxu1 %v6246_v52  ;;  %2484 = vmatprep.mubr.bf16.mxu1 %v7529_v39  ;;  %v360_v52 = vld [vmem:[#allocation8 + $0x6a8] sm:$0xff]  ;;  %v6112_v56 = vcombine.high %v165_v49, %v169_v50  ;;  %v6111_v1 = vcombine.low %v165_v49, %v169_v50  ;;  %v7604_v42 = vld [vmem:[%s9468_s2 + $0x80] ss:$20 sps:$4 sm:$0xff]  }
  0xee   :  { %v6302_v58 = vcombine.high %v356_v51, %v360_v52  ;;  %v6301_v3 = vcombine.low %v356_v51, %v360_v52  ;;  %v392_v32 = vld [vmem:[#allocation8 + $0x7a8] sm:$0xff]  ;;  %v213_v50 = vld [vmem:[#allocation8 + $0x210] sm:$0xff] }
  0xef   :  { %2309 = vmatpush1.bf16.msra.mxu0 %v6307_v60  ;;  %v173_v60 = vld [vmem:[#allocation8 + $0xd0] sm:$0xff]  ;;  %v396_v43 = vld [vmem:[#allocation8 + $0x7c8] sm:$0xff] }
  0xf0   :  { %2512 = vmatpush1.bf16.msra.mxu1 %v6245_v61  ;;  %2310 = vmatprep.subr.bf16.mxu0 %v6316_v62  ;;  %v177_v61 = vld [vmem:[#allocation8 + $0xf0] sm:$0xff]  ;;  %v404_v52 = vld [vmem:[#allocation8 + $0x808] sm:$0xff] }
  0xf1   :  { %2513 = vmatprep.subr.bf16.mxu1 %v6254_v63  ;;  %v7580_v62 = vld [vmem:[%s9468_s2 + $0x30] ss:$20 sps:$4 sm:$0xff]   ;;  %v364_v63 = vld [vmem:[#allocation8 + $0x6c8] sm:$0xff]  ;;  %v6119_v13 = vcombine.low %v173_v60, %v177_v61 }
  0xf2   :  { %v6309_v14 = vcombine.low %v364_v63, %v368_v0  ;;  %v217_v51 = vld [vmem:[#allocation8 + $0x230] sm:$0xff] }
  0xf3   :  { %2311 = vmatpush1.bf16.msra.mxu0 %v6315_v4  ;;  %2485 = vmatmul.mubr.bf16.gmra.mrb[24].mxu1 %v7536_v55  ;;  %v6120_v4 = vcombine.high %v173_v60, %v177_v61  ;;  %v221_v61 = vld [vmem:[#allocation8 + $0x250] sm:$0xff] }
  0xf4   :  { %2514 = vmatpush1.bf16.msra.mxu1 %v6253_v5  ;;  %2312 = vmatprep.subr.bf16.mxu0 %v6324_v6  ;;  %v6310_v5 = vcombine.high %v364_v63, %v368_v0  ;;  %v181_v6 = vld [vmem:[#allocation8 + $0x110] sm:$0xff]  ;;  %v412_v0 = vld [vmem:[#allocation8 + $0x848] sm:$0xff] }
  0xf5   :  { %2515 = vmatprep.subr.bf16.mxu1 %v6262_v7  ;;  %2494 = vmatprep.mubr.bf16.mxu1 %v7541_v57  ;;  %v185_v7 = vld [vmem:[#allocation8 + $0x130] sm:$0xff] }
  0xf6   :  { %v6127_v24 = vcombine.low %v181_v6, %v185_v7  ;;  %v225_v63 = vld [vmem:[#allocation8 + $0x270] sm:$0xff] }
  0xf7   :  { %2313 = vmatpush1.bf16.msra.mxu0 %v6323_v15  ;;  %v6128_v15 = vcombine.high %v181_v6, %v185_v7  ;;  %v229_v7 = vld [vmem:[#allocation8 + $0x290] sm:$0xff] }
  0xf8   :  { %2516 = vmatpush1.bf16.msra.mxu1 %v6261_v16  ;;  %2314 = vmatprep.subr.bf16.mxu0 %v6332_v18  ;;  %v6318_v16 = vcombine.high %v372_v9, %v376_v10  ;;  %v189_v18 = vld [vmem:[#allocation8 + $0x150] sm:$0xff] }
  0xf9   :  { %2517 = vmatprep.subr.bf16.mxu1 %v6270_v19  ;;  %v193_v19 = vld [vmem:[#allocation8 + $0x170] sm:$0xff] }
  0xfb   :  { %2315 = vmatpush1.bf16.msra.mxu0 %v6331_v25  ;;  %2495 = vmatmul.mubr.bf16.gmra.mrb[28].mxu1 %v7548_v11  ;;  %v7597_v25 = vld [vmem:[%s9468_s2 + $0x84] ss:$20 sps:$4 sm:$0xff]  }
  0xfc   :  { %2518 = vmatpush1.bf16.msra.mxu1 %v6269_v26  ;;  %2316 = vmatprep.subr.bf16.mxu0 %v6340_v27  ;;  %v6317_v26 = vcombine.low %v372_v9, %v376_v10  ;;  %v6136_v27 = vcombine.high %v189_v18, %v193_v19  ;;  %v420_v9 = vld [vmem:[#allocation8 + $0x888] sm:$0xff] }
  0xfd   :  { %2519 = vmatprep.subr.bf16.mxu1 %v6278_v28  ;;  %2537 = vmatprep.mubr.bf16.mxu1 %v7553_v12  ;;  %v6326_v28 = vcombine.high %v380_v22, %v384_v23  ;;  %v424_v10 = vld [vmem:[#allocation8 + $0x8a8] sm:$0xff] }
  0xff   :  { %2317 = vmatpush1.bf16.msra.mxu0 %v6339_v33  ;;  %v6135_v33 = vcombine.low %v189_v18, %v193_v19  ;;  %v237_v18 = vld [vmem:[#allocation8 + $0x2d0] sm:$0xff] }
 0x100   :  { %2520 = vmatpush1.bf16.msra.mxu1 %v6277_v34  ;;  %2651 = vmatprep.subr.bf16.mxu0 %v6096_v35  ;;  %v6325_v34 = vcombine.low %v380_v22, %v384_v23  ;;  %v6144_v35 = vcombine.high %v197_v29, %v201_v30  ;;  %v241_v19 = vld [vmem:[#allocation8 + $0x2f0] sm:$0xff]  ;;  %v428_v22 = vld [vmem:[#allocation8 + $0x8c8] sm:$0xff] }
 0x101   :  { %2521 = vmatprep.subr.bf16.mxu1 %v6286_v36  ;;  %v6334_v36 = vcombine.high %v388_v31, %v392_v32  ;;  %v432_v23 = vld [vmem:[#allocation8 + $0x8e8] sm:$0xff] }
 0x102   :  { %2319 = vmatmul.mubr.bf16.vlgmr.msra.gmra.mrb[0].mxu0 %v7568_v41 }
 0x103   :  { %2652 = vmatpush1.bf16.msra.mxu0 %v6095_v44  ;;  %2328 = vmatprep.mubr.bf16.mxu0 %v7573_v45  ;;  %v400_v44 = vld [vmem:[#allocation8 + $0x7e8] sm:$0xff] }
 0x104   :  { %2522 = vmatpush1.bf16.msra.mxu1 %v6285_v46  ;;  %2653 = vmatprep.subr.bf16.mxu0 %v6104_v47  ;;  %v6143_v46 = vcombine.low %v197_v29, %v201_v30  ;;  %v6333_v47 = vcombine.low %v388_v31, %v392_v32  ;;  %v6342_v49 = vcombine.high %v396_v43, %v400_v44  ;;  %v245_v29 = vld [vmem:[#allocation8 + $0x310] sm:$0xff]  ;;  %v436_v31 = vld [vmem:[#allocation8 + $0x908] sm:$0xff] }
 0x105   :  { %2523 = vmatprep.subr.bf16.mxu1 %v6294_v48  ;;  %v6152_v48 = vcombine.high %v205_v38, %v209_v40  ;;  %v249_v30 = vld [vmem:[#allocation8 + $0x330] sm:$0xff]  ;;  %v440_v32 = vld [vmem:[#allocation8 + $0x928] sm:$0xff] }
 0x107   :  { %2654 = vmatpush1.bf16.msra.mxu0 %v6103_v53  ;;  %v408_v53 = vld [vmem:[#allocation8 + $0x828] sm:$0xff] }
 0x108   :  { %2524 = vmatpush1.bf16.msra.mxu1 %v6293_v54  ;;  %2655 = vmatprep.subr.bf16.mxu0 %v6112_v56  ;;  %v6151_v54 = vcombine.low %v205_v38, %v209_v40  ;;  %v6341_v56 = vcombine.low %v396_v43, %v400_v44  ;;  %v6350_v60 = vcombine.high %v404_v52, %v408_v53  ;;  %v253_v38 = vld [vmem:[#allocation8 + $0x350] sm:$0xff]  ;;  %v444_v43 = vld [vmem:[#allocation8 + $0x948] sm:$0xff] }
 0x109   :  { %2525 = vmatprep.subr.bf16.mxu1 %v6302_v58  ;;  %v6160_v58 = vcombine.high %v213_v50, %v217_v51  ;;  %v257_v40 = vld [vmem:[#allocation8 + $0x370] sm:$0xff]  ;;  %v448_v44 = vld [vmem:[#allocation8 + $0x968] sm:$0xff] }
 0x10a   :  { %2329 = vmatmul.mubr.bf16.gmra.mrb[4].mxu0 %v7580_v62 }
 0x10b   :  { %2656 = vmatpush1.bf16.msra.mxu0 %v6111_v1  ;;  %2338 = vmatprep.mubr.bf16.mxu0 %v7585_v2  ;;  %v416_v1 = vld [vmem:[#allocation8 + $0x868] sm:$0xff] }
 0x10c   :  { %2526 = vmatpush1.bf16.msra.mxu1 %v6301_v3  ;;  %2657 = vmatprep.subr.bf16.mxu0 %v6120_v4  ;;  %v6159_v3 = vcombine.low %v213_v50, %v217_v51  ;;  %v6349_v4 = vcombine.low %v404_v52, %v408_v53  ;;  %v6358_v6 = vcombine.high %v412_v0, %v416_v1  ;;  %v261_v50 = vld [vmem:[#allocation8 + $0x390] sm:$0xff]  ;;  %v452_v52 = vld [vmem:[#allocation8 + $0x988] sm:$0xff] }
 0x10d   :  { %2527 = vmatprep.subr.bf16.mxu1 %v6310_v5  ;;  %v6168_v5 = vcombine.high %v221_v61, %v225_v63  ;;  %v265_v51 = vld [vmem:[#allocation8 + $0x3b0] sm:$0xff]  ;;  %v456_v53 = vld [vmem:[#allocation8 + $0x9a8] sm:$0xff] }
 0x10f   :  { %2658 = vmatpush1.bf16.msra.mxu0 %v6119_v13  ;;  %v6167_v13 = vcombine.low %v221_v61, %v225_v63  ;;  %v269_v61 = vld [vmem:[#allocation8 + $0x3d0] sm:$0xff] }
 0x110   :  { %2528 = vmatpush1.bf16.msra.mxu1 %v6309_v14  ;;  %2659 = vmatprep.subr.bf16.mxu0 %v6128_v15  ;;  %v6357_v14 = vcombine.low %v412_v0, %v416_v1  ;;  %v273_v63 = vld [vmem:[#allocation8 + $0x3f0] sm:$0xff]  ;;  %v460_v0 = vld [vmem:[#allocation8 + $0x9c8] sm:$0xff] }
 0x111   :  { %2529 = vmatprep.subr.bf16.mxu1 %v6318_v16  ;;  %v6366_v16 = vcombine.high %v420_v9, %v424_v10  ;;  %v464_v1 = vld [vmem:[#allocation8 + $0x9e8] sm:$0xff] }
 0x112   :  { %2339 = vmatmul.mubr.bf16.gmra.mrb[8].mxu0 %v7592_v20 }
 0x113   :  { %2660 = vmatpush1.bf16.msra.mxu0 %v6127_v24  ;;  %2348 = vmatprep.mubr.bf16.mxu0 %v7597_v25 }
 0x114   :  { %2530 = vmatpush1.bf16.msra.mxu1 %v6317_v26  ;;  %2661 = vmatprep.subr.bf16.mxu0 %v6136_v27  ;;  %v6365_v26 = vcombine.low %v420_v9, %v424_v10  ;;  %v6184_v27 = vcombine.high %v237_v18, %v241_v19  ;;  %v150_v9 = vld [vmem:[#allocation8 + $0x18] sm:$0xff] }
 0x115   :  { %2531 = vmatprep.subr.bf16.mxu1 %v6326_v28  ;;  %v6374_v28 = vcombine.high %v428_v22, %v432_v23  ;;  %v154_v10 = vld [vmem:[#allocation8 + $0x38] sm:$0xff] }
 0x117   :  { %2662 = vmatpush1.bf16.msra.mxu0 %v6135_v33  ;;  %v6183_v33 = vcombine.low %v237_v18, %v241_v19  ;;  %v285_v18 = vld [vmem:[#allocation8 + $0x450] sm:$0xff] }
 0x118   :  { %2532 = vmatpush1.bf16.msra.mxu1 %v6325_v34  ;;  %2663 = vmatprep.subr.bf16.mxu0 %v6144_v35  ;;  %v6373_v34 = vcombine.low %v428_v22, %v432_v23  ;;  %v6192_v35 = vcombine.high %v245_v29, %v249_v30  ;;  %v289_v19 = vld [vmem:[#allocation8 + $0x470] sm:$0xff]  ;;  %v158_v22 = vld [vmem:[#allocation8 + $0x58] sm:$0xff] }
 0x119   :  { %2533 = vmatprep.subr.bf16.mxu1 %v6334_v36  ;;  %v6382_v36 = vcombine.high %v436_v31, %v440_v32  ;;  %v162_v23 = vld [vmem:[#allocation8 + $0x78] sm:$0xff] }
 0x11a   :  { %2349 = vmatmul.mubr.bf16.gmra.mrb[12].mxu0 %v7604_v42 }
 0x11b   :  { %2664 = vmatpush1.bf16.msra.mxu0 %v6143_v46  ;;  %2683 = vmatprep.mubr.bf16.mxu0 %v7490_v59  ;;  %v233_v59 = vld [vmem:[#allocation8 + $0x2b0] sm:$0xff]  ;;  %v6191_v46 = vcombine.low %v245_v29, %v249_v30 }
 0x11c   :  { %2534 = vmatpush1.bf16.msra.mxu1 %v6333_v47  ;;  %2665 = vmatprep.subr.bf16.mxu0 %v6152_v48  ;;  %v6176_v15 = vcombine.high %v229_v7, %v233_v59  ;;  %v6175_v24 = vcombine.low %v229_v7, %v233_v59  ;;  %v6381_v47 = vcombine.low %v436_v31, %v440_v32  ;;  %v277_v7 = vld [vmem:[#allocation8 + $0x410] sm:$0xff]  ;;  %v166_v31 = vld [vmem:[#allocation8 + $0x98] sm:$0xff] }
 0x11d   :  { %2535 = vmatprep.subr.bf16.mxu1 %v6342_v49  ;;  %v6200_v48 = vcombine.high %v253_v38, %v257_v40  ;;  %v6390_v49 = vcombine.high %v444_v43, %v448_v44  ;;  %v281_v59 = vld [vmem:[#allocation8 + $0x430] sm:$0xff]  ;;  %v170_v32 = vld [vmem:[#allocation8 + $0xb8] sm:$0xff] }
 0x11e   :  { %v293_v29 = vld [vmem:[#allocation8 + $0x490] sm:$0xff] }
 0x11f   :  { %2666 = vmatpush1.bf16.msra.mxu0 %v6151_v54  ;;  %v6199_v54 = vcombine.low %v253_v38, %v257_v40  ;;  %v297_v30 = vld [vmem:[#allocation8 + $0x4b0] sm:$0xff]  ;;  %v6114_v38 = vcombine.high %v166_v31, %v170_v32 }
 0x120   :  { %2536 = vmatpush1.bf16.msra.mxu1 %v6341_v56  ;;  %2667 = vmatprep.subr.bf16.mxu0 %v6160_v58  ;;  %v6389_v56 = vcombine.low %v444_v43, %v448_v44  ;;  %v6208_v58 = vcombine.high %v261_v50, %v265_v51  ;;  %v305_v40 = vld [vmem:[#allocation8 + $0x4f0] sm:$0xff]  ;;  %v174_v43 = vld [vmem:[#allocation8 + $0xd8] sm:$0xff] }
 0x121   :  { %2578 = vmatprep.subr.bf16.mxu1 %v6350_v60  ;;  %v6398_v60 = vcombine.high %v452_v52, %v456_v53  ;;  %v178_v44 = vld [vmem:[#allocation8 + $0xf8] sm:$0xff] }
 0x123   :  { %2538 = vmatmul.mubr.bf16.vlgmr.msra.gmra.mrb[16].mxu1 %v7568_v41  ;;  %2668 = vmatpush1.bf16.msra.mxu0 %v6159_v3  ;;  %v6207_v3 = vcombine.low %v261_v50, %v265_v51  ;;  %v309_v50 = vld [vmem:[#allocation8 + $0x510] sm:$0xff] }
 0x124   :  { %2579 = vmatpush1.bf16.msra.mxu1 %v6349_v4  ;;  %2669 = vmatprep.subr.bf16.mxu0 %v6168_v5  ;;  %v6397_v4 = vcombine.low %v452_v52, %v456_v53  ;;  %v6216_v5 = vcombine.high %v269_v61, %v273_v63  ;;  %v313_v51 = vld [vmem:[#allocation8 + $0x530] sm:$0xff]  ;;  %v182_v52 = vld [vmem:[#allocation8 + $0x118] sm:$0xff] }
 0x125   :  { %2580 = vmatprep.subr.bf16.mxu1 %v6358_v6  ;;  %2547 = vmatprep.mubr.bf16.mxu1 %v7573_v45  ;;  %v6406_v6 = vcombine.high %v460_v0, %v464_v1  ;;  %v186_v53 = vld [vmem:[#allocation8 + $0x138] sm:$0xff] }
 0x127   :  { %2670 = vmatpush1.bf16.msra.mxu0 %v6167_v13  ;;  %v6215_v13 = vcombine.low %v269_v61, %v273_v63  ;;  %v317_v61 = vld [vmem:[#allocation8 + $0x550] sm:$0xff] }
 0x128   :  { %2581 = vmatpush1.bf16.msra.mxu1 %v6357_v14  ;;  %2671 = vmatprep.subr.bf16.mxu0 %v6176_v15  ;;  %v6405_v14 = vcombine.low %v460_v0, %v464_v1  ;;  %v6224_v15 = vcombine.high %v277_v7, %v281_v59  ;;  %v321_v63 = vld [vmem:[#allocation8 + $0x570] sm:$0xff]  ;;  %v194_v0 = vld [vmem:[#allocation8 + $0x178] sm:$0xff]  ;;  %v6255_v1 = vcombine.low %v309_v50, %v313_v51 }
 0x129   :  { %2582 = vmatprep.subr.bf16.mxu1 %v6366_v16  ;;  %v6098_v16 = vcombine.high %v150_v9, %v154_v10 }
 0x12b   :  { %2548 = vmatmul.mubr.bf16.gmra.mrb[20].mxu1 %v7580_v62  ;;  %2672 = vmatpush1.bf16.msra.mxu0 %v6175_v24  ;;  %v6223_v24 = vcombine.low %v277_v7, %v281_v59  ;;  %v329_v7 = vld [vmem:[#allocation8 + $0x5b0] sm:$0xff]  ;;  %v198_v59 = vld [vmem:[#allocation8 + $0x198] sm:$0xff] }
 0x12c   :  { %2583 = vmatpush1.bf16.msra.mxu1 %v6365_v26  ;;  %2673 = vmatprep.subr.bf16.mxu0 %v6184_v27  ;;  %v6097_v26 = vcombine.low %v150_v9, %v154_v10  ;;  %v6232_v27 = vcombine.high %v285_v18, %v289_v19  ;;  %v202_v9 = vld [vmem:[#allocation8 + $0x1b8] sm:$0xff]  ;;  %v7638_v10 = vld [vmem:[%s9468_s2 + $0x60] ss:$20 sps:$4 sm:$0xff]  }
 0x12d   :  { %2584 = vmatprep.subr.bf16.mxu1 %v6374_v28  ;;  %2557 = vmatprep.mubr.bf16.mxu1 %v7585_v2  ;;  %v6106_v28 = vcombine.high %v158_v22, %v162_v23 }
 0x12f   :  { %2674 = vmatpush1.bf16.msra.mxu0 %v6183_v33  ;;  %v7620_v33 = vld [vmem:[%s9468_s2 + $0x10] ss:$20 sps:$4 sm:$0xff]  }
 0x130   :  { %2585 = vmatpush1.bf16.msra.mxu1 %v6373_v34  ;;  %2675 = vmatprep.subr.bf16.mxu0 %v6192_v35  ;;  %v6231_v34 = vcombine.low %v285_v18, %v289_v19  ;;  %v6105_v35 = vcombine.low %v158_v22, %v162_v23  ;;  %v337_v18 = vld [vmem:[#allocation8 + $0x5f0] sm:$0xff]  ;;  %v210_v19 = vld [vmem:[#allocation8 + $0x1f8] sm:$0xff]  ;;  %v6145_v23 = vcombine.low %v198_v59, %v202_v9 }
 0x131   :  { %2586 = vmatprep.subr.bf16.mxu1 %v6382_v36  ;;  %v6240_v36 = vcombine.high %v293_v29, %v297_v30 }
 0x133   :  { %2558 = vmatmul.mubr.bf16.gmra.mrb[24].mxu1 %v7592_v20  ;;  %2676 = vmatpush1.bf16.msra.mxu0 %v6191_v46  ;;  %v6239_v46 = vcombine.low %v293_v29, %v297_v30  ;;  %v214_v29 = vld [vmem:[#allocation8 + $0x218] sm:$0xff] }
 0x134   :  { %2587 = vmatpush1.bf16.msra.mxu1 %v6381_v47  ;;  %2677 = vmatprep.subr.bf16.mxu0 %v6200_v48  ;;  %v6113_v47 = vcombine.low %v166_v31, %v170_v32  ;;  %v218_v30 = vld [vmem:[#allocation8 + $0x238] sm:$0xff] }
 0x135   :  { %2588 = vmatprep.subr.bf16.mxu1 %v6390_v49  ;;  %2567 = vmatprep.mubr.bf16.mxu1 %v7597_v25  ;;  %v6122_v49 = vcombine.high %v174_v43, %v178_v44  ;;  %v7647_v31 = vld [vmem:[%s9468_s2 + $0x88] ss:$20 sps:$4 sm:$0xff]  }
 0x137   :  { %2678 = vmatpush1.bf16.msra.mxu0 %v6199_v54  ;;  %v7629_v54 = vld [vmem:[%s9468_s2 + $0x38] ss:$20 sps:$4 sm:$0xff]  }
 0x138   :  { %2589 = vmatpush1.bf16.msra.mxu1 %v6389_v56  ;;  %2679 = vmatprep.subr.bf16.mxu0 %v6208_v58  ;;  %v6121_v56 = vcombine.low %v174_v43, %v178_v44  ;;  %v6256_v58 = vcombine.high %v309_v50, %v313_v51  ;;  %v6161_v44 = vcombine.low %v214_v29, %v218_v30  ;;  %v230_v50 = vld [vmem:[#allocation8 + $0x298] sm:$0xff] }
 0x139   :  { %2590 = vmatprep.subr.bf16.mxu1 %v6398_v60  ;;  %v6130_v60 = vcombine.high %v182_v52, %v186_v53  ;;  %v234_v51 = vld [vmem:[#allocation8 + $0x2b8] sm:$0xff] }
 0x13b   :  { %2568 = vmatmul.mubr.bf16.gmra.mrb[28].mxu1 %v7604_v42  ;;  %2680 = vmatpush1.bf16.msra.mxu0 %v6207_v3  ;;  %v6129_v3 = vcombine.low %v182_v52, %v186_v53 }
 0x13c   :  { %2591 = vmatpush1.bf16.msra.mxu1 %v6397_v4  ;;  %2681 = vmatprep.subr.bf16.mxu0 %v6216_v5  ;;  %v6264_v4 = vcombine.high %v317_v61, %v321_v63 }
 0x13d   :  { %2592 = vmatprep.subr.bf16.mxu1 %v6406_v6  ;;  %2610 = vmatprep.mubr.bf16.mxu1 %v9476_v8  ;;  %v325_v6 = vld [vmem:[#allocation8 + $0x590] sm:$0xff] }
 0x13e   :  { %v6271_v22 = vcombine.low %v325_v6, %v329_v7 }
 0x13f   :  { %2682 = vmatpush1.bf16.msra.mxu0 %v6215_v13 }
 0x140   :  { %2593 = vmatpush1.bf16.msra.mxu1 %v6405_v14  ;;  %2724 = vmatprep.subr.bf16.mxu0 %v6224_v15  ;;  %v6272_v14 = vcombine.high %v325_v6, %v329_v7  ;;  %v6146_v15 = vcombine.high %v198_v59, %v202_v9  ;;  %v250_v6 = vld [vmem:[#allocation8 + $0x338] sm:$0xff] }
 0x141   :  { %2870 = vmatprep.subr.bf16.mxu1 %v6098_v16  ;;  %v333_v16 = vld [vmem:[#allocation8 + $0x5d0] sm:$0xff] }
 0x142   :  { %2684 = vmatmul.mubr.bf16.vlgmr.msra.gmra.mrb[16].mxu0 %v7512_v17  ;;  %v301_v17 = vld [vmem:[#allocation8 + $0x4d0] sm:$0xff] }
 0x143   :  { %2611 = vmatmul.mubr.bf16.vlgmr.msra.gmra.mrb[16].mxu1 %v7620_v33  ;;  %2725 = vmatpush1.bf16.msra.mxu0 %v6223_v24  ;;  %v6248_v48 = vcombine.high %v301_v17, %v305_v40  ;;  %v6280_v24 = vcombine.high %v333_v16, %v337_v18 }
 0x144   :  { %2871 = vmatpush1.bf16.msra.mxu1 %v6097_v26  ;;  %2726 = vmatprep.subr.bf16.mxu0 %v6232_v27  ;;  %v341_v27 = vld [vmem:[#allocation8 + $0x610] sm:$0xff] }
 0x145   :  { %2872 = vmatprep.subr.bf16.mxu1 %v6106_v28  ;;  %2620 = vmatprep.mubr.bf16.mxu1 %v9476_v8  ;;  %v345_v28 = vld [vmem:[#allocation8 + $0x630] sm:$0xff] }
 0x146   :  { %2693 = vmatprep.mubr.bf16.mxu0 %v7517_v21  ;;  %v6247_v21 = vcombine.low %v301_v17, %v305_v40  ;;  %v226_v17 = vld [vmem:[#allocation8 + $0x278] sm:$0xff]  ;;  %v6287_v43 = vcombine.low %v341_v27, %v345_v28 }
 0x147   :  { %2727 = vmatpush1.bf16.msra.mxu0 %v6231_v34  ;;  %v6288_v34 = vcombine.high %v341_v27, %v345_v28  ;;  %v7167_v40 = vld [vmem:[%s9468_s2 + $0x4] ss:$20 sps:$4 sm:$0xff]  }
 0x148   :  { %2873 = vmatpush1.bf16.msra.mxu1 %v6105_v35  ;;  %2728 = vmatprep.subr.bf16.mxu0 %v6240_v36  ;;  %v6162_v35 = vcombine.high %v214_v29, %v218_v30  ;;  %v349_v36 = vld [vmem:[#allocation8 + $0x650] sm:$0xff]  ;;  %v266_v27 = vld [vmem:[#allocation8 + $0x3b8] sm:$0xff] }
 0x149   :  { %2874 = vmatprep.subr.bf16.mxu1 %v6114_v38  ;;  %v353_v38 = vld [vmem:[#allocation8 + $0x670] sm:$0xff] }
 0x14a   :  { %2694 = vmatmul.mubr.bf16.gmra.mrb[20].mxu0 %v7524_v37  ;;  %v190_v37 = vld [vmem:[#allocation8 + $0x158] sm:$0xff] }
 0x14b   :  { %2621 = vmatmul.mubr.bf16.gmra.mrb[20].mxu1 %v7629_v54  ;;  %2729 = vmatpush1.bf16.msra.mxu0 %v6239_v46  ;;  %v6138_v5 = vcombine.high %v190_v37, %v194_v0  ;;  %v6137_v13 = vcombine.low %v190_v37, %v194_v0  ;;  %v6296_v46 = vcombine.high %v349_v36, %v353_v38 }
 0x14c   :  { %2875 = vmatpush1.bf16.msra.mxu1 %v6113_v47  ;;  %2730 = vmatprep.subr.bf16.mxu0 %v6248_v48  ;;  %v357_v48 = vld [vmem:[#allocation8 + $0x690] sm:$0xff]  ;;  %v6177_v37 = vcombine.low %v230_v50, %v234_v51 }
 0x14d   :  { %2876 = vmatprep.subr.bf16.mxu1 %v6122_v49  ;;  %2630 = vmatprep.mubr.bf16.mxu1 %v9476_v8  ;;  %v361_v49 = vld [vmem:[#allocation8 + $0x6b0] sm:$0xff] }
 0x14e   :  { %2703 = vmatprep.mubr.bf16.mxu0 %v7529_v39  ;;  %v6263_v39 = vcombine.low %v317_v61, %v321_v63  ;;  %v6304_v53 = vcombine.high %v357_v48, %v361_v49  ;;  %v242_v61 = vld [vmem:[#allocation8 + $0x2f8] sm:$0xff]  ;;  %v6303_v63 = vcombine.low %v357_v48, %v361_v49  ;;  %v405_v48 = vld [vmem:[#allocation8 + $0x810] sm:$0xff] }
 0x14f   :  { %2731 = vmatpush1.bf16.msra.mxu0 %v6247_v21  ;;  %v6178_v21 = vcombine.high %v230_v50, %v234_v51  ;;  %v409_v49 = vld [vmem:[#allocation8 + $0x830] sm:$0xff]  ;;  %v278_v50 = vld [vmem:[#allocation8 + $0x418] sm:$0xff] }
 0x150   :  { %2877 = vmatpush1.bf16.msra.mxu1 %v6121_v56  ;;  %2732 = vmatprep.subr.bf16.mxu0 %v6256_v58  ;;  %v365_v56 = vld [vmem:[#allocation8 + $0x6d0] sm:$0xff]  ;;  %v282_v51 = vld [vmem:[#allocation8 + $0x438] sm:$0xff] }
 0x151   :  { %2878 = vmatprep.subr.bf16.mxu1 %v6130_v60  ;;  %v369_v58 = vld [vmem:[#allocation8 + $0x6f0] sm:$0xff]  ;;  %v238_v60 = vld [vmem:[#allocation8 + $0x2d8] sm:$0xff] }
 0x152   :  { %2704 = vmatmul.mubr.bf16.gmra.mrb[24].mxu0 %v7536_v55  ;;  %v206_v55 = vld [vmem:[#allocation8 + $0x1d8] sm:$0xff]  ;;  %v6312_v0 = vcombine.high %v365_v56, %v369_v58  ;;  %v6311_v7 = vcombine.low %v365_v56, %v369_v58  ;;  %v6185_v59 = vcombine.low %v238_v60, %v242_v61  ;;  %v413_v56 = vld [vmem:[#allocation8 + $0x850] sm:$0xff] }
 0x153   :  { %2631 = vmatmul.mubr.bf16.gmra.mrb[24].mxu1 %v7638_v10  ;;  %2733 = vmatpush1.bf16.msra.mxu0 %v6255_v1  ;;  %v6154_v26 = vcombine.high %v206_v55, %v210_v19  ;;  %v6153_v32 = vcombine.low %v206_v55, %v210_v19  ;;  %v6186_v1 = vcombine.high %v238_v60, %v242_v61  ;;  %v417_v58 = vld [vmem:[#allocation8 + $0x870] sm:$0xff]  ;;  %v286_v60 = vld [vmem:[#allocation8 + $0x458] sm:$0xff] }
 0x154   :  { %2879 = vmatpush1.bf16.msra.mxu1 %v6129_v3  ;;  %2734 = vmatprep.subr.bf16.mxu0 %v6264_v4  ;;  %v373_v3 = vld [vmem:[#allocation8 + $0x710] sm:$0xff]  ;;  %v290_v61 = vld [vmem:[#allocation8 + $0x478] sm:$0xff] }
 0x155   :  { %2880 = vmatprep.subr.bf16.mxu1 %v6138_v5  ;;  %2640 = vmatprep.mubr.bf16.mxu1 %v9476_v8  ;;  %v377_v4 = vld [vmem:[#allocation8 + $0x730] sm:$0xff]  ;;  %v246_v5 = vld [vmem:[#allocation8 + $0x318] sm:$0xff] }
 0x156   :  { %2713 = vmatprep.mubr.bf16.mxu0 %v7541_v57  ;;  %v6279_v57 = vcombine.low %v333_v16, %v337_v18  ;;  %v6320_v9 = vcombine.high %v373_v3, %v377_v4  ;;  %v258_v16 = vld [vmem:[#allocation8 + $0x378] sm:$0xff]  ;;  %v6319_v18 = vcombine.low %v373_v3, %v377_v4  ;;  %v6193_v55 = vcombine.low %v246_v5, %v250_v6 }
 0x157   :  { %2735 = vmatpush1.bf16.msra.mxu0 %v6263_v39  ;;  %v6194_v39 = vcombine.high %v246_v5, %v250_v6  ;;  %v6360_v3 = vcombine.high %v413_v56, %v417_v58  ;;  %v6234_v5 = vcombine.high %v286_v60, %v290_v61  ;;  %v421_v6 = vld [vmem:[#allocation8 + $0x890] sm:$0xff] }
 0x158   :  { %2881 = vmatpush1.bf16.msra.mxu1 %v6137_v13  ;;  %2736 = vmatprep.subr.bf16.mxu0 %v6272_v14  ;;  %v381_v13 = vld [vmem:[#allocation8 + $0x750] sm:$0xff] }
 0x159   :  { %2882 = vmatprep.subr.bf16.mxu1 %v6146_v15  ;;  %v385_v14 = vld [vmem:[#allocation8 + $0x770] sm:$0xff]  ;;  %v254_v15 = vld [vmem:[#allocation8 + $0x358] sm:$0xff] }
 0x15a   :  { %2714 = vmatmul.mubr.bf16.gmra.mrb[28].mxu0 %v7548_v11  ;;  %v222_v11 = vld [vmem:[#allocation8 + $0x258] sm:$0xff]  ;;  %v6328_v19 = vcombine.high %v381_v13, %v385_v14  ;;  %v6327_v28 = vcombine.low %v381_v13, %v385_v14  ;;  %v6201_v29 = vcombine.low %v254_v15, %v258_v16  ;;  %v7168_v13 = vld [vmem:[%s9468_s2] ss:$20 sps:$4 sm:$0xff]   ;;  %v6359_v14 = vcombine.low %v413_v56, %v417_v58 }
 0x15b   :  { %2641 = vmatmul.mubr.bf16.gmra.mrb[28].mxu1 %v7647_v31  ;;  %2737 = vmatpush1.bf16.msra.mxu0 %v6271_v22  ;;  %v6170_v47 = vcombine.high %v222_v11, %v226_v17  ;;  %v6169_v52 = vcombine.low %v222_v11, %v226_v17  ;;  %v6202_v22 = vcombine.high %v254_v15, %v258_v16 }
 0x15c   :  { %2883 = vmatpush1.bf16.msra.mxu1 %v6145_v23  ;;  %2738 = vmatprep.subr.bf16.mxu0 %v6280_v24  ;;  %v389_v23 = vld [vmem:[#allocation8 + $0x790] sm:$0xff]  ;;  %v6233_v15 = vcombine.low %v286_v60, %v290_v61 }
 0x15d   :  { %2884 = vmatprep.subr.bf16.mxu1 %v6154_v26  ;;  %2756 = vmatprep.mubr.bf16.mxu0 %v7553_v12  ;;  %v6295_v12 = vcombine.low %v349_v36, %v353_v38  ;;  %v393_v24 = vld [vmem:[#allocation8 + $0x7b0] sm:$0xff]  ;;  %v262_v26 = vld [vmem:[#allocation8 + $0x398] sm:$0xff] }
 0x15e   :  { %2902 = vmatprep.mubr.bf16.mxu1 %v7167_v40  ;;  %v6336_v30 = vcombine.high %v389_v23, %v393_v24  ;;  %v270_v36 = vld [vmem:[#allocation8 + $0x3d8] sm:$0xff]  ;;  %v6335_v17 = vcombine.low %v389_v23, %v393_v24  ;;  %v7169_v24 = vld [vmem:[%s9468_s2 + $0x2c] ss:$20 sps:$4 sm:$0xff]   ;;  %v453_v61 = vld [vmem:[#allocation8 + $0x990] sm:$0xff] }
 0x15f   :  { %2739 = vmatpush1.bf16.msra.mxu0 %v6279_v57  ;;  %v6210_v57 = vcombine.high %v262_v26, %v266_v27  ;;  %v274_v38 = vld [vmem:[#allocation8 + $0x3f8] sm:$0xff] }
 0x160   :  { %2885 = vmatpush1.bf16.msra.mxu1 %v6153_v32  ;;  %2740 = vmatprep.subr.bf16.mxu0 %v6288_v34  ;;  %v397_v32 = vld [vmem:[#allocation8 + $0x7d0] sm:$0xff] }
 0x161   :  { %2886 = vmatprep.subr.bf16.mxu1 %v6162_v35  ;;  %v401_v34 = vld [vmem:[#allocation8 + $0x7f0] sm:$0xff] }
 0x163   :  { %2741 = vmatpush1.bf16.msra.mxu0 %v6287_v43  ;;  %v6209_v43 = vcombine.low %v262_v26, %v266_v27 }
 0x164   :  { %2887 = vmatpush1.bf16.msra.mxu1 %v6161_v44  ;;  %2742 = vmatprep.subr.bf16.mxu0 %v6296_v46  ;;  %v6344_v44 = vcombine.high %v397_v32, %v401_v34 }
 0x165   :  { %2888 = vmatprep.subr.bf16.mxu1 %v6170_v47  ;;  %v6218_v47 = vcombine.high %v270_v36, %v274_v38 }
 0x167   :  { %2743 = vmatpush1.bf16.msra.mxu0 %v6295_v12  ;;  %v6343_v12 = vcombine.low %v397_v32, %v401_v34  ;;  %v441_v32 = vld [vmem:[#allocation8 + $0x930] sm:$0xff] }
 0x168   :  { %2889 = vmatpush1.bf16.msra.mxu1 %v6169_v52  ;;  %2744 = vmatprep.subr.bf16.mxu0 %v6304_v53  ;;  %v6217_v52 = vcombine.low %v270_v36, %v274_v38  ;;  %v6352_v53 = vcombine.high %v405_v48, %v409_v49  ;;  %v310_v36 = vld [vmem:[#allocation8 + $0x518] sm:$0xff] }
 0x169   :  { %2890 = vmatprep.subr.bf16.mxu1 %v6178_v21  ;;  %v6226_v21 = vcombine.high %v278_v50, %v282_v51  ;;  %v314_v38 = vld [vmem:[#allocation8 + $0x538] sm:$0xff] }
 0x16b   :  { %2745 = vmatpush1.bf16.msra.mxu0 %v6303_v63 }
 0x16c   :  { %2891 = vmatpush1.bf16.msra.mxu1 %v6177_v37  ;;  %2746 = vmatprep.subr.bf16.mxu0 %v6312_v0  ;;  %v6351_v37 = vcombine.low %v405_v48, %v409_v49  ;;  %v445_v48 = vld [vmem:[#allocation8 + $0x950] sm:$0xff] }
 0x16d   :  { %2892 = vmatprep.subr.bf16.mxu1 %v6186_v1  ;;  %v6225_v1 = vcombine.low %v278_v50, %v282_v51  ;;  %v449_v49 = vld [vmem:[#allocation8 + $0x970] sm:$0xff]  ;;  %v7170_v50 = vld [vmem:[%s9468_s2 + $0x28] ss:$20 sps:$4 sm:$0xff]  }
 0x16e   :  { %v322_v51 = vld [vmem:[#allocation8 + $0x578] sm:$0xff]  ;;  %v6392_v56 = vcombine.high %v445_v48, %v449_v49 }
 0x16f   :  { %2747 = vmatpush1.bf16.msra.mxu0 %v6311_v7  ;;  %v425_v7 = vld [vmem:[#allocation8 + $0x8b0] sm:$0xff] }
 0x170   :  { %2893 = vmatpush1.bf16.msra.mxu1 %v6185_v59  ;;  %2748 = vmatprep.subr.bf16.mxu0 %v6320_v9  ;;  %v294_v9 = vld [vmem:[#allocation8 + $0x498] sm:$0xff]  ;;  %v6368_v16 = vcombine.high %v421_v6, %v425_v7  ;;  %v6367_v26 = vcombine.low %v421_v6, %v425_v7  ;;  %v6391_v6 = vcombine.low %v445_v48, %v449_v49 }
 0x171   :  { %2894 = vmatprep.subr.bf16.mxu1 %v6194_v39  ;;  %v298_v39 = vld [vmem:[#allocation8 + $0x4b8] sm:$0xff] }
 0x173   :  { %2749 = vmatpush1.bf16.msra.mxu0 %v6319_v18  ;;  %v6242_v18 = vcombine.high %v294_v9, %v298_v39 }
 0x174   :  { %2895 = vmatpush1.bf16.msra.mxu1 %v6193_v55  ;;  %2750 = vmatprep.subr.bf16.mxu0 %v6328_v19  ;;  %v429_v55 = vld [vmem:[#allocation8 + $0x8d0] sm:$0xff] }
 0x175   :  { %2896 = vmatprep.subr.bf16.mxu1 %v6202_v22  ;;  %v433_v19 = vld [vmem:[#allocation8 + $0x8f0] sm:$0xff]  ;;  %v306_v22 = vld [vmem:[#allocation8 + $0x4f8] sm:$0xff] }
 0x176   :  { %v7654_v35 = vpop.f32.mrb[0].mxu1 }
 0x177   :  { %v7656_v11 = vpop.f32.mrb[1].mxu1  ;;  %2751 = vmatpush1.bf16.msra.mxu0 %v6327_v28  ;;  %v6241_v28 = vcombine.low %v294_v9, %v298_v39 }
 0x178   :  { %v7658_v40 = vpop.f32.mrb[2].mxu1  ;;  %2897 = vmatpush1.bf16.msra.mxu1 %v6201_v29  ;;  %2752 = vmatprep.subr.bf16.mxu0 %v6336_v30 }
 0x179   :  { %v7660_v46 = vpop.f32.mrb[3].mxu1  ;;  %2898 = vmatprep.subr.bf16.mxu1 %v6210_v57  ;;  %v437_v57 = vld [vmem:[#allocation8 + $0x910] sm:$0xff] }
 0x17b   :  { %2753 = vmatpush1.bf16.msra.mxu0 %v6335_v17  ;;  %v6375_v17 = vcombine.low %v429_v55, %v433_v19 }
 0x17c   :  { %2899 = vmatpush1.bf16.msra.mxu1 %v6209_v43  ;;  %2754 = vmatprep.subr.bf16.mxu0 %v6344_v44  ;;  %v6384_v44 = vcombine.high %v437_v57, %v441_v32 }
 0x17d   :  { %2900 = vmatprep.subr.bf16.mxu1 %v6218_v47  ;;  %v6258_v47 = vcombine.high %v310_v36, %v314_v38 }
 0x17e   :  { %v7662_v63 = vpop.f32.mrb[4].mxu1 }
 0x17f   :  { %2755 = vmatpush1.bf16.msra.mxu0 %v6343_v12  ;;  %v7664_v0 = vpop.f32.mrb[5].mxu1 }
 0x180   :  { %2901 = vmatpush1.bf16.msra.mxu1 %v6217_v52  ;;  %2797 = vmatprep.subr.bf16.mxu0 %v6352_v53  ;;  %v7666_v4 = vpop.f32.mrb[6].mxu1  ;;  %v6383_v52 = vcombine.low %v437_v57, %v441_v32 }
 0x181   :  { %2943 = vmatprep.subr.bf16.mxu1 %v6226_v21  ;;  %v7668_v59 = vpop.f32.mrb[7].mxu1  ;;  %v6257_v21 = vcombine.low %v310_v36, %v314_v38  ;;  %v3161_v36 = vld [vmem:[#allocation11 + $0x40] sm:$0xff] }
 0x182   :  { %2757 = vmatmul.mubr.bf16.vlgmr.msra.gmra.mrb[16].mxu0 %v7568_v41  ;;  %v302_v41 = vld [vmem:[#allocation8 + $0x4d8] sm:$0xff]  ;;  %v3165_v38 = vld [vmem:[#allocation11 + $0x60] sm:$0xff] }
 0x183   :  { %2798 = vmatpush1.bf16.msra.mxu0 %v6351_v37  ;;  %2903 = vmatmul.mubr.bf16.vlgmr.msra.gmra.mrb[32].mxu1 %v7168_v13  ;;  %v6250_v30 = vcombine.high %v302_v41, %v306_v22  ;;  %v6249_v43 = vcombine.low %v302_v41, %v306_v22  ;;  %v457_v37 = vld [vmem:[#allocation8 + $0x9b0] sm:$0xff]  ;;  %v3153_v22 = vld [vmem:[#allocation11] sm:$0xff]  ;;  %v7723_v49 = vcombine.high %v3161_v36, %v3165_v38 }
 0x184   :  { %2944 = vmatpush1.bf16.msra.mxu1 %v6225_v1  ;;  %2799 = vmatprep.subr.bf16.mxu0 %v6360_v3  ;;  %v326_v3 = vld [vmem:[#allocation8 + $0x598] sm:$0xff]  ;;  %v6400_v9 = vcombine.high %v453_v61, %v457_v37  ;;  %v461_v13 = vld [vmem:[#allocation8 + $0x9d0] sm:$0xff] }
 0x185   :  { %2945 = vmatprep.subr.bf16.mxu1 %v6234_v5  ;;  %2766 = vmatprep.mubr.bf16.mxu0 %v7573_v45  ;;  %v6376_v45 = vcombine.high %v429_v55, %v433_v19  ;;  %v330_v5 = vld [vmem:[#allocation8 + $0x5b8] sm:$0xff]  ;;  %9712 = vst [vmem:[#allocation24_spill] sm:$0xff] %v7723_v49 }
 0x186   :  { %v7675_v23 = vpop.f32.mrb[8].mxu1  ;;  %2912 = vmatprep.mubr.bf16.mxu1 %v7169_v24  ;;  %v6274_v39 = vcombine.high %v326_v3, %v330_v5  ;;  %v6273_v55 = vcombine.low %v326_v3, %v330_v5  ;;  %v3157_v24 = vld [vmem:[#allocation11 + $0x20] sm:$0xff]  ;;  %v366_v5 = vld [vmem:[#allocation8 + $0x6d8] sm:$0xff] }
 0x187   :  { %2800 = vmatpush1.bf16.msra.mxu0 %v6359_v14  ;;  %v7680_v27 = vpop.f32.mrb[9].mxu1  ;;  %v465_v14 = vld [vmem:[#allocation8 + $0x9f0] sm:$0xff]  ;;  %v7712_v57 = vcombine.high %v3153_v22, %v3157_v24  ;;  %v3181_v3 = vld [vmem:[#allocation11 + $0xe0] sm:$0xff] }
 0x188   :  { %2946 = vmatpush1.bf16.msra.mxu1 %v6233_v15  ;;  %2801 = vmatprep.subr.bf16.mxu0 %v6368_v16  ;;  %v7682_v29 = vpop.f32.mrb[10].mxu1  ;;  %v7172_v15 = vld [vmem:[%s9468_s2 + $0x50] ss:$20 sps:$4 sm:$0xff]   ;;  %v338_v16 = vld [vmem:[#allocation8 + $0x5f8] sm:$0xff]  ;;  %v6408_v19 = vcombine.high %v461_v13, %v465_v14 }
 0x189   :  { %2947 = vmatprep.subr.bf16.mxu1 %v6242_v18  ;;  %v7684_v34 = vpop.f32.mrb[11].mxu1  ;;  %v7173_v18 = vld [vmem:[%s9468_s2 + $0x7c] ss:$20 sps:$4 sm:$0xff]   ;;  %9710 = vst [vmem:[#allocation22_spill] sm:$0xff] %v7712_v57 }
 0x18a   :  { %2767 = vmatmul.mubr.bf16.gmra.mrb[20].mxu0 %v7580_v62  ;;  %v318_v62 = vld [vmem:[#allocation8 + $0x558] sm:$0xff] }
 0x18b   :  { %2802 = vmatpush1.bf16.msra.mxu0 %v6367_v26  ;;  %2776 = vmatprep.mubr.bf16.mxu0 %v7585_v2  ;;  %v7171_v2 = vld [vmem:[%s9468_s2 + $0x54] ss:$20 sps:$4 sm:$0xff]   ;;  %v6266_v60 = vcombine.high %v318_v62, %v322_v51  ;;  %v6265_v7 = vcombine.low %v318_v62, %v322_v51  ;;  %v342_v26 = vld [vmem:[#allocation8 + $0x618] sm:$0xff] }
 0x18c   :  { %2948 = vmatpush1.bf16.msra.mxu1 %v6241_v28  ;;  %2803 = vmatprep.subr.bf16.mxu0 %v6376_v45  ;;  %v346_v28 = vld [vmem:[#allocation8 + $0x638] sm:$0xff]  ;;  %v6407_v45 = vcombine.low %v461_v13, %v465_v14  ;;  %v3169_v62 = vld [vmem:[#allocation11 + $0x80] sm:$0xff] }
 0x18d   :  { %2949 = vmatprep.subr.bf16.mxu1 %v6250_v30  ;;  %2913 = vmatmul.mubr.bf16.gmra.mrb[36].mxu1 %v7170_v50  ;;  %v6290_v32 = vcombine.high %v342_v26, %v346_v28  ;;  %v6289_v48 = vcombine.low %v342_v26, %v346_v28  ;;  %v3173_v51 = vld [vmem:[#allocation11 + $0xa0] sm:$0xff] }
 0x18e   :  { %v7691_v12 = vpop.f32.mrb[12].mxu1  ;;  %2922 = vmatprep.mubr.bf16.mxu1 %v7171_v2  ;;  %v358_v2 = vld [vmem:[#allocation8 + $0x698] sm:$0xff]  ;;  %v3185_v13 = vld [vmem:[#allocation11 + $0x100] sm:$0xff] }
 0x18f   :  { %2804 = vmatpush1.bf16.msra.mxu0 %v6375_v17  ;;  %v7696_v53 = vpop.f32.mrb[13].mxu1  ;;  %v7174_v17 = vld [vmem:[%s9468_s2 + $0x78] ss:$20 sps:$4 sm:$0xff]  }
 0x190   :  { %2950 = vmatpush1.bf16.msra.mxu1 %v6249_v43  ;;  %2805 = vmatprep.subr.bf16.mxu0 %v6384_v44  ;;  %v7698_v58 = vpop.f32.mrb[14].mxu1  ;;  %v354_v43 = vld [vmem:[#allocation8 + $0x678] sm:$0xff]  ;;  %v7175_v44 = vld [vmem:[%s9468_s2 + $0xc] ss:$20 sps:$4 sm:$0xff]  }
 0x191   :  { %2951 = vmatprep.subr.bf16.mxu1 %v6258_v47  ;;  %v7700_v1 = vpop.f32.mrb[15].mxu1  ;;  %v7720_v47 = vcombine.low %v3153_v22, %v3157_v24  ;;  %v3189_v14 = vld [vmem:[#allocation11 + $0x120] sm:$0xff]  ;;  %v382_v22 = vld [vmem:[#allocation8 + $0x758] sm:$0xff] }
 0x192   :  { %2777 = vmatmul.mubr.bf16.gmra.mrb[24].mxu0 %v7592_v20  ;;  %v334_v20 = vld [vmem:[#allocation8 + $0x5d8] sm:$0xff]  ;;  %v7748_v24 = vcombine.low %v3185_v13, %v3189_v14 }
 0x193   :  { %2806 = vmatpush1.bf16.msra.mxu0 %v6383_v52  ;;  %2786 = vmatprep.mubr.bf16.mxu0 %v7597_v25  ;;  %v6399_v25 = vcombine.low %v453_v61, %v457_v37  ;;  %v6282_v41 = vcombine.high %v334_v20, %v338_v16  ;;  %v6281_v30 = vcombine.low %v334_v20, %v338_v16  ;;  %v362_v52 = vld [vmem:[#allocation8 + $0x6b8] sm:$0xff]  ;;  %v3177_v37 = vld [vmem:[#allocation11 + $0xc0] sm:$0xff] }
 0x194   :  { %2952 = vmatpush1.bf16.msra.mxu1 %v6257_v21  ;;  %2807 = vmatprep.subr.bf16.mxu0 %v6392_v56  ;;  %9711 = vst [vmem:[#allocation23_spill] sm:$0xff] %v7720_v47  ;;  %v7727_v21 = vcombine.low %v3161_v36, %v3165_v38  ;;  %v6306_v61 = vcombine.high %v358_v2, %v362_v52  ;;  %v378_v20 = vld [vmem:[#allocation8 + $0x738] sm:$0xff]  ;;  %9719 = vst [vmem:[#allocation31_spill] sm:$0xff] %v7748_v24 }
 0x195   :  { %2953 = vmatprep.subr.bf16.mxu1 %v6266_v60  ;;  %2923 = vmatmul.mubr.bf16.gmra.mrb[40].mxu1 %v7172_v15  ;;  %v7731_v60 = vcombine.high %v3169_v62, %v3173_v51  ;;  %v374_v15 = vld [vmem:[#allocation8 + $0x718] sm:$0xff]  ;;  %v7741_v16 = vcombine.low %v3177_v37, %v3181_v3 }
 0x196   :  { %2932 = vmatprep.mubr.bf16.mxu1 %v7173_v18  ;;  %9713 = vst [vmem:[#allocation25_spill] sm:$0xff] %v7727_v21  ;;  %v6321_v26 = vcombine.low %v374_v15, %v378_v20  ;;  %v390_v36 = vld [vmem:[#allocation8 + $0x798] sm:$0xff] }
 0x197   :  { %2808 = vmatpush1.bf16.msra.mxu0 %v6391_v6  ;;  %9714 = vst [vmem:[#allocation26_spill] sm:$0xff] %v7731_v60  ;;  %v7734_v6 = vcombine.low %v3169_v62, %v3173_v51  ;;  %9717 = vst [vmem:[#allocation29_spill] sm:$0xff] %v7741_v16  ;;  %v394_v38 = vld [vmem:[#allocation8 + $0x7b8] sm:$0xff] }
 0x198   :  { %2954 = vmatpush1.bf16.msra.mxu1 %v6265_v7  ;;  %2809 = vmatprep.subr.bf16.mxu0 %v6400_v9  ;;  %v6305_v7 = vcombine.low %v358_v2, %v362_v52  ;;  %v7737_v9 = vcombine.high %v3177_v37, %v3181_v3  ;;  %v398_v62 = vld [vmem:[#allocation8 + $0x7d8] sm:$0xff]  ;;  %v6337_v2 = vcombine.low %v390_v36, %v394_v38  ;;  %v3221_v37 = vld [vmem:[#allocation11 + $0x220] sm:$0xff] }
 0x199   :  { %2955 = vmatprep.subr.bf16.mxu1 %v6274_v39  ;;  %9715 = vst [vmem:[#allocation27_spill] sm:$0xff] %v7734_v6  ;;  %v406_v3 = vld [vmem:[#allocation8 + $0x818] sm:$0xff] }
 0x19a   :  { %2787 = vmatmul.mubr.bf16.gmra.mrb[28].mxu0 %v7604_v42  ;;  %v350_v42 = vld [vmem:[#allocation8 + $0x658] sm:$0xff]  ;;  %9716 = vst [vmem:[#allocation28_spill] sm:$0xff] %v7737_v9 }
 0x19b   :  { %2810 = vmatpush1.bf16.msra.mxu0 %v6399_v25  ;;  %2829 = vmatprep.mubr.bf16.mxu0 %v9476_v8  ;;  %v6298_v50 = vcombine.high %v350_v42, %v354_v43  ;;  %v6297_v56 = vcombine.low %v350_v42, %v354_v43  ;;  %v7745_v25 = vcombine.high %v3185_v13, %v3189_v14  ;;  %v3225_v14 = vld [vmem:[#allocation11 + $0x240] sm:$0xff] }
 0x19c   :  { %2956 = vmatpush1.bf16.msra.mxu1 %v6273_v55  ;;  %2811 = vmatprep.subr.bf16.mxu0 %v6408_v19  ;;  %v6322_v55 = vcombine.high %v374_v15, %v378_v20  ;;  %v3193_v19 = vld [vmem:[#allocation11 + $0x140] sm:$0xff]  ;;  %v414_v20 = vld [vmem:[#allocation8 + $0x858] sm:$0xff] }
 0x19d   :  { %2957 = vmatprep.subr.bf16.mxu1 %v6282_v41  ;;  %2933 = vmatmul.mubr.bf16.gmra.mrb[44].mxu1 %v7174_v17  ;;  %9718 = vst [vmem:[#allocation30_spill] sm:$0xff] %v7745_v25  ;;  %v3197_v41 = vld [vmem:[#allocation11 + $0x160] sm:$0xff] }
 0x19e   :  { %2975 = vmatprep.mubr.bf16.mxu1 %v7175_v44  ;;  %v7751_v28 = vcombine.high %v3193_v19, %v3197_v41  ;;  %v7755_v17 = vcombine.low %v3193_v19, %v3197_v41  ;;  %v6338_v44 = vcombine.high %v390_v36, %v394_v38  ;;  %v3229_v15 = vld [vmem:[#allocation11 + $0x260] sm:$0xff] }
 0x19f   :  { %2812 = vmatpush1.bf16.msra.mxu0 %v6407_v45  ;;  %v7779_v19 = vcombine.high %v3225_v14, %v3229_v15 }
 0x1a0   :  { %2958 = vmatpush1.bf16.msra.mxu1 %v6281_v30  ;;  %3929 = vmatprep.subr.bf16.mxu0 %v7712_v57  ;;  %9720 = vst [vmem:[#allocation32_spill] sm:$0xff] %v7751_v28  ;;  %v3201_v30 = vld [vmem:[#allocation11 + $0x180] sm:$0xff]  ;;  %9721 = vst [vmem:[#allocation33_spill] sm:$0xff] %v7755_v17 }
 0x1a1   :  { %2959 = vmatprep.subr.bf16.mxu1 %v6290_v32  ;;  %v3205_v32 = vld [vmem:[#allocation11 + $0x1a0] sm:$0xff]  ;;  %9728 = vst [vmem:[#allocation40_spill] sm:$0xff] %v7779_v19 }
 0x1a2   :  { %2830 = vmatmul.mubr.bf16.vlgmr.msra.gmra.mrb[16].mxu0 %v7620_v33  ;;  %v370_v33 = vld [vmem:[#allocation8 + $0x6f8] sm:$0xff]  ;;  %v7759_v43 = vcombine.high %v3201_v30, %v3205_v32  ;;  %v7762_v51 = vcombine.low %v3201_v30, %v3205_v32  ;;  %v7785_v32 = vcombine.low %v3225_v14, %v3229_v15 }
 0x1a3   :  { %3930 = vmatpush1.bf16.msra.mxu0 %v7720_v47  ;;  %2839 = vmatprep.mubr.bf16.mxu0 %v9476_v8  ;;  %v6314_v39 = vcombine.high %v366_v5, %v370_v33  ;;  %v6313_v18 = vcombine.low %v366_v5, %v370_v33  ;;  %v410_v5 = vld [vmem:[#allocation8 + $0x838] sm:$0xff] }
 0x1a4   :  { %2960 = vmatpush1.bf16.msra.mxu1 %v6289_v48  ;;  %3931 = vmatprep.subr.bf16.mxu0 %v7723_v49  ;;  %9722 = vst [vmem:[#allocation34_spill] sm:$0xff] %v7759_v43  ;;  %v3209_v48 = vld [vmem:[#allocation11 + $0x1c0] sm:$0xff]  ;;  %9723 = vst [vmem:[#allocation35_spill] sm:$0xff] %v7762_v51  ;;  %v6354_v13 = vcombine.high %v406_v3, %v410_v5  ;;  %v442_v14 = vld [vmem:[#allocation8 + $0x938] sm:$0xff] }
 0x1a5   :  { %2961 = vmatprep.subr.bf16.mxu1 %v6298_v50  ;;  %v3213_v50 = vld [vmem:[#allocation11 + $0x1e0] sm:$0xff]  ;;  %9729 = vst [vmem:[#allocation41_spill] sm:$0xff] %v7785_v32 }
 0x1a6   :  { %v7765_v52 = vcombine.high %v3209_v48, %v3213_v50  ;;  %v7769_v33 = vcombine.low %v3209_v48, %v3213_v50  ;;  %v7176_v30 = vld [vmem:[%s9468_s2 + $0x8] ss:$20 sps:$4 sm:$0xff]  }
 0x1a7   :  { %3932 = vmatpush1.bf16.msra.mxu0 %v7727_v21  ;;  %v3241_v48 = vld [vmem:[#allocation11 + $0x2c0] sm:$0xff] }
 0x1a8   :  { %2962 = vmatpush1.bf16.msra.mxu1 %v6297_v56  ;;  %3933 = vmatprep.subr.bf16.mxu0 %v7731_v60  ;;  %9724 = vst [vmem:[#allocation36_spill] sm:$0xff] %v7765_v52  ;;  %9725 = vst [vmem:[#allocation37_spill] sm:$0xff] %v7769_v33  ;;  %v3245_v50 = vld [vmem:[#allocation11 + $0x2e0] sm:$0xff] }
 0x1a9   :  { %2963 = vmatprep.subr.bf16.mxu1 %v6306_v61  ;;  %v3217_v61 = vld [vmem:[#allocation11 + $0x200] sm:$0xff] }
 0x1aa   :  { %2840 = vmatmul.mubr.bf16.gmra.mrb[20].mxu0 %v7629_v54  ;;  %v386_v54 = vld [vmem:[#allocation8 + $0x778] sm:$0xff] }
 0x1ab   :  { %3934 = vmatpush1.bf16.msra.mxu0 %v7734_v6  ;;  %2849 = vmatprep.mubr.bf16.mxu0 %v9476_v8  ;;  %v6330_v45 = vcombine.high %v382_v22, %v386_v54  ;;  %v6329_v42 = vcombine.low %v382_v22, %v386_v54  ;;  %v3233_v22 = vld [vmem:[#allocation11 + $0x280] sm:$0xff] }
 0x1ac   :  { %2964 = vmatpush1.bf16.msra.mxu1 %v6305_v7  ;;  %3935 = vmatprep.subr.bf16.mxu0 %v7737_v9  ;;  %v3237_v54 = vld [vmem:[#allocation11 + $0x2a0] sm:$0xff] }
 0x1ad   :  { %2965 = vmatprep.subr.bf16.mxu1 %v6314_v39  ;;  %v7773_v39 = vcombine.high %v3217_v61, %v3221_v37  ;;  %v7788_v38 = vcombine.high %v3233_v22, %v3237_v54 }
 0x1af   :  { %3936 = vmatpush1.bf16.msra.mxu0 %v7741_v16  ;;  %9726 = vst [vmem:[#allocation38_spill] sm:$0xff] %v7773_v39  ;;  %9730 = vst [vmem:[#allocation42_spill] sm:$0xff] %v7788_v38 }
 0x1b0   :  { %2966 = vmatpush1.bf16.msra.mxu1 %v6313_v18  ;;  %3937 = vmatprep.subr.bf16.mxu0 %v7745_v25  ;;  %v7776_v18 = vcombine.low %v3217_v61, %v3221_v37  ;;  %v7797_v37 = vcombine.high %v3241_v48, %v3245_v50 }
 0x1b1   :  { %2967 = vmatprep.subr.bf16.mxu1 %v6322_v55  ;;  %v6353_v55 = vcombine.low %v406_v3, %v410_v5  ;;  %v3249_v5 = vld [vmem:[#allocation11 + $0x300] sm:$0xff] }
 0x1b2   :  { %2850 = vmatmul.mubr.bf16.gmra.mrb[24].mxu0 %v7638_v10  ;;  %v402_v10 = vld [vmem:[#allocation8 + $0x7f8] sm:$0xff]  ;;  %9727 = vst [vmem:[#allocation39_spill] sm:$0xff] %v7776_v18  ;;  %9732 = vst [vmem:[#allocation44_spill] sm:$0xff] %v7797_v37 }
 0x1b3   :  { %3938 = vmatpush1.bf16.msra.mxu0 %v7748_v24  ;;  %2859 = vmatprep.mubr.bf16.mxu0 %v9476_v8  ;;  %v6346_v56 = vcombine.high %v398_v62, %v402_v10  ;;  %v6345_v7 = vcombine.low %v398_v62, %v402_v10  ;;  %v430_v62 = vld [vmem:[#allocation8 + $0x8d8] sm:$0xff] }
 0x1b4   :  { %2968 = vmatpush1.bf16.msra.mxu1 %v6321_v26  ;;  %3939 = vmatprep.subr.bf16.mxu0 %v7751_v28  ;;  %v422_v26 = vld [vmem:[#allocation8 + $0x898] sm:$0xff] }
 0x1b5   :  { %2969 = vmatprep.subr.bf16.mxu1 %v6330_v45  ;;  %v426_v45 = vld [vmem:[#allocation8 + $0x8b8] sm:$0xff] }
 0x1b6   :  { %v434_v10 = vld [vmem:[#allocation8 + $0x8f8] sm:$0xff]  ;;  %v6369_v61 = vcombine.low %v422_v26, %v426_v45 }
 0x1b7   :  { %3940 = vmatpush1.bf16.msra.mxu0 %v7755_v17  ;;  %v6378_v3 = vcombine.high %v430_v62, %v434_v10 }
 0x1b8   :  { %2970 = vmatpush1.bf16.msra.mxu1 %v6329_v42  ;;  %3941 = vmatprep.subr.bf16.mxu0 %v7759_v43  ;;  %v7177_v42 = vld [vmem:[%s9468_s2 + $0x34] ss:$20 sps:$4 sm:$0xff]  }
 0x1b9   :  { %2971 = vmatprep.subr.bf16.mxu1 %v6338_v44  ;;  %v6370_v44 = vcombine.high %v422_v26, %v426_v45  ;;  %v3257_v26 = vld [vmem:[#allocation11 + $0x340] sm:$0xff] }
 0x1ba   :  { %2860 = vmatmul.mubr.bf16.gmra.mrb[28].mxu0 %v7647_v31  ;;  %v418_v31 = vld [vmem:[#allocation8 + $0x878] sm:$0xff]  ;;  %v3261_v45 = vld [vmem:[#allocation11 + $0x360] sm:$0xff] }
 0x1bb   :  { %3942 = vmatpush1.bf16.msra.mxu0 %v7762_v51  ;;  %3961 = vmatprep.mubr.bf16.mxu0 %v9476_v8  ;;  %v6362_v41 = vcombine.high %v414_v20, %v418_v31  ;;  %v6361_v36 = vcombine.low %v414_v20, %v418_v31  ;;  %v7178_v20 = vld [vmem:[%s9468_s2 + $0x30] ss:$20 sps:$4 sm:$0xff]   ;;  %v7805_v31 = vcombine.low %v3241_v48, %v3245_v50 }
 0x1bc   :  { %2972 = vmatpush1.bf16.msra.mxu1 %v6337_v2  ;;  %3943 = vmatprep.subr.bf16.mxu0 %v7765_v52  ;;  %v469_v2 = vlaneseq  ;;  %v7817_v48 = vld [vmem:[#allocation9] sm:$0xff] }
 0x1bd   :  { %2973 = vmatprep.subr.bf16.mxu1 %v6346_v56  ;;  %v7794_v56 = vcombine.low %v3233_v22, %v3237_v54  ;;  %9733 = vst [vmem:[#allocation45_spill] sm:$0xff] %v7805_v31  ;;  %v7179_v22 = vld [vmem:[%s9468_s2 + $0x5c] ss:$20 sps:$4 sm:$0xff]   ;;  %v7181_v8 = vld [vmem:[%s9468_s2 + $0x84] ss:$20 sps:$4 sm:$0xff]  }
 0x1be   :  { %v7799_v15 = vshrl.u32 %v469_v2, 7 }
 0x1bf   :  { %3944 = vmatpush1.bf16.msra.mxu0 %v7769_v33  ;;  %9731 = vst [vmem:[#allocation43_spill] sm:$0xff] %v7794_v56 }
 0x1c0   :  { %2974 = vmatpush1.bf16.msra.mxu1 %v6345_v7  ;;  %3945 = vmatprep.subr.bf16.mxu0 %v7773_v39  ;;  %v3253_v7 = vld [vmem:[#allocation11 + $0x320] sm:$0xff]  ;;  %v475_v50 = vsub.s32 1, %v7799_v15 }
 0x1c1   :  { %3016 = vmatprep.subr.bf16.mxu1 %v6354_v13  ;;  %v438_v13 = vld [vmem:[#allocation8 + $0x918] sm:$0xff] }
 0x1c2   :  { %v6386_v54 = vcombine.high %v438_v13, %v442_v14 }
 0x1c3   :  { %2976 = vmatmul.mubr.bf16.vlgmr.msra.gmra.mrb[32].mxu1 %v7176_v30  ;;  %3946 = vmatpush1.bf16.msra.mxu0 %v7776_v18  ;;  %v471_v30 = vsub.s32 0, %v7799_v15 }
 0x1c4   :  { %3017 = vmatpush1.bf16.msra.mxu1 %v6353_v55  ;;  %3947 = vmatprep.subr.bf16.mxu0 %v7779_v19  ;;  %v6377_v55 = vcombine.low %v430_v62, %v434_v10  ;;  %v6385_v62 = vcombine.low %v438_v13, %v442_v14  ;;  %v7821_v10 = vcombine.high %v3257_v26, %v3261_v45 }
 0x1c5   :  { %3018 = vmatprep.subr.bf16.mxu1 %v6362_v41  ;;  %2985 = vmatprep.mubr.bf16.mxu1 %v7177_v42  ;;  %v7808_v41 = vcombine.high %v3249_v5, %v3253_v7  ;;  %v450_v42 = vld [vmem:[#allocation8 + $0x978] sm:$0xff]  ;;  %v7831_v13 = vrot.slane %v7817_v48, %v475_v50  ;;  %v7833_v14 = vcombine.low %v3257_v26, %v3261_v45 }
 0x1c6   :  { %9736 = vst [vmem:[#allocation48_spill] sm:$0xff] %v7821_v10  ;;  %v462_v45 = vld [vmem:[#allocation8 + $0x9d8] sm:$0xff] }
 0x1c7   :  { %3948 = vmatpush1.bf16.msra.mxu0 %v7785_v32  ;;  %9734 = vst [vmem:[#allocation46_spill] sm:$0xff] %v7808_v41  ;;  %9737 = vst [vmem:[#allocation49_spill] sm:$0xff] %v7833_v14 }
 0x1c8   :  { %3019 = vmatpush1.bf16.msra.mxu1 %v6361_v36  ;;  %3949 = vmatprep.subr.bf16.mxu0 %v7788_v38  ;;  %v446_v36 = vld [vmem:[#allocation8 + $0x958] sm:$0xff] }
 0x1c9   :  { %3020 = vmatprep.subr.bf16.mxu1 %v6370_v44  ;;  %v7815_v44 = vcombine.low %v3249_v5, %v3253_v7  ;;  %v6394_v2 = vcombine.high %v446_v36, %v450_v42  ;;  %v458_v5 = vld [vmem:[#allocation8 + $0x9b8] sm:$0xff] }
 0x1ca   :  { %v7180_v7 = vld [vmem:[%s9468_s2 + $0x58] ss:$20 sps:$4 sm:$0xff]  }
 0x1cb   :  { %2986 = vmatmul.mubr.bf16.gmra.mrb[36].mxu1 %v7178_v20  ;;  %3950 = vmatpush1.bf16.msra.mxu0 %v7794_v56  ;;  %9735 = vst [vmem:[#allocation47_spill] sm:$0xff] %v7815_v44  ;;  %v7824_v20 = vrot.slane %v7817_v48, %v471_v30  ;;  %v3155_v38 = vld [vmem:[#allocation11 + $0x10] sm:$0xff] }
 0x1cc   :  { %3021 = vmatpush1.bf16.msra.mxu1 %v6369_v61  ;;  %3951 = vmatprep.subr.bf16.mxu0 %v7797_v37  ;;  %v3265_v61 = vld [vmem:[#allocation11 + $0x380] sm:$0xff] }
 0x1cd   :  { %3022 = vmatprep.subr.bf16.mxu1 %v6378_v3  ;;  %2995 = vmatprep.mubr.bf16.mxu1 %v7179_v22  ;;  %v3269_v3 = vld [vmem:[#allocation11 + $0x3a0] sm:$0xff]  ;;  %v454_v22 = vld [vmem:[#allocation8 + $0x998] sm:$0xff] }
 0x1cf   :  { %3952 = vmatpush1.bf16.msra.mxu0 %v7805_v31 }
 0x1d0   :  { %3023 = vmatpush1.bf16.msra.mxu1 %v6377_v55  ;;  %3953 = vmatprep.subr.bf16.mxu0 %v7808_v41  ;;  %v6393_v55 = vcombine.low %v446_v36, %v450_v42  ;;  %v3277_v41 = vld [vmem:[#allocation11 + $0x3e0] sm:$0xff] }
 0x1d1   :  { %3024 = vmatprep.subr.bf16.mxu1 %v6386_v54  ;;  %v7836_v54 = vcombine.high %v3265_v61, %v3269_v3 }
 0x1d3   :  { %2996 = vmatmul.mubr.bf16.gmra.mrb[40].mxu1 %v7180_v7  ;;  %3954 = vmatpush1.bf16.msra.mxu0 %v7815_v44  ;;  %9738 = vst [vmem:[#allocation50_spill] sm:$0xff] %v7836_v54  ;;  %v6402_v7 = vcombine.high %v454_v22, %v458_v5  ;;  %v3273_v44 = vld [vmem:[#allocation11 + $0x3c0] sm:$0xff] }
 0x1d4   :  { %3025 = vmatpush1.bf16.msra.mxu1 %v6385_v62  ;;  %3955 = vmatprep.subr.bf16.mxu0 %v7821_v10  ;;  %v466_v62 = vld [vmem:[#allocation8 + $0x9f8] sm:$0xff]  ;;  %v6401_v10 = vcombine.low %v454_v22, %v458_v5  ;;  %v7848_v37 = vcombine.high %v3273_v44, %v3277_v41  ;;  %v3158_v22 = vld [vmem:[#allocation11 + $0x28] sm:$0xff] }
 0x1d5   :  { %v2320_v30 = vpop.f32.mrb[0].mxu0  ;;  %3026 = vmatprep.subr.bf16.mxu1 %v6394_v2  ;;  %3005 = vmatprep.mubr.bf16.mxu1 %v7181_v8  ;;  %v7844_v2 = vcombine.low %v3265_v61, %v3269_v3  ;;  %v3154_v3 = vld [vmem:[#allocation11 + $0x8] sm:$0xff] }
 0x1d6   :  { %v6647_v50 = vadd.f32 %v2320_v30, %v7824_v20  ;;  %v2322_v26 = vpop.f32.mrb[1].mxu0  ;;  %9740 = vst [vmem:[#allocation52_spill] sm:$0xff] %v7848_v37 }
 0x1d7   :  { %v6649_v36 = vadd.f32 %v2322_v26, %v7831_v13  ;;  %v2324_v42 = vpop.f32.mrb[2].mxu0  ;;  %3956 = vmatpush1.bf16.msra.mxu0 %v7833_v14  ;;  %9739 = vst [vmem:[#allocation51_spill] sm:$0xff] %v7844_v2  ;;  %v6410_v26 = vcombine.high %v462_v45, %v466_v62  ;;  %v3159_v14 = vld [vmem:[#allocation11 + $0x30] sm:$0xff] }
 0x1d8   :  { %v6651_v31 = vadd.f32 %v2324_v42, %v7824_v20  ;;  %3027 = vmatpush1.bf16.msra.mxu1 %v6393_v55  ;;  %v2326_v8 = vpop.f32.mrb[3].mxu0  ;;  %3957 = vmatprep.subr.bf16.mxu0 %v7836_v54  ;;  %v7851_v30 = vadd.f32 %v6647_v50, %v7654_v35  ;;  %v7182_v55 = vld [vmem:[%s9468_s2 + $0x80] ss:$20 sps:$4 sm:$0xff]   ;;  %v7864_v35 = vcombine.low %v3273_v44, %v3277_v41  ;;  %v3163_v42 = vld [vmem:[#allocation11 + $0x50] sm:$0xff] }
 0x1d9   :  { %v6653_v56 = vadd.f32 %v2326_v8, %v7831_v13  ;;  %3028 = vmatprep.subr.bf16.mxu1 %v6402_v7  ;;  %v7855_v61 = vadd.f32 %v6649_v36, %v7656_v11  ;;  %v6409_v11 = vcombine.low %v462_v45, %v466_v62  ;;  %v7870_v50 = vcombine.high %v3155_v38, %v3159_v14  ;;  %v3167_v8 = vld [vmem:[#allocation11 + $0x70] sm:$0xff] }
 0x1da   :  { %9741 = vst [vmem:[#allocation53_spill] sm:$0xff] %v7851_v30  ;;  %v7858_v5 = vadd.f32 %v6651_v31, %v7658_v40  ;;  %9744 = vst [vmem:[#allocation56_spill] sm:$0xff] %v7864_v35  ;;  %v9747_v31 = vmov 0   ;;  %v7873_v36 = vcombine.high %v3154_v3, %v3158_v22  ;;  %v7878_v45 = vcombine.low %v3154_v3, %v3158_v22  ;;  %v3171_v3 = vld [vmem:[#allocation11 + $0x90] sm:$0xff]  ;;  %v3170_v22 = vld [vmem:[#allocation11 + $0x88] sm:$0xff] }
 0x1db   :  { %9742 = vst [vmem:[#allocation54_spill] sm:$0xff] %v7855_v61  ;;  %3006 = vmatmul.mubr.bf16.gmra.mrb[44].mxu1 %v7182_v55  ;;  %3958 = vmatpush1.bf16.msra.mxu0 %v7844_v2  ;;  %v7867_v7 = vadd.f32 %v6653_v56, %v7660_v46  ;;  %9746 = vst [vmem:[#allocation58_spill] sm:$0xff] %v7870_v50  ;;  %v3162_v55 = vld [vmem:[#allocation11 + $0x48] sm:$0xff]  ;;  %v7880_v62 = vcombine.low %v3155_v38, %v3159_v14  ;;  %v3175_v38 = vld [vmem:[#allocation11 + $0xb0] sm:$0xff] }
 0x1dc   :  { %9743 = vst [vmem:[#allocation55_spill] sm:$0xff] %v7858_v5  ;;  %3029 = vmatpush1.bf16.msra.mxu1 %v6401_v10  ;;  %3959 = vmatprep.subr.bf16.mxu0 %v7848_v37  ;;  %9748 = vst [vmem:[#allocation59_spill] sm:$0xff] %v7873_v36  ;;  %v3166_v46 = vld [vmem:[#allocation11 + $0x68] sm:$0xff]  ;;  %v7884_v5 = vcombine.high %v3163_v42, %v3167_v8 }
 0x1dd   :  { %9745 = vst [vmem:[#allocation57_spill] sm:$0xff] %v7867_v7  ;;  %v2330_v40 = vpop.f32.mrb[4].mxu0  ;;  %3030 = vmatprep.subr.bf16.mxu1 %v6410_v26  ;;  %3048 = vmatprep.mubr.bf16.mxu1 %v9747_v31  ;;  %9749 = vst [vmem:[#allocation60_spill] sm:$0xff] %v7878_v45  ;;  %v7891_v61 = vcombine.high %v3162_v55, %v3166_v46  ;;  %v3242_v30 = vld [vmem:[#allocation11 + $0x2c8] sm:$0xff] }
 0x1de   :  { %v6655_v41 = vadd.f32 %v2330_v40, %v7824_v20  ;;  %v2332_v44 = vpop.f32.mrb[5].mxu0  ;;  %9750 = vst [vmem:[#allocation61_spill] sm:$0xff] %v7880_v62  ;;  %9751 = vst [vmem:[#allocation62_spill] sm:$0xff] %v7884_v5 }
 0x1df   :  { %v6657_v56 = vadd.f32 %v2332_v44, %v7831_v13  ;;  %v2334_v10 = vpop.f32.mrb[6].mxu0  ;;  %3960 = vmatpush1.bf16.msra.mxu0 %v7864_v35  ;;  %9753 = vst [vmem:[#allocation64_spill] sm:$0xff] %v7891_v61 }
 0x1e0   :  { %v6659_v26 = vadd.f32 %v2334_v10, %v7824_v20  ;;  %3031 = vmatpush1.bf16.msra.mxu1 %v6409_v11  ;;  %v2336_v7 = vpop.f32.mrb[7].mxu0  ;;  %4011 = vmatprep.subr.bf16.mxu0 %v7870_v50  ;;  %v7887_v40 = vadd.f32 %v6655_v41, %v7662_v63  ;;  %v3174_v11 = vld [vmem:[#allocation11 + $0xa8] sm:$0xff] }
 0x1e1   :  { %v6661_v44 = vadd.f32 %v2336_v7, %v7831_v13  ;;  %3970 = vmatprep.subr.bf16.mxu1 %v7873_v36  ;;  %v7894_v14 = vadd.f32 %v6657_v56, %v7664_v0  ;;  %v7183_v63 = vld [vmem:[%s9468_s2 + $0x10] ss:$20 sps:$4 sm:$0xff]   ;;  %v7904_v7 = vcombine.low %v3163_v42, %v3167_v8  ;;  %v7911_v0 = vcombine.low %v3162_v55, %v3166_v46  ;;  %v3179_v42 = vld [vmem:[#allocation11 + $0xd0] sm:$0xff] }
 0x1e2   :  { %9752 = vst [vmem:[#allocation63_spill] sm:$0xff] %v7887_v40  ;;  %3962 = vmatmul.mubr.bf16.vlgmr.msra.gmra.mrb[32].mxu0 %v9747_v31  ;;  %v7898_v10 = vadd.f32 %v6659_v26, %v7666_v4  ;;  %v7913_v4 = vcombine.high %v3171_v3, %v3175_v38  ;;  %v7917_v26 = vcombine.high %v3170_v22, %v3174_v11  ;;  %v3183_v8 = vld [vmem:[#allocation11 + $0xf0] sm:$0xff] }
 0x1e3   :  { %9754 = vst [vmem:[#allocation65_spill] sm:$0xff] %v7894_v14  ;;  %3049 = vmatmul.mubr.bf16.vlgmr.msra.gmra.mrb[32].mxu1 %v7183_v63  ;;  %4012 = vmatpush1.bf16.msra.mxu0 %v7880_v62  ;;  %9756 = vst [vmem:[#allocation67_spill] sm:$0xff] %v7904_v7  ;;  %v7907_v41 = vadd.f32 %v6661_v44, %v7668_v59  ;;  %v3178_v63 = vld [vmem:[#allocation11 + $0xc8] sm:$0xff]  ;;  %v7925_v14 = vcombine.low %v3171_v3, %v3175_v38  ;;  %v3187_v3 = vld [vmem:[#allocation11 + $0x110] sm:$0xff] }
 0x1e4   :  { %9755 = vst [vmem:[#allocation66_spill] sm:$0xff] %v7898_v10  ;;  %3971 = vmatpush1.bf16.msra.mxu1 %v7878_v45  ;;  %4013 = vmatprep.subr.bf16.mxu0 %v7884_v5  ;;  %9758 = vst [vmem:[#allocation69_spill] sm:$0xff] %v7911_v0  ;;  %v7923_v10 = vcombine.low %v3170_v22, %v3174_v11  ;;  %v3191_v38 = vld [vmem:[#allocation11 + $0x130] sm:$0xff] }
 0x1e5   :  { %9757 = vst [vmem:[#allocation68_spill] sm:$0xff] %v7907_v41  ;;  %9759 = vst [vmem:[#allocation70_spill] sm:$0xff] %v7913_v4  ;;  %v2340_v56 = vpop.f32.mrb[8].mxu0  ;;  %3972 = vmatprep.subr.bf16.mxu1 %v7891_v61  ;;  %3058 = vmatprep.mubr.bf16.mxu1 %v9747_v31  ;;  %v3182_v41 = vld [vmem:[#allocation11 + $0xe8] sm:$0xff] }
 0x1e6   :  { %9760 = vst [vmem:[#allocation71_spill] sm:$0xff] %v7917_v26  ;;  %v6663_v59 = vadd.f32 %v2340_v56, %v7824_v20  ;;  %v2342_v44 = vpop.f32.mrb[9].mxu0  ;;  %4043 = vmatprep.mubr.bf16.mxu0 %v9747_v31  ;;  %9761 = vst [vmem:[#allocation72_spill] sm:$0xff] %v7923_v10  ;;  %v7930_v56 = vcombine.high %v3179_v42, %v3183_v8  ;;  %v7937_v22 = vcombine.high %v3178_v63, %v3182_v41 }
 0x1e7   :  { %v6665_v55 = vadd.f32 %v2342_v44, %v7831_v13  ;;  %v2344_v46 = vpop.f32.mrb[10].mxu0  ;;  %4014 = vmatpush1.bf16.msra.mxu0 %v7904_v7  ;;  %9762 = vst [vmem:[#allocation73_spill] sm:$0xff] %v7925_v14  ;;  %v3190_v7 = vld [vmem:[#allocation11 + $0x128] sm:$0xff] }
 0x1e8   :  { %v6667_v40 = vadd.f32 %v2344_v46, %v7824_v20  ;;  %3973 = vmatpush1.bf16.msra.mxu1 %v7911_v0  ;;  %v2346_v5 = vpop.f32.mrb[11].mxu0  ;;  %4015 = vmatprep.subr.bf16.mxu0 %v7913_v4  ;;  %9763 = vst [vmem:[#allocation74_spill] sm:$0xff] %v7930_v56  ;;  %v7933_v62 = vadd.f32 %v6663_v59, %v7675_v23  ;;  %9765 = vst [vmem:[#allocation76_spill] sm:$0xff] %v7937_v22  ;;  %v3186_v46 = vld [vmem:[#allocation11 + $0x108] sm:$0xff]  ;;  %v7184_v23 = vld [vmem:[%s9468_s2 + $0x38] ss:$20 sps:$4 sm:$0xff]  }
 0x1e9   :  { %v6669_v44 = vadd.f32 %v2346_v5, %v7831_v13  ;;  %3974 = vmatprep.subr.bf16.mxu1 %v7917_v26  ;;  %v7940_v11 = vadd.f32 %v6665_v55, %v7680_v27  ;;  %v7949_v5 = vcombine.low %v3179_v42, %v3183_v8  ;;  %v7956_v27 = vcombine.low %v3178_v63, %v3182_v41  ;;  %v3195_v42 = vld [vmem:[#allocation11 + $0x150] sm:$0xff] }
 0x1ea   :  { %9764 = vst [vmem:[#allocation75_spill] sm:$0xff] %v7933_v62  ;;  %v7943_v4 = vadd.f32 %v6667_v40, %v7682_v29  ;;  %v7958_v29 = vcombine.high %v3187_v3, %v3191_v38  ;;  %v7962_v55 = vcombine.high %v3186_v46, %v3190_v7  ;;  %v3199_v8 = vld [vmem:[#allocation11 + $0x170] sm:$0xff]  ;;  %v7967_v63 = vcombine.low %v3186_v46, %v3190_v7  ;;  %v3202_v46 = vld [vmem:[#allocation11 + $0x188] sm:$0xff] }
 0x1eb   :  { %9766 = vst [vmem:[#allocation77_spill] sm:$0xff] %v7940_v11  ;;  %3059 = vmatmul.mubr.bf16.gmra.mrb[36].mxu1 %v7184_v23  ;;  %4016 = vmatpush1.bf16.msra.mxu0 %v7925_v14  ;;  %9768 = vst [vmem:[#allocation79_spill] sm:$0xff] %v7949_v5  ;;  %v7952_v59 = vadd.f32 %v6669_v44, %v7684_v34  ;;  %v3194_v23 = vld [vmem:[#allocation11 + $0x148] sm:$0xff]  ;;  %v7969_v11 = vcombine.low %v3187_v3, %v3191_v38  ;;  %v3203_v3 = vld [vmem:[#allocation11 + $0x190] sm:$0xff] }
 0x1ec   :  { %9767 = vst [vmem:[#allocation78_spill] sm:$0xff] %v7943_v4  ;;  %3975 = vmatpush1.bf16.msra.mxu1 %v7923_v10  ;;  %4017 = vmatprep.subr.bf16.mxu0 %v7930_v56  ;;  %9770 = vst [vmem:[#allocation81_spill] sm:$0xff] %v7956_v27  ;;  %v3207_v38 = vld [vmem:[#allocation11 + $0x1b0] sm:$0xff] }
 0x1ed   :  { %9769 = vst [vmem:[#allocation80_spill] sm:$0xff] %v7952_v59  ;;  %9771 = vst [vmem:[#allocation82_spill] sm:$0xff] %v7958_v29  ;;  %v2350_v40 = vpop.f32.mrb[12].mxu0  ;;  %3976 = vmatprep.subr.bf16.mxu1 %v7937_v22  ;;  %3068 = vmatprep.mubr.bf16.mxu1 %v9747_v31  ;;  %v3198_v59 = vld [vmem:[#allocation11 + $0x168] sm:$0xff] }
 0x1ee   :  { %9772 = vst [vmem:[#allocation83_spill] sm:$0xff] %v7962_v55  ;;  %v6671_v34 = vadd.f32 %v2350_v40, %v7824_v20  ;;  %v2352_v44 = vpop.f32.mrb[13].mxu0  ;;  %9773 = vst [vmem:[#allocation84_spill] sm:$0xff] %v7967_v63  ;;  %v7974_v40 = vcombine.high %v3195_v42, %v3199_v8  ;;  %v7981_v7 = vcombine.high %v3194_v23, %v3198_v59 }
 0x1ef   :  { %v6673_v4 = vadd.f32 %v2352_v44, %v7831_v13  ;;  %v2354_v41 = vpop.f32.mrb[14].mxu0  ;;  %4018 = vmatpush1.bf16.msra.mxu0 %v7949_v5  ;;  %9774 = vst [vmem:[#allocation85_spill] sm:$0xff] %v7969_v11  ;;  %v3238_v5 = vld [vmem:[#allocation11 + $0x2a8] sm:$0xff] }
 0x1f0   :  { %v6675_v62 = vadd.f32 %v2354_v41, %v7824_v20  ;;  %3977 = vmatpush1.bf16.msra.mxu1 %v7956_v27  ;;  %v2356_v56 = vpop.f32.mrb[15].mxu0  ;;  %4019 = vmatprep.subr.bf16.mxu0 %v7958_v29  ;;  %9775 = vst [vmem:[#allocation86_spill] sm:$0xff] %v7974_v40  ;;  %v7977_v14 = vadd.f32 %v6671_v34, %v7691_v12  ;;  %9777 = vst [vmem:[#allocation88_spill] sm:$0xff] %v7981_v7  ;;  %v3206_v41 = vld [vmem:[#allocation11 + $0x1a8] sm:$0xff] }
 0x1f1   :  { %v6677_v44 = vadd.f32 %v2356_v56, %v7831_v13  ;;  %3978 = vmatprep.subr.bf16.mxu1 %v7962_v55  ;;  %v7984_v20 = vadd.f32 %v6673_v4, %v7696_v53  ;;  %v7185_v12 = vld [vmem:[%s9468_s2 + $0x60] ss:$20 sps:$4 sm:$0xff]   ;;  %v7993_v13 = vcombine.low %v3195_v42, %v3199_v8  ;;  %v8000_v53 = vcombine.low %v3194_v23, %v3198_v59  ;;  %v3211_v4 = vld [vmem:[#allocation11 + $0x1d0] sm:$0xff] }
 0x1f2   :  { %9776 = vst [vmem:[#allocation87_spill] sm:$0xff] %v7977_v14  ;;  %v7987_v29 = vadd.f32 %v6675_v62, %v7698_v58  ;;  %v8002_v58 = vcombine.high %v3203_v3, %v3207_v38  ;;  %v8006_v62 = vcombine.high %v3202_v46, %v3206_v41  ;;  %v3215_v42 = vld [vmem:[#allocation11 + $0x1f0] sm:$0xff]  ;;  %v3210_v8 = vld [vmem:[#allocation11 + $0x1c8] sm:$0xff]  ;;  %v8013_v59 = vcombine.low %v3202_v46, %v3206_v41 }
 0x1f3   :  { %9778 = vst [vmem:[#allocation89_spill] sm:$0xff] %v7984_v20  ;;  %3069 = vmatmul.mubr.bf16.gmra.mrb[40].mxu1 %v7185_v12  ;;  %4020 = vmatpush1.bf16.msra.mxu0 %v7969_v11  ;;  %9780 = vst [vmem:[#allocation91_spill] sm:$0xff] %v7993_v13  ;;  %v7996_v56 = vadd.f32 %v6677_v44, %v7700_v1  ;;  %v3214_v34 = vld [vmem:[#allocation11 + $0x1e8] sm:$0xff]  ;;  %v8009_v1 = vcombine.low %v3203_v3, %v3207_v38  ;;  %v3219_v12 = vld [vmem:[#allocation11 + $0x210] sm:$0xff] }
 0x1f4   :  { %9779 = vst [vmem:[#allocation90_spill] sm:$0xff] %v7987_v29  ;;  %3979 = vmatpush1.bf16.msra.mxu1 %v7967_v63  ;;  %4021 = vmatprep.subr.bf16.mxu0 %v7974_v40  ;;  %9782 = vst [vmem:[#allocation93_spill] sm:$0xff] %v8000_v53  ;;  %v8015_v23 = vcombine.high %v3211_v4, %v3215_v42  ;;  %v8018_v44 = vcombine.high %v3210_v8, %v3214_v34  ;;  %v3218_v29 = vld [vmem:[#allocation11 + $0x208] sm:$0xff]  ;;  %v7186_v3 = vld [vmem:[%s9468_s2 + $0x88] ss:$20 sps:$4 sm:$0xff]   ;;  %s5805_s2 = sld [smem:[#allocation5]] }
 0x1f5   :  { %9781 = vst [vmem:[#allocation92_spill] sm:$0xff] %v7996_v56  ;;  %9783 = vst [vmem:[#allocation94_spill] sm:$0xff] %v8002_v58  ;;  %3980 = vmatprep.subr.bf16.mxu1 %v7981_v7  ;;  %3078 = vmatprep.mubr.bf16.mxu1 %v9747_v31  ;;  %v3223_v56 = vld [vmem:[#allocation11 + $0x230] sm:$0xff]  ;;  %v3222_v20 = vld [vmem:[#allocation11 + $0x228] sm:$0xff]  ;;  %v8024_v38 = vcombine.low %v3211_v4, %v3215_v42  ;;  %v8028_v46 = vcombine.low %v3210_v8, %v3214_v34 }
 0x1f6   :  { %9784 = vst [vmem:[#allocation95_spill] sm:$0xff] %v8006_v62  ;;  %9785 = vst [vmem:[#allocation96_spill] sm:$0xff] %v8009_v1  ;;  %v8030_v41 = vcombine.high %v3219_v12, %v3223_v56  ;;  %v8033_v14 = vcombine.high %v3218_v29, %v3222_v20  ;;  %v8037_v4 = vcombine.low %v3219_v12, %v3223_v56  ;;  %v3239_v40 = vld [vmem:[#allocation11 + $0x2b0] sm:$0xff]  ;;  %v3234_v11 = vld [vmem:[#allocation11 + $0x288] sm:$0xff] }
 0x1f7   :  { %4022 = vmatpush1.bf16.msra.mxu0 %v7993_v13  ;;  %9786 = vst [vmem:[#allocation97_spill] sm:$0xff] %v8013_v59  ;;  %9787 = vst [vmem:[#allocation98_spill] sm:$0xff] %v8015_v23  ;;  %v3231_v13 = vld [vmem:[#allocation11 + $0x270] sm:$0xff]  ;;  %v8041_v42 = vcombine.low %v3218_v29, %v3222_v20  ;;  %v8058_v12 = vcombine.high %v3234_v11, %v3238_v5 }
 0x1f8   :  { %3981 = vmatpush1.bf16.msra.mxu1 %v8000_v53  ;;  %4023 = vmatprep.subr.bf16.mxu0 %v8002_v58  ;;  %9788 = vst [vmem:[#allocation99_spill] sm:$0xff] %v8018_v44  ;;  %9789 = vst [vmem:[#allocation100_spill] sm:$0xff] %v8024_v38  ;;  %v3227_v58 = vld [vmem:[#allocation11 + $0x250] sm:$0xff] }
 0x1f9   :  { %3982 = vmatprep.subr.bf16.mxu1 %v8006_v62  ;;  %9790 = vst [vmem:[#allocation101_spill] sm:$0xff] %v8028_v46  ;;  %9791 = vst [vmem:[#allocation102_spill] sm:$0xff] %v8030_v41  ;;  %v8043_v8 = vcombine.high %v3227_v58, %v3231_v13  ;;  %v8049_v56 = vcombine.low %v3227_v58, %v3231_v13  ;;  %v8065_v58 = vcombine.low %v3234_v11, %v3238_v5 }
 0x1fa   :  { %9792 = vst [vmem:[#allocation103_spill] sm:$0xff] %v8033_v14  ;;  %9793 = vst [vmem:[#allocation104_spill] sm:$0xff] %v8037_v4  ;;  %s6616_s12 = sshll.u32 %s5805_s2, 4 }
 0x1fb   :  { %3079 = vmatmul.mubr.bf16.gmra.mrb[44].mxu1 %v7186_v3  ;;  %4024 = vmatpush1.bf16.msra.mxu0 %v8009_v1  ;;  %v3226_v3 = vld [vmem:[#allocation11 + $0x248] sm:$0xff]  ;;  %9794 = vst [vmem:[#allocation105_spill] sm:$0xff] %v8041_v42  ;;  %9795 = vst [vmem:[#allocation106_spill] sm:$0xff] %v8043_v8  ;;  %s5808_s24 = scalar_lea.vmem [#allocation3], %s6616_s12 }
 0x1fc   :  { %3983 = vmatpush1.bf16.msra.mxu1 %v8013_v59  ;;  %4025 = vmatprep.subr.bf16.mxu0 %v8015_v23  ;;  %v3230_v1 = vld [vmem:[#allocation11 + $0x268] sm:$0xff]  ;;  %v3235_v23 = vld [vmem:[#allocation11 + $0x290] sm:$0xff]  ;;  %9797 = vst [vmem:[#allocation108_spill] sm:$0xff] %v8049_v56  ;;  %9800 = vst [vmem:[#allocation111_spill] sm:$0xff] %v8058_v12 }
 0x1fd   :  { %3984 = vmatprep.subr.bf16.mxu1 %v8018_v44  ;;  %4002 = vmatprep.mubr.bf16.mxu1 %v9747_v31  ;;  %v8046_v34 = vcombine.high %v3226_v3, %v3230_v1  ;;  %v8053_v29 = vcombine.low %v3226_v3, %v3230_v1  ;;  %v8055_v20 = vcombine.high %v3235_v23, %v3239_v40 }
 0x1fe   :  { %v8061_v13 = vcombine.low %v3235_v23, %v3239_v40  ;;  %9802 = vst [vmem:[#allocation113_spill] sm:$0xff] %v8065_v58 }
 0x1ff   :  { %4026 = vmatpush1.bf16.msra.mxu0 %v8024_v38  ;;  %9796 = vst [vmem:[#allocation107_spill] sm:$0xff] %v8046_v34  ;;  %9798 = vst [vmem:[#allocation109_spill] sm:$0xff] %v8053_v29  ;;  %v3247_v38 = vld [vmem:[#allocation11 + $0x2f0] sm:$0xff] }
 0x200   :  { %3985 = vmatpush1.bf16.msra.mxu1 %v8028_v46  ;;  %4027 = vmatprep.subr.bf16.mxu0 %v8030_v41  ;;  %9799 = vst [vmem:[#allocation110_spill] sm:$0xff] %v8055_v20  ;;  %v3243_v41 = vld [vmem:[#allocation11 + $0x2d0] sm:$0xff]  ;;  %9801 = vst [vmem:[#allocation112_spill] sm:$0xff] %v8061_v13 }
 0x201   :  { %3986 = vmatprep.subr.bf16.mxu1 %v8033_v14  ;;  %v3246_v14 = vld [vmem:[#allocation11 + $0x2e8] sm:$0xff]  ;;  %v8067_v1 = vcombine.high %v3243_v41, %v3247_v38  ;;  %v8073_v40 = vcombine.low %v3243_v41, %v3247_v38 }
 0x202   :  { %v8070_v3 = vcombine.high %v3242_v30, %v3246_v14  ;;  %v8077_v11 = vcombine.low %v3242_v30, %v3246_v14 }
 0x203   :  { %4028 = vmatpush1.bf16.msra.mxu0 %v8037_v4  ;;  %9803 = vst [vmem:[#allocation114_spill] sm:$0xff] %v8067_v1  ;;  %v3255_v4 = vld [vmem:[#allocation11 + $0x330] sm:$0xff]  ;;  %9805 = vst [vmem:[#allocation116_spill] sm:$0xff] %v8073_v40 }
 0x204   :  { %3987 = vmatpush1.bf16.msra.mxu1 %v8041_v42  ;;  %4029 = vmatprep.subr.bf16.mxu0 %v8043_v8  ;;  %9804 = vst [vmem:[#allocation115_spill] sm:$0xff] %v8070_v3  ;;  %v3251_v8 = vld [vmem:[#allocation11 + $0x310] sm:$0xff]  ;;  %v3254_v42 = vld [vmem:[#allocation11 + $0x328] sm:$0xff]  ;;  %9806 = vst [vmem:[#allocation117_spill] sm:$0xff] %v8077_v11 }
 0x205   :  { %3988 = vmatprep.subr.bf16.mxu1 %v8046_v34  ;;  %v3250_v34 = vld [vmem:[#allocation11 + $0x308] sm:$0xff]  ;;  %v8079_v5 = vcombine.high %v3251_v8, %v3255_v4  ;;  %v8085_v38 = vcombine.low %v3251_v8, %v3255_v4  ;;  %v479_v4 = vsub.s32 2, %v7799_v15 }
 0x206   :  { %v8082_v23 = vcombine.high %v3250_v34, %v3254_v42  ;;  %v8089_v30 = vcombine.low %v3250_v34, %v3254_v42  ;;  %v483_v42 = vsub.s32 3, %v7799_v15 }
 0x207   :  { %4030 = vmatpush1.bf16.msra.mxu0 %v8049_v56  ;;  %9807 = vst [vmem:[#allocation118_spill] sm:$0xff] %v8079_v5  ;;  %v3263_v56 = vld [vmem:[#allocation11 + $0x370] sm:$0xff]  ;;  %9809 = vst [vmem:[#allocation120_spill] sm:$0xff] %v8085_v38 }
 0x208   :  { %3989 = vmatpush1.bf16.msra.mxu1 %v8053_v29  ;;  %4031 = vmatprep.subr.bf16.mxu0 %v8055_v20  ;;  %9808 = vst [vmem:[#allocation119_spill] sm:$0xff] %v8082_v23  ;;  %v3259_v20 = vld [vmem:[#allocation11 + $0x350] sm:$0xff]  ;;  %v3262_v29 = vld [vmem:[#allocation11 + $0x368] sm:$0xff]  ;;  %9810 = vst [vmem:[#allocation121_spill] sm:$0xff] %v8089_v30 }
 0x209   :  { %3990 = vmatprep.subr.bf16.mxu1 %v8058_v12  ;;  %v3258_v12 = vld [vmem:[#allocation11 + $0x348] sm:$0xff]  ;;  %v8091_v14 = vcombine.high %v3259_v20, %v3263_v56  ;;  %v8098_v8 = vcombine.low %v3259_v20, %v3263_v56 }
 0x20a   :  { %v8094_v41 = vcombine.high %v3258_v12, %v3262_v29  ;;  %v8103_v34 = vcombine.low %v3258_v12, %v3262_v29  ;;  %v3274_v56 = vld [vmem:[#allocation11 + $0x3c8] sm:$0xff]  ;;  %v8121_v12 = vrot.slane %v7817_v48, %v483_v42  ;;  %v3156_v42 = vld [vmem:[#allocation11 + $0x18] sm:$0xff] }
 0x20b   :  { %4032 = vmatpush1.bf16.msra.mxu0 %v8061_v13  ;;  %9811 = vst [vmem:[#allocation122_spill] sm:$0xff] %v8091_v14  ;;  %v3271_v13 = vld [vmem:[#allocation11 + $0x3b0] sm:$0xff]  ;;  %9813 = vst [vmem:[#allocation124_spill] sm:$0xff] %v8098_v8  ;;  %v3278_v20 = vld [vmem:[#allocation11 + $0x3e8] sm:$0xff] }
 0x20c   :  { %3991 = vmatpush1.bf16.msra.mxu1 %v8065_v58  ;;  %4033 = vmatprep.subr.bf16.mxu0 %v8067_v1  ;;  %9812 = vst [vmem:[#allocation123_spill] sm:$0xff] %v8094_v41  ;;  %v3267_v1 = vld [vmem:[#allocation11 + $0x390] sm:$0xff]  ;;  %v3270_v58 = vld [vmem:[#allocation11 + $0x3a8] sm:$0xff]  ;;  %9814 = vst [vmem:[#allocation125_spill] sm:$0xff] %v8103_v34 }
 0x20d   :  { %3992 = vmatprep.subr.bf16.mxu1 %v8070_v3  ;;  %v3266_v3 = vld [vmem:[#allocation11 + $0x388] sm:$0xff]  ;;  %v8118_v29 = vcombine.low %v3267_v1, %v3271_v13 }
 0x20f   :  { %4034 = vmatpush1.bf16.msra.mxu0 %v8073_v40  ;;  %v8108_v40 = vcombine.high %v3266_v3, %v3270_v58  ;;  %9819 = vst [vmem:[#allocation130_spill] sm:$0xff] %v8118_v29 }
 0x210   :  { %3993 = vmatpush1.bf16.msra.mxu1 %v8077_v11  ;;  %4035 = vmatprep.subr.bf16.mxu0 %v8079_v5  ;;  %v8105_v5 = vcombine.high %v3267_v1, %v3271_v13  ;;  %v8133_v13 = vcombine.high %v3274_v56, %v3278_v20 }
 0x211   :  { %3994 = vmatprep.subr.bf16.mxu1 %v8082_v23  ;;  %9816 = vst [vmem:[#allocation127_spill] sm:$0xff] %v8108_v40  ;;  %v3275_v23 = vld [vmem:[#allocation11 + $0x3d0] sm:$0xff] }
 0x212   :  { %9815 = vst [vmem:[#allocation126_spill] sm:$0xff] %v8105_v5  ;;  %9823 = vst [vmem:[#allocation134_spill] sm:$0xff] %v8133_v13 }
 0x213   :  { %4036 = vmatpush1.bf16.msra.mxu0 %v8085_v38  ;;  %v3279_v38 = vld [vmem:[#allocation11 + $0x3f0] sm:$0xff] }
 0x214   :  { %3995 = vmatpush1.bf16.msra.mxu1 %v8089_v30  ;;  %4037 = vmatprep.subr.bf16.mxu0 %v8091_v14  ;;  %v8113_v30 = vrot.slane %v7817_v48, %v479_v4 }
 0x215   :  { %3996 = vmatprep.subr.bf16.mxu1 %v8094_v41  ;;  %v8127_v41 = vcombine.high %v3275_v23, %v3279_v38 }
 0x216   :  { %v8110_v11 = vpop.f32.mrb[16].mxu1 }
 0x217   :  { %9817 = vst [vmem:[#allocation128_spill] sm:$0xff] %v8110_v11  ;;  %v8115_v46 = vpop.f32.mrb[17].mxu1  ;;  %4038 = vmatpush1.bf16.msra.mxu0 %v8098_v8  ;;  %v8125_v11 = vcombine.low %v3266_v3, %v3270_v58  ;;  %9821 = vst [vmem:[#allocation132_spill] sm:$0xff] %v8127_v41  ;;  %v3160_v8 = vld [vmem:[#allocation11 + $0x38] sm:$0xff]  ;;  %v8143_v58 = vcombine.low %v3274_v56, %v3278_v20 }
 0x218   :  { %9818 = vst [vmem:[#allocation129_spill] sm:$0xff] %v8115_v46  ;;  %v2616_v14 = vpop.f32.mrb[18].mxu1  ;;  %3997 = vmatpush1.bf16.msra.mxu1 %v8103_v34  ;;  %4039 = vmatprep.subr.bf16.mxu0 %v8105_v5  ;;  %v8139_v5 = vcombine.low %v3275_v23, %v3279_v38  ;;  %v8146_v3 = vcombine.high %v3156_v42, %v3160_v8 }
 0x219   :  { %9820 = vst [vmem:[#allocation131_spill] sm:$0xff] %v8125_v11  ;;  %v8130_v4 = vadd.f32 %v2616_v14, %v8113_v30  ;;  %v2618_v46 = vpop.f32.mrb[19].mxu1  ;;  %3998 = vmatprep.subr.bf16.mxu1 %v8108_v40  ;;  %9826 = vst [vmem:[#allocation137_spill] sm:$0xff] %v8143_v58  ;;  %v8156_v56 = vcombine.low %v3156_v42, %v3160_v8 }
 0x21a   :  { %v8136_v1 = vadd.f32 %v2618_v46, %v8121_v12  ;;  %9825 = vst [vmem:[#allocation136_spill] sm:$0xff] %v8139_v5  ;;  %9827 = vst [vmem:[#allocation138_spill] sm:$0xff] %v8146_v3  ;;  %v3168_v46 = vld [vmem:[#allocation11 + $0x78] sm:$0xff] }
 0x21b   :  { %9822 = vst [vmem:[#allocation133_spill] sm:$0xff] %v8130_v4  ;;  %4040 = vmatpush1.bf16.msra.mxu0 %v8118_v29  ;;  %v3164_v4 = vld [vmem:[#allocation11 + $0x58] sm:$0xff] }
 0x21c   :  { %9824 = vst [vmem:[#allocation135_spill] sm:$0xff] %v8136_v1  ;;  %3999 = vmatpush1.bf16.msra.mxu1 %v8125_v11  ;;  %4041 = vmatprep.subr.bf16.mxu0 %v8127_v41  ;;  %v8172_v8 = vcombine.low %v3164_v4, %v3168_v46 }
 0x21d   :  { %4000 = vmatprep.subr.bf16.mxu1 %v8133_v13 }
 0x21e   :  { %v2622_v14 = vpop.f32.mrb[20].mxu1 }
 0x21f   :  { %v8149_v1 = vadd.f32 %v2622_v14, %v8113_v30  ;;  %v2624_v40 = vpop.f32.mrb[21].mxu1  ;;  %4042 = vmatpush1.bf16.msra.mxu0 %v8139_v5  ;;  %v8163_v14 = vcombine.high %v3164_v4, %v3168_v46 }
 0x220   :  { %v8153_v23 = vadd.f32 %v2624_v40, %v8121_v12  ;;  %v2626_v38 = vpop.f32.mrb[22].mxu1  ;;  %4001 = vmatpush1.bf16.msra.mxu1 %v8143_v58  ;;  %4164 = vmatprep.subr.bf16.mxu0 %v7712_v57  ;;  %v3172_v40 = vld [vmem:[#allocation11 + $0x98] sm:$0xff] }
 0x221   :  { %9828 = vst [vmem:[#allocation139_spill] sm:$0xff] %v8149_v1  ;;  %v8160_v20 = vadd.f32 %v2626_v38, %v8113_v30  ;;  %v2628_v41 = vpop.f32.mrb[23].mxu1  ;;  %4052 = vmatprep.subr.bf16.mxu1 %v8146_v3  ;;  %v3180_v38 = vld [vmem:[#allocation11 + $0xd8] sm:$0xff] }
 0x222   :  { %9829 = vst [vmem:[#allocation140_spill] sm:$0xff] %v8153_v23  ;;  %v8166_v1 = vadd.f32 %v2628_v41, %v8121_v12  ;;  %4044 = vmatmul.mubr.bf16.vlgmr.msra.gmra.mrb[36].mxu0 %v9747_v31  ;;  %v3176_v23 = vld [vmem:[#allocation11 + $0xb8] sm:$0xff] }
 0x223   :  { %9830 = vst [vmem:[#allocation141_spill] sm:$0xff] %v8160_v20  ;;  %4003 = vmatmul.mubr.bf16.vlgmr.msra.gmra.mrb[48].mxu1 %v9747_v31  ;;  %4165 = vmatpush1.bf16.msra.mxu0 %v7720_v47  ;;  %v8176_v42 = vcombine.high %v3172_v40, %v3176_v23  ;;  %v8187_v47 = vcombine.low %v3172_v40, %v3176_v23 }
 0x224   :  { %9831 = vst [vmem:[#allocation142_spill] sm:$0xff] %v8166_v1  ;;  %4053 = vmatpush1.bf16.msra.mxu1 %v8156_v56  ;;  %4084 = vmatprep.mubr.bf16.mxu1 %v9747_v31  ;;  %v3184_v1 = vld [vmem:[#allocation11 + $0xf8] sm:$0xff] }
 0x225   :  { %4054 = vmatprep.subr.bf16.mxu1 %v8163_v14  ;;  %4166 = vmatprep.subr.bf16.mxu0 %v7723_v49  ;;  %v8201_v23 = vcombine.low %v3180_v38, %v3184_v1 }
 0x226   :  { %v2632_v41 = vpop.f32.mrb[24].mxu1 }
 0x227   :  { %v8180_v20 = vadd.f32 %v2632_v41, %v8113_v30  ;;  %v2634_v57 = vpop.f32.mrb[25].mxu1  ;;  %4167 = vmatpush1.bf16.msra.mxu0 %v7727_v21  ;;  %v8194_v41 = vcombine.high %v3180_v38, %v3184_v1 }
 0x228   :  { %v8184_v4 = vadd.f32 %v2634_v57, %v8121_v12  ;;  %v2636_v46 = vpop.f32.mrb[26].mxu1  ;;  %4055 = vmatpush1.bf16.msra.mxu1 %v8172_v8  ;;  %4168 = vmatprep.subr.bf16.mxu0 %v7731_v60  ;;  %v3188_v57 = vld [vmem:[#allocation11 + $0x118] sm:$0xff] }
 0x229   :  { %9832 = vst [vmem:[#allocation143_spill] sm:$0xff] %v8180_v20  ;;  %v8191_v49 = vadd.f32 %v2636_v46, %v8113_v30  ;;  %v2638_v5 = vpop.f32.mrb[27].mxu1  ;;  %4056 = vmatprep.subr.bf16.mxu1 %v8176_v42  ;;  %v3200_v60 = vld [vmem:[#allocation11 + $0x178] sm:$0xff] }
 0x22a   :  { %9833 = vst [vmem:[#allocation144_spill] sm:$0xff] %v8184_v4  ;;  %v8197_v20 = vadd.f32 %v2638_v5, %v8121_v12  ;;  %v3192_v4 = vld [vmem:[#allocation11 + $0x138] sm:$0xff] }
 0x22b   :  { %9834 = vst [vmem:[#allocation145_spill] sm:$0xff] %v8191_v49  ;;  %4169 = vmatpush1.bf16.msra.mxu0 %v7734_v6  ;;  %v8205_v40 = vcombine.high %v3188_v57, %v3192_v4  ;;  %v3196_v49 = vld [vmem:[#allocation11 + $0x158] sm:$0xff]  ;;  %v8215_v38 = vcombine.low %v3188_v57, %v3192_v4 }
 0x22c   :  { %9835 = vst [vmem:[#allocation146_spill] sm:$0xff] %v8197_v20  ;;  %4057 = vmatpush1.bf16.msra.mxu1 %v8187_v47  ;;  %4170 = vmatprep.subr.bf16.mxu0 %v7737_v9  ;;  %v8229_v4 = vcombine.low %v3196_v49, %v3200_v60 }
 0x22d   :  { %4058 = vmatprep.subr.bf16.mxu1 %v8194_v41 }
 0x22e   :  { %v2642_v46 = vpop.f32.mrb[28].mxu1 }
 0x22f   :  { %v8208_v5 = vadd.f32 %v2642_v46, %v8113_v30  ;;  %v2644_v20 = vpop.f32.mrb[29].mxu1  ;;  %4171 = vmatpush1.bf16.msra.mxu0 %v7741_v16  ;;  %v8222_v46 = vcombine.high %v3196_v49, %v3200_v60  ;;  %v3220_v60 = vld [vmem:[#allocation11 + $0x218] sm:$0xff] }
 0x230   :  { %v8212_v6 = vadd.f32 %v2644_v20, %v8121_v12  ;;  %v2646_v1 = vpop.f32.mrb[30].mxu1  ;;  %4059 = vmatpush1.bf16.msra.mxu1 %v8201_v23  ;;  %4172 = vmatprep.subr.bf16.mxu0 %v7745_v25  ;;  %v3204_v20 = vld [vmem:[#allocation11 + $0x198] sm:$0xff] }
 0x231   :  { %9836 = vst [vmem:[#allocation147_spill] sm:$0xff] %v8208_v5  ;;  %v8219_v9 = vadd.f32 %v2646_v1, %v8113_v30  ;;  %v2648_v21 = vpop.f32.mrb[31].mxu1  ;;  %4060 = vmatprep.subr.bf16.mxu1 %v8205_v40  ;;  %v3212_v1 = vld [vmem:[#allocation11 + $0x1d8] sm:$0xff] }
 0x232   :  { %9837 = vst [vmem:[#allocation148_spill] sm:$0xff] %v8212_v6  ;;  %v8225_v5 = vadd.f32 %v2648_v21, %v8121_v12  ;;  %v3208_v6 = vld [vmem:[#allocation11 + $0x1b8] sm:$0xff] }
 0x233   :  { %9838 = vst [vmem:[#allocation149_spill] sm:$0xff] %v8219_v9  ;;  %4173 = vmatpush1.bf16.msra.mxu0 %v7748_v24  ;;  %v8233_v57 = vcombine.high %v3204_v20, %v3208_v6  ;;  %v3216_v9 = vld [vmem:[#allocation11 + $0x1f8] sm:$0xff]  ;;  %v8237_v21 = vcombine.low %v3204_v20, %v3208_v6  ;;  %v9846_v24 = vld [vmem:[#allocation42_spill] sm:$0xff] }
 0x234   :  { %9839 = vst [vmem:[#allocation150_spill] sm:$0xff] %v8225_v5  ;;  %4061 = vmatpush1.bf16.msra.mxu1 %v8215_v38  ;;  %4174 = vmatprep.subr.bf16.mxu0 %v7751_v28  ;;  %v8241_v49 = vcombine.high %v3212_v1, %v3216_v9  ;;  %v3224_v5 = vld [vmem:[#allocation11 + $0x238] sm:$0xff]  ;;  %v8245_v28 = vcombine.low %v3212_v1, %v3216_v9 }
 0x235   :  { %4062 = vmatprep.subr.bf16.mxu1 %v8222_v46  ;;  %v8249_v6 = vcombine.high %v3220_v60, %v3224_v5  ;;  %v3228_v20 = vld [vmem:[#allocation11 + $0x258] sm:$0xff] }
 0x236   :  { %v3236_v1 = vld [vmem:[#allocation11 + $0x298] sm:$0xff] }
 0x237   :  { %4175 = vmatpush1.bf16.msra.mxu0 %v7755_v17  ;;  %9840 = vst [vmem:[#allocation151_spill] sm:$0xff] %v8249_v6  ;;  %v8253_v17 = vcombine.low %v3220_v60, %v3224_v5  ;;  %v3244_v60 = vld [vmem:[#allocation11 + $0x2d8] sm:$0xff] }
 0x238   :  { %4063 = vmatpush1.bf16.msra.mxu1 %v8229_v4  ;;  %4176 = vmatprep.subr.bf16.mxu0 %v7759_v43  ;;  %v3232_v43 = vld [vmem:[#allocation11 + $0x278] sm:$0xff] }
 0x239   :  { %4064 = vmatprep.subr.bf16.mxu1 %v8233_v57  ;;  %9841 = vst [vmem:[#allocation152_spill] sm:$0xff] %v8253_v17  ;;  %v8257_v9 = vcombine.high %v3228_v20, %v3232_v43  ;;  %v9850_v16 = vld [vmem:[#allocation44_spill] sm:$0xff] }
 0x23b   :  { %4177 = vmatpush1.bf16.msra.mxu0 %v7762_v51  ;;  %9842 = vst [vmem:[#allocation153_spill] sm:$0xff] %v8257_v9  ;;  %v8261_v51 = vcombine.low %v3228_v20, %v3232_v43  ;;  %v3252_v20 = vld [vmem:[#allocation11 + $0x318] sm:$0xff] }
 0x23c   :  { %4065 = vmatpush1.bf16.msra.mxu1 %v8237_v21  ;;  %4178 = vmatprep.subr.bf16.mxu0 %v7765_v52  ;;  %v3240_v52 = vld [vmem:[#allocation11 + $0x2b8] sm:$0xff] }
 0x23d   :  { %4066 = vmatprep.subr.bf16.mxu1 %v8241_v49  ;;  %9843 = vst [vmem:[#allocation154_spill] sm:$0xff] %v8261_v51  ;;  %v8265_v5 = vcombine.high %v3236_v1, %v3240_v52 }
 0x23f   :  { %4179 = vmatpush1.bf16.msra.mxu0 %v7769_v33  ;;  %9844 = vst [vmem:[#allocation155_spill] sm:$0xff] %v8265_v5  ;;  %v8269_v33 = vcombine.low %v3236_v1, %v3240_v52  ;;  %v3260_v1 = vld [vmem:[#allocation11 + $0x358] sm:$0xff] }
 0x240   :  { %4067 = vmatpush1.bf16.msra.mxu1 %v8245_v28  ;;  %4180 = vmatprep.subr.bf16.mxu0 %v7773_v39  ;;  %v3248_v39 = vld [vmem:[#allocation11 + $0x2f8] sm:$0xff] }
 0x241   :  { %4068 = vmatprep.subr.bf16.mxu1 %v8249_v6  ;;  %9845 = vst [vmem:[#allocation156_spill] sm:$0xff] %v8269_v33  ;;  %v8273_v43 = vcombine.high %v3244_v60, %v3248_v39  ;;  %v8277_v25 = vcombine.low %v3244_v60, %v3248_v39  ;;  %v3268_v60 = vld [vmem:[#allocation11 + $0x398] sm:$0xff] }
 0x243   :  { %4181 = vmatpush1.bf16.msra.mxu0 %v7776_v18  ;;  %9847 = vst [vmem:[#allocation157_spill] sm:$0xff] %v8273_v43  ;;  %v9848_v18 = vld [vmem:[#allocation43_spill] sm:$0xff]  ;;  %9849 = vst [vmem:[#allocation158_spill] sm:$0xff] %v8277_v25 }
 0x244   :  { %4069 = vmatpush1.bf16.msra.mxu1 %v8253_v17  ;;  %4182 = vmatprep.subr.bf16.mxu0 %v7779_v19  ;;  %v3256_v19 = vld [vmem:[#allocation11 + $0x338] sm:$0xff] }
 0x245   :  { %4070 = vmatprep.subr.bf16.mxu1 %v8257_v9  ;;  %v8281_v52 = vcombine.high %v3252_v20, %v3256_v19  ;;  %v8285_v29 = vcombine.low %v3252_v20, %v3256_v19  ;;  %v3276_v20 = vld [vmem:[#allocation11 + $0x3d8] sm:$0xff] }
 0x247   :  { %4183 = vmatpush1.bf16.msra.mxu0 %v7785_v32  ;;  %9851 = vst [vmem:[#allocation159_spill] sm:$0xff] %v8281_v52  ;;  %v9852_v32 = vld [vmem:[#allocation45_spill] sm:$0xff]  ;;  %9853 = vst [vmem:[#allocation160_spill] sm:$0xff] %v8285_v29 }
 0x248   :  { %4071 = vmatpush1.bf16.msra.mxu1 %v8261_v51  ;;  %4184 = vmatprep.subr.bf16.mxu0 %v9846_v24  ;;  %v3264_v24 = vld [vmem:[#allocation11 + $0x378] sm:$0xff] }
 0x249   :  { %4072 = vmatprep.subr.bf16.mxu1 %v8265_v5  ;;  %v9854_v5 = vld [vmem:[#allocation46_spill] sm:$0xff]  ;;  %v8289_v39 = vcombine.high %v3260_v1, %v3264_v24 }
 0x24b   :  { %4185 = vmatpush1.bf16.msra.mxu0 %v9848_v18  ;;  %9855 = vst [vmem:[#allocation161_spill] sm:$0xff] %v8289_v39  ;;  %v9856_v18 = vld [vmem:[#allocation47_spill] sm:$0xff] }
 0x24c   :  { %4073 = vmatpush1.bf16.msra.mxu1 %v8269_v33  ;;  %4186 = vmatprep.subr.bf16.mxu0 %v9850_v16  ;;  %v3272_v16 = vld [vmem:[#allocation11 + $0x3b8] sm:$0xff] }
 0x24d   :  { %4074 = vmatprep.subr.bf16.mxu1 %v8273_v43  ;;  %v8293_v43 = vcombine.low %v3260_v1, %v3264_v24  ;;  %v9858_v33 = vld [vmem:[#allocation48_spill] sm:$0xff]  ;;  %v8297_v19 = vcombine.high %v3268_v60, %v3272_v16 }
 0x24f   :  { %4187 = vmatpush1.bf16.msra.mxu0 %v9852_v32  ;;  %9857 = vst [vmem:[#allocation162_spill] sm:$0xff] %v8293_v43  ;;  %9859 = vst [vmem:[#allocation163_spill] sm:$0xff] %v8297_v19  ;;  %v9860_v32 = vld [vmem:[#allocation49_spill] sm:$0xff] }
 0x250   :  { %4075 = vmatpush1.bf16.msra.mxu1 %v8277_v25  ;;  %4188 = vmatprep.subr.bf16.mxu0 %v9854_v5  ;;  %v3280_v5 = vld [vmem:[#allocation11 + $0x3f8] sm:$0xff] }
 0x251   :  { %4076 = vmatprep.subr.bf16.mxu1 %v8281_v52  ;;  %v8301_v52 = vcombine.low %v3268_v60, %v3272_v16  ;;  %v8305_v24 = vcombine.high %v3276_v20, %v3280_v5  ;;  %v8309_v1 = vcombine.low %v3276_v20, %v3280_v5  ;;  %v487_v16 = vsub.s32 4, %v7799_v15 }
 0x253   :  { %4189 = vmatpush1.bf16.msra.mxu0 %v9856_v18  ;;  %9861 = vst [vmem:[#allocation164_spill] sm:$0xff] %v8301_v52  ;;  %9862 = vst [vmem:[#allocation165_spill] sm:$0xff] %v8305_v24  ;;  %v8333_v60 = vrot.slane %v7817_v48, %v487_v16  ;;  %v9871_v18 = vld [vmem:[#allocation103_spill] sm:$0xff] }
 0x254   :  { %4077 = vmatpush1.bf16.msra.mxu1 %v8285_v29  ;;  %4190 = vmatprep.subr.bf16.mxu0 %v9858_v33  ;;  %9863 = vst [vmem:[#allocation166_spill] sm:$0xff] %v8309_v1 }
 0x255   :  { %4078 = vmatprep.subr.bf16.mxu1 %v8289_v39 }
 0x257   :  { %4191 = vmatpush1.bf16.msra.mxu0 %v9860_v32 }
 0x258   :  { %4079 = vmatpush1.bf16.msra.mxu1 %v8293_v43  ;;  %4192 = vmatprep.subr.bf16.mxu0 %v7836_v54 }
 0x259   :  { %4080 = vmatprep.subr.bf16.mxu1 %v8297_v19 }
 0x25b   :  { %4193 = vmatpush1.bf16.msra.mxu0 %v7844_v2 }
 0x25c   :  { %4081 = vmatpush1.bf16.msra.mxu1 %v8301_v52  ;;  %4194 = vmatprep.subr.bf16.mxu0 %v7848_v37 }
 0x25d   :  { %4082 = vmatprep.subr.bf16.mxu1 %v8305_v24 }
 0x25f   :  { %4195 = vmatpush1.bf16.msra.mxu0 %v7864_v35 }
 0x260   :  { %4083 = vmatpush1.bf16.msra.mxu1 %v8309_v1  ;;  %4246 = vmatprep.subr.bf16.mxu0 %v7870_v50 }
 0x261   :  { %4205 = vmatprep.subr.bf16.mxu1 %v7873_v36 }
 0x263   :  { %4085 = vmatmul.mubr.bf16.vlgmr.msra.gmra.mrb[52].mxu1 %v9747_v31  ;;  %v491_v31 = vsub.s32 5, %v7799_v15 }
 0x264   :  { %4206 = vmatpush1.bf16.msra.mxu1 %v7878_v45 }
 0x265   :  { %4207 = vmatprep.subr.bf16.mxu1 %v7891_v61  ;;  %v8338_v50 = vrot.slane %v7817_v48, %v491_v31 }
 0x268   :  { %4208 = vmatpush1.bf16.msra.mxu1 %v7911_v0 }
 0x269   :  { %4209 = vmatprep.subr.bf16.mxu1 %v7917_v26 }
 0x26c   :  { %4210 = vmatpush1.bf16.msra.mxu1 %v7923_v10 }
 0x26d   :  { %4211 = vmatprep.subr.bf16.mxu1 %v7937_v22 }
 0x270   :  { %4212 = vmatpush1.bf16.msra.mxu1 %v7956_v27 }
 0x271   :  { %4213 = vmatprep.subr.bf16.mxu1 %v7962_v55 }
 0x274   :  { %4214 = vmatpush1.bf16.msra.mxu1 %v7967_v63 }
 0x275   :  { %v8329_v5 = vpop.f32.mrb[16].mxu0  ;;  %4215 = vmatprep.subr.bf16.mxu1 %v7981_v7 }
 0x276   :  { %v8335_v20 = vpop.f32.mrb[17].mxu0 }
 0x277   :  { %v2835_v35 = vpop.f32.mrb[18].mxu0 }
 0x278   :  { %v8341_v37 = vadd.f32 %v2835_v35, %v8333_v60  ;;  %v2837_v2 = vpop.f32.mrb[19].mxu0  ;;  %4216 = vmatpush1.bf16.msra.mxu1 %v8000_v53 }
 0x279   :  { %v8345_v54 = vadd.f32 %v2837_v2, %v8338_v50  ;;  %4217 = vmatprep.subr.bf16.mxu1 %v8006_v62 }
 0x27a   :  { %9864 = vst [vmem:[#allocation167_spill] sm:$0xff] %v8341_v37 }
 0x27b   :  { %9865 = vst [vmem:[#allocation168_spill] sm:$0xff] %v8345_v54  ;;  %v9869_v54 = vld [vmem:[#allocation101_spill] sm:$0xff] }
 0x27c   :  { %4218 = vmatpush1.bf16.msra.mxu1 %v8013_v59 }
 0x27d   :  { %v2841_v16 = vpop.f32.mrb[20].mxu0  ;;  %4219 = vmatprep.subr.bf16.mxu1 %v8018_v44  ;;  %v9872_v44 = vld [vmem:[#allocation105_spill] sm:$0xff] }
 0x27e   :  { %v8351_v48 = vadd.f32 %v2841_v16, %v8333_v60  ;;  %v2843_v31 = vpop.f32.mrb[21].mxu0 }
 0x27f   :  { %v8354_v35 = vadd.f32 %v2843_v31, %v8338_v50  ;;  %v2845_v37 = vpop.f32.mrb[22].mxu0 }
 0x280   :  { %9866 = vst [vmem:[#allocation169_spill] sm:$0xff] %v8351_v48  ;;  %v8357_v32 = vadd.f32 %v2845_v37, %v8333_v60  ;;  %v2847_v2 = vpop.f32.mrb[23].mxu0  ;;  %4220 = vmatpush1.bf16.msra.mxu1 %v9869_v54  ;;  %v9873_v48 = vld [vmem:[#allocation107_spill] sm:$0xff] }
 0x281   :  { %9867 = vst [vmem:[#allocation170_spill] sm:$0xff] %v8354_v35  ;;  %v8361_v33 = vadd.f32 %v2847_v2, %v8338_v50  ;;  %4221 = vmatprep.subr.bf16.mxu1 %v9871_v18 }
 0x282   :  { %9868 = vst [vmem:[#allocation171_spill] sm:$0xff] %v8357_v32 }
 0x283   :  { %9870 = vst [vmem:[#allocation172_spill] sm:$0xff] %v8361_v33  ;;  %v9877_v33 = vld [vmem:[#allocation109_spill] sm:$0xff] }
 0x284   :  { %4222 = vmatpush1.bf16.msra.mxu1 %v9872_v44  ;;  %v9879_v44 = vld [vmem:[#allocation111_spill] sm:$0xff] }
 0x285   :  { %v2851_v16 = vpop.f32.mrb[24].mxu0  ;;  %4223 = vmatprep.subr.bf16.mxu1 %v9873_v48  ;;  %v9880_v48 = vld [vmem:[#allocation113_spill] sm:$0xff] }
 0x286   :  { %v8367_v31 = vadd.f32 %v2851_v16, %v8333_v60  ;;  %v2853_v35 = vpop.f32.mrb[25].mxu0 }
 0x287   :  { %v8370_v37 = vadd.f32 %v2853_v35, %v8338_v50  ;;  %v2855_v32 = vpop.f32.mrb[26].mxu0 }
 0x288   :  { %9874 = vst [vmem:[#allocation173_spill] sm:$0xff] %v8367_v31  ;;  %v8373_v54 = vadd.f32 %v2855_v32, %v8333_v60  ;;  %v2857_v2 = vpop.f32.mrb[27].mxu0  ;;  %4224 = vmatpush1.bf16.msra.mxu1 %v9877_v33  ;;  %v9881_v31 = vld [vmem:[#allocation115_spill] sm:$0xff] }
 0x289   :  { %9875 = vst [vmem:[#allocation174_spill] sm:$0xff] %v8370_v37  ;;  %v8377_v18 = vadd.f32 %v2857_v2, %v8338_v50  ;;  %4225 = vmatprep.subr.bf16.mxu1 %v9879_v44 }
 0x28a   :  { %9876 = vst [vmem:[#allocation175_spill] sm:$0xff] %v8373_v54 }
 0x28b   :  { %9878 = vst [vmem:[#allocation176_spill] sm:$0xff] %v8377_v18  ;;  %v9885_v18 = vld [vmem:[#allocation117_spill] sm:$0xff] }
 0x28c   :  { %4226 = vmatpush1.bf16.msra.mxu1 %v9880_v48  ;;  %v9887_v48 = vld [vmem:[#allocation119_spill] sm:$0xff] }
 0x28d   :  { %v2861_v16 = vpop.f32.mrb[28].mxu0  ;;  %4227 = vmatprep.subr.bf16.mxu1 %v9881_v31  ;;  %v9888_v31 = vld [vmem:[#allocation121_spill] sm:$0xff] }
 0x28e   :  { %v8383_v35 = vadd.f32 %v2861_v16, %v8333_v60  ;;  %v2863_v37 = vpop.f32.mrb[29].mxu0  ;;  %v9889_v16 = vld [vmem:[#allocation123_spill] sm:$0xff] }
 0x28f   :  { %v8386_v32 = vadd.f32 %v2863_v37, %v8338_v50  ;;  %v2865_v54 = vpop.f32.mrb[30].mxu0  ;;  %v9890_v37 = vld [vmem:[#allocation127_spill] sm:$0xff] }
 0x290   :  { %9882 = vst [vmem:[#allocation177_spill] sm:$0xff] %v8383_v35  ;;  %v8389_v33 = vadd.f32 %v2865_v54, %v8333_v60  ;;  %v2867_v2 = vpop.f32.mrb[31].mxu0  ;;  %4228 = vmatpush1.bf16.msra.mxu1 %v9885_v18  ;;  %v495_v54 = vsub.s32 6, %v7799_v15 }
 0x291   :  { %9883 = vst [vmem:[#allocation178_spill] sm:$0xff] %v8386_v32  ;;  %v8393_v44 = vadd.f32 %v2867_v2, %v8338_v50  ;;  %4229 = vmatprep.subr.bf16.mxu1 %v9887_v48  ;;  %v499_v2 = vsub.s32 7, %v7799_v15  ;;  %v9891_v32 = vld [vmem:[#allocation53_spill] sm:$0xff] }
 0x292   :  { %9884 = vst [vmem:[#allocation179_spill] sm:$0xff] %v8389_v33 }
 0x293   :  { %9886 = vst [vmem:[#allocation180_spill] sm:$0xff] %v8393_v44 }
 0x294   :  { %4230 = vmatpush1.bf16.msra.mxu1 %v9888_v31 }
 0x295   :  { %4231 = vmatprep.subr.bf16.mxu1 %v9889_v16  ;;  %v7187_v16 = vld [vmem:[#allocation9] sm:$0xff] }
 0x296   :  { %v8414_v48 = vrot.slane %v7187_v16, %v499_v2 }
 0x298   :  { %4232 = vmatpush1.bf16.msra.mxu1 %v8103_v34 }
 0x299   :  { %4233 = vmatprep.subr.bf16.mxu1 %v9890_v37  ;;  %v8409_v37 = vrot.slane %v7187_v16, %v495_v54 }
 0x29c   :  { %4234 = vmatpush1.bf16.msra.mxu1 %v8125_v11 }
 0x29d   :  { %4235 = vmatprep.subr.bf16.mxu1 %v8133_v13  ;;  %v9892_v13 = vld [vmem:[#allocation54_spill] sm:$0xff] }
 0x2a0   :  { %4236 = vmatpush1.bf16.msra.mxu1 %v8143_v58 }
 0x2a1   :  { %4287 = vmatprep.subr.bf16.mxu1 %v8146_v3 }
 0x2b5   :  { %v3963_v44 = vpop.f32.mrb[32].mxu0 }
 0x2b6   :  { %v8406_v33 = vpop.f32.mrb[32].mxu1  ;;  %v4093_v35 = vadd.f32 %v9891_v32, %v3963_v44  ;;  %v3965_v34 = vpop.f32.mrb[33].mxu0 }
 0x2b7   :  { %v8411_v11 = vpop.f32.mrb[33].mxu1  ;;  %v4094_v31 = vadd.f32 %v9892_v13, %v3965_v34  ;;  %v3967_v58 = vpop.f32.mrb[34].mxu0 }
 0x2b8   :  { %v3054_v3 = vpop.f32.mrb[34].mxu1  ;;  %v3968_v18 = vpop.f32.mrb[35].mxu0 }
 0x2b9   :  { %v8417_v15 = vadd.f32 %v3054_v3, %v8409_v37  ;;  %v3056_v59 = vpop.f32.mrb[35].mxu1 }
 0x2ba   :  { %v8420_v62 = vadd.f32 %v3056_v59, %v8414_v48 }
 0x2bb   :  { %9893 = vst [vmem:[#allocation53_spill] sm:$0xff] %v8417_v15 }
 0x2bc   :  { %9894 = vst [vmem:[#allocation54_spill] sm:$0xff] %v8420_v62 }
 0x2be   :  { %v3060_v44 = vpop.f32.mrb[36].mxu1 }
 0x2bf   :  { %v8423_v32 = vadd.f32 %v3060_v44, %v8409_v37  ;;  %v3062_v54 = vpop.f32.mrb[37].mxu1 }
 0x2c0   :  { %v8426_v53 = vadd.f32 %v3062_v54, %v8414_v48  ;;  %v3064_v34 = vpop.f32.mrb[38].mxu1 }
 0x2c1   :  { %9895 = vst [vmem:[#allocation181_spill] sm:$0xff] %v8423_v32  ;;  %v8429_v13 = vadd.f32 %v3064_v34, %v8409_v37  ;;  %v3066_v18 = vpop.f32.mrb[39].mxu1  ;;  %v6540_v32 = vmul.f32 -1.442695, %v4094_v31 }
 0x2c2   :  { %9896 = vst [vmem:[#allocation182_spill] sm:$0xff] %v8426_v53  ;;  %v8432_v58 = vadd.f32 %v3066_v18, %v8414_v48 }
 0x2c3   :  { %9897 = vst [vmem:[#allocation183_spill] sm:$0xff] %v8429_v13 }
 0x2c4   :  { %9898 = vst [vmem:[#allocation184_spill] sm:$0xff] %v8432_v58 }
 0x2c6   :  { %v3070_v3 = vpop.f32.mrb[40].mxu1 }
 0x2c7   :  { %v8435_v59 = vadd.f32 %v3070_v3, %v8409_v37  ;;  %v3072_v16 = vpop.f32.mrb[41].mxu1 }
 0x2c8   :  { %v8438_v2 = vadd.f32 %v3072_v16, %v8414_v48  ;;  %v3074_v44 = vpop.f32.mrb[42].mxu1 }
 0x2c9   :  { %9899 = vst [vmem:[#allocation185_spill] sm:$0xff] %v8435_v59  ;;  %v8441_v54 = vadd.f32 %v3074_v44, %v8409_v37  ;;  %v3076_v53 = vpop.f32.mrb[43].mxu1 }
 0x2ca   :  { %9900 = vst [vmem:[#allocation186_spill] sm:$0xff] %v8438_v2  ;;  %v8444_v34 = vadd.f32 %v3076_v53, %v8414_v48 }
 0x2cb   :  { %9901 = vst [vmem:[#allocation187_spill] sm:$0xff] %v8441_v54  ;;  %v6539_v54 = vmul.f32 -1.442695, %v4093_v35 }
 0x2cc   :  { %9902 = vst [vmem:[#allocation188_spill] sm:$0xff] %v8444_v34 }
 0x2cd   :  { %6895 = vpow2.f32 %v6539_v54 }
 0x2ce   :  { %v3080_v13 = vpop.f32.mrb[44].mxu1  ;;  %6897 = vpow2.f32 %v6540_v32 }
 0x2cf   :  { %v8447_v18 = vadd.f32 %v3080_v13, %v8409_v37  ;;  %v3082_v58 = vpop.f32.mrb[45].mxu1 }
 0x2d0   :  { %v8450_v3 = vadd.f32 %v3082_v58, %v8414_v48  ;;  %v3084_v59 = vpop.f32.mrb[46].mxu1  ;;  %v6695_v58 = vadd.f32 %v8329_v5, %v8333_v60 }
 0x2d1   :  { %9903 = vst [vmem:[#allocation189_spill] sm:$0xff] %v8447_v18  ;;  %v8453_v16 = vadd.f32 %v3084_v59, %v8409_v37  ;;  %v3086_v2 = vpop.f32.mrb[47].mxu1  ;;  %v6696_v59 = vadd.f32 %v8335_v20, %v8338_v50 }
 0x2d2   :  { %9904 = vst [vmem:[#allocation190_spill] sm:$0xff] %v8450_v3  ;;  %v8456_v44 = vadd.f32 %v3086_v2, %v8414_v48  ;;  %v9907_v3 = vld [vmem:[#allocation128_spill] sm:$0xff]  ;;  %v9908_v2 = vld [vmem:[#allocation129_spill] sm:$0xff] }
 0x2d3   :  { %9905 = vst [vmem:[#allocation191_spill] sm:$0xff] %v8453_v16  ;;  %v6679_v62 = vadd.f32 %v9907_v3, %v8113_v30  ;;  %v6680_v35 = vadd.f32 %v9908_v2, %v8121_v12 }
 0x2d4   :  { %9906 = vst [vmem:[#allocation192_spill] sm:$0xff] %v8456_v44 }
 0x2d7   :  { %v6896_v53 = vpop.eup %6895 }
 0x2d8   :  { %v6898_v34 = vpop.eup %6897  ;;  %v4107_v13 = vadd.f32 1.0, %v6896_v53 }
 0x2d9   :  { %v4108_v18 = vadd.f32 1.0, %v6898_v34 }
 0x2da   :  { %6899 = vrcp.f32 %v4107_v13 }
 0x2db   :  { %6901 = vrcp.f32 %v4108_v18 }
 0x2e4   :  { %v6900_v12 = vpop.eup %6899 }
 0x2e5   :  { %v6902_v13 = vpop.eup %6901 }
 0x2f5   :  { %v4045_v16 = vpop.f32.mrb[36].mxu0 }
 0x2f6   :  { %v4004_v31 = vpop.f32.mrb[48].mxu1  ;;  %v4097_v32 = vadd.f32 %v6695_v58, %v4045_v16  ;;  %v4047_v54 = vpop.f32.mrb[37].mxu0 }
 0x2f7   :  { %v4095_v53 = vadd.f32 %v6679_v62, %v4004_v31  ;;  %v4006_v34 = vpop.f32.mrb[49].mxu1  ;;  %v4098_v44 = vadd.f32 %v6696_v59, %v4047_v54  ;;  %v4049_v15 = vpop.f32.mrb[38].mxu0 }
 0x2f8   :  { %6903 = vtanh.f32 %v4097_v32  ;;  %v4096_v5 = vadd.f32 %v6680_v35, %v4006_v34  ;;  %v4008_v60 = vpop.f32.mrb[50].mxu1  ;;  %v4050_v30 = vpop.f32.mrb[39].mxu0 }
 0x2f9   :  { %v6541_v3 = vmul.f32 -1.442695, %v4095_v53  ;;  %6905 = vtanh.f32 %v4098_v44  ;;  %v4009_v50 = vpop.f32.mrb[51].mxu1  ;;  %v6712_v60 = vadd.f32 %v8411_v11, %v8414_v48 }
 0x2fa   :  { %v6542_v20 = vmul.f32 -1.442695, %v4096_v5  ;;  %v6711_v5 = vadd.f32 %v8406_v33, %v8409_v37 }
 0x2fb   :  { %6907 = vpow2.f32 %v6541_v3 }
 0x2fc   :  { %6909 = vpow2.f32 %v6542_v20 }
 0x302   :  { %v6904_v2 = vpop.eup %6903 }
 0x303   :  { %v6906_v16 = vpop.eup %6905  ;;  %v4141_v58 = vmul.f32 %v6904_v2, %v6900_v12 }
 0x304   :  { %v4142_v18 = vmul.f32 %v6906_v16, %v6902_v13 }
 0x305   :  { %v6908_v62 = vpop.eup %6907 }
 0x306   :  { %v6910_v31 = vpop.eup %6909  ;;  %v4119_v59 = vadd.f32 1.0, %v6908_v62 }
 0x307   :  { %v4120_v15 = vadd.f32 1.0, %v6910_v31 }
 0x308   :  { %6911 = vrcp.f32 %v4119_v59 }
 0x309   :  { %6913 = vrcp.f32 %v4120_v15 }
 0x312   :  { %v6912_v35 = vpop.eup %6911 }
 0x313   :  { %v6914_v32 = vpop.eup %6913  ;;  %v4139_v54 = vmul.f32 0.0, %v6912_v35 }
 0x314   :  { %v4140_v44 = vmul.f32 0.0, %v6914_v32 }
 0x315   :  { %v8466_v53 = vadd.f32 %v4141_v58, %v4139_v54 }
 0x316   :  { %v8468_v34 = vadd.f32 %v4142_v18, %v4140_v44 }
 0x336   :  { %v4086_v30 = vpop.f32.mrb[52].mxu1 }
 0x337   :  { %v4099_v3 = vadd.f32 %v6711_v5, %v4086_v30  ;;  %v4088_v50 = vpop.f32.mrb[53].mxu1  ;;  %v9909_v5 = vld [vmem:[#allocation61_spill] sm:$0xff]  ;;  %v9911_v30 = vld [vmem:[#allocation67_spill] sm:$0xff] }
 0x338   :  { %v4100_v20 = vadd.f32 %v6712_v60, %v4088_v50  ;;  %v4090_v12 = vpop.f32.mrb[54].mxu1  ;;  %v9910_v60 = vld [vmem:[#allocation62_spill] sm:$0xff]  ;;  %v9913_v50 = vld [vmem:[#allocation73_spill] sm:$0xff] }
 0x339   :  { %v6543_v13 = vmul.f32 -1.442695, %v4099_v3  ;;  %v4091_v2 = vpop.f32.mrb[55].mxu1  ;;  %v9912_v3 = vld [vmem:[#allocation70_spill] sm:$0xff]  ;;  %v9915_v12 = vld [vmem:[#allocation79_spill] sm:$0xff] }
 0x33a   :  { %v6544_v16 = vmul.f32 -1.442695, %v4100_v20  ;;  %v9914_v20 = vld [vmem:[#allocation74_spill] sm:$0xff]  ;;  %v9917_v2 = vld [vmem:[#allocation85_spill] sm:$0xff] }
 0x33b   :  { %6915 = vpow2.f32 %v6543_v13  ;;  %v9916_v13 = vld [vmem:[#allocation82_spill] sm:$0xff] }
 0x33c   :  { %6917 = vpow2.f32 %v6544_v16  ;;  %v9918_v16 = vld [vmem:[#allocation86_spill] sm:$0xff] }
 0x33d   :  { %6919 = vtanh.f32 %v8466_v53 }
 0x33e   :  { %6921 = vtanh.f32 %v8468_v34 }
 0x345   :  { %v6916_v58 = vpop.eup %6915 }
 0x346   :  { %v6918_v62 = vpop.eup %6917  ;;  %v4133_v18 = vadd.f32 1.0, %v6916_v58  ;;  %v9919_v58 = vld [vmem:[#allocation91_spill] sm:$0xff] }
 0x347   :  { %v4134_v33 = vadd.f32 1.0, %v6918_v62  ;;  %v6920_v11 = vpop.eup %6919  ;;  %v9920_v62 = vld [vmem:[#allocation94_spill] sm:$0xff] }
 0x348   :  { %6923 = vrcp.f32 %v4133_v18  ;;  %v6922_v48 = vpop.eup %6921  ;;  %v9921_v18 = vld [vmem:[#allocation96_spill] sm:$0xff] }
 0x349   :  { %6925 = vrcp.f32 %v4134_v33  ;;  %v9922_v33 = vld [vmem:[#allocation98_spill] sm:$0xff] }
 0x352   :  { %v6924_v37 = vpop.eup %6923 }
 0x353   :  { %v6926_v31 = vpop.eup %6925  ;;  %v4147_v59 = vmul.f32 %v6924_v37, %v6920_v11  ;;  %v9923_v11 = vld [vmem:[#allocation100_spill] sm:$0xff] }
 0x354   :  { %v4148_v15 = vmul.f32 %v6926_v31, %v6922_v48  ;;  %v9924_v48 = vld [vmem:[#allocation102_spill] sm:$0xff]  ;;  %v9925_v37 = vld [vmem:[#allocation104_spill] sm:$0xff] }
 0x355   :  { %v4149_v35 = vmax.f32 %v4147_v59, 0.0  ;;  %v8476_v44 = vpack.c.bf16 %v4147_v59, %v4147_v59  ;;  %v9926_v31 = vld [vmem:[#allocation106_spill] sm:$0xff]  ;;  %v9927_v59 = vld [vmem:[#allocation108_spill] sm:$0xff] }
 0x356   :  { %v4150_v32 = vmax.f32 %v4148_v15, 0.0  ;;  %v4163_v54 = vpack.c.bf16 %v4148_v15, %v4148_v15  ;;  %v9928_v15 = vld [vmem:[#allocation110_spill] sm:$0xff] }
 0x357   :  { %4151 = vst [vmem:[#allocation3] sm:$0xff] %v4149_v35  ;;  %v9929_v35 = vld [vmem:[#allocation155_spill] sm:$0xff] }
 0x358   :  { %4152 = vst [vmem:[#allocation3 + $0x8] sm:$0xff] %v4150_v32  ;;  %4196 = vmatprep.mubr.bf16.mxu0 %v4163_v54  ;;  %4237 = vmatprep.mubr.bf16.mxu1 %v4163_v54  ;;  %v9930_v32 = vld [vmem:[#allocation112_spill] sm:$0xff] }
 0x359   :  { %4197 = vmatmul.mubr.bf16.vlgmr.msra.gmra.mrb[40].mxu0 %v8476_v44  ;;  %4238 = vmatmul.mubr.bf16.vlgmr.msra.gmra.mrb[56].mxu1 %v8476_v44 }
 0x35a   :  { %4247 = vmatpush1.bf16.msra.mxu0 %v9909_v5  ;;  %4288 = vmatpush1.bf16.msra.mxu1 %v8156_v56 }
 0x35b   :  { %4278 = vmatprep.mubr.bf16.mxu0 %v4163_v54  ;;  %4319 = vmatprep.mubr.bf16.mxu1 %v4163_v54  ;;  %v9931_v54 = vld [vmem:[#allocation156_spill] sm:$0xff] }
 0x35c   :  { %4248 = vmatprep.subr.bf16.mxu0 %v9910_v60  ;;  %4289 = vmatprep.subr.bf16.mxu1 %v8163_v14 }
 0x35e   :  { %4249 = vmatpush1.bf16.msra.mxu0 %v9911_v30  ;;  %4290 = vmatpush1.bf16.msra.mxu1 %v8172_v8 }
 0x35f   :  { %4250 = vmatprep.subr.bf16.mxu0 %v9912_v3  ;;  %4291 = vmatprep.subr.bf16.mxu1 %v8176_v42 }
 0x362   :  { %4251 = vmatpush1.bf16.msra.mxu0 %v9913_v50  ;;  %4292 = vmatpush1.bf16.msra.mxu1 %v8187_v47 }
 0x363   :  { %4252 = vmatprep.subr.bf16.mxu0 %v9914_v20  ;;  %4293 = vmatprep.subr.bf16.mxu1 %v8194_v41 }
 0x366   :  { %4253 = vmatpush1.bf16.msra.mxu0 %v9915_v12  ;;  %4294 = vmatpush1.bf16.msra.mxu1 %v8201_v23 }
 0x367   :  { %4254 = vmatprep.subr.bf16.mxu0 %v9916_v13  ;;  %4295 = vmatprep.subr.bf16.mxu1 %v8205_v40 }
 0x36a   :  { %4255 = vmatpush1.bf16.msra.mxu0 %v9917_v2  ;;  %4296 = vmatpush1.bf16.msra.mxu1 %v8215_v38 }
 0x36b   :  { %4256 = vmatprep.subr.bf16.mxu0 %v9918_v16  ;;  %4297 = vmatprep.subr.bf16.mxu1 %v8222_v46 }
 0x36e   :  { %4257 = vmatpush1.bf16.msra.mxu0 %v9919_v58  ;;  %4298 = vmatpush1.bf16.msra.mxu1 %v8229_v4 }
 0x36f   :  { %4258 = vmatprep.subr.bf16.mxu0 %v9920_v62  ;;  %4299 = vmatprep.subr.bf16.mxu1 %v8233_v57 }
 0x372   :  { %4259 = vmatpush1.bf16.msra.mxu0 %v9921_v18  ;;  %4300 = vmatpush1.bf16.msra.mxu1 %v8237_v21 }
 0x373   :  { %4260 = vmatprep.subr.bf16.mxu0 %v9922_v33  ;;  %4301 = vmatprep.subr.bf16.mxu1 %v8241_v49 }
 0x376   :  { %4261 = vmatpush1.bf16.msra.mxu0 %v9923_v11  ;;  %4302 = vmatpush1.bf16.msra.mxu1 %v8245_v28 }
 0x377   :  { %4262 = vmatprep.subr.bf16.mxu0 %v9924_v48  ;;  %4303 = vmatprep.subr.bf16.mxu1 %v8249_v6  ;;  %v9932_v6 = vld [vmem:[#allocation114_spill] sm:$0xff] }
 0x37a   :  { %4263 = vmatpush1.bf16.msra.mxu0 %v9925_v37  ;;  %4304 = vmatpush1.bf16.msra.mxu1 %v8253_v17  ;;  %v9933_v37 = vld [vmem:[#allocation157_spill] sm:$0xff]  ;;  %v9934_v17 = vld [vmem:[#allocation116_spill] sm:$0xff] }
 0x37b   :  { %4264 = vmatprep.subr.bf16.mxu0 %v9926_v31  ;;  %4305 = vmatprep.subr.bf16.mxu1 %v8257_v9  ;;  %v9935_v9 = vld [vmem:[#allocation118_spill] sm:$0xff] }
 0x37e   :  { %4265 = vmatpush1.bf16.msra.mxu0 %v9927_v59  ;;  %4306 = vmatpush1.bf16.msra.mxu1 %v8261_v51  ;;  %v9936_v59 = vld [vmem:[#allocation159_spill] sm:$0xff]  ;;  %v9937_v51 = vld [vmem:[#allocation120_spill] sm:$0xff] }
 0x37f   :  { %4266 = vmatprep.subr.bf16.mxu0 %v9928_v15  ;;  %4307 = vmatprep.subr.bf16.mxu1 %v9929_v35  ;;  %v9938_v35 = vld [vmem:[#allocation122_spill] sm:$0xff] }
 0x382   :  { %4267 = vmatpush1.bf16.msra.mxu0 %v9930_v32  ;;  %4308 = vmatpush1.bf16.msra.mxu1 %v9931_v54  ;;  %v9939_v54 = vld [vmem:[#allocation124_spill] sm:$0xff] }
 0x383   :  { %4268 = vmatprep.subr.bf16.mxu0 %v9932_v6  ;;  %4309 = vmatprep.subr.bf16.mxu1 %v9933_v37  ;;  %v9940_v37 = vld [vmem:[#allocation126_spill] sm:$0xff] }
 0x386   :  { %4269 = vmatpush1.bf16.msra.mxu0 %v9934_v17  ;;  %4310 = vmatpush1.bf16.msra.mxu1 %v8277_v25  ;;  %v9941_v25 = vld [vmem:[#allocation130_spill] sm:$0xff] }
 0x387   :  { %4270 = vmatprep.subr.bf16.mxu0 %v9935_v9  ;;  %4311 = vmatprep.subr.bf16.mxu1 %v9936_v59  ;;  %v9942_v59 = vld [vmem:[#allocation132_spill] sm:$0xff] }
 0x38a   :  { %4271 = vmatpush1.bf16.msra.mxu0 %v9937_v51  ;;  %4312 = vmatpush1.bf16.msra.mxu1 %v8285_v29  ;;  %v9943_v29 = vld [vmem:[#allocation136_spill] sm:$0xff] }
 0x38b   :  { %4272 = vmatprep.subr.bf16.mxu0 %v9938_v35  ;;  %4313 = vmatprep.subr.bf16.mxu1 %v8289_v39  ;;  %v9944_v39 = vld [vmem:[#allocation22_spill] sm:$0xff] }
 0x38e   :  { %4273 = vmatpush1.bf16.msra.mxu0 %v9939_v54  ;;  %4314 = vmatpush1.bf16.msra.mxu1 %v8293_v43 }
 0x38f   :  { %4274 = vmatprep.subr.bf16.mxu0 %v9940_v37  ;;  %4315 = vmatprep.subr.bf16.mxu1 %v8297_v19  ;;  %v9945_v19 = vld [vmem:[#allocation23_spill] sm:$0xff] }
 0x392   :  { %4275 = vmatpush1.bf16.msra.mxu0 %v9941_v25  ;;  %4316 = vmatpush1.bf16.msra.mxu1 %v8301_v52  ;;  %v9946_v52 = vld [vmem:[#allocation24_spill] sm:$0xff] }
 0x393   :  { %4276 = vmatprep.subr.bf16.mxu0 %v9942_v59  ;;  %4317 = vmatprep.subr.bf16.mxu1 %v8305_v24  ;;  %v9947_v24 = vld [vmem:[#allocation25_spill] sm:$0xff] }
 0x396   :  { %4277 = vmatpush1.bf16.msra.mxu0 %v9943_v29  ;;  %4318 = vmatpush1.bf16.msra.mxu1 %v8309_v1  ;;  %v9948_v1 = vld [vmem:[#allocation26_spill] sm:$0xff] }
 0x397   :  { %4400 = vmatprep.subr.bf16.mxu0 %v9944_v39  ;;  %4441 = vmatprep.subr.bf16.mxu1 %v7873_v36  ;;  %v9949_v36 = vld [vmem:[#allocation27_spill] sm:$0xff] }
 0x399   :  { %4279 = vmatmul.mubr.bf16.vlgmr.msra.gmra.mrb[44].mxu0 %v8476_v44  ;;  %4320 = vmatmul.mubr.bf16.vlgmr.msra.gmra.mrb[60].mxu1 %v8476_v44  ;;  %v9950_v44 = vld [vmem:[#allocation28_spill] sm:$0xff] }
 0x39a   :  { %4401 = vmatpush1.bf16.msra.mxu0 %v9945_v19  ;;  %4442 = vmatpush1.bf16.msra.mxu1 %v7878_v45  ;;  %v9951_v45 = vld [vmem:[#allocation29_spill] sm:$0xff]  ;;  %v10002_v19 = vld [vmem:[#allocation135_spill] sm:$0xff] }
 0x39b   :  { %4402 = vmatprep.subr.bf16.mxu0 %v9946_v52  ;;  %4443 = vmatprep.subr.bf16.mxu1 %v7891_v61  ;;  %v9952_v61 = vld [vmem:[#allocation30_spill] sm:$0xff]  ;;  %v10001_v52 = vld [vmem:[#allocation57_spill] sm:$0xff] }
 0x39e   :  { %4403 = vmatpush1.bf16.msra.mxu0 %v9947_v24  ;;  %4444 = vmatpush1.bf16.msra.mxu1 %v7911_v0  ;;  %v9953_v0 = vld [vmem:[#allocation31_spill] sm:$0xff] }
 0x39f   :  { %4404 = vmatprep.subr.bf16.mxu0 %v9948_v1  ;;  %4445 = vmatprep.subr.bf16.mxu1 %v7917_v26  ;;  %v9954_v26 = vld [vmem:[#allocation32_spill] sm:$0xff]  ;;  %v10000_v1 = vld [vmem:[#allocation133_spill] sm:$0xff] }
 0x3a2   :  { %4405 = vmatpush1.bf16.msra.mxu0 %v9949_v36  ;;  %4446 = vmatpush1.bf16.msra.mxu1 %v7923_v10  ;;  %v9955_v10 = vld [vmem:[#allocation33_spill] sm:$0xff]  ;;  %v9999_v36 = vld [vmem:[#allocation55_spill] sm:$0xff] }
 0x3a3   :  { %4406 = vmatprep.subr.bf16.mxu0 %v9950_v44  ;;  %4447 = vmatprep.subr.bf16.mxu1 %v7937_v22  ;;  %v9956_v44 = vld [vmem:[#allocation93_spill] sm:$0xff]  ;;  %v9957_v22 = vld [vmem:[#allocation34_spill] sm:$0xff] }
 0x3a6   :  { %4407 = vmatpush1.bf16.msra.mxu0 %v9951_v45  ;;  %4448 = vmatpush1.bf16.msra.mxu1 %v7956_v27  ;;  %v9958_v45 = vld [vmem:[#allocation95_spill] sm:$0xff] }
 0x3a7   :  { %4408 = vmatprep.subr.bf16.mxu0 %v9952_v61  ;;  %4449 = vmatprep.subr.bf16.mxu1 %v7962_v55  ;;  %v9959_v27 = vld [vmem:[#allocation35_spill] sm:$0xff]  ;;  %v9960_v61 = vld [vmem:[#allocation97_spill] sm:$0xff]  ;;  %v9961_v55 = vld [vmem:[#allocation36_spill] sm:$0xff] }
 0x3aa   :  { %4409 = vmatpush1.bf16.msra.mxu0 %v9953_v0  ;;  %4450 = vmatpush1.bf16.msra.mxu1 %v7967_v63  ;;  %v9962_v0 = vld [vmem:[#allocation99_spill] sm:$0xff]  ;;  %v9963_v63 = vld [vmem:[#allocation37_spill] sm:$0xff] }
 0x3ab   :  { %4410 = vmatprep.subr.bf16.mxu0 %v9954_v26  ;;  %4451 = vmatprep.subr.bf16.mxu1 %v7981_v7  ;;  %v9964_v26 = vld [vmem:[#allocation101_spill] sm:$0xff]  ;;  %v9965_v7 = vld [vmem:[#allocation38_spill] sm:$0xff] }
 0x3ae   :  { %4411 = vmatpush1.bf16.msra.mxu0 %v9955_v10  ;;  %4452 = vmatpush1.bf16.msra.mxu1 %v9956_v44  ;;  %v9966_v10 = vld [vmem:[#allocation103_spill] sm:$0xff] }
 0x3af   :  { %4412 = vmatprep.subr.bf16.mxu0 %v9957_v22  ;;  %4453 = vmatprep.subr.bf16.mxu1 %v9958_v45  ;;  %v9967_v44 = vld [vmem:[#allocation39_spill] sm:$0xff]  ;;  %v9968_v22 = vld [vmem:[#allocation105_spill] sm:$0xff]  ;;  %v9969_v45 = vld [vmem:[#allocation40_spill] sm:$0xff] }
 0x3b2   :  { %4413 = vmatpush1.bf16.msra.mxu0 %v9959_v27  ;;  %4454 = vmatpush1.bf16.msra.mxu1 %v9960_v61  ;;  %v9970_v27 = vld [vmem:[#allocation107_spill] sm:$0xff]  ;;  %v9971_v61 = vld [vmem:[#allocation41_spill] sm:$0xff] }
 0x3b3   :  { %4414 = vmatprep.subr.bf16.mxu0 %v9961_v55  ;;  %4455 = vmatprep.subr.bf16.mxu1 %v9962_v0  ;;  %v9972_v55 = vld [vmem:[#allocation109_spill] sm:$0xff]  ;;  %v9973_v0 = vld [vmem:[#allocation42_spill] sm:$0xff] }
 0x3b6   :  { %4415 = vmatpush1.bf16.msra.mxu0 %v9963_v63  ;;  %4456 = vmatpush1.bf16.msra.mxu1 %v9964_v26  ;;  %v9974_v63 = vld [vmem:[#allocation111_spill] sm:$0xff] }
 0x3b7   :  { %4416 = vmatprep.subr.bf16.mxu0 %v9965_v7  ;;  %4457 = vmatprep.subr.bf16.mxu1 %v9966_v10  ;;  %v9975_v26 = vld [vmem:[#allocation43_spill] sm:$0xff]  ;;  %v9976_v7 = vld [vmem:[#allocation113_spill] sm:$0xff]  ;;  %v9977_v10 = vld [vmem:[#allocation44_spill] sm:$0xff] }
 0x3ba   :  { %4417 = vmatpush1.bf16.msra.mxu0 %v9967_v44  ;;  %4458 = vmatpush1.bf16.msra.mxu1 %v9968_v22  ;;  %v9978_v44 = vld [vmem:[#allocation115_spill] sm:$0xff]  ;;  %v9979_v22 = vld [vmem:[#allocation45_spill] sm:$0xff] }
 0x3bb   :  { %4418 = vmatprep.subr.bf16.mxu0 %v9969_v45  ;;  %4459 = vmatprep.subr.bf16.mxu1 %v9970_v27  ;;  %v9980_v45 = vld [vmem:[#allocation117_spill] sm:$0xff]  ;;  %v9981_v27 = vld [vmem:[#allocation46_spill] sm:$0xff] }
 0x3be   :  { %4419 = vmatpush1.bf16.msra.mxu0 %v9971_v61  ;;  %4460 = vmatpush1.bf16.msra.mxu1 %v9972_v55  ;;  %v9982_v61 = vld [vmem:[#allocation119_spill] sm:$0xff] }
 0x3bf   :  { %4420 = vmatprep.subr.bf16.mxu0 %v9973_v0  ;;  %4461 = vmatprep.subr.bf16.mxu1 %v9974_v63  ;;  %v9983_v55 = vld [vmem:[#allocation47_spill] sm:$0xff]  ;;  %v9984_v0 = vld [vmem:[#allocation121_spill] sm:$0xff]  ;;  %v9985_v63 = vld [vmem:[#allocation48_spill] sm:$0xff] }
 0x3c2   :  { %4421 = vmatpush1.bf16.msra.mxu0 %v9975_v26  ;;  %4462 = vmatpush1.bf16.msra.mxu1 %v9976_v7  ;;  %v9986_v26 = vld [vmem:[#allocation123_spill] sm:$0xff]  ;;  %v9987_v7 = vld [vmem:[#allocation49_spill] sm:$0xff] }
 0x3c3   :  { %4422 = vmatprep.subr.bf16.mxu0 %v9977_v10  ;;  %4463 = vmatprep.subr.bf16.mxu1 %v9978_v44  ;;  %v9988_v10 = vld [vmem:[#allocation125_spill] sm:$0xff]  ;;  %v9989_v44 = vld [vmem:[#allocation50_spill] sm:$0xff] }
 0x3c6   :  { %4423 = vmatpush1.bf16.msra.mxu0 %v9979_v22  ;;  %4464 = vmatpush1.bf16.msra.mxu1 %v9980_v45  ;;  %v9990_v22 = vld [vmem:[#allocation127_spill] sm:$0xff] }
 0x3c7   :  { %4424 = vmatprep.subr.bf16.mxu0 %v9981_v27  ;;  %4465 = vmatprep.subr.bf16.mxu1 %v9982_v61  ;;  %v9991_v45 = vld [vmem:[#allocation51_spill] sm:$0xff]  ;;  %v9993_v61 = vld [vmem:[#allocation52_spill] sm:$0xff] }
 0x3c8   :  { %v9992_v27 = vld [vmem:[#allocation131_spill] sm:$0xff] }
 0x3ca   :  { %4425 = vmatpush1.bf16.msra.mxu0 %v9983_v55  ;;  %4466 = vmatpush1.bf16.msra.mxu1 %v9984_v0  ;;  %v9994_v55 = vld [vmem:[#allocation134_spill] sm:$0xff]  ;;  %v9995_v0 = vld [vmem:[#allocation56_spill] sm:$0xff] }
 0x3cb   :  { %4426 = vmatprep.subr.bf16.mxu0 %v9985_v63  ;;  %4467 = vmatprep.subr.bf16.mxu1 %v9986_v26  ;;  %v9996_v63 = vld [vmem:[#allocation137_spill] sm:$0xff]  ;;  %v9997_v26 = vld [vmem:[#allocation58_spill] sm:$0xff] }
 0x3ce   :  { %4427 = vmatpush1.bf16.msra.mxu0 %v9987_v7  ;;  %4468 = vmatpush1.bf16.msra.mxu1 %v9988_v10  ;;  %v9998_v7 = vld [vmem:[#allocation138_spill] sm:$0xff] }
 0x3cf   :  { %4428 = vmatprep.subr.bf16.mxu0 %v9989_v44  ;;  %4469 = vmatprep.subr.bf16.mxu1 %v9990_v22 }
 0x3d2   :  { %4429 = vmatpush1.bf16.msra.mxu0 %v9991_v45  ;;  %4470 = vmatpush1.bf16.msra.mxu1 %v9992_v27 }
 0x3d3   :  { %4430 = vmatprep.subr.bf16.mxu0 %v9993_v61  ;;  %4471 = vmatprep.subr.bf16.mxu1 %v9994_v55 }
 0x3d6   :  { %4431 = vmatpush1.bf16.msra.mxu0 %v9995_v0  ;;  %4472 = vmatpush1.bf16.msra.mxu1 %v9996_v63 }
 0x3d7   :  { %4482 = vmatprep.subr.bf16.mxu0 %v9997_v26  ;;  %4523 = vmatprep.subr.bf16.mxu1 %v9998_v7 }
 0x42c   :  { %v4198_v10 = vpop.f32.mrb[40].mxu0  ;;  %v4239_v44 = vpop.f32.mrb[56].mxu1 }
 0x42d   :  { %v4328_v22 = vadd.f32 %v9999_v36, %v4198_v10  ;;  %v4330_v45 = vadd.f32 %v10000_v1, %v4239_v44  ;;  %v4200_v24 = vpop.f32.mrb[41].mxu0  ;;  %v4241_v27 = vpop.f32.mrb[57].mxu1 }
 0x42e   :  { %v4329_v61 = vadd.f32 %v10001_v52, %v4200_v24  ;;  %v4331_v55 = vadd.f32 %v10002_v19, %v4241_v27  ;;  %v4202_v39 = vpop.f32.mrb[42].mxu0  ;;  %v4243_v0 = vpop.f32.mrb[58].mxu1 }
 0x42f   :  { %v4203_v29 = vpop.f32.mrb[43].mxu0  ;;  %v4244_v63 = vpop.f32.mrb[59].mxu1  ;;  %v6545_v59 = vmul.f32 -1.442695, %v4328_v22  ;;  %v6547_v26 = vmul.f32 -1.442695, %v4330_v45 }
 0x430   :  { %v6546_v25 = vmul.f32 -1.442695, %v4329_v61  ;;  %v6548_v7 = vmul.f32 -1.442695, %v4331_v55  ;;  %v10003_v45 = vld [vmem:[#allocation167_spill] sm:$0xff]  ;;  %v10004_v22 = vld [vmem:[#allocation53_spill] sm:$0xff] }
 0x431   :  { %6927 = vpow2.f32 %v6545_v59  ;;  %v10006_v39 = vld [vmem:[#allocation54_spill] sm:$0xff] }
 0x432   :  { %6929 = vpow2.f32 %v6547_v26 }
 0x433   :  { %6931 = vpow2.f32 %v6546_v25 }
 0x434   :  { %6933 = vpow2.f32 %v6548_v7  ;;  %v10005_v7 = vld [vmem:[#allocation168_spill] sm:$0xff] }
 0x43b   :  { %v6928_v36 = vpop.eup %6927 }
 0x43c   :  { %v6930_v10 = vpop.eup %6929  ;;  %v4342_v37 = vadd.f32 1.0, %v6928_v36 }
 0x43d   :  { %v6932_v1 = vpop.eup %6931  ;;  %v4354_v52 = vadd.f32 1.0, %v6930_v10 }
 0x43e   :  { %v6934_v44 = vpop.eup %6933  ;;  %v4343_v24 = vadd.f32 1.0, %v6932_v1  ;;  %6935 = vrcp.f32 %v4342_v37 }
 0x43f   :  { %v4355_v27 = vadd.f32 1.0, %v6934_v44  ;;  %6937 = vrcp.f32 %v4354_v52 }
 0x440   :  { %6939 = vrcp.f32 %v4343_v24 }
 0x441   :  { %6941 = vrcp.f32 %v4355_v27 }
 0x448   :  { %v6936_v52 = vpop.eup %6935 }
 0x449   :  { %v6938_v24 = vpop.eup %6937 }
 0x46c   :  { %v4280_v0 = vpop.f32.mrb[44].mxu0  ;;  %v4321_v63 = vpop.f32.mrb[60].mxu1 }
 0x46d   :  { %v4332_v61 = vadd.f32 %v10003_v45, %v4280_v0  ;;  %v4334_v55 = vadd.f32 %v10004_v22, %v4321_v63  ;;  %v4282_v26 = vpop.f32.mrb[45].mxu0  ;;  %v4323_v25 = vpop.f32.mrb[61].mxu1  ;;  %v4374_v22 = vmul.f32 %v6938_v24, %v8466_v53 }
 0x46e   :  { %v4333_v29 = vadd.f32 %v10005_v7, %v4282_v26  ;;  %v4335_v19 = vadd.f32 %v10006_v39, %v4323_v25  ;;  %v4284_v59 = vpop.f32.mrb[46].mxu0  ;;  %v4325_v36 = vpop.f32.mrb[62].mxu1 }
 0x46f   :  { %6943 = vtanh.f32 %v4332_v61  ;;  %v6549_v10 = vmul.f32 -1.442695, %v4334_v55  ;;  %v4285_v37 = vpop.f32.mrb[47].mxu0  ;;  %v4326_v1 = vpop.f32.mrb[63].mxu1 }
 0x470   :  { %6945 = vtanh.f32 %v4333_v29  ;;  %v6550_v44 = vmul.f32 -1.442695, %v4335_v19  ;;  %v6940_v0 = vpop.eup %6939 }
 0x471   :  { %6947 = vpow2.f32 %v6549_v10  ;;  %v6942_v63 = vpop.eup %6941 }
 0x472   :  { %6949 = vpow2.f32 %v6550_v44  ;;  %v4375_v7 = vmul.f32 %v6942_v63, %v8468_v34  ;;  %v10007_v63 = vld [vmem:[#allocation151_spill] sm:$0xff] }
 0x479   :  { %v6944_v45 = vpop.eup %6943 }
 0x47a   :  { %v6946_v27 = vpop.eup %6945  ;;  %v4376_v26 = vmul.f32 %v6944_v45, %v6936_v52  ;;  %v10008_v45 = vld [vmem:[#allocation104_spill] sm:$0xff] }
 0x47b   :  { %v6948_v25 = vpop.eup %6947  ;;  %v4377_v61 = vmul.f32 %v6946_v27, %v6940_v0  ;;  %v10009_v27 = vld [vmem:[#allocation152_spill] sm:$0xff] }
 0x47c   :  { %v6950_v55 = vpop.eup %6949  ;;  %v8620_v39 = vadd.f32 %v4376_v26, %v4374_v22  ;;  %v4368_v29 = vadd.f32 1.0, %v6948_v25  ;;  %v10010_v22 = vld [vmem:[#allocation153_spill] sm:$0xff]  ;;  %v10011_v26 = vld [vmem:[#allocation108_spill] sm:$0xff]  ;;  %v10012_v25 = vld [vmem:[#allocation154_spill] sm:$0xff] }
 0x47d   :  { %v8622_v19 = vadd.f32 %v4377_v61, %v4375_v7  ;;  %v4369_v59 = vadd.f32 1.0, %v6950_v55  ;;  %v10013_v7 = vld [vmem:[#allocation155_spill] sm:$0xff]  ;;  %v10014_v61 = vld [vmem:[#allocation156_spill] sm:$0xff]  ;;  %v10015_v55 = vld [vmem:[#allocation157_spill] sm:$0xff] }
 0x47e   :  { %6951 = vtanh.f32 %v8620_v39 }
 0x47f   :  { %6953 = vrcp.f32 %v4368_v29  ;;  %v10016_v29 = vld [vmem:[#allocation158_spill] sm:$0xff] }
 0x480   :  { %6955 = vtanh.f32 %v8622_v19 }
 0x481   :  { %6957 = vrcp.f32 %v4369_v59  ;;  %v10017_v59 = vld [vmem:[#allocation159_spill] sm:$0xff] }
 0x488   :  { %v6952_v36 = vpop.eup %6951 }
 0x489   :  { %v6954_v53 = vpop.eup %6953 }
 0x48a   :  { %v6956_v10 = vpop.eup %6955  ;;  %v4382_v37 = vmul.f32 %v6954_v53, %v6952_v36  ;;  %v10018_v36 = vld [vmem:[#allocation160_spill] sm:$0xff]  ;;  %v10019_v53 = vld [vmem:[#allocation161_spill] sm:$0xff] }
 0x48b   :  { %v6958_v1 = vpop.eup %6957 }
 0x48c   :  { %v4383_v34 = vmul.f32 %v6958_v1, %v6956_v10  ;;  %v4384_v44 = vmax.f32 %v4382_v37, 0.0  ;;  %v8626_v0 = vpack.c.bf16 %v4382_v37, %v4382_v37  ;;  %v10020_v10 = vld [vmem:[#allocation126_spill] sm:$0xff]  ;;  %v10021_v37 = vld [vmem:[#allocation163_spill] sm:$0xff] }
 0x48d   :  { %v10022_v1 = vld [vmem:[#allocation130_spill] sm:$0xff] }
 0x48e   :  { %v4385_v52 = vmax.f32 %v4383_v34, 0.0  ;;  %v4399_v24 = vpack.c.bf16 %v4383_v34, %v4383_v34  ;;  %4387 = vst [vmem:[#allocation3 + $0x10] sm:$0xff] %v4384_v44  ;;  %v10023_v34 = vld [vmem:[#allocation164_spill] sm:$0xff] }
 0x48f   :  { %v10024_v44 = vld [vmem:[#allocation132_spill] sm:$0xff] }
 0x490   :  { %4388 = vst [vmem:[#allocation3 + $0x18] sm:$0xff] %v4385_v52  ;;  %4432 = vmatprep.mubr.bf16.mxu0 %v4399_v24  ;;  %4473 = vmatprep.mubr.bf16.mxu1 %v4399_v24  ;;  %v10025_v52 = vld [vmem:[#allocation165_spill] sm:$0xff] }
 0x491   :  { %4433 = vmatmul.mubr.bf16.vlgmr.msra.gmra.mrb[48].mxu0 %v8626_v0  ;;  %4474 = vmatmul.mubr.bf16.vlgmr.msra.gmra.mrb[64].mxu1 %v8626_v0 }
 0x492   :  { %4483 = vmatpush1.bf16.msra.mxu0 %v9909_v5  ;;  %4524 = vmatpush1.bf16.msra.mxu1 %v8156_v56 }
 0x493   :  { %4514 = vmatprep.mubr.bf16.mxu0 %v4399_v24  ;;  %4555 = vmatprep.mubr.bf16.mxu1 %v4399_v24  ;;  %v10026_v24 = vld [vmem:[#allocation136_spill] sm:$0xff] }
 0x494   :  { %4484 = vmatprep.subr.bf16.mxu0 %v9910_v60  ;;  %4525 = vmatprep.subr.bf16.mxu1 %v8163_v14 }
 0x496   :  { %4485 = vmatpush1.bf16.msra.mxu0 %v9911_v30  ;;  %4526 = vmatpush1.bf16.msra.mxu1 %v8172_v8 }
 0x497   :  { %4486 = vmatprep.subr.bf16.mxu0 %v9912_v3  ;;  %4527 = vmatprep.subr.bf16.mxu1 %v8176_v42 }
 0x49a   :  { %4487 = vmatpush1.bf16.msra.mxu0 %v9913_v50  ;;  %4528 = vmatpush1.bf16.msra.mxu1 %v8187_v47 }
 0x49b   :  { %4488 = vmatprep.subr.bf16.mxu0 %v9914_v20  ;;  %4529 = vmatprep.subr.bf16.mxu1 %v8194_v41 }
 0x49e   :  { %4489 = vmatpush1.bf16.msra.mxu0 %v9915_v12  ;;  %4530 = vmatpush1.bf16.msra.mxu1 %v8201_v23 }
 0x49f   :  { %4490 = vmatprep.subr.bf16.mxu0 %v9916_v13  ;;  %4531 = vmatprep.subr.bf16.mxu1 %v8205_v40 }
 0x4a2   :  { %4491 = vmatpush1.bf16.msra.mxu0 %v9917_v2  ;;  %4532 = vmatpush1.bf16.msra.mxu1 %v8215_v38 }
 0x4a3   :  { %4492 = vmatprep.subr.bf16.mxu0 %v9918_v16  ;;  %4533 = vmatprep.subr.bf16.mxu1 %v8222_v46 }
 0x4a6   :  { %4493 = vmatpush1.bf16.msra.mxu0 %v9919_v58  ;;  %4534 = vmatpush1.bf16.msra.mxu1 %v8229_v4 }
 0x4a7   :  { %4494 = vmatprep.subr.bf16.mxu0 %v9920_v62  ;;  %4535 = vmatprep.subr.bf16.mxu1 %v8233_v57 }
 0x4aa   :  { %4495 = vmatpush1.bf16.msra.mxu0 %v9921_v18  ;;  %4536 = vmatpush1.bf16.msra.mxu1 %v8237_v21 }
 0x4ab   :  { %4496 = vmatprep.subr.bf16.mxu0 %v9922_v33  ;;  %4537 = vmatprep.subr.bf16.mxu1 %v8241_v49 }
 0x4ae   :  { %4497 = vmatpush1.bf16.msra.mxu0 %v9923_v11  ;;  %4538 = vmatpush1.bf16.msra.mxu1 %v8245_v28 }
 0x4af   :  { %4498 = vmatprep.subr.bf16.mxu0 %v9924_v48  ;;  %4539 = vmatprep.subr.bf16.mxu1 %v10007_v63 }
 0x4b2   :  { %4499 = vmatpush1.bf16.msra.mxu0 %v10008_v45  ;;  %4540 = vmatpush1.bf16.msra.mxu1 %v10009_v27 }
 0x4b3   :  { %4500 = vmatprep.subr.bf16.mxu0 %v9926_v31  ;;  %4541 = vmatprep.subr.bf16.mxu1 %v10010_v22 }
 0x4b6   :  { %4501 = vmatpush1.bf16.msra.mxu0 %v10011_v26  ;;  %4542 = vmatpush1.bf16.msra.mxu1 %v10012_v25 }
 0x4b7   :  { %4502 = vmatprep.subr.bf16.mxu0 %v9928_v15  ;;  %4543 = vmatprep.subr.bf16.mxu1 %v10013_v7 }
 0x4ba   :  { %4503 = vmatpush1.bf16.msra.mxu0 %v9930_v32  ;;  %4544 = vmatpush1.bf16.msra.mxu1 %v10014_v61 }
 0x4bb   :  { %4504 = vmatprep.subr.bf16.mxu0 %v9932_v6  ;;  %4545 = vmatprep.subr.bf16.mxu1 %v10015_v55 }
 0x4be   :  { %4505 = vmatpush1.bf16.msra.mxu0 %v9934_v17  ;;  %4546 = vmatpush1.bf16.msra.mxu1 %v10016_v29 }
 0x4bf   :  { %4506 = vmatprep.subr.bf16.mxu0 %v9935_v9  ;;  %4547 = vmatprep.subr.bf16.mxu1 %v10017_v59  ;;  %v10096_v59 = vld [vmem:[#allocation65_spill] sm:$0xff]  ;;  %v10097_v9 = vld [vmem:[#allocation140_spill] sm:$0xff] }
 0x4c2   :  { %4507 = vmatpush1.bf16.msra.mxu0 %v9937_v51  ;;  %4548 = vmatpush1.bf16.msra.mxu1 %v10018_v36  ;;  %v10095_v36 = vld [vmem:[#allocation139_spill] sm:$0xff] }
 0x4c3   :  { %4508 = vmatprep.subr.bf16.mxu0 %v9938_v35  ;;  %4549 = vmatprep.subr.bf16.mxu1 %v10019_v53  ;;  %v10027_v35 = vld [vmem:[#allocation166_spill] sm:$0xff] }
 0x4c4   :  { %v10028_v53 = vld [vmem:[#allocation22_spill] sm:$0xff] }
 0x4c6   :  { %4509 = vmatpush1.bf16.msra.mxu0 %v9939_v54  ;;  %4550 = vmatpush1.bf16.msra.mxu1 %v8293_v43  ;;  %v10029_v54 = vld [vmem:[#allocation59_spill] sm:$0xff] }
 0x4c7   :  { %4510 = vmatprep.subr.bf16.mxu0 %v10020_v10  ;;  %4551 = vmatprep.subr.bf16.mxu1 %v10021_v37  ;;  %v10030_v37 = vld [vmem:[#allocation23_spill] sm:$0xff]  ;;  %v10039_v10 = vld [vmem:[#allocation72_spill] sm:$0xff] }
 0x4c8   :  { %v10094_v43 = vld [vmem:[#allocation63_spill] sm:$0xff] }
 0x4ca   :  { %4511 = vmatpush1.bf16.msra.mxu0 %v10022_v1  ;;  %4552 = vmatpush1.bf16.msra.mxu1 %v10023_v34  ;;  %v10031_v1 = vld [vmem:[#allocation60_spill] sm:$0xff] }
 0x4cb   :  { %4512 = vmatprep.subr.bf16.mxu0 %v10024_v44  ;;  %4553 = vmatprep.subr.bf16.mxu1 %v10025_v52  ;;  %v10032_v34 = vld [vmem:[#allocation24_spill] sm:$0xff]  ;;  %v10034_v52 = vld [vmem:[#allocation25_spill] sm:$0xff] }
 0x4cc   :  { %v10033_v44 = vld [vmem:[#allocation64_spill] sm:$0xff] }
 0x4ce   :  { %4513 = vmatpush1.bf16.msra.mxu0 %v10026_v24  ;;  %4554 = vmatpush1.bf16.msra.mxu1 %v10027_v35  ;;  %v10035_v24 = vld [vmem:[#allocation69_spill] sm:$0xff]  ;;  %v10036_v35 = vld [vmem:[#allocation26_spill] sm:$0xff] }
 0x4cf   :  { %4636 = vmatprep.subr.bf16.mxu0 %v10028_v53  ;;  %4677 = vmatprep.subr.bf16.mxu1 %v10029_v54  ;;  %v10037_v53 = vld [vmem:[#allocation71_spill] sm:$0xff] }
 0x4d0   :  { %v10038_v54 = vld [vmem:[#allocation27_spill] sm:$0xff] }
 0x4d1   :  { %4515 = vmatmul.mubr.bf16.vlgmr.msra.gmra.mrb[52].mxu0 %v8626_v0  ;;  %4556 = vmatmul.mubr.bf16.vlgmr.msra.gmra.mrb[68].mxu1 %v8626_v0  ;;  %v10040_v0 = vld [vmem:[#allocation28_spill] sm:$0xff] }
 0x4d2   :  { %4637 = vmatpush1.bf16.msra.mxu0 %v10030_v37  ;;  %4678 = vmatpush1.bf16.msra.mxu1 %v10031_v1  ;;  %v10041_v37 = vld [vmem:[#allocation76_spill] sm:$0xff]  ;;  %v10042_v1 = vld [vmem:[#allocation29_spill] sm:$0xff] }
 0x4d3   :  { %4638 = vmatprep.subr.bf16.mxu0 %v10032_v34  ;;  %4679 = vmatprep.subr.bf16.mxu1 %v10033_v44  ;;  %v10043_v34 = vld [vmem:[#allocation81_spill] sm:$0xff]  ;;  %v10044_v44 = vld [vmem:[#allocation30_spill] sm:$0xff] }
 0x4d6   :  { %4639 = vmatpush1.bf16.msra.mxu0 %v10034_v52  ;;  %4680 = vmatpush1.bf16.msra.mxu1 %v10035_v24  ;;  %v10045_v52 = vld [vmem:[#allocation83_spill] sm:$0xff] }
 0x4d7   :  { %4640 = vmatprep.subr.bf16.mxu0 %v10036_v35  ;;  %4681 = vmatprep.subr.bf16.mxu1 %v10037_v53  ;;  %v10046_v24 = vld [vmem:[#allocation31_spill] sm:$0xff]  ;;  %v10047_v35 = vld [vmem:[#allocation84_spill] sm:$0xff] }
 0x4d8   :  { %v10048_v53 = vld [vmem:[#allocation32_spill] sm:$0xff] }
 0x4da   :  { %4641 = vmatpush1.bf16.msra.mxu0 %v10038_v54  ;;  %4682 = vmatpush1.bf16.msra.mxu1 %v10039_v10  ;;  %v10049_v54 = vld [vmem:[#allocation88_spill] sm:$0xff]  ;;  %v10050_v10 = vld [vmem:[#allocation33_spill] sm:$0xff] }
 0x4db   :  { %4642 = vmatprep.subr.bf16.mxu0 %v10040_v0  ;;  %4683 = vmatprep.subr.bf16.mxu1 %v10041_v37  ;;  %v10051_v0 = vld [vmem:[#allocation93_spill] sm:$0xff]  ;;  %v10052_v37 = vld [vmem:[#allocation34_spill] sm:$0xff] }
 0x4de   :  { %4643 = vmatpush1.bf16.msra.mxu0 %v10042_v1  ;;  %4684 = vmatpush1.bf16.msra.mxu1 %v10043_v34  ;;  %v10053_v1 = vld [vmem:[#allocation95_spill] sm:$0xff] }
 0x4df   :  { %4644 = vmatprep.subr.bf16.mxu0 %v10044_v44  ;;  %4685 = vmatprep.subr.bf16.mxu1 %v10045_v52  ;;  %v10054_v34 = vld [vmem:[#allocation35_spill] sm:$0xff]  ;;  %v10055_v44 = vld [vmem:[#allocation97_spill] sm:$0xff]  ;;  %v10056_v52 = vld [vmem:[#allocation36_spill] sm:$0xff] }
 0x4e2   :  { %4645 = vmatpush1.bf16.msra.mxu0 %v10046_v24  ;;  %4686 = vmatpush1.bf16.msra.mxu1 %v10047_v35  ;;  %v10057_v24 = vld [vmem:[#allocation99_spill] sm:$0xff]  ;;  %v10058_v35 = vld [vmem:[#allocation37_spill] sm:$0xff] }
 0x4e3   :  { %4646 = vmatprep.subr.bf16.mxu0 %v10048_v53  ;;  %4687 = vmatprep.subr.bf16.mxu1 %v10049_v54  ;;  %v10059_v53 = vld [vmem:[#allocation101_spill] sm:$0xff]  ;;  %v10060_v54 = vld [vmem:[#allocation38_spill] sm:$0xff] }
 0x4e6   :  { %4647 = vmatpush1.bf16.msra.mxu0 %v10050_v10  ;;  %4688 = vmatpush1.bf16.msra.mxu1 %v10051_v0  ;;  %v10061_v10 = vld [vmem:[#allocation103_spill] sm:$0xff] }
 0x4e7   :  { %4648 = vmatprep.subr.bf16.mxu0 %v10052_v37  ;;  %4689 = vmatprep.subr.bf16.mxu1 %v10053_v1  ;;  %v10062_v0 = vld [vmem:[#allocation39_spill] sm:$0xff]  ;;  %v10063_v37 = vld [vmem:[#allocation105_spill] sm:$0xff]  ;;  %v10064_v1 = vld [vmem:[#allocation40_spill] sm:$0xff] }
 0x4ea   :  { %4649 = vmatpush1.bf16.msra.mxu0 %v10054_v34  ;;  %4690 = vmatpush1.bf16.msra.mxu1 %v10055_v44  ;;  %v10065_v34 = vld [vmem:[#allocation107_spill] sm:$0xff]  ;;  %v10066_v44 = vld [vmem:[#allocation41_spill] sm:$0xff] }
 0x4eb   :  { %4650 = vmatprep.subr.bf16.mxu0 %v10056_v52  ;;  %4691 = vmatprep.subr.bf16.mxu1 %v10057_v24  ;;  %v10067_v52 = vld [vmem:[#allocation109_spill] sm:$0xff]  ;;  %v10068_v24 = vld [vmem:[#allocation42_spill] sm:$0xff] }
 0x4ee   :  { %4651 = vmatpush1.bf16.msra.mxu0 %v10058_v35  ;;  %4692 = vmatpush1.bf16.msra.mxu1 %v10059_v53  ;;  %v10069_v35 = vld [vmem:[#allocation111_spill] sm:$0xff] }
 0x4ef   :  { %4652 = vmatprep.subr.bf16.mxu0 %v10060_v54  ;;  %4693 = vmatprep.subr.bf16.mxu1 %v10061_v10  ;;  %v10070_v53 = vld [vmem:[#allocation43_spill] sm:$0xff]  ;;  %v10071_v54 = vld [vmem:[#allocation113_spill] sm:$0xff]  ;;  %v10072_v10 = vld [vmem:[#allocation44_spill] sm:$0xff] }
 0x4f2   :  { %4653 = vmatpush1.bf16.msra.mxu0 %v10062_v0  ;;  %4694 = vmatpush1.bf16.msra.mxu1 %v10063_v37  ;;  %v10073_v0 = vld [vmem:[#allocation115_spill] sm:$0xff]  ;;  %v10074_v37 = vld [vmem:[#allocation45_spill] sm:$0xff] }
 0x4f3   :  { %4654 = vmatprep.subr.bf16.mxu0 %v10064_v1  ;;  %4695 = vmatprep.subr.bf16.mxu1 %v10065_v34  ;;  %v10075_v1 = vld [vmem:[#allocation117_spill] sm:$0xff]  ;;  %v10076_v34 = vld [vmem:[#allocation46_spill] sm:$0xff] }
 0x4f6   :  { %4655 = vmatpush1.bf16.msra.mxu0 %v10066_v44  ;;  %4696 = vmatpush1.bf16.msra.mxu1 %v10067_v52  ;;  %v10077_v44 = vld [vmem:[#allocation119_spill] sm:$0xff] }
 0x4f7   :  { %4656 = vmatprep.subr.bf16.mxu0 %v10068_v24  ;;  %4697 = vmatprep.subr.bf16.mxu1 %v10069_v35  ;;  %v10078_v52 = vld [vmem:[#allocation47_spill] sm:$0xff]  ;;  %v10079_v24 = vld [vmem:[#allocation121_spill] sm:$0xff]  ;;  %v10080_v35 = vld [vmem:[#allocation48_spill] sm:$0xff] }
 0x4fa   :  { %4657 = vmatpush1.bf16.msra.mxu0 %v10070_v53  ;;  %4698 = vmatpush1.bf16.msra.mxu1 %v10071_v54  ;;  %v10081_v53 = vld [vmem:[#allocation123_spill] sm:$0xff]  ;;  %v10082_v54 = vld [vmem:[#allocation49_spill] sm:$0xff] }
 0x4fb   :  { %4658 = vmatprep.subr.bf16.mxu0 %v10072_v10  ;;  %4699 = vmatprep.subr.bf16.mxu1 %v10073_v0  ;;  %v10083_v10 = vld [vmem:[#allocation125_spill] sm:$0xff]  ;;  %v10084_v0 = vld [vmem:[#allocation50_spill] sm:$0xff] }
 0x4fe   :  { %4659 = vmatpush1.bf16.msra.mxu0 %v10074_v37  ;;  %4700 = vmatpush1.bf16.msra.mxu1 %v10075_v1  ;;  %v10085_v37 = vld [vmem:[#allocation127_spill] sm:$0xff] }
 0x4ff   :  { %4660 = vmatprep.subr.bf16.mxu0 %v10076_v34  ;;  %4701 = vmatprep.subr.bf16.mxu1 %v10077_v44  ;;  %v10086_v1 = vld [vmem:[#allocation51_spill] sm:$0xff]  ;;  %v10088_v44 = vld [vmem:[#allocation52_spill] sm:$0xff] }
 0x500   :  { %v10087_v34 = vld [vmem:[#allocation131_spill] sm:$0xff] }
 0x502   :  { %4661 = vmatpush1.bf16.msra.mxu0 %v10078_v52  ;;  %4702 = vmatpush1.bf16.msra.mxu1 %v10079_v24  ;;  %v10089_v52 = vld [vmem:[#allocation134_spill] sm:$0xff]  ;;  %v10090_v24 = vld [vmem:[#allocation56_spill] sm:$0xff] }
 0x503   :  { %4662 = vmatprep.subr.bf16.mxu0 %v10080_v35  ;;  %4703 = vmatprep.subr.bf16.mxu1 %v10081_v53  ;;  %v10091_v35 = vld [vmem:[#allocation137_spill] sm:$0xff]  ;;  %v10092_v53 = vld [vmem:[#allocation58_spill] sm:$0xff] }
 0x506   :  { %4663 = vmatpush1.bf16.msra.mxu0 %v10082_v54  ;;  %4704 = vmatpush1.bf16.msra.mxu1 %v10083_v10  ;;  %v10093_v54 = vld [vmem:[#allocation138_spill] sm:$0xff] }
 0x507   :  { %4664 = vmatprep.subr.bf16.mxu0 %v10084_v0  ;;  %4705 = vmatprep.subr.bf16.mxu1 %v10085_v37 }
 0x50a   :  { %4665 = vmatpush1.bf16.msra.mxu0 %v10086_v1  ;;  %4706 = vmatpush1.bf16.msra.mxu1 %v10087_v34 }
 0x50b   :  { %4666 = vmatprep.subr.bf16.mxu0 %v10088_v44  ;;  %4707 = vmatprep.subr.bf16.mxu1 %v10089_v52 }
 0x50e   :  { %4667 = vmatpush1.bf16.msra.mxu0 %v10090_v24  ;;  %4708 = vmatpush1.bf16.msra.mxu1 %v10091_v35 }
 0x50f   :  { %4718 = vmatprep.subr.bf16.mxu0 %v10092_v53  ;;  %4759 = vmatprep.subr.bf16.mxu1 %v10093_v54 }
 0x564   :  { %v4434_v10 = vpop.f32.mrb[48].mxu0  ;;  %v4475_v0 = vpop.f32.mrb[64].mxu1 }
 0x565   :  { %v4564_v37 = vadd.f32 %v10094_v43, %v4434_v10  ;;  %v4566_v1 = vadd.f32 %v10095_v36, %v4475_v0  ;;  %v4436_v51 = vpop.f32.mrb[49].mxu0  ;;  %v4477_v34 = vpop.f32.mrb[65].mxu1 }
 0x566   :  { %v4565_v44 = vadd.f32 %v10096_v59, %v4436_v51  ;;  %v4567_v52 = vadd.f32 %v10097_v9, %v4477_v34  ;;  %v4438_v29 = vpop.f32.mrb[50].mxu0  ;;  %v4479_v24 = vpop.f32.mrb[66].mxu1 }
 0x567   :  { %v4439_v17 = vpop.f32.mrb[51].mxu0  ;;  %v4480_v35 = vpop.f32.mrb[67].mxu1  ;;  %v6551_v55 = vmul.f32 -1.442695, %v4564_v37  ;;  %v6553_v53 = vmul.f32 -1.442695, %v4566_v1 }
 0x568   :  { %v6552_v6 = vmul.f32 -1.442695, %v4565_v44  ;;  %v6554_v54 = vmul.f32 -1.442695, %v4567_v52  ;;  %v10098_v29 = vld [vmem:[#allocation169_spill] sm:$0xff]  ;;  %v10101_v44 = vld [vmem:[#allocation182_spill] sm:$0xff] }
 0x569   :  { %6959 = vpow2.f32 %v6551_v55  ;;  %v10099_v1 = vld [vmem:[#allocation181_spill] sm:$0xff] }
 0x56a   :  { %6961 = vpow2.f32 %v6553_v53 }
 0x56b   :  { %6963 = vpow2.f32 %v6552_v6 }
 0x56c   :  { %6965 = vpow2.f32 %v6554_v54  ;;  %v10100_v54 = vld [vmem:[#allocation170_spill] sm:$0xff] }
 0x573   :  { %v6960_v43 = vpop.eup %6959 }
 0x574   :  { %v6962_v36 = vpop.eup %6961  ;;  %v4578_v61 = vadd.f32 1.0, %v6960_v43 }
 0x575   :  { %v6964_v10 = vpop.eup %6963  ;;  %v4590_v51 = vadd.f32 1.0, %v6962_v36 }
 0x576   :  { %v6966_v0 = vpop.eup %6965  ;;  %v4579_v59 = vadd.f32 1.0, %v6964_v10  ;;  %6967 = vrcp.f32 %v4578_v61 }
 0x577   :  { %v4591_v9 = vadd.f32 1.0, %v6966_v0  ;;  %6969 = vrcp.f32 %v4590_v51 }
 0x578   :  { %6971 = vrcp.f32 %v4579_v59 }
 0x579   :  { %6973 = vrcp.f32 %v4591_v9 }
 0x580   :  { %v6968_v51 = vpop.eup %6967 }
 0x581   :  { %v6970_v59 = vpop.eup %6969 }
 0x5a4   :  { %v4516_v17 = vpop.f32.mrb[52].mxu0  ;;  %v4557_v35 = vpop.f32.mrb[68].mxu1 }
 0x5a5   :  { %v4568_v37 = vadd.f32 %v10098_v29, %v4516_v17  ;;  %v4570_v55 = vadd.f32 %v10099_v1, %v4557_v35  ;;  %v4518_v53 = vpop.f32.mrb[53].mxu0  ;;  %v4559_v6 = vpop.f32.mrb[69].mxu1  ;;  %v4610_v1 = vmul.f32 %v6970_v59, %v8620_v39 }
 0x5a6   :  { %v4569_v34 = vadd.f32 %v10100_v54, %v4518_v53  ;;  %v4571_v52 = vadd.f32 %v10101_v44, %v4559_v6  ;;  %v4520_v24 = vpop.f32.mrb[54].mxu0  ;;  %v4561_v43 = vpop.f32.mrb[70].mxu1 }
 0x5a7   :  { %6975 = vtanh.f32 %v4568_v37  ;;  %v6555_v36 = vmul.f32 -1.442695, %v4570_v55  ;;  %v4521_v61 = vpop.f32.mrb[55].mxu0  ;;  %v4562_v10 = vpop.f32.mrb[71].mxu1 }
 0x5a8   :  { %6977 = vtanh.f32 %v4569_v34  ;;  %v6556_v0 = vmul.f32 -1.442695, %v4571_v52  ;;  %v6972_v17 = vpop.eup %6971 }
 0x5a9   :  { %6979 = vpow2.f32 %v6555_v36  ;;  %v6974_v35 = vpop.eup %6973 }
 0x5aa   :  { %6981 = vpow2.f32 %v6556_v0  ;;  %v4611_v54 = vmul.f32 %v6974_v35, %v8622_v19  ;;  %v10102_v35 = vld [vmem:[#allocation156_spill] sm:$0xff] }
 0x5b1   :  { %v6976_v29 = vpop.eup %6975 }
 0x5b2   :  { %v6978_v9 = vpop.eup %6977  ;;  %v4612_v53 = vmul.f32 %v6976_v29, %v6968_v51  ;;  %v10103_v29 = vld [vmem:[#allocation114_spill] sm:$0xff] }
 0x5b3   :  { %v6980_v6 = vpop.eup %6979  ;;  %v4613_v37 = vmul.f32 %v6978_v9, %v6972_v17  ;;  %v10104_v9 = vld [vmem:[#allocation157_spill] sm:$0xff] }
 0x5b4   :  { %v6982_v55 = vpop.eup %6981  ;;  %v8770_v44 = vadd.f32 %v4612_v53, %v4610_v1  ;;  %v4604_v34 = vadd.f32 1.0, %v6980_v6  ;;  %v10105_v1 = vld [vmem:[#allocation116_spill] sm:$0xff]  ;;  %v10106_v53 = vld [vmem:[#allocation158_spill] sm:$0xff] }
 0x5b5   :  { %v8772_v52 = vadd.f32 %v4613_v37, %v4611_v54  ;;  %v4605_v24 = vadd.f32 1.0, %v6982_v55  ;;  %v10107_v6 = vld [vmem:[#allocation118_spill] sm:$0xff]  ;;  %v10108_v54 = vld [vmem:[#allocation159_spill] sm:$0xff]  ;;  %v10109_v37 = vld [vmem:[#allocation120_spill] sm:$0xff] }
 0x5b6   :  { %6983 = vtanh.f32 %v8770_v44  ;;  %v10110_v55 = vld [vmem:[#allocation160_spill] sm:$0xff] }
 0x5b7   :  { %6985 = vrcp.f32 %v4604_v34  ;;  %v10111_v34 = vld [vmem:[#allocation122_spill] sm:$0xff] }
 0x5b8   :  { %6987 = vtanh.f32 %v8772_v52 }
 0x5b9   :  { %6989 = vrcp.f32 %v4605_v24  ;;  %v10112_v24 = vld [vmem:[#allocation161_spill] sm:$0xff] }
 0x5c0   :  { %v6984_v43 = vpop.eup %6983 }
 0x5c1   :  { %v6986_v39 = vpop.eup %6985 }
 0x5c2   :  { %v6988_v36 = vpop.eup %6987  ;;  %v4618_v61 = vmul.f32 %v6986_v39, %v6984_v43  ;;  %v10113_v43 = vld [vmem:[#allocation124_spill] sm:$0xff]  ;;  %v10114_v39 = vld [vmem:[#allocation162_spill] sm:$0xff] }
 0x5c3   :  { %v6990_v10 = vpop.eup %6989 }
 0x5c4   :  { %v4619_v19 = vmul.f32 %v6990_v10, %v6988_v36  ;;  %v4620_v0 = vmax.f32 %v4618_v61, 0.0  ;;  %v8776_v17 = vpack.c.bf16 %v4618_v61, %v4618_v61  ;;  %v10115_v36 = vld [vmem:[#allocation126_spill] sm:$0xff]  ;;  %v10116_v61 = vld [vmem:[#allocation163_spill] sm:$0xff] }
 0x5c5   :  { %v10117_v10 = vld [vmem:[#allocation130_spill] sm:$0xff] }
 0x5c6   :  { %v4621_v51 = vmax.f32 %v4619_v19, 0.0  ;;  %v4635_v59 = vpack.c.bf16 %v4619_v19, %v4619_v19  ;;  %4623 = vst [vmem:[#allocation3 + $0x20] sm:$0xff] %v4620_v0  ;;  %v10118_v19 = vld [vmem:[#allocation164_spill] sm:$0xff] }
 0x5c7   :  { %v10119_v0 = vld [vmem:[#allocation132_spill] sm:$0xff] }
 0x5c8   :  { %4624 = vst [vmem:[#allocation3 + $0x28] sm:$0xff] %v4621_v51  ;;  %4668 = vmatprep.mubr.bf16.mxu0 %v4635_v59  ;;  %4709 = vmatprep.mubr.bf16.mxu1 %v4635_v59  ;;  %v10120_v51 = vld [vmem:[#allocation165_spill] sm:$0xff] }
 0x5c9   :  { %4669 = vmatmul.mubr.bf16.vlgmr.msra.gmra.mrb[56].mxu0 %v8776_v17  ;;  %4710 = vmatmul.mubr.bf16.vlgmr.msra.gmra.mrb[72].mxu1 %v8776_v17 }
 0x5ca   :  { %4719 = vmatpush1.bf16.msra.mxu0 %v9909_v5  ;;  %4760 = vmatpush1.bf16.msra.mxu1 %v8156_v56 }
 0x5cb   :  { %4750 = vmatprep.mubr.bf16.mxu0 %v4635_v59  ;;  %4791 = vmatprep.mubr.bf16.mxu1 %v4635_v59  ;;  %v10121_v59 = vld [vmem:[#allocation136_spill] sm:$0xff] }
 0x5cc   :  { %4720 = vmatprep.subr.bf16.mxu0 %v9910_v60  ;;  %4761 = vmatprep.subr.bf16.mxu1 %v8163_v14 }
 0x5ce   :  { %4721 = vmatpush1.bf16.msra.mxu0 %v9911_v30  ;;  %4762 = vmatpush1.bf16.msra.mxu1 %v8172_v8 }
 0x5cf   :  { %4722 = vmatprep.subr.bf16.mxu0 %v9912_v3  ;;  %4763 = vmatprep.subr.bf16.mxu1 %v8176_v42 }
 0x5d2   :  { %4723 = vmatpush1.bf16.msra.mxu0 %v9913_v50  ;;  %4764 = vmatpush1.bf16.msra.mxu1 %v8187_v47 }
 0x5d3   :  { %4724 = vmatprep.subr.bf16.mxu0 %v9914_v20  ;;  %4765 = vmatprep.subr.bf16.mxu1 %v8194_v41 }
 0x5d6   :  { %4725 = vmatpush1.bf16.msra.mxu0 %v9915_v12  ;;  %4766 = vmatpush1.bf16.msra.mxu1 %v8201_v23 }
 0x5d7   :  { %4726 = vmatprep.subr.bf16.mxu0 %v9916_v13  ;;  %4767 = vmatprep.subr.bf16.mxu1 %v8205_v40 }
 0x5da   :  { %4727 = vmatpush1.bf16.msra.mxu0 %v9917_v2  ;;  %4768 = vmatpush1.bf16.msra.mxu1 %v8215_v38 }
 0x5db   :  { %4728 = vmatprep.subr.bf16.mxu0 %v9918_v16  ;;  %4769 = vmatprep.subr.bf16.mxu1 %v8222_v46 }
 0x5de   :  { %4729 = vmatpush1.bf16.msra.mxu0 %v9919_v58  ;;  %4770 = vmatpush1.bf16.msra.mxu1 %v8229_v4 }
 0x5df   :  { %4730 = vmatprep.subr.bf16.mxu0 %v9920_v62  ;;  %4771 = vmatprep.subr.bf16.mxu1 %v8233_v57 }
 0x5e2   :  { %4731 = vmatpush1.bf16.msra.mxu0 %v9921_v18  ;;  %4772 = vmatpush1.bf16.msra.mxu1 %v8237_v21 }
 0x5e3   :  { %4732 = vmatprep.subr.bf16.mxu0 %v9922_v33  ;;  %4773 = vmatprep.subr.bf16.mxu1 %v8241_v49 }
 0x5e6   :  { %4733 = vmatpush1.bf16.msra.mxu0 %v9923_v11  ;;  %4774 = vmatpush1.bf16.msra.mxu1 %v8245_v28 }
 0x5e7   :  { %4734 = vmatprep.subr.bf16.mxu0 %v9924_v48  ;;  %4775 = vmatprep.subr.bf16.mxu1 %v10007_v63 }
 0x5ea   :  { %4735 = vmatpush1.bf16.msra.mxu0 %v10008_v45  ;;  %4776 = vmatpush1.bf16.msra.mxu1 %v10009_v27 }
 0x5eb   :  { %4736 = vmatprep.subr.bf16.mxu0 %v9926_v31  ;;  %4777 = vmatprep.subr.bf16.mxu1 %v10010_v22 }
 0x5ee   :  { %4737 = vmatpush1.bf16.msra.mxu0 %v10011_v26  ;;  %4778 = vmatpush1.bf16.msra.mxu1 %v10012_v25 }
 0x5ef   :  { %4738 = vmatprep.subr.bf16.mxu0 %v9928_v15  ;;  %4779 = vmatprep.subr.bf16.mxu1 %v10013_v7 }
 0x5f2   :  { %4739 = vmatpush1.bf16.msra.mxu0 %v9930_v32  ;;  %4780 = vmatpush1.bf16.msra.mxu1 %v10102_v35 }
 0x5f3   :  { %4740 = vmatprep.subr.bf16.mxu0 %v10103_v29  ;;  %4781 = vmatprep.subr.bf16.mxu1 %v10104_v9 }
 0x5f6   :  { %4741 = vmatpush1.bf16.msra.mxu0 %v10105_v1  ;;  %4782 = vmatpush1.bf16.msra.mxu1 %v10106_v53 }
 0x5f7   :  { %4742 = vmatprep.subr.bf16.mxu0 %v10107_v6  ;;  %4783 = vmatprep.subr.bf16.mxu1 %v10108_v54  ;;  %v10191_v54 = vld [vmem:[#allocation68_spill] sm:$0xff]  ;;  %v10192_v6 = vld [vmem:[#allocation142_spill] sm:$0xff] }
 0x5fa   :  { %4743 = vmatpush1.bf16.msra.mxu0 %v10109_v37  ;;  %4784 = vmatpush1.bf16.msra.mxu1 %v10110_v55  ;;  %v10190_v55 = vld [vmem:[#allocation141_spill] sm:$0xff] }
 0x5fb   :  { %4744 = vmatprep.subr.bf16.mxu0 %v10111_v34  ;;  %4785 = vmatprep.subr.bf16.mxu1 %v10112_v24  ;;  %v10122_v34 = vld [vmem:[#allocation166_spill] sm:$0xff] }
 0x5fc   :  { %v10123_v24 = vld [vmem:[#allocation22_spill] sm:$0xff] }
 0x5fe   :  { %4745 = vmatpush1.bf16.msra.mxu0 %v10113_v43  ;;  %4786 = vmatpush1.bf16.msra.mxu1 %v10114_v39  ;;  %v10124_v43 = vld [vmem:[#allocation59_spill] sm:$0xff]  ;;  %v10189_v39 = vld [vmem:[#allocation66_spill] sm:$0xff] }
 0x5ff   :  { %4746 = vmatprep.subr.bf16.mxu0 %v10115_v36  ;;  %4787 = vmatprep.subr.bf16.mxu1 %v10116_v61  ;;  %v10125_v61 = vld [vmem:[#allocation23_spill] sm:$0xff]  ;;  %v10134_v36 = vld [vmem:[#allocation72_spill] sm:$0xff] }
 0x602   :  { %4747 = vmatpush1.bf16.msra.mxu0 %v10117_v10  ;;  %4788 = vmatpush1.bf16.msra.mxu1 %v10118_v19  ;;  %v10126_v10 = vld [vmem:[#allocation60_spill] sm:$0xff] }
 0x603   :  { %4748 = vmatprep.subr.bf16.mxu0 %v10119_v0  ;;  %4789 = vmatprep.subr.bf16.mxu1 %v10120_v51  ;;  %v10127_v19 = vld [vmem:[#allocation24_spill] sm:$0xff]  ;;  %v10129_v51 = vld [vmem:[#allocation25_spill] sm:$0xff] }
 0x604   :  { %v10128_v0 = vld [vmem:[#allocation64_spill] sm:$0xff] }
 0x606   :  { %4749 = vmatpush1.bf16.msra.mxu0 %v10121_v59  ;;  %4790 = vmatpush1.bf16.msra.mxu1 %v10122_v34  ;;  %v10130_v59 = vld [vmem:[#allocation69_spill] sm:$0xff]  ;;  %v10131_v34 = vld [vmem:[#allocation26_spill] sm:$0xff] }
 0x607   :  { %4872 = vmatprep.subr.bf16.mxu0 %v10123_v24  ;;  %4913 = vmatprep.subr.bf16.mxu1 %v10124_v43  ;;  %v10132_v24 = vld [vmem:[#allocation71_spill] sm:$0xff] }
 0x608   :  { %v10133_v43 = vld [vmem:[#allocation27_spill] sm:$0xff] }
 0x609   :  { %4751 = vmatmul.mubr.bf16.vlgmr.msra.gmra.mrb[60].mxu0 %v8776_v17  ;;  %4792 = vmatmul.mubr.bf16.vlgmr.msra.gmra.mrb[76].mxu1 %v8776_v17  ;;  %v10135_v17 = vld [vmem:[#allocation28_spill] sm:$0xff] }
 0x60a   :  { %4873 = vmatpush1.bf16.msra.mxu0 %v10125_v61  ;;  %4914 = vmatpush1.bf16.msra.mxu1 %v10126_v10  ;;  %v10136_v61 = vld [vmem:[#allocation76_spill] sm:$0xff]  ;;  %v10137_v10 = vld [vmem:[#allocation29_spill] sm:$0xff] }
 0x60b   :  { %4874 = vmatprep.subr.bf16.mxu0 %v10127_v19  ;;  %4915 = vmatprep.subr.bf16.mxu1 %v10128_v0  ;;  %v10138_v19 = vld [vmem:[#allocation81_spill] sm:$0xff]  ;;  %v10139_v0 = vld [vmem:[#allocation30_spill] sm:$0xff] }
 0x60e   :  { %4875 = vmatpush1.bf16.msra.mxu0 %v10129_v51  ;;  %4916 = vmatpush1.bf16.msra.mxu1 %v10130_v59  ;;  %v10140_v51 = vld [vmem:[#allocation83_spill] sm:$0xff] }
 0x60f   :  { %4876 = vmatprep.subr.bf16.mxu0 %v10131_v34  ;;  %4917 = vmatprep.subr.bf16.mxu1 %v10132_v24  ;;  %v10141_v59 = vld [vmem:[#allocation31_spill] sm:$0xff]  ;;  %v10142_v34 = vld [vmem:[#allocation84_spill] sm:$0xff] }
 0x610   :  { %v10143_v24 = vld [vmem:[#allocation32_spill] sm:$0xff] }
 0x612   :  { %4877 = vmatpush1.bf16.msra.mxu0 %v10133_v43  ;;  %4918 = vmatpush1.bf16.msra.mxu1 %v10134_v36  ;;  %v10144_v43 = vld [vmem:[#allocation88_spill] sm:$0xff]  ;;  %v10145_v36 = vld [vmem:[#allocation33_spill] sm:$0xff] }
 0x613   :  { %4878 = vmatprep.subr.bf16.mxu0 %v10135_v17  ;;  %4919 = vmatprep.subr.bf16.mxu1 %v10136_v61  ;;  %v10146_v17 = vld [vmem:[#allocation93_spill] sm:$0xff]  ;;  %v10147_v61 = vld [vmem:[#allocation34_spill] sm:$0xff] }
 0x616   :  { %4879 = vmatpush1.bf16.msra.mxu0 %v10137_v10  ;;  %4920 = vmatpush1.bf16.msra.mxu1 %v10138_v19  ;;  %v10148_v10 = vld [vmem:[#allocation95_spill] sm:$0xff] }
 0x617   :  { %4880 = vmatprep.subr.bf16.mxu0 %v10139_v0  ;;  %4921 = vmatprep.subr.bf16.mxu1 %v10140_v51  ;;  %v10149_v19 = vld [vmem:[#allocation35_spill] sm:$0xff]  ;;  %v10150_v0 = vld [vmem:[#allocation97_spill] sm:$0xff]  ;;  %v10151_v51 = vld [vmem:[#allocation36_spill] sm:$0xff] }
 0x61a   :  { %4881 = vmatpush1.bf16.msra.mxu0 %v10141_v59  ;;  %4922 = vmatpush1.bf16.msra.mxu1 %v10142_v34  ;;  %v10152_v59 = vld [vmem:[#allocation99_spill] sm:$0xff]  ;;  %v10153_v34 = vld [vmem:[#allocation37_spill] sm:$0xff] }
 0x61b   :  { %4882 = vmatprep.subr.bf16.mxu0 %v10143_v24  ;;  %4923 = vmatprep.subr.bf16.mxu1 %v10144_v43  ;;  %v10154_v24 = vld [vmem:[#allocation101_spill] sm:$0xff]  ;;  %v10155_v43 = vld [vmem:[#allocation38_spill] sm:$0xff] }
 0x61e   :  { %4883 = vmatpush1.bf16.msra.mxu0 %v10145_v36  ;;  %4924 = vmatpush1.bf16.msra.mxu1 %v10146_v17  ;;  %v10156_v36 = vld [vmem:[#allocation103_spill] sm:$0xff] }
 0x61f   :  { %4884 = vmatprep.subr.bf16.mxu0 %v10147_v61  ;;  %4925 = vmatprep.subr.bf16.mxu1 %v10148_v10  ;;  %v10157_v17 = vld [vmem:[#allocation39_spill] sm:$0xff]  ;;  %v10158_v61 = vld [vmem:[#allocation105_spill] sm:$0xff]  ;;  %v10159_v10 = vld [vmem:[#allocation40_spill] sm:$0xff] }
 0x622   :  { %4885 = vmatpush1.bf16.msra.mxu0 %v10149_v19  ;;  %4926 = vmatpush1.bf16.msra.mxu1 %v10150_v0  ;;  %v10160_v19 = vld [vmem:[#allocation107_spill] sm:$0xff]  ;;  %v10161_v0 = vld [vmem:[#allocation41_spill] sm:$0xff] }
 0x623   :  { %4886 = vmatprep.subr.bf16.mxu0 %v10151_v51  ;;  %4927 = vmatprep.subr.bf16.mxu1 %v10152_v59  ;;  %v10162_v51 = vld [vmem:[#allocation109_spill] sm:$0xff]  ;;  %v10163_v59 = vld [vmem:[#allocation42_spill] sm:$0xff] }
 0x626   :  { %4887 = vmatpush1.bf16.msra.mxu0 %v10153_v34  ;;  %4928 = vmatpush1.bf16.msra.mxu1 %v10154_v24  ;;  %v10164_v34 = vld [vmem:[#allocation111_spill] sm:$0xff] }
 0x627   :  { %4888 = vmatprep.subr.bf16.mxu0 %v10155_v43  ;;  %4929 = vmatprep.subr.bf16.mxu1 %v10156_v36  ;;  %v10165_v24 = vld [vmem:[#allocation43_spill] sm:$0xff]  ;;  %v10166_v43 = vld [vmem:[#allocation113_spill] sm:$0xff]  ;;  %v10167_v36 = vld [vmem:[#allocation44_spill] sm:$0xff] }
 0x62a   :  { %4889 = vmatpush1.bf16.msra.mxu0 %v10157_v17  ;;  %4930 = vmatpush1.bf16.msra.mxu1 %v10158_v61  ;;  %v10168_v17 = vld [vmem:[#allocation115_spill] sm:$0xff]  ;;  %v10169_v61 = vld [vmem:[#allocation45_spill] sm:$0xff] }
 0x62b   :  { %4890 = vmatprep.subr.bf16.mxu0 %v10159_v10  ;;  %4931 = vmatprep.subr.bf16.mxu1 %v10160_v19  ;;  %v10170_v10 = vld [vmem:[#allocation117_spill] sm:$0xff]  ;;  %v10171_v19 = vld [vmem:[#allocation46_spill] sm:$0xff] }
 0x62e   :  { %4891 = vmatpush1.bf16.msra.mxu0 %v10161_v0  ;;  %4932 = vmatpush1.bf16.msra.mxu1 %v10162_v51  ;;  %v10172_v0 = vld [vmem:[#allocation119_spill] sm:$0xff] }
 0x62f   :  { %4892 = vmatprep.subr.bf16.mxu0 %v10163_v59  ;;  %4933 = vmatprep.subr.bf16.mxu1 %v10164_v34  ;;  %v10173_v51 = vld [vmem:[#allocation47_spill] sm:$0xff]  ;;  %v10174_v59 = vld [vmem:[#allocation121_spill] sm:$0xff]  ;;  %v10175_v34 = vld [vmem:[#allocation48_spill] sm:$0xff] }
 0x632   :  { %4893 = vmatpush1.bf16.msra.mxu0 %v10165_v24  ;;  %4934 = vmatpush1.bf16.msra.mxu1 %v10166_v43  ;;  %v10176_v24 = vld [vmem:[#allocation123_spill] sm:$0xff]  ;;  %v10177_v43 = vld [vmem:[#allocation49_spill] sm:$0xff] }
 0x633   :  { %4894 = vmatprep.subr.bf16.mxu0 %v10167_v36  ;;  %4935 = vmatprep.subr.bf16.mxu1 %v10168_v17  ;;  %v10178_v36 = vld [vmem:[#allocation125_spill] sm:$0xff]  ;;  %v10179_v17 = vld [vmem:[#allocation50_spill] sm:$0xff] }
 0x636   :  { %4895 = vmatpush1.bf16.msra.mxu0 %v10169_v61  ;;  %4936 = vmatpush1.bf16.msra.mxu1 %v10170_v10  ;;  %v10180_v61 = vld [vmem:[#allocation127_spill] sm:$0xff] }
 0x637   :  { %4896 = vmatprep.subr.bf16.mxu0 %v10171_v19  ;;  %4937 = vmatprep.subr.bf16.mxu1 %v10172_v0  ;;  %v10181_v10 = vld [vmem:[#allocation51_spill] sm:$0xff]  ;;  %v10183_v0 = vld [vmem:[#allocation52_spill] sm:$0xff] }
 0x638   :  { %v10182_v19 = vld [vmem:[#allocation131_spill] sm:$0xff] }
 0x63a   :  { %4897 = vmatpush1.bf16.msra.mxu0 %v10173_v51  ;;  %4938 = vmatpush1.bf16.msra.mxu1 %v10174_v59  ;;  %v10184_v51 = vld [vmem:[#allocation134_spill] sm:$0xff]  ;;  %v10185_v59 = vld [vmem:[#allocation56_spill] sm:$0xff] }
 0x63b   :  { %4898 = vmatprep.subr.bf16.mxu0 %v10175_v34  ;;  %4939 = vmatprep.subr.bf16.mxu1 %v10176_v24  ;;  %v10186_v34 = vld [vmem:[#allocation137_spill] sm:$0xff]  ;;  %v10187_v24 = vld [vmem:[#allocation58_spill] sm:$0xff] }
 0x63e   :  { %4899 = vmatpush1.bf16.msra.mxu0 %v10177_v43  ;;  %4940 = vmatpush1.bf16.msra.mxu1 %v10178_v36  ;;  %v10188_v43 = vld [vmem:[#allocation138_spill] sm:$0xff] }
 0x63f   :  { %4900 = vmatprep.subr.bf16.mxu0 %v10179_v17  ;;  %4941 = vmatprep.subr.bf16.mxu1 %v10180_v61 }
 0x642   :  { %4901 = vmatpush1.bf16.msra.mxu0 %v10181_v10  ;;  %4942 = vmatpush1.bf16.msra.mxu1 %v10182_v19 }
 0x643   :  { %4902 = vmatprep.subr.bf16.mxu0 %v10183_v0  ;;  %4943 = vmatprep.subr.bf16.mxu1 %v10184_v51 }
 0x646   :  { %4903 = vmatpush1.bf16.msra.mxu0 %v10185_v59  ;;  %4944 = vmatpush1.bf16.msra.mxu1 %v10186_v34 }
 0x647   :  { %4954 = vmatprep.subr.bf16.mxu0 %v10187_v24  ;;  %4995 = vmatprep.subr.bf16.mxu1 %v10188_v43 }
 0x69c   :  { %v4670_v36 = vpop.f32.mrb[56].mxu0  ;;  %v4711_v17 = vpop.f32.mrb[72].mxu1 }
 0x69d   :  { %v4800_v61 = vadd.f32 %v10189_v39, %v4670_v36  ;;  %v4802_v10 = vadd.f32 %v10190_v55, %v4711_v17  ;;  %v4672_v37 = vpop.f32.mrb[57].mxu0  ;;  %v4713_v19 = vpop.f32.mrb[73].mxu1 }
 0x69e   :  { %v4801_v0 = vadd.f32 %v10191_v54, %v4672_v37  ;;  %v4803_v51 = vadd.f32 %v10192_v6, %v4713_v19  ;;  %v4674_v53 = vpop.f32.mrb[58].mxu0  ;;  %v4715_v59 = vpop.f32.mrb[74].mxu1 }
 0x69f   :  { %v4675_v1 = vpop.f32.mrb[59].mxu0  ;;  %v4716_v34 = vpop.f32.mrb[75].mxu1  ;;  %v6557_v9 = vmul.f32 -1.442695, %v4800_v61  ;;  %v6559_v24 = vmul.f32 -1.442695, %v4802_v10 }
 0x6a0   :  { %v6558_v29 = vmul.f32 -1.442695, %v4801_v0  ;;  %v6560_v43 = vmul.f32 -1.442695, %v4803_v51  ;;  %v10193_v34 = vld [vmem:[#allocation171_spill] sm:$0xff]  ;;  %v10196_v0 = vld [vmem:[#allocation184_spill] sm:$0xff] }
 0x6a1   :  { %6991 = vpow2.f32 %v6557_v9  ;;  %v10194_v10 = vld [vmem:[#allocation183_spill] sm:$0xff] }
 0x6a2   :  { %6993 = vpow2.f32 %v6559_v24 }
 0x6a3   :  { %6995 = vpow2.f32 %v6558_v29 }
 0x6a4   :  { %6997 = vpow2.f32 %v6560_v43  ;;  %v10195_v43 = vld [vmem:[#allocation172_spill] sm:$0xff] }
 0x6ab   :  { %v6992_v39 = vpop.eup %6991 }
 0x6ac   :  { %v6994_v55 = vpop.eup %6993  ;;  %v4814_v35 = vadd.f32 1.0, %v6992_v39 }
 0x6ad   :  { %v6996_v36 = vpop.eup %6995  ;;  %v4826_v54 = vadd.f32 1.0, %v6994_v55 }
 0x6ae   :  { %v6998_v17 = vpop.eup %6997  ;;  %v4815_v37 = vadd.f32 1.0, %v6996_v36  ;;  %6999 = vrcp.f32 %v4814_v35 }
 0x6af   :  { %v4827_v6 = vadd.f32 1.0, %v6998_v17  ;;  %7001 = vrcp.f32 %v4826_v54 }
 0x6b0   :  { %7003 = vrcp.f32 %v4815_v37 }
 0x6b1   :  { %7005 = vrcp.f32 %v4827_v6 }
 0x6b8   :  { %v7000_v54 = vpop.eup %6999 }
 0x6b9   :  { %v7002_v37 = vpop.eup %7001 }
 0x6dc   :  { %v4752_v1 = vpop.f32.mrb[60].mxu0  ;;  %v4793_v53 = vpop.f32.mrb[76].mxu1 }
 0x6dd   :  { %v4804_v61 = vadd.f32 %v10193_v34, %v4752_v1  ;;  %v4806_v9 = vadd.f32 %v10194_v10, %v4793_v53  ;;  %v4754_v24 = vpop.f32.mrb[61].mxu0  ;;  %v4795_v29 = vpop.f32.mrb[77].mxu1  ;;  %v4846_v10 = vmul.f32 %v7002_v37, %v8770_v44 }
 0x6de   :  { %v4805_v19 = vadd.f32 %v10195_v43, %v4754_v24  ;;  %v4807_v51 = vadd.f32 %v10196_v0, %v4795_v29  ;;  %v4756_v59 = vpop.f32.mrb[62].mxu0  ;;  %v4797_v39 = vpop.f32.mrb[78].mxu1 }
 0x6df   :  { %7007 = vtanh.f32 %v4804_v61  ;;  %v6561_v55 = vmul.f32 -1.442695, %v4806_v9  ;;  %v4757_v35 = vpop.f32.mrb[63].mxu0  ;;  %v4798_v36 = vpop.f32.mrb[79].mxu1 }
 0x6e0   :  { %7009 = vtanh.f32 %v4805_v19  ;;  %v6562_v17 = vmul.f32 -1.442695, %v4807_v51  ;;  %v7004_v1 = vpop.eup %7003 }
 0x6e1   :  { %7011 = vpow2.f32 %v6561_v55  ;;  %v7006_v53 = vpop.eup %7005 }
 0x6e2   :  { %7013 = vpow2.f32 %v6562_v17  ;;  %v4847_v43 = vmul.f32 %v7006_v53, %v8772_v52  ;;  %v10197_v53 = vld [vmem:[#allocation156_spill] sm:$0xff] }
 0x6e9   :  { %v7008_v34 = vpop.eup %7007 }
 0x6ea   :  { %v7010_v6 = vpop.eup %7009  ;;  %v4848_v24 = vmul.f32 %v7008_v34, %v7000_v54  ;;  %v10198_v34 = vld [vmem:[#allocation114_spill] sm:$0xff] }
 0x6eb   :  { %v7012_v29 = vpop.eup %7011  ;;  %v4849_v61 = vmul.f32 %v7010_v6, %v7004_v1  ;;  %v10199_v6 = vld [vmem:[#allocation157_spill] sm:$0xff] }
 0x6ec   :  { %v7014_v9 = vpop.eup %7013  ;;  %v8920_v0 = vadd.f32 %v4848_v24, %v4846_v10  ;;  %v4840_v19 = vadd.f32 1.0, %v7012_v29  ;;  %v10200_v10 = vld [vmem:[#allocation116_spill] sm:$0xff]  ;;  %v10201_v24 = vld [vmem:[#allocation158_spill] sm:$0xff] }
 0x6ed   :  { %v8922_v51 = vadd.f32 %v4849_v61, %v4847_v43  ;;  %v4841_v59 = vadd.f32 1.0, %v7014_v9  ;;  %v10202_v29 = vld [vmem:[#allocation118_spill] sm:$0xff]  ;;  %v10203_v43 = vld [vmem:[#allocation159_spill] sm:$0xff]  ;;  %v10204_v61 = vld [vmem:[#allocation120_spill] sm:$0xff] }
 0x6ee   :  { %7015 = vtanh.f32 %v8920_v0  ;;  %v10205_v9 = vld [vmem:[#allocation160_spill] sm:$0xff] }
 0x6ef   :  { %7017 = vrcp.f32 %v4840_v19  ;;  %v10206_v19 = vld [vmem:[#allocation122_spill] sm:$0xff] }
 0x6f0   :  { %7019 = vtanh.f32 %v8922_v51 }
 0x6f1   :  { %7021 = vrcp.f32 %v4841_v59  ;;  %v10207_v59 = vld [vmem:[#allocation161_spill] sm:$0xff] }
 0x6f8   :  { %v7016_v39 = vpop.eup %7015 }
 0x6f9   :  { %v7018_v44 = vpop.eup %7017 }
 0x6fa   :  { %v7020_v55 = vpop.eup %7019  ;;  %v4854_v35 = vmul.f32 %v7018_v44, %v7016_v39  ;;  %v10208_v39 = vld [vmem:[#allocation124_spill] sm:$0xff]  ;;  %v10209_v44 = vld [vmem:[#allocation162_spill] sm:$0xff] }
 0x6fb   :  { %v7022_v36 = vpop.eup %7021 }
 0x6fc   :  { %v4855_v52 = vmul.f32 %v7022_v36, %v7020_v55  ;;  %v4856_v17 = vmax.f32 %v4854_v35, 0.0  ;;  %v8926_v1 = vpack.c.bf16 %v4854_v35, %v4854_v35  ;;  %v10210_v55 = vld [vmem:[#allocation126_spill] sm:$0xff]  ;;  %v10211_v35 = vld [vmem:[#allocation163_spill] sm:$0xff] }
 0x6fd   :  { %v10212_v36 = vld [vmem:[#allocation130_spill] sm:$0xff] }
 0x6fe   :  { %v4857_v54 = vmax.f32 %v4855_v52, 0.0  ;;  %v4871_v37 = vpack.c.bf16 %v4855_v52, %v4855_v52  ;;  %4859 = vst [vmem:[#allocation3 + $0x30] sm:$0xff] %v4856_v17  ;;  %v10213_v52 = vld [vmem:[#allocation164_spill] sm:$0xff] }
 0x6ff   :  { %v10214_v17 = vld [vmem:[#allocation132_spill] sm:$0xff] }
 0x700   :  { %4860 = vst [vmem:[#allocation3 + $0x38] sm:$0xff] %v4857_v54  ;;  %4904 = vmatprep.mubr.bf16.mxu0 %v4871_v37  ;;  %4945 = vmatprep.mubr.bf16.mxu1 %v4871_v37  ;;  %v10215_v54 = vld [vmem:[#allocation165_spill] sm:$0xff] }
 0x701   :  { %4905 = vmatmul.mubr.bf16.vlgmr.msra.gmra.mrb[64].mxu0 %v8926_v1  ;;  %4946 = vmatmul.mubr.bf16.vlgmr.msra.gmra.mrb[80].mxu1 %v8926_v1 }
 0x702   :  { %4955 = vmatpush1.bf16.msra.mxu0 %v9909_v5  ;;  %4996 = vmatpush1.bf16.msra.mxu1 %v8156_v56 }
 0x703   :  { %4986 = vmatprep.mubr.bf16.mxu0 %v4871_v37  ;;  %5027 = vmatprep.mubr.bf16.mxu1 %v4871_v37  ;;  %v10216_v37 = vld [vmem:[#allocation136_spill] sm:$0xff] }
 0x704   :  { %4956 = vmatprep.subr.bf16.mxu0 %v9910_v60  ;;  %4997 = vmatprep.subr.bf16.mxu1 %v8163_v14 }
 0x706   :  { %4957 = vmatpush1.bf16.msra.mxu0 %v9911_v30  ;;  %4998 = vmatpush1.bf16.msra.mxu1 %v8172_v8 }
 0x707   :  { %4958 = vmatprep.subr.bf16.mxu0 %v9912_v3  ;;  %4999 = vmatprep.subr.bf16.mxu1 %v8176_v42 }
 0x70a   :  { %4959 = vmatpush1.bf16.msra.mxu0 %v9913_v50  ;;  %5000 = vmatpush1.bf16.msra.mxu1 %v8187_v47 }
 0x70b   :  { %4960 = vmatprep.subr.bf16.mxu0 %v9914_v20  ;;  %5001 = vmatprep.subr.bf16.mxu1 %v8194_v41 }
 0x70e   :  { %4961 = vmatpush1.bf16.msra.mxu0 %v9915_v12  ;;  %5002 = vmatpush1.bf16.msra.mxu1 %v8201_v23 }
 0x70f   :  { %4962 = vmatprep.subr.bf16.mxu0 %v9916_v13  ;;  %5003 = vmatprep.subr.bf16.mxu1 %v8205_v40 }
 0x712   :  { %4963 = vmatpush1.bf16.msra.mxu0 %v9917_v2  ;;  %5004 = vmatpush1.bf16.msra.mxu1 %v8215_v38 }
 0x713   :  { %4964 = vmatprep.subr.bf16.mxu0 %v9918_v16  ;;  %5005 = vmatprep.subr.bf16.mxu1 %v8222_v46 }
 0x716   :  { %4965 = vmatpush1.bf16.msra.mxu0 %v9919_v58  ;;  %5006 = vmatpush1.bf16.msra.mxu1 %v8229_v4 }
 0x717   :  { %4966 = vmatprep.subr.bf16.mxu0 %v9920_v62  ;;  %5007 = vmatprep.subr.bf16.mxu1 %v8233_v57 }
 0x71a   :  { %4967 = vmatpush1.bf16.msra.mxu0 %v9921_v18  ;;  %5008 = vmatpush1.bf16.msra.mxu1 %v8237_v21 }
 0x71b   :  { %4968 = vmatprep.subr.bf16.mxu0 %v9922_v33  ;;  %5009 = vmatprep.subr.bf16.mxu1 %v8241_v49 }
 0x71e   :  { %4969 = vmatpush1.bf16.msra.mxu0 %v9923_v11  ;;  %5010 = vmatpush1.bf16.msra.mxu1 %v8245_v28 }
 0x71f   :  { %4970 = vmatprep.subr.bf16.mxu0 %v9924_v48  ;;  %5011 = vmatprep.subr.bf16.mxu1 %v10007_v63 }
 0x722   :  { %4971 = vmatpush1.bf16.msra.mxu0 %v10008_v45  ;;  %5012 = vmatpush1.bf16.msra.mxu1 %v10009_v27 }
 0x723   :  { %4972 = vmatprep.subr.bf16.mxu0 %v9926_v31  ;;  %5013 = vmatprep.subr.bf16.mxu1 %v10010_v22 }
 0x726   :  { %4973 = vmatpush1.bf16.msra.mxu0 %v10011_v26  ;;  %5014 = vmatpush1.bf16.msra.mxu1 %v10012_v25 }
 0x727   :  { %4974 = vmatprep.subr.bf16.mxu0 %v9928_v15  ;;  %5015 = vmatprep.subr.bf16.mxu1 %v10013_v7 }
 0x72a   :  { %4975 = vmatpush1.bf16.msra.mxu0 %v9930_v32  ;;  %5016 = vmatpush1.bf16.msra.mxu1 %v10197_v53 }
 0x72b   :  { %4976 = vmatprep.subr.bf16.mxu0 %v10198_v34  ;;  %5017 = vmatprep.subr.bf16.mxu1 %v10199_v6 }
 0x72e   :  { %4977 = vmatpush1.bf16.msra.mxu0 %v10200_v10  ;;  %5018 = vmatpush1.bf16.msra.mxu1 %v10201_v24 }
 0x72f   :  { %4978 = vmatprep.subr.bf16.mxu0 %v10202_v29  ;;  %5019 = vmatprep.subr.bf16.mxu1 %v10203_v43  ;;  %v10286_v43 = vld [vmem:[#allocation77_spill] sm:$0xff]  ;;  %v10287_v29 = vld [vmem:[#allocation144_spill] sm:$0xff] }
 0x732   :  { %4979 = vmatpush1.bf16.msra.mxu0 %v10204_v61  ;;  %5020 = vmatpush1.bf16.msra.mxu1 %v10205_v9  ;;  %v10285_v9 = vld [vmem:[#allocation143_spill] sm:$0xff] }
 0x733   :  { %4980 = vmatprep.subr.bf16.mxu0 %v10206_v19  ;;  %5021 = vmatprep.subr.bf16.mxu1 %v10207_v59  ;;  %v10217_v19 = vld [vmem:[#allocation166_spill] sm:$0xff] }
 0x734   :  { %v10218_v59 = vld [vmem:[#allocation22_spill] sm:$0xff] }
 0x736   :  { %4981 = vmatpush1.bf16.msra.mxu0 %v10208_v39  ;;  %5022 = vmatpush1.bf16.msra.mxu1 %v10209_v44  ;;  %v10219_v39 = vld [vmem:[#allocation59_spill] sm:$0xff] }
 0x737   :  { %4982 = vmatprep.subr.bf16.mxu0 %v10210_v55  ;;  %5023 = vmatprep.subr.bf16.mxu1 %v10211_v35  ;;  %v10220_v35 = vld [vmem:[#allocation23_spill] sm:$0xff]  ;;  %v10229_v55 = vld [vmem:[#allocation72_spill] sm:$0xff] }
 0x738   :  { %v10284_v44 = vld [vmem:[#allocation75_spill] sm:$0xff] }
 0x73a   :  { %4983 = vmatpush1.bf16.msra.mxu0 %v10212_v36  ;;  %5024 = vmatpush1.bf16.msra.mxu1 %v10213_v52  ;;  %v10221_v36 = vld [vmem:[#allocation60_spill] sm:$0xff] }
 0x73b   :  { %4984 = vmatprep.subr.bf16.mxu0 %v10214_v17  ;;  %5025 = vmatprep.subr.bf16.mxu1 %v10215_v54  ;;  %v10222_v52 = vld [vmem:[#allocation24_spill] sm:$0xff]  ;;  %v10224_v54 = vld [vmem:[#allocation25_spill] sm:$0xff] }
 0x73c   :  { %v10223_v17 = vld [vmem:[#allocation64_spill] sm:$0xff] }
 0x73e   :  { %4985 = vmatpush1.bf16.msra.mxu0 %v10216_v37  ;;  %5026 = vmatpush1.bf16.msra.mxu1 %v10217_v19  ;;  %v10225_v37 = vld [vmem:[#allocation69_spill] sm:$0xff]  ;;  %v10226_v19 = vld [vmem:[#allocation26_spill] sm:$0xff] }
 0x73f   :  { %5108 = vmatprep.subr.bf16.mxu0 %v10218_v59  ;;  %5149 = vmatprep.subr.bf16.mxu1 %v10219_v39  ;;  %v10227_v59 = vld [vmem:[#allocation71_spill] sm:$0xff] }
 0x740   :  { %v10228_v39 = vld [vmem:[#allocation27_spill] sm:$0xff] }
 0x741   :  { %4987 = vmatmul.mubr.bf16.vlgmr.msra.gmra.mrb[68].mxu0 %v8926_v1  ;;  %5028 = vmatmul.mubr.bf16.vlgmr.msra.gmra.mrb[84].mxu1 %v8926_v1  ;;  %v10230_v1 = vld [vmem:[#allocation28_spill] sm:$0xff] }
 0x742   :  { %5109 = vmatpush1.bf16.msra.mxu0 %v10220_v35  ;;  %5150 = vmatpush1.bf16.msra.mxu1 %v10221_v36  ;;  %v10231_v35 = vld [vmem:[#allocation76_spill] sm:$0xff]  ;;  %v10232_v36 = vld [vmem:[#allocation29_spill] sm:$0xff] }
 0x743   :  { %5110 = vmatprep.subr.bf16.mxu0 %v10222_v52  ;;  %5151 = vmatprep.subr.bf16.mxu1 %v10223_v17  ;;  %v10233_v52 = vld [vmem:[#allocation81_spill] sm:$0xff]  ;;  %v10234_v17 = vld [vmem:[#allocation30_spill] sm:$0xff] }
 0x746   :  { %5111 = vmatpush1.bf16.msra.mxu0 %v10224_v54  ;;  %5152 = vmatpush1.bf16.msra.mxu1 %v10225_v37  ;;  %v10235_v54 = vld [vmem:[#allocation83_spill] sm:$0xff] }
 0x747   :  { %5112 = vmatprep.subr.bf16.mxu0 %v10226_v19  ;;  %5153 = vmatprep.subr.bf16.mxu1 %v10227_v59  ;;  %v10236_v37 = vld [vmem:[#allocation31_spill] sm:$0xff]  ;;  %v10237_v19 = vld [vmem:[#allocation84_spill] sm:$0xff] }
 0x748   :  { %v10238_v59 = vld [vmem:[#allocation32_spill] sm:$0xff] }
 0x74a   :  { %5113 = vmatpush1.bf16.msra.mxu0 %v10228_v39  ;;  %5154 = vmatpush1.bf16.msra.mxu1 %v10229_v55  ;;  %v10239_v39 = vld [vmem:[#allocation88_spill] sm:$0xff]  ;;  %v10240_v55 = vld [vmem:[#allocation33_spill] sm:$0xff] }
 0x74b   :  { %5114 = vmatprep.subr.bf16.mxu0 %v10230_v1  ;;  %5155 = vmatprep.subr.bf16.mxu1 %v10231_v35  ;;  %v10241_v1 = vld [vmem:[#allocation93_spill] sm:$0xff]  ;;  %v10242_v35 = vld [vmem:[#allocation34_spill] sm:$0xff] }
 0x74e   :  { %5115 = vmatpush1.bf16.msra.mxu0 %v10232_v36  ;;  %5156 = vmatpush1.bf16.msra.mxu1 %v10233_v52  ;;  %v10243_v36 = vld [vmem:[#allocation95_spill] sm:$0xff] }
 0x74f   :  { %5116 = vmatprep.subr.bf16.mxu0 %v10234_v17  ;;  %5157 = vmatprep.subr.bf16.mxu1 %v10235_v54  ;;  %v10244_v52 = vld [vmem:[#allocation35_spill] sm:$0xff]  ;;  %v10245_v17 = vld [vmem:[#allocation97_spill] sm:$0xff]  ;;  %v10246_v54 = vld [vmem:[#allocation36_spill] sm:$0xff] }
 0x752   :  { %5117 = vmatpush1.bf16.msra.mxu0 %v10236_v37  ;;  %5158 = vmatpush1.bf16.msra.mxu1 %v10237_v19  ;;  %v10247_v37 = vld [vmem:[#allocation99_spill] sm:$0xff]  ;;  %v10248_v19 = vld [vmem:[#allocation37_spill] sm:$0xff] }
 0x753   :  { %5118 = vmatprep.subr.bf16.mxu0 %v10238_v59  ;;  %5159 = vmatprep.subr.bf16.mxu1 %v10239_v39  ;;  %v10249_v59 = vld [vmem:[#allocation101_spill] sm:$0xff]  ;;  %v10250_v39 = vld [vmem:[#allocation38_spill] sm:$0xff] }
 0x756   :  { %5119 = vmatpush1.bf16.msra.mxu0 %v10240_v55  ;;  %5160 = vmatpush1.bf16.msra.mxu1 %v10241_v1  ;;  %v10251_v55 = vld [vmem:[#allocation103_spill] sm:$0xff] }
 0x757   :  { %5120 = vmatprep.subr.bf16.mxu0 %v10242_v35  ;;  %5161 = vmatprep.subr.bf16.mxu1 %v10243_v36  ;;  %v10252_v1 = vld [vmem:[#allocation39_spill] sm:$0xff]  ;;  %v10253_v35 = vld [vmem:[#allocation105_spill] sm:$0xff]  ;;  %v10254_v36 = vld [vmem:[#allocation40_spill] sm:$0xff] }
 0x75a   :  { %5121 = vmatpush1.bf16.msra.mxu0 %v10244_v52  ;;  %5162 = vmatpush1.bf16.msra.mxu1 %v10245_v17  ;;  %v10255_v52 = vld [vmem:[#allocation107_spill] sm:$0xff]  ;;  %v10256_v17 = vld [vmem:[#allocation41_spill] sm:$0xff] }
 0x75b   :  { %5122 = vmatprep.subr.bf16.mxu0 %v10246_v54  ;;  %5163 = vmatprep.subr.bf16.mxu1 %v10247_v37  ;;  %v10257_v54 = vld [vmem:[#allocation109_spill] sm:$0xff]  ;;  %v10258_v37 = vld [vmem:[#allocation42_spill] sm:$0xff] }
 0x75e   :  { %5123 = vmatpush1.bf16.msra.mxu0 %v10248_v19  ;;  %5164 = vmatpush1.bf16.msra.mxu1 %v10249_v59  ;;  %v10259_v19 = vld [vmem:[#allocation111_spill] sm:$0xff] }
 0x75f   :  { %5124 = vmatprep.subr.bf16.mxu0 %v10250_v39  ;;  %5165 = vmatprep.subr.bf16.mxu1 %v10251_v55  ;;  %v10260_v59 = vld [vmem:[#allocation43_spill] sm:$0xff]  ;;  %v10261_v39 = vld [vmem:[#allocation113_spill] sm:$0xff]  ;;  %v10262_v55 = vld [vmem:[#allocation44_spill] sm:$0xff] }
 0x762   :  { %5125 = vmatpush1.bf16.msra.mxu0 %v10252_v1  ;;  %5166 = vmatpush1.bf16.msra.mxu1 %v10253_v35  ;;  %v10263_v1 = vld [vmem:[#allocation115_spill] sm:$0xff]  ;;  %v10264_v35 = vld [vmem:[#allocation45_spill] sm:$0xff] }
 0x763   :  { %5126 = vmatprep.subr.bf16.mxu0 %v10254_v36  ;;  %5167 = vmatprep.subr.bf16.mxu1 %v10255_v52  ;;  %v10265_v36 = vld [vmem:[#allocation117_spill] sm:$0xff]  ;;  %v10266_v52 = vld [vmem:[#allocation46_spill] sm:$0xff] }
 0x766   :  { %5127 = vmatpush1.bf16.msra.mxu0 %v10256_v17  ;;  %5168 = vmatpush1.bf16.msra.mxu1 %v10257_v54  ;;  %v10267_v17 = vld [vmem:[#allocation119_spill] sm:$0xff] }
 0x767   :  { %5128 = vmatprep.subr.bf16.mxu0 %v10258_v37  ;;  %5169 = vmatprep.subr.bf16.mxu1 %v10259_v19  ;;  %v10268_v54 = vld [vmem:[#allocation47_spill] sm:$0xff]  ;;  %v10269_v37 = vld [vmem:[#allocation121_spill] sm:$0xff]  ;;  %v10270_v19 = vld [vmem:[#allocation48_spill] sm:$0xff] }
 0x76a   :  { %5129 = vmatpush1.bf16.msra.mxu0 %v10260_v59  ;;  %5170 = vmatpush1.bf16.msra.mxu1 %v10261_v39  ;;  %v10271_v59 = vld [vmem:[#allocation123_spill] sm:$0xff]  ;;  %v10272_v39 = vld [vmem:[#allocation49_spill] sm:$0xff] }
 0x76b   :  { %5130 = vmatprep.subr.bf16.mxu0 %v10262_v55  ;;  %5171 = vmatprep.subr.bf16.mxu1 %v10263_v1  ;;  %v10273_v55 = vld [vmem:[#allocation125_spill] sm:$0xff]  ;;  %v10274_v1 = vld [vmem:[#allocation50_spill] sm:$0xff] }
 0x76e   :  { %5131 = vmatpush1.bf16.msra.mxu0 %v10264_v35  ;;  %5172 = vmatpush1.bf16.msra.mxu1 %v10265_v36  ;;  %v10275_v35 = vld [vmem:[#allocation127_spill] sm:$0xff] }
 0x76f   :  { %5132 = vmatprep.subr.bf16.mxu0 %v10266_v52  ;;  %5173 = vmatprep.subr.bf16.mxu1 %v10267_v17  ;;  %v10276_v36 = vld [vmem:[#allocation51_spill] sm:$0xff]  ;;  %v10278_v17 = vld [vmem:[#allocation52_spill] sm:$0xff] }
 0x770   :  { %v10277_v52 = vld [vmem:[#allocation131_spill] sm:$0xff] }
 0x772   :  { %5133 = vmatpush1.bf16.msra.mxu0 %v10268_v54  ;;  %5174 = vmatpush1.bf16.msra.mxu1 %v10269_v37  ;;  %v10279_v54 = vld [vmem:[#allocation134_spill] sm:$0xff]  ;;  %v10280_v37 = vld [vmem:[#allocation56_spill] sm:$0xff] }
 0x773   :  { %5134 = vmatprep.subr.bf16.mxu0 %v10270_v19  ;;  %5175 = vmatprep.subr.bf16.mxu1 %v10271_v59  ;;  %v10281_v19 = vld [vmem:[#allocation137_spill] sm:$0xff]  ;;  %v10282_v59 = vld [vmem:[#allocation58_spill] sm:$0xff] }
 0x776   :  { %5135 = vmatpush1.bf16.msra.mxu0 %v10272_v39  ;;  %5176 = vmatpush1.bf16.msra.mxu1 %v10273_v55  ;;  %v10283_v39 = vld [vmem:[#allocation138_spill] sm:$0xff] }
 0x777   :  { %5136 = vmatprep.subr.bf16.mxu0 %v10274_v1  ;;  %5177 = vmatprep.subr.bf16.mxu1 %v10275_v35 }
 0x77a   :  { %5137 = vmatpush1.bf16.msra.mxu0 %v10276_v36  ;;  %5178 = vmatpush1.bf16.msra.mxu1 %v10277_v52 }
 0x77b   :  { %5138 = vmatprep.subr.bf16.mxu0 %v10278_v17  ;;  %5179 = vmatprep.subr.bf16.mxu1 %v10279_v54 }
 0x77e   :  { %5139 = vmatpush1.bf16.msra.mxu0 %v10280_v37  ;;  %5180 = vmatpush1.bf16.msra.mxu1 %v10281_v19 }
 0x77f   :  { %5190 = vmatprep.subr.bf16.mxu0 %v10282_v59  ;;  %5231 = vmatprep.subr.bf16.mxu1 %v10283_v39 }
 0x7d4   :  { %v4906_v55 = vpop.f32.mrb[64].mxu0  ;;  %v4947_v1 = vpop.f32.mrb[80].mxu1 }
 0x7d5   :  { %v5036_v35 = vadd.f32 %v10284_v44, %v4906_v55  ;;  %v5038_v36 = vadd.f32 %v10285_v9, %v4947_v1  ;;  %v4908_v61 = vpop.f32.mrb[65].mxu0  ;;  %v4949_v52 = vpop.f32.mrb[81].mxu1 }
 0x7d6   :  { %v5037_v17 = vadd.f32 %v10286_v43, %v4908_v61  ;;  %v5039_v54 = vadd.f32 %v10287_v29, %v4949_v52  ;;  %v4910_v24 = vpop.f32.mrb[66].mxu0  ;;  %v4951_v37 = vpop.f32.mrb[82].mxu1 }
 0x7d7   :  { %v4911_v10 = vpop.f32.mrb[67].mxu0  ;;  %v4952_v19 = vpop.f32.mrb[83].mxu1  ;;  %v6563_v6 = vmul.f32 -1.442695, %v5036_v35  ;;  %v6565_v59 = vmul.f32 -1.442695, %v5038_v36 }
 0x7d8   :  { %v6564_v34 = vmul.f32 -1.442695, %v5037_v17  ;;  %v6566_v39 = vmul.f32 -1.442695, %v5039_v54  ;;  %v10288_v19 = vld [vmem:[#allocation173_spill] sm:$0xff]  ;;  %v10291_v17 = vld [vmem:[#allocation186_spill] sm:$0xff] }
 0x7d9   :  { %7023 = vpow2.f32 %v6563_v6  ;;  %v10289_v36 = vld [vmem:[#allocation185_spill] sm:$0xff] }
 0x7da   :  { %7025 = vpow2.f32 %v6565_v59 }
 0x7db   :  { %7027 = vpow2.f32 %v6564_v34 }
 0x7dc   :  { %7029 = vpow2.f32 %v6566_v39  ;;  %v10290_v39 = vld [vmem:[#allocation174_spill] sm:$0xff] }
 0x7e3   :  { %v7024_v44 = vpop.eup %7023 }
 0x7e4   :  { %v7026_v9 = vpop.eup %7025  ;;  %v5050_v53 = vadd.f32 1.0, %v7024_v44 }
 0x7e5   :  { %v7028_v55 = vpop.eup %7027  ;;  %v5062_v43 = vadd.f32 1.0, %v7026_v9 }
 0x7e6   :  { %v7030_v1 = vpop.eup %7029  ;;  %v5051_v61 = vadd.f32 1.0, %v7028_v55  ;;  %7031 = vrcp.f32 %v5050_v53 }
 0x7e7   :  { %v5063_v29 = vadd.f32 1.0, %v7030_v1  ;;  %7033 = vrcp.f32 %v5062_v43 }
 0x7e8   :  { %7035 = vrcp.f32 %v5051_v61 }
 0x7e9   :  { %7037 = vrcp.f32 %v5063_v29 }
 0x7f0   :  { %v7032_v43 = vpop.eup %7031 }
 0x7f1   :  { %v7034_v61 = vpop.eup %7033 }
 0x814   :  { %v4988_v10 = vpop.f32.mrb[68].mxu0  ;;  %v5029_v24 = vpop.f32.mrb[84].mxu1 }
 0x815   :  { %v5040_v35 = vadd.f32 %v10288_v19, %v4988_v10  ;;  %v5042_v6 = vadd.f32 %v10289_v36, %v5029_v24  ;;  %v4990_v59 = vpop.f32.mrb[69].mxu0  ;;  %v5031_v34 = vpop.f32.mrb[85].mxu1  ;;  %v5082_v36 = vmul.f32 %v7034_v61, %v8920_v0 }
 0x816   :  { %v5041_v52 = vadd.f32 %v10290_v39, %v4990_v59  ;;  %v5043_v54 = vadd.f32 %v10291_v17, %v5031_v34  ;;  %v4992_v37 = vpop.f32.mrb[70].mxu0  ;;  %v5033_v44 = vpop.f32.mrb[86].mxu1 }
 0x817   :  { %7039 = vtanh.f32 %v5040_v35  ;;  %v6567_v9 = vmul.f32 -1.442695, %v5042_v6  ;;  %v4993_v53 = vpop.f32.mrb[71].mxu0  ;;  %v5034_v55 = vpop.f32.mrb[87].mxu1 }
 0x818   :  { %7041 = vtanh.f32 %v5041_v52  ;;  %v6568_v1 = vmul.f32 -1.442695, %v5043_v54  ;;  %v7036_v10 = vpop.eup %7035 }
 0x819   :  { %7043 = vpow2.f32 %v6567_v9  ;;  %v7038_v24 = vpop.eup %7037 }
 0x81a   :  { %7045 = vpow2.f32 %v6568_v1  ;;  %v5083_v39 = vmul.f32 %v7038_v24, %v8922_v51  ;;  %v10292_v24 = vld [vmem:[#allocation156_spill] sm:$0xff] }
 0x821   :  { %v7040_v19 = vpop.eup %7039 }
 0x822   :  { %v7042_v29 = vpop.eup %7041  ;;  %v5084_v59 = vmul.f32 %v7040_v19, %v7032_v43  ;;  %v10293_v19 = vld [vmem:[#allocation114_spill] sm:$0xff] }
 0x823   :  { %v7044_v34 = vpop.eup %7043  ;;  %v5085_v35 = vmul.f32 %v7042_v29, %v7036_v10  ;;  %v10294_v29 = vld [vmem:[#allocation157_spill] sm:$0xff] }
 0x824   :  { %v7046_v6 = vpop.eup %7045  ;;  %v9070_v17 = vadd.f32 %v5084_v59, %v5082_v36  ;;  %v5076_v52 = vadd.f32 1.0, %v7044_v34  ;;  %v10295_v36 = vld [vmem:[#allocation116_spill] sm:$0xff]  ;;  %v10296_v59 = vld [vmem:[#allocation158_spill] sm:$0xff] }
 0x825   :  { %v9072_v54 = vadd.f32 %v5085_v35, %v5083_v39  ;;  %v5077_v37 = vadd.f32 1.0, %v7046_v6  ;;  %v10297_v34 = vld [vmem:[#allocation118_spill] sm:$0xff]  ;;  %v10298_v39 = vld [vmem:[#allocation159_spill] sm:$0xff]  ;;  %v10299_v35 = vld [vmem:[#allocation120_spill] sm:$0xff] }
 0x826   :  { %7047 = vtanh.f32 %v9070_v17  ;;  %v10300_v6 = vld [vmem:[#allocation160_spill] sm:$0xff] }
 0x827   :  { %7049 = vrcp.f32 %v5076_v52  ;;  %v10301_v52 = vld [vmem:[#allocation122_spill] sm:$0xff] }
 0x828   :  { %7051 = vtanh.f32 %v9072_v54 }
 0x829   :  { %7053 = vrcp.f32 %v5077_v37  ;;  %v10302_v37 = vld [vmem:[#allocation161_spill] sm:$0xff] }
 0x830   :  { %v7048_v44 = vpop.eup %7047 }
 0x831   :  { %v7050_v0 = vpop.eup %7049 }
 0x832   :  { %v7052_v9 = vpop.eup %7051  ;;  %v5090_v53 = vmul.f32 %v7050_v0, %v7048_v44  ;;  %v10303_v44 = vld [vmem:[#allocation124_spill] sm:$0xff]  ;;  %v10304_v0 = vld [vmem:[#allocation162_spill] sm:$0xff] }
 0x833   :  { %v7054_v55 = vpop.eup %7053 }
 0x834   :  { %v5091_v51 = vmul.f32 %v7054_v55, %v7052_v9  ;;  %v5092_v1 = vmax.f32 %v5090_v53, 0.0  ;;  %v9076_v10 = vpack.c.bf16 %v5090_v53, %v5090_v53  ;;  %v10305_v9 = vld [vmem:[#allocation126_spill] sm:$0xff]  ;;  %v10306_v53 = vld [vmem:[#allocation163_spill] sm:$0xff] }
 0x835   :  { %v10307_v55 = vld [vmem:[#allocation130_spill] sm:$0xff] }
 0x836   :  { %v5093_v43 = vmax.f32 %v5091_v51, 0.0  ;;  %v5107_v61 = vpack.c.bf16 %v5091_v51, %v5091_v51  ;;  %5095 = vst [vmem:[#allocation3 + $0x40] sm:$0xff] %v5092_v1  ;;  %v10308_v51 = vld [vmem:[#allocation164_spill] sm:$0xff] }
 0x837   :  { %v10309_v1 = vld [vmem:[#allocation132_spill] sm:$0xff] }
 0x838   :  { %5096 = vst [vmem:[#allocation3 + $0x48] sm:$0xff] %v5093_v43  ;;  %5140 = vmatprep.mubr.bf16.mxu0 %v5107_v61  ;;  %5181 = vmatprep.mubr.bf16.mxu1 %v5107_v61  ;;  %v10310_v43 = vld [vmem:[#allocation165_spill] sm:$0xff] }
 0x839   :  { %5141 = vmatmul.mubr.bf16.vlgmr.msra.gmra.mrb[72].mxu0 %v9076_v10  ;;  %5182 = vmatmul.mubr.bf16.vlgmr.msra.gmra.mrb[88].mxu1 %v9076_v10 }
 0x83a   :  { %5191 = vmatpush1.bf16.msra.mxu0 %v9909_v5  ;;  %5232 = vmatpush1.bf16.msra.mxu1 %v8156_v56 }
 0x83b   :  { %5222 = vmatprep.mubr.bf16.mxu0 %v5107_v61  ;;  %5263 = vmatprep.mubr.bf16.mxu1 %v5107_v61  ;;  %v10311_v61 = vld [vmem:[#allocation136_spill] sm:$0xff] }
 0x83c   :  { %5192 = vmatprep.subr.bf16.mxu0 %v9910_v60  ;;  %5233 = vmatprep.subr.bf16.mxu1 %v8163_v14 }
 0x83e   :  { %5193 = vmatpush1.bf16.msra.mxu0 %v9911_v30  ;;  %5234 = vmatpush1.bf16.msra.mxu1 %v8172_v8 }
 0x83f   :  { %5194 = vmatprep.subr.bf16.mxu0 %v9912_v3  ;;  %5235 = vmatprep.subr.bf16.mxu1 %v8176_v42 }
 0x842   :  { %5195 = vmatpush1.bf16.msra.mxu0 %v9913_v50  ;;  %5236 = vmatpush1.bf16.msra.mxu1 %v8187_v47 }
 0x843   :  { %5196 = vmatprep.subr.bf16.mxu0 %v9914_v20  ;;  %5237 = vmatprep.subr.bf16.mxu1 %v8194_v41 }
 0x846   :  { %5197 = vmatpush1.bf16.msra.mxu0 %v9915_v12  ;;  %5238 = vmatpush1.bf16.msra.mxu1 %v8201_v23 }
 0x847   :  { %5198 = vmatprep.subr.bf16.mxu0 %v9916_v13  ;;  %5239 = vmatprep.subr.bf16.mxu1 %v8205_v40 }
 0x84a   :  { %5199 = vmatpush1.bf16.msra.mxu0 %v9917_v2  ;;  %5240 = vmatpush1.bf16.msra.mxu1 %v8215_v38 }
 0x84b   :  { %5200 = vmatprep.subr.bf16.mxu0 %v9918_v16  ;;  %5241 = vmatprep.subr.bf16.mxu1 %v8222_v46 }
 0x84e   :  { %5201 = vmatpush1.bf16.msra.mxu0 %v9919_v58  ;;  %5242 = vmatpush1.bf16.msra.mxu1 %v8229_v4 }
 0x84f   :  { %5202 = vmatprep.subr.bf16.mxu0 %v9920_v62  ;;  %5243 = vmatprep.subr.bf16.mxu1 %v8233_v57 }
 0x852   :  { %5203 = vmatpush1.bf16.msra.mxu0 %v9921_v18  ;;  %5244 = vmatpush1.bf16.msra.mxu1 %v8237_v21 }
 0x853   :  { %5204 = vmatprep.subr.bf16.mxu0 %v9922_v33  ;;  %5245 = vmatprep.subr.bf16.mxu1 %v8241_v49 }
 0x856   :  { %5205 = vmatpush1.bf16.msra.mxu0 %v9923_v11  ;;  %5246 = vmatpush1.bf16.msra.mxu1 %v8245_v28 }
 0x857   :  { %5206 = vmatprep.subr.bf16.mxu0 %v9924_v48  ;;  %5247 = vmatprep.subr.bf16.mxu1 %v10007_v63 }
 0x85a   :  { %5207 = vmatpush1.bf16.msra.mxu0 %v10008_v45  ;;  %5248 = vmatpush1.bf16.msra.mxu1 %v10009_v27 }
 0x85b   :  { %5208 = vmatprep.subr.bf16.mxu0 %v9926_v31  ;;  %5249 = vmatprep.subr.bf16.mxu1 %v10010_v22 }
 0x85e   :  { %5209 = vmatpush1.bf16.msra.mxu0 %v10011_v26  ;;  %5250 = vmatpush1.bf16.msra.mxu1 %v10012_v25 }
 0x85f   :  { %5210 = vmatprep.subr.bf16.mxu0 %v9928_v15  ;;  %5251 = vmatprep.subr.bf16.mxu1 %v10013_v7 }
 0x862   :  { %5211 = vmatpush1.bf16.msra.mxu0 %v9930_v32  ;;  %5252 = vmatpush1.bf16.msra.mxu1 %v10292_v24 }
 0x863   :  { %5212 = vmatprep.subr.bf16.mxu0 %v10293_v19  ;;  %5253 = vmatprep.subr.bf16.mxu1 %v10294_v29 }
 0x866   :  { %5213 = vmatpush1.bf16.msra.mxu0 %v10295_v36  ;;  %5254 = vmatpush1.bf16.msra.mxu1 %v10296_v59 }
 0x867   :  { %5214 = vmatprep.subr.bf16.mxu0 %v10297_v34  ;;  %5255 = vmatprep.subr.bf16.mxu1 %v10298_v39  ;;  %v10381_v39 = vld [vmem:[#allocation80_spill] sm:$0xff]  ;;  %v10382_v34 = vld [vmem:[#allocation146_spill] sm:$0xff] }
 0x86a   :  { %5215 = vmatpush1.bf16.msra.mxu0 %v10299_v35  ;;  %5256 = vmatpush1.bf16.msra.mxu1 %v10300_v6  ;;  %v10380_v6 = vld [vmem:[#allocation145_spill] sm:$0xff] }
 0x86b   :  { %5216 = vmatprep.subr.bf16.mxu0 %v10301_v52  ;;  %5257 = vmatprep.subr.bf16.mxu1 %v10302_v37  ;;  %v10312_v52 = vld [vmem:[#allocation166_spill] sm:$0xff] }
 0x86c   :  { %v10313_v37 = vld [vmem:[#allocation22_spill] sm:$0xff] }
 0x86e   :  { %5217 = vmatpush1.bf16.msra.mxu0 %v10303_v44  ;;  %5258 = vmatpush1.bf16.msra.mxu1 %v10304_v0  ;;  %v10314_v44 = vld [vmem:[#allocation59_spill] sm:$0xff]  ;;  %v10379_v0 = vld [vmem:[#allocation78_spill] sm:$0xff] }
 0x86f   :  { %5218 = vmatprep.subr.bf16.mxu0 %v10305_v9  ;;  %5259 = vmatprep.subr.bf16.mxu1 %v10306_v53  ;;  %v10315_v53 = vld [vmem:[#allocation23_spill] sm:$0xff]  ;;  %v10324_v9 = vld [vmem:[#allocation72_spill] sm:$0xff] }
 0x872   :  { %5219 = vmatpush1.bf16.msra.mxu0 %v10307_v55  ;;  %5260 = vmatpush1.bf16.msra.mxu1 %v10308_v51  ;;  %v10316_v55 = vld [vmem:[#allocation60_spill] sm:$0xff] }
 0x873   :  { %5220 = vmatprep.subr.bf16.mxu0 %v10309_v1  ;;  %5261 = vmatprep.subr.bf16.mxu1 %v10310_v43  ;;  %v10317_v51 = vld [vmem:[#allocation24_spill] sm:$0xff]  ;;  %v10319_v43 = vld [vmem:[#allocation25_spill] sm:$0xff] }
 0x874   :  { %v10318_v1 = vld [vmem:[#allocation64_spill] sm:$0xff] }
 0x876   :  { %5221 = vmatpush1.bf16.msra.mxu0 %v10311_v61  ;;  %5262 = vmatpush1.bf16.msra.mxu1 %v10312_v52  ;;  %v10320_v61 = vld [vmem:[#allocation69_spill] sm:$0xff]  ;;  %v10321_v52 = vld [vmem:[#allocation26_spill] sm:$0xff] }
 0x877   :  { %5344 = vmatprep.subr.bf16.mxu0 %v10313_v37  ;;  %5385 = vmatprep.subr.bf16.mxu1 %v10314_v44  ;;  %v10322_v37 = vld [vmem:[#allocation71_spill] sm:$0xff] }
 0x878   :  { %v10323_v44 = vld [vmem:[#allocation27_spill] sm:$0xff] }
 0x879   :  { %5223 = vmatmul.mubr.bf16.vlgmr.msra.gmra.mrb[76].mxu0 %v9076_v10  ;;  %5264 = vmatmul.mubr.bf16.vlgmr.msra.gmra.mrb[92].mxu1 %v9076_v10  ;;  %v10325_v10 = vld [vmem:[#allocation28_spill] sm:$0xff] }
 0x87a   :  { %5345 = vmatpush1.bf16.msra.mxu0 %v10315_v53  ;;  %5386 = vmatpush1.bf16.msra.mxu1 %v10316_v55  ;;  %v10326_v53 = vld [vmem:[#allocation76_spill] sm:$0xff]  ;;  %v10327_v55 = vld [vmem:[#allocation29_spill] sm:$0xff] }
 0x87b   :  { %5346 = vmatprep.subr.bf16.mxu0 %v10317_v51  ;;  %5387 = vmatprep.subr.bf16.mxu1 %v10318_v1  ;;  %v10328_v51 = vld [vmem:[#allocation81_spill] sm:$0xff]  ;;  %v10329_v1 = vld [vmem:[#allocation30_spill] sm:$0xff] }
 0x87e   :  { %5347 = vmatpush1.bf16.msra.mxu0 %v10319_v43  ;;  %5388 = vmatpush1.bf16.msra.mxu1 %v10320_v61  ;;  %v10330_v43 = vld [vmem:[#allocation83_spill] sm:$0xff] }
 0x87f   :  { %5348 = vmatprep.subr.bf16.mxu0 %v10321_v52  ;;  %5389 = vmatprep.subr.bf16.mxu1 %v10322_v37  ;;  %v10331_v61 = vld [vmem:[#allocation31_spill] sm:$0xff]  ;;  %v10332_v52 = vld [vmem:[#allocation84_spill] sm:$0xff] }
 0x880   :  { %v10333_v37 = vld [vmem:[#allocation32_spill] sm:$0xff] }
 0x882   :  { %5349 = vmatpush1.bf16.msra.mxu0 %v10323_v44  ;;  %5390 = vmatpush1.bf16.msra.mxu1 %v10324_v9  ;;  %v10334_v44 = vld [vmem:[#allocation88_spill] sm:$0xff]  ;;  %v10335_v9 = vld [vmem:[#allocation33_spill] sm:$0xff] }
 0x883   :  { %5350 = vmatprep.subr.bf16.mxu0 %v10325_v10  ;;  %5391 = vmatprep.subr.bf16.mxu1 %v10326_v53  ;;  %v10336_v10 = vld [vmem:[#allocation93_spill] sm:$0xff]  ;;  %v10337_v53 = vld [vmem:[#allocation34_spill] sm:$0xff] }
 0x886   :  { %5351 = vmatpush1.bf16.msra.mxu0 %v10327_v55  ;;  %5392 = vmatpush1.bf16.msra.mxu1 %v10328_v51  ;;  %v10338_v55 = vld [vmem:[#allocation95_spill] sm:$0xff] }
 0x887   :  { %5352 = vmatprep.subr.bf16.mxu0 %v10329_v1  ;;  %5393 = vmatprep.subr.bf16.mxu1 %v10330_v43  ;;  %v10339_v51 = vld [vmem:[#allocation35_spill] sm:$0xff]  ;;  %v10340_v1 = vld [vmem:[#allocation97_spill] sm:$0xff]  ;;  %v10341_v43 = vld [vmem:[#allocation36_spill] sm:$0xff] }
 0x88a   :  { %5353 = vmatpush1.bf16.msra.mxu0 %v10331_v61  ;;  %5394 = vmatpush1.bf16.msra.mxu1 %v10332_v52  ;;  %v10342_v61 = vld [vmem:[#allocation99_spill] sm:$0xff]  ;;  %v10343_v52 = vld [vmem:[#allocation37_spill] sm:$0xff] }
 0x88b   :  { %5354 = vmatprep.subr.bf16.mxu0 %v10333_v37  ;;  %5395 = vmatprep.subr.bf16.mxu1 %v10334_v44  ;;  %v10344_v37 = vld [vmem:[#allocation101_spill] sm:$0xff]  ;;  %v10345_v44 = vld [vmem:[#allocation38_spill] sm:$0xff] }
 0x88e   :  { %5355 = vmatpush1.bf16.msra.mxu0 %v10335_v9  ;;  %5396 = vmatpush1.bf16.msra.mxu1 %v10336_v10  ;;  %v10346_v9 = vld [vmem:[#allocation103_spill] sm:$0xff] }
 0x88f   :  { %5356 = vmatprep.subr.bf16.mxu0 %v10337_v53  ;;  %5397 = vmatprep.subr.bf16.mxu1 %v10338_v55  ;;  %v10347_v10 = vld [vmem:[#allocation39_spill] sm:$0xff]  ;;  %v10348_v53 = vld [vmem:[#allocation105_spill] sm:$0xff]  ;;  %v10349_v55 = vld [vmem:[#allocation40_spill] sm:$0xff] }
 0x892   :  { %5357 = vmatpush1.bf16.msra.mxu0 %v10339_v51  ;;  %5398 = vmatpush1.bf16.msra.mxu1 %v10340_v1  ;;  %v10350_v51 = vld [vmem:[#allocation107_spill] sm:$0xff]  ;;  %v10351_v1 = vld [vmem:[#allocation41_spill] sm:$0xff] }
 0x893   :  { %5358 = vmatprep.subr.bf16.mxu0 %v10341_v43  ;;  %5399 = vmatprep.subr.bf16.mxu1 %v10342_v61  ;;  %v10352_v43 = vld [vmem:[#allocation109_spill] sm:$0xff]  ;;  %v10353_v61 = vld [vmem:[#allocation42_spill] sm:$0xff] }
 0x896   :  { %5359 = vmatpush1.bf16.msra.mxu0 %v10343_v52  ;;  %5400 = vmatpush1.bf16.msra.mxu1 %v10344_v37  ;;  %v10354_v52 = vld [vmem:[#allocation111_spill] sm:$0xff] }
 0x897   :  { %5360 = vmatprep.subr.bf16.mxu0 %v10345_v44  ;;  %5401 = vmatprep.subr.bf16.mxu1 %v10346_v9  ;;  %v10355_v37 = vld [vmem:[#allocation43_spill] sm:$0xff]  ;;  %v10356_v44 = vld [vmem:[#allocation113_spill] sm:$0xff]  ;;  %v10357_v9 = vld [vmem:[#allocation44_spill] sm:$0xff] }
 0x89a   :  { %5361 = vmatpush1.bf16.msra.mxu0 %v10347_v10  ;;  %5402 = vmatpush1.bf16.msra.mxu1 %v10348_v53  ;;  %v10358_v10 = vld [vmem:[#allocation115_spill] sm:$0xff]  ;;  %v10359_v53 = vld [vmem:[#allocation45_spill] sm:$0xff] }
 0x89b   :  { %5362 = vmatprep.subr.bf16.mxu0 %v10349_v55  ;;  %5403 = vmatprep.subr.bf16.mxu1 %v10350_v51  ;;  %v10360_v55 = vld [vmem:[#allocation117_spill] sm:$0xff]  ;;  %v10361_v51 = vld [vmem:[#allocation46_spill] sm:$0xff] }
 0x89e   :  { %5363 = vmatpush1.bf16.msra.mxu0 %v10351_v1  ;;  %5404 = vmatpush1.bf16.msra.mxu1 %v10352_v43  ;;  %v10362_v1 = vld [vmem:[#allocation119_spill] sm:$0xff] }
 0x89f   :  { %5364 = vmatprep.subr.bf16.mxu0 %v10353_v61  ;;  %5405 = vmatprep.subr.bf16.mxu1 %v10354_v52  ;;  %v10363_v43 = vld [vmem:[#allocation47_spill] sm:$0xff]  ;;  %v10364_v61 = vld [vmem:[#allocation121_spill] sm:$0xff]  ;;  %v10365_v52 = vld [vmem:[#allocation48_spill] sm:$0xff] }
 0x8a2   :  { %5365 = vmatpush1.bf16.msra.mxu0 %v10355_v37  ;;  %5406 = vmatpush1.bf16.msra.mxu1 %v10356_v44  ;;  %v10366_v37 = vld [vmem:[#allocation123_spill] sm:$0xff]  ;;  %v10367_v44 = vld [vmem:[#allocation49_spill] sm:$0xff] }
 0x8a3   :  { %5366 = vmatprep.subr.bf16.mxu0 %v10357_v9  ;;  %5407 = vmatprep.subr.bf16.mxu1 %v10358_v10  ;;  %v10368_v9 = vld [vmem:[#allocation125_spill] sm:$0xff]  ;;  %v10369_v10 = vld [vmem:[#allocation50_spill] sm:$0xff] }
 0x8a6   :  { %5367 = vmatpush1.bf16.msra.mxu0 %v10359_v53  ;;  %5408 = vmatpush1.bf16.msra.mxu1 %v10360_v55  ;;  %v10370_v53 = vld [vmem:[#allocation127_spill] sm:$0xff] }
 0x8a7   :  { %5368 = vmatprep.subr.bf16.mxu0 %v10361_v51  ;;  %5409 = vmatprep.subr.bf16.mxu1 %v10362_v1  ;;  %v10371_v55 = vld [vmem:[#allocation51_spill] sm:$0xff]  ;;  %v10373_v1 = vld [vmem:[#allocation52_spill] sm:$0xff] }
 0x8a8   :  { %v10372_v51 = vld [vmem:[#allocation131_spill] sm:$0xff] }
 0x8aa   :  { %5369 = vmatpush1.bf16.msra.mxu0 %v10363_v43  ;;  %5410 = vmatpush1.bf16.msra.mxu1 %v10364_v61  ;;  %v10374_v43 = vld [vmem:[#allocation134_spill] sm:$0xff]  ;;  %v10375_v61 = vld [vmem:[#allocation56_spill] sm:$0xff] }
 0x8ab   :  { %5370 = vmatprep.subr.bf16.mxu0 %v10365_v52  ;;  %5411 = vmatprep.subr.bf16.mxu1 %v10366_v37  ;;  %v10376_v52 = vld [vmem:[#allocation137_spill] sm:$0xff]  ;;  %v10377_v37 = vld [vmem:[#allocation58_spill] sm:$0xff] }
 0x8ae   :  { %5371 = vmatpush1.bf16.msra.mxu0 %v10367_v44  ;;  %5412 = vmatpush1.bf16.msra.mxu1 %v10368_v9  ;;  %v10378_v44 = vld [vmem:[#allocation138_spill] sm:$0xff] }
 0x8af   :  { %5372 = vmatprep.subr.bf16.mxu0 %v10369_v10  ;;  %5413 = vmatprep.subr.bf16.mxu1 %v10370_v53 }
 0x8b2   :  { %5373 = vmatpush1.bf16.msra.mxu0 %v10371_v55  ;;  %5414 = vmatpush1.bf16.msra.mxu1 %v10372_v51 }
 0x8b3   :  { %5374 = vmatprep.subr.bf16.mxu0 %v10373_v1  ;;  %5415 = vmatprep.subr.bf16.mxu1 %v10374_v43 }
 0x8b6   :  { %5375 = vmatpush1.bf16.msra.mxu0 %v10375_v61  ;;  %5416 = vmatpush1.bf16.msra.mxu1 %v10376_v52 }
 0x8b7   :  { %5426 = vmatprep.subr.bf16.mxu0 %v10377_v37  ;;  %5467 = vmatprep.subr.bf16.mxu1 %v10378_v44 }
 0x90c   :  { %v5142_v9 = vpop.f32.mrb[72].mxu0  ;;  %v5183_v10 = vpop.f32.mrb[88].mxu1 }
 0x90d   :  { %v5272_v53 = vadd.f32 %v10379_v0, %v5142_v9  ;;  %v5274_v55 = vadd.f32 %v10380_v6, %v5183_v10  ;;  %v5144_v35 = vpop.f32.mrb[73].mxu0  ;;  %v5185_v51 = vpop.f32.mrb[89].mxu1 }
 0x90e   :  { %v5273_v1 = vadd.f32 %v10381_v39, %v5144_v35  ;;  %v5275_v43 = vadd.f32 %v10382_v34, %v5185_v51  ;;  %v5146_v59 = vpop.f32.mrb[74].mxu0  ;;  %v5187_v61 = vpop.f32.mrb[90].mxu1 }
 0x90f   :  { %v5147_v36 = vpop.f32.mrb[75].mxu0  ;;  %v5188_v52 = vpop.f32.mrb[91].mxu1  ;;  %v6569_v29 = vmul.f32 -1.442695, %v5272_v53  ;;  %v6571_v37 = vmul.f32 -1.442695, %v5274_v55 }
 0x910   :  { %v6570_v19 = vmul.f32 -1.442695, %v5273_v1  ;;  %v6572_v44 = vmul.f32 -1.442695, %v5275_v43  ;;  %v10383_v52 = vld [vmem:[#allocation175_spill] sm:$0xff]  ;;  %v10386_v1 = vld [vmem:[#allocation188_spill] sm:$0xff] }
 0x911   :  { %7055 = vpow2.f32 %v6569_v29  ;;  %v10384_v55 = vld [vmem:[#allocation187_spill] sm:$0xff] }
 0x912   :  { %7057 = vpow2.f32 %v6571_v37 }
 0x913   :  { %7059 = vpow2.f32 %v6570_v19 }
 0x914   :  { %7061 = vpow2.f32 %v6572_v44  ;;  %v10385_v44 = vld [vmem:[#allocation176_spill] sm:$0xff] }
 0x91b   :  { %v7056_v0 = vpop.eup %7055 }
 0x91c   :  { %v7058_v6 = vpop.eup %7057  ;;  %v5286_v24 = vadd.f32 1.0, %v7056_v0 }
 0x91d   :  { %v7060_v9 = vpop.eup %7059  ;;  %v5298_v39 = vadd.f32 1.0, %v7058_v6 }
 0x91e   :  { %v7062_v10 = vpop.eup %7061  ;;  %v5287_v35 = vadd.f32 1.0, %v7060_v9  ;;  %7063 = vrcp.f32 %v5286_v24 }
 0x91f   :  { %v5299_v34 = vadd.f32 1.0, %v7062_v10  ;;  %7065 = vrcp.f32 %v5298_v39 }
 0x920   :  { %7067 = vrcp.f32 %v5287_v35 }
 0x921   :  { %7069 = vrcp.f32 %v5299_v34 }
 0x928   :  { %v7064_v39 = vpop.eup %7063 }
 0x929   :  { %v7066_v35 = vpop.eup %7065 }
 0x94c   :  { %v5224_v36 = vpop.f32.mrb[76].mxu0  ;;  %v5265_v59 = vpop.f32.mrb[92].mxu1 }
 0x94d   :  { %v5276_v53 = vadd.f32 %v10383_v52, %v5224_v36  ;;  %v5278_v29 = vadd.f32 %v10384_v55, %v5265_v59  ;;  %v5226_v37 = vpop.f32.mrb[77].mxu0  ;;  %v5267_v19 = vpop.f32.mrb[93].mxu1  ;;  %v5318_v55 = vmul.f32 %v7066_v35, %v9070_v17 }
 0x94e   :  { %v5277_v51 = vadd.f32 %v10385_v44, %v5226_v37  ;;  %v5279_v43 = vadd.f32 %v10386_v1, %v5267_v19  ;;  %v5228_v61 = vpop.f32.mrb[78].mxu0  ;;  %v5269_v0 = vpop.f32.mrb[94].mxu1 }
 0x94f   :  { %7071 = vtanh.f32 %v5276_v53  ;;  %v6573_v6 = vmul.f32 -1.442695, %v5278_v29  ;;  %v5229_v24 = vpop.f32.mrb[79].mxu0  ;;  %v5270_v9 = vpop.f32.mrb[95].mxu1 }
 0x950   :  { %7073 = vtanh.f32 %v5277_v51  ;;  %v6574_v10 = vmul.f32 -1.442695, %v5279_v43  ;;  %v7068_v36 = vpop.eup %7067 }
 0x951   :  { %7075 = vpow2.f32 %v6573_v6  ;;  %v7070_v59 = vpop.eup %7069 }
 0x952   :  { %7077 = vpow2.f32 %v6574_v10  ;;  %v5319_v44 = vmul.f32 %v7070_v59, %v9072_v54  ;;  %v10387_v59 = vld [vmem:[#allocation156_spill] sm:$0xff] }
 0x959   :  { %v7072_v52 = vpop.eup %7071 }
 0x95a   :  { %v7074_v34 = vpop.eup %7073  ;;  %v5320_v37 = vmul.f32 %v7072_v52, %v7064_v39  ;;  %v10388_v52 = vld [vmem:[#allocation114_spill] sm:$0xff] }
 0x95b   :  { %v7076_v19 = vpop.eup %7075  ;;  %v5321_v53 = vmul.f32 %v7074_v34, %v7068_v36  ;;  %v10389_v34 = vld [vmem:[#allocation157_spill] sm:$0xff] }
 0x95c   :  { %v7078_v29 = vpop.eup %7077  ;;  %v9220_v1 = vadd.f32 %v5320_v37, %v5318_v55  ;;  %v5312_v51 = vadd.f32 1.0, %v7076_v19  ;;  %v10390_v55 = vld [vmem:[#allocation116_spill] sm:$0xff]  ;;  %v10391_v37 = vld [vmem:[#allocation158_spill] sm:$0xff] }
 0x95d   :  { %v9222_v43 = vadd.f32 %v5321_v53, %v5319_v44  ;;  %v5313_v61 = vadd.f32 1.0, %v7078_v29  ;;  %v10392_v19 = vld [vmem:[#allocation118_spill] sm:$0xff]  ;;  %v10393_v44 = vld [vmem:[#allocation159_spill] sm:$0xff]  ;;  %v10394_v53 = vld [vmem:[#allocation120_spill] sm:$0xff] }
 0x95e   :  { %7079 = vtanh.f32 %v9220_v1  ;;  %v10395_v29 = vld [vmem:[#allocation160_spill] sm:$0xff] }
 0x95f   :  { %7081 = vrcp.f32 %v5312_v51  ;;  %v10396_v51 = vld [vmem:[#allocation122_spill] sm:$0xff] }
 0x960   :  { %7083 = vtanh.f32 %v9222_v43 }
 0x961   :  { %7085 = vrcp.f32 %v5313_v61  ;;  %v10397_v61 = vld [vmem:[#allocation161_spill] sm:$0xff] }
 0x968   :  { %v7080_v0 = vpop.eup %7079 }
 0x969   :  { %v7082_v17 = vpop.eup %7081 }
 0x96a   :  { %v7084_v6 = vpop.eup %7083  ;;  %v5326_v24 = vmul.f32 %v7082_v17, %v7080_v0  ;;  %v10398_v0 = vld [vmem:[#allocation124_spill] sm:$0xff]  ;;  %v10399_v17 = vld [vmem:[#allocation162_spill] sm:$0xff] }
 0x96b   :  { %v7086_v9 = vpop.eup %7085 }
 0x96c   :  { %v5327_v54 = vmul.f32 %v7086_v9, %v7084_v6  ;;  %v5328_v10 = vmax.f32 %v5326_v24, 0.0  ;;  %v9226_v36 = vpack.c.bf16 %v5326_v24, %v5326_v24  ;;  %v10400_v6 = vld [vmem:[#allocation126_spill] sm:$0xff]  ;;  %v10401_v24 = vld [vmem:[#allocation163_spill] sm:$0xff] }
 0x96d   :  { %v10402_v9 = vld [vmem:[#allocation130_spill] sm:$0xff] }
 0x96e   :  { %v5329_v39 = vmax.f32 %v5327_v54, 0.0  ;;  %v5343_v35 = vpack.c.bf16 %v5327_v54, %v5327_v54  ;;  %5331 = vst [vmem:[#allocation3 + $0x50] sm:$0xff] %v5328_v10  ;;  %v10403_v54 = vld [vmem:[#allocation164_spill] sm:$0xff] }
 0x96f   :  { %v10404_v10 = vld [vmem:[#allocation132_spill] sm:$0xff] }
 0x970   :  { %5332 = vst [vmem:[#allocation3 + $0x58] sm:$0xff] %v5329_v39  ;;  %5376 = vmatprep.mubr.bf16.mxu0 %v5343_v35  ;;  %5417 = vmatprep.mubr.bf16.mxu1 %v5343_v35  ;;  %v10405_v39 = vld [vmem:[#allocation165_spill] sm:$0xff] }
 0x971   :  { %5377 = vmatmul.mubr.bf16.vlgmr.msra.gmra.mrb[80].mxu0 %v9226_v36  ;;  %5418 = vmatmul.mubr.bf16.vlgmr.msra.gmra.mrb[96].mxu1 %v9226_v36 }
 0x972   :  { %5427 = vmatpush1.bf16.msra.mxu0 %v9909_v5  ;;  %5468 = vmatpush1.bf16.msra.mxu1 %v8156_v56 }
 0x973   :  { %5458 = vmatprep.mubr.bf16.mxu0 %v5343_v35  ;;  %5499 = vmatprep.mubr.bf16.mxu1 %v5343_v35  ;;  %v10406_v35 = vld [vmem:[#allocation136_spill] sm:$0xff] }
 0x974   :  { %5428 = vmatprep.subr.bf16.mxu0 %v9910_v60  ;;  %5469 = vmatprep.subr.bf16.mxu1 %v8163_v14 }
 0x976   :  { %5429 = vmatpush1.bf16.msra.mxu0 %v9911_v30  ;;  %5470 = vmatpush1.bf16.msra.mxu1 %v8172_v8 }
 0x977   :  { %5430 = vmatprep.subr.bf16.mxu0 %v9912_v3  ;;  %5471 = vmatprep.subr.bf16.mxu1 %v8176_v42 }
 0x97a   :  { %5431 = vmatpush1.bf16.msra.mxu0 %v9913_v50  ;;  %5472 = vmatpush1.bf16.msra.mxu1 %v8187_v47 }
 0x97b   :  { %5432 = vmatprep.subr.bf16.mxu0 %v9914_v20  ;;  %5473 = vmatprep.subr.bf16.mxu1 %v8194_v41 }
 0x97e   :  { %5433 = vmatpush1.bf16.msra.mxu0 %v9915_v12  ;;  %5474 = vmatpush1.bf16.msra.mxu1 %v8201_v23 }
 0x97f   :  { %5434 = vmatprep.subr.bf16.mxu0 %v9916_v13  ;;  %5475 = vmatprep.subr.bf16.mxu1 %v8205_v40 }
 0x982   :  { %5435 = vmatpush1.bf16.msra.mxu0 %v9917_v2  ;;  %5476 = vmatpush1.bf16.msra.mxu1 %v8215_v38 }
 0x983   :  { %5436 = vmatprep.subr.bf16.mxu0 %v9918_v16  ;;  %5477 = vmatprep.subr.bf16.mxu1 %v8222_v46 }
 0x986   :  { %5437 = vmatpush1.bf16.msra.mxu0 %v9919_v58  ;;  %5478 = vmatpush1.bf16.msra.mxu1 %v8229_v4 }
 0x987   :  { %5438 = vmatprep.subr.bf16.mxu0 %v9920_v62  ;;  %5479 = vmatprep.subr.bf16.mxu1 %v8233_v57 }
 0x98a   :  { %5439 = vmatpush1.bf16.msra.mxu0 %v9921_v18  ;;  %5480 = vmatpush1.bf16.msra.mxu1 %v8237_v21 }
 0x98b   :  { %5440 = vmatprep.subr.bf16.mxu0 %v9922_v33  ;;  %5481 = vmatprep.subr.bf16.mxu1 %v8241_v49 }
 0x98e   :  { %5441 = vmatpush1.bf16.msra.mxu0 %v9923_v11  ;;  %5482 = vmatpush1.bf16.msra.mxu1 %v8245_v28 }
 0x98f   :  { %5442 = vmatprep.subr.bf16.mxu0 %v9924_v48  ;;  %5483 = vmatprep.subr.bf16.mxu1 %v10007_v63 }
 0x992   :  { %5443 = vmatpush1.bf16.msra.mxu0 %v10008_v45  ;;  %5484 = vmatpush1.bf16.msra.mxu1 %v10009_v27 }
 0x993   :  { %5444 = vmatprep.subr.bf16.mxu0 %v9926_v31  ;;  %5485 = vmatprep.subr.bf16.mxu1 %v10010_v22 }
 0x996   :  { %5445 = vmatpush1.bf16.msra.mxu0 %v10011_v26  ;;  %5486 = vmatpush1.bf16.msra.mxu1 %v10012_v25 }
 0x997   :  { %5446 = vmatprep.subr.bf16.mxu0 %v9928_v15  ;;  %5487 = vmatprep.subr.bf16.mxu1 %v10013_v7 }
 0x99a   :  { %5447 = vmatpush1.bf16.msra.mxu0 %v9930_v32  ;;  %5488 = vmatpush1.bf16.msra.mxu1 %v10387_v59 }
 0x99b   :  { %5448 = vmatprep.subr.bf16.mxu0 %v10388_v52  ;;  %5489 = vmatprep.subr.bf16.mxu1 %v10389_v34 }
 0x99e   :  { %5449 = vmatpush1.bf16.msra.mxu0 %v10390_v55  ;;  %5490 = vmatpush1.bf16.msra.mxu1 %v10391_v37 }
 0x99f   :  { %5450 = vmatprep.subr.bf16.mxu0 %v10392_v19  ;;  %5491 = vmatprep.subr.bf16.mxu1 %v10393_v44  ;;  %v10476_v44 = vld [vmem:[#allocation89_spill] sm:$0xff]  ;;  %v10477_v19 = vld [vmem:[#allocation148_spill] sm:$0xff] }
 0x9a2   :  { %5451 = vmatpush1.bf16.msra.mxu0 %v10394_v53  ;;  %5492 = vmatpush1.bf16.msra.mxu1 %v10395_v29  ;;  %v10475_v29 = vld [vmem:[#allocation147_spill] sm:$0xff] }
 0x9a3   :  { %5452 = vmatprep.subr.bf16.mxu0 %v10396_v51  ;;  %5493 = vmatprep.subr.bf16.mxu1 %v10397_v61  ;;  %v10407_v51 = vld [vmem:[#allocation166_spill] sm:$0xff] }
 0x9a4   :  { %v10408_v61 = vld [vmem:[#allocation22_spill] sm:$0xff] }
 0x9a6   :  { %5453 = vmatpush1.bf16.msra.mxu0 %v10398_v0  ;;  %5494 = vmatpush1.bf16.msra.mxu1 %v10399_v17  ;;  %v10409_v0 = vld [vmem:[#allocation59_spill] sm:$0xff] }
 0x9a7   :  { %5454 = vmatprep.subr.bf16.mxu0 %v10400_v6  ;;  %5495 = vmatprep.subr.bf16.mxu1 %v10401_v24  ;;  %v10410_v24 = vld [vmem:[#allocation23_spill] sm:$0xff]  ;;  %v10419_v6 = vld [vmem:[#allocation72_spill] sm:$0xff] }
 0x9a8   :  { %v10474_v17 = vld [vmem:[#allocation87_spill] sm:$0xff] }
 0x9aa   :  { %5455 = vmatpush1.bf16.msra.mxu0 %v10402_v9  ;;  %5496 = vmatpush1.bf16.msra.mxu1 %v10403_v54  ;;  %v10411_v9 = vld [vmem:[#allocation60_spill] sm:$0xff] }
 0x9ab   :  { %5456 = vmatprep.subr.bf16.mxu0 %v10404_v10  ;;  %5497 = vmatprep.subr.bf16.mxu1 %v10405_v39  ;;  %v10412_v54 = vld [vmem:[#allocation24_spill] sm:$0xff]  ;;  %v10414_v39 = vld [vmem:[#allocation25_spill] sm:$0xff] }
 0x9ac   :  { %v10413_v10 = vld [vmem:[#allocation64_spill] sm:$0xff] }
 0x9ae   :  { %5457 = vmatpush1.bf16.msra.mxu0 %v10406_v35  ;;  %5498 = vmatpush1.bf16.msra.mxu1 %v10407_v51  ;;  %v10415_v35 = vld [vmem:[#allocation69_spill] sm:$0xff]  ;;  %v10416_v51 = vld [vmem:[#allocation26_spill] sm:$0xff] }
 0x9af   :  { %5580 = vmatprep.subr.bf16.mxu0 %v10408_v61  ;;  %5621 = vmatprep.subr.bf16.mxu1 %v10409_v0  ;;  %v10417_v61 = vld [vmem:[#allocation71_spill] sm:$0xff] }
 0x9b0   :  { %v10418_v0 = vld [vmem:[#allocation27_spill] sm:$0xff] }
 0x9b1   :  { %5459 = vmatmul.mubr.bf16.vlgmr.msra.gmra.mrb[84].mxu0 %v9226_v36  ;;  %5500 = vmatmul.mubr.bf16.vlgmr.msra.gmra.mrb[100].mxu1 %v9226_v36  ;;  %v10420_v36 = vld [vmem:[#allocation28_spill] sm:$0xff] }
 0x9b2   :  { %5581 = vmatpush1.bf16.msra.mxu0 %v10410_v24  ;;  %5622 = vmatpush1.bf16.msra.mxu1 %v10411_v9  ;;  %v10421_v24 = vld [vmem:[#allocation76_spill] sm:$0xff]  ;;  %v10422_v9 = vld [vmem:[#allocation29_spill] sm:$0xff] }
 0x9b3   :  { %5582 = vmatprep.subr.bf16.mxu0 %v10412_v54  ;;  %5623 = vmatprep.subr.bf16.mxu1 %v10413_v10  ;;  %v10423_v54 = vld [vmem:[#allocation81_spill] sm:$0xff]  ;;  %v10424_v10 = vld [vmem:[#allocation30_spill] sm:$0xff] }
 0x9b6   :  { %5583 = vmatpush1.bf16.msra.mxu0 %v10414_v39  ;;  %5624 = vmatpush1.bf16.msra.mxu1 %v10415_v35  ;;  %v10425_v39 = vld [vmem:[#allocation83_spill] sm:$0xff] }
 0x9b7   :  { %5584 = vmatprep.subr.bf16.mxu0 %v10416_v51  ;;  %5625 = vmatprep.subr.bf16.mxu1 %v10417_v61  ;;  %v10426_v35 = vld [vmem:[#allocation31_spill] sm:$0xff]  ;;  %v10427_v51 = vld [vmem:[#allocation84_spill] sm:$0xff] }
 0x9b8   :  { %v10428_v61 = vld [vmem:[#allocation32_spill] sm:$0xff] }
 0x9ba   :  { %5585 = vmatpush1.bf16.msra.mxu0 %v10418_v0  ;;  %5626 = vmatpush1.bf16.msra.mxu1 %v10419_v6  ;;  %v10429_v0 = vld [vmem:[#allocation88_spill] sm:$0xff]  ;;  %v10430_v6 = vld [vmem:[#allocation33_spill] sm:$0xff] }
 0x9bb   :  { %5586 = vmatprep.subr.bf16.mxu0 %v10420_v36  ;;  %5627 = vmatprep.subr.bf16.mxu1 %v10421_v24  ;;  %v10431_v36 = vld [vmem:[#allocation93_spill] sm:$0xff]  ;;  %v10432_v24 = vld [vmem:[#allocation34_spill] sm:$0xff] }
 0x9be   :  { %5587 = vmatpush1.bf16.msra.mxu0 %v10422_v9  ;;  %5628 = vmatpush1.bf16.msra.mxu1 %v10423_v54  ;;  %v10433_v9 = vld [vmem:[#allocation95_spill] sm:$0xff] }
 0x9bf   :  { %5588 = vmatprep.subr.bf16.mxu0 %v10424_v10  ;;  %5629 = vmatprep.subr.bf16.mxu1 %v10425_v39  ;;  %v10434_v54 = vld [vmem:[#allocation35_spill] sm:$0xff]  ;;  %v10435_v10 = vld [vmem:[#allocation97_spill] sm:$0xff]  ;;  %v10436_v39 = vld [vmem:[#allocation36_spill] sm:$0xff] }
 0x9c2   :  { %5589 = vmatpush1.bf16.msra.mxu0 %v10426_v35  ;;  %5630 = vmatpush1.bf16.msra.mxu1 %v10427_v51  ;;  %v10437_v35 = vld [vmem:[#allocation99_spill] sm:$0xff]  ;;  %v10438_v51 = vld [vmem:[#allocation37_spill] sm:$0xff] }
 0x9c3   :  { %5590 = vmatprep.subr.bf16.mxu0 %v10428_v61  ;;  %5631 = vmatprep.subr.bf16.mxu1 %v10429_v0  ;;  %v10439_v61 = vld [vmem:[#allocation101_spill] sm:$0xff]  ;;  %v10440_v0 = vld [vmem:[#allocation38_spill] sm:$0xff] }
 0x9c6   :  { %5591 = vmatpush1.bf16.msra.mxu0 %v10430_v6  ;;  %5632 = vmatpush1.bf16.msra.mxu1 %v10431_v36  ;;  %v10441_v6 = vld [vmem:[#allocation103_spill] sm:$0xff] }
 0x9c7   :  { %5592 = vmatprep.subr.bf16.mxu0 %v10432_v24  ;;  %5633 = vmatprep.subr.bf16.mxu1 %v10433_v9  ;;  %v10442_v36 = vld [vmem:[#allocation39_spill] sm:$0xff]  ;;  %v10443_v24 = vld [vmem:[#allocation105_spill] sm:$0xff]  ;;  %v10444_v9 = vld [vmem:[#allocation40_spill] sm:$0xff] }
 0x9ca   :  { %5593 = vmatpush1.bf16.msra.mxu0 %v10434_v54  ;;  %5634 = vmatpush1.bf16.msra.mxu1 %v10435_v10  ;;  %v10445_v54 = vld [vmem:[#allocation107_spill] sm:$0xff]  ;;  %v10446_v10 = vld [vmem:[#allocation41_spill] sm:$0xff] }
 0x9cb   :  { %5594 = vmatprep.subr.bf16.mxu0 %v10436_v39  ;;  %5635 = vmatprep.subr.bf16.mxu1 %v10437_v35  ;;  %v10447_v39 = vld [vmem:[#allocation109_spill] sm:$0xff]  ;;  %v10448_v35 = vld [vmem:[#allocation42_spill] sm:$0xff] }
 0x9ce   :  { %5595 = vmatpush1.bf16.msra.mxu0 %v10438_v51  ;;  %5636 = vmatpush1.bf16.msra.mxu1 %v10439_v61  ;;  %v10449_v51 = vld [vmem:[#allocation111_spill] sm:$0xff] }
 0x9cf   :  { %5596 = vmatprep.subr.bf16.mxu0 %v10440_v0  ;;  %5637 = vmatprep.subr.bf16.mxu1 %v10441_v6  ;;  %v10450_v61 = vld [vmem:[#allocation43_spill] sm:$0xff]  ;;  %v10451_v0 = vld [vmem:[#allocation113_spill] sm:$0xff]  ;;  %v10452_v6 = vld [vmem:[#allocation44_spill] sm:$0xff] }
 0x9d2   :  { %5597 = vmatpush1.bf16.msra.mxu0 %v10442_v36  ;;  %5638 = vmatpush1.bf16.msra.mxu1 %v10443_v24  ;;  %v10453_v36 = vld [vmem:[#allocation115_spill] sm:$0xff]  ;;  %v10454_v24 = vld [vmem:[#allocation45_spill] sm:$0xff] }
 0x9d3   :  { %5598 = vmatprep.subr.bf16.mxu0 %v10444_v9  ;;  %5639 = vmatprep.subr.bf16.mxu1 %v10445_v54  ;;  %v10455_v9 = vld [vmem:[#allocation117_spill] sm:$0xff]  ;;  %v10456_v54 = vld [vmem:[#allocation46_spill] sm:$0xff] }
 0x9d6   :  { %5599 = vmatpush1.bf16.msra.mxu0 %v10446_v10  ;;  %5640 = vmatpush1.bf16.msra.mxu1 %v10447_v39  ;;  %v10457_v10 = vld [vmem:[#allocation119_spill] sm:$0xff] }
 0x9d7   :  { %5600 = vmatprep.subr.bf16.mxu0 %v10448_v35  ;;  %5641 = vmatprep.subr.bf16.mxu1 %v10449_v51  ;;  %v10458_v39 = vld [vmem:[#allocation47_spill] sm:$0xff]  ;;  %v10459_v35 = vld [vmem:[#allocation121_spill] sm:$0xff]  ;;  %v10460_v51 = vld [vmem:[#allocation48_spill] sm:$0xff] }
 0x9da   :  { %5601 = vmatpush1.bf16.msra.mxu0 %v10450_v61  ;;  %5642 = vmatpush1.bf16.msra.mxu1 %v10451_v0  ;;  %v10461_v61 = vld [vmem:[#allocation123_spill] sm:$0xff]  ;;  %v10462_v0 = vld [vmem:[#allocation49_spill] sm:$0xff] }
 0x9db   :  { %5602 = vmatprep.subr.bf16.mxu0 %v10452_v6  ;;  %5643 = vmatprep.subr.bf16.mxu1 %v10453_v36  ;;  %v10463_v6 = vld [vmem:[#allocation125_spill] sm:$0xff]  ;;  %v10464_v36 = vld [vmem:[#allocation50_spill] sm:$0xff] }
 0x9de   :  { %5603 = vmatpush1.bf16.msra.mxu0 %v10454_v24  ;;  %5644 = vmatpush1.bf16.msra.mxu1 %v10455_v9  ;;  %v10465_v24 = vld [vmem:[#allocation127_spill] sm:$0xff] }
 0x9df   :  { %5604 = vmatprep.subr.bf16.mxu0 %v10456_v54  ;;  %5645 = vmatprep.subr.bf16.mxu1 %v10457_v10  ;;  %v10466_v9 = vld [vmem:[#allocation51_spill] sm:$0xff]  ;;  %v10468_v10 = vld [vmem:[#allocation52_spill] sm:$0xff] }
 0x9e0   :  { %v10467_v54 = vld [vmem:[#allocation131_spill] sm:$0xff] }
 0x9e2   :  { %5605 = vmatpush1.bf16.msra.mxu0 %v10458_v39  ;;  %5646 = vmatpush1.bf16.msra.mxu1 %v10459_v35  ;;  %v10469_v39 = vld [vmem:[#allocation134_spill] sm:$0xff]  ;;  %v10470_v35 = vld [vmem:[#allocation56_spill] sm:$0xff] }
 0x9e3   :  { %5606 = vmatprep.subr.bf16.mxu0 %v10460_v51  ;;  %5647 = vmatprep.subr.bf16.mxu1 %v10461_v61  ;;  %v10471_v51 = vld [vmem:[#allocation137_spill] sm:$0xff]  ;;  %v10472_v61 = vld [vmem:[#allocation58_spill] sm:$0xff] }
 0x9e6   :  { %5607 = vmatpush1.bf16.msra.mxu0 %v10462_v0  ;;  %5648 = vmatpush1.bf16.msra.mxu1 %v10463_v6  ;;  %v10473_v0 = vld [vmem:[#allocation138_spill] sm:$0xff] }
 0x9e7   :  { %5608 = vmatprep.subr.bf16.mxu0 %v10464_v36  ;;  %5649 = vmatprep.subr.bf16.mxu1 %v10465_v24 }
 0x9ea   :  { %5609 = vmatpush1.bf16.msra.mxu0 %v10466_v9  ;;  %5650 = vmatpush1.bf16.msra.mxu1 %v10467_v54 }
 0x9eb   :  { %5610 = vmatprep.subr.bf16.mxu0 %v10468_v10  ;;  %5651 = vmatprep.subr.bf16.mxu1 %v10469_v39 }
 0x9ee   :  { %5611 = vmatpush1.bf16.msra.mxu0 %v10470_v35  ;;  %5652 = vmatpush1.bf16.msra.mxu1 %v10471_v51 }
 0x9ef   :  { %5662 = vmatprep.subr.bf16.mxu0 %v10472_v61  ;;  %5703 = vmatprep.subr.bf16.mxu1 %v10473_v0 }
 0xa44   :  { %v5378_v6 = vpop.f32.mrb[80].mxu0  ;;  %v5419_v36 = vpop.f32.mrb[96].mxu1 }
 0xa45   :  { %v5508_v24 = vadd.f32 %v10474_v17, %v5378_v6  ;;  %v5510_v9 = vadd.f32 %v10475_v29, %v5419_v36  ;;  %v5380_v53 = vpop.f32.mrb[81].mxu0  ;;  %v5421_v54 = vpop.f32.mrb[97].mxu1 }
 0xa46   :  { %v5509_v10 = vadd.f32 %v10476_v44, %v5380_v53  ;;  %v5511_v39 = vadd.f32 %v10477_v19, %v5421_v54  ;;  %v5382_v37 = vpop.f32.mrb[82].mxu0  ;;  %v5423_v35 = vpop.f32.mrb[98].mxu1  ;;  %v10479_v54 = vld [vmem:[#allocation189_spill] sm:$0xff] }
 0xa47   :  { %v5383_v55 = vpop.f32.mrb[83].mxu0  ;;  %v5424_v51 = vpop.f32.mrb[99].mxu1  ;;  %v6575_v34 = vmul.f32 -1.442695, %v5508_v24  ;;  %v6577_v61 = vmul.f32 -1.442695, %v5510_v9 }
 0xa48   :  { %v6576_v52 = vmul.f32 -1.442695, %v5509_v10  ;;  %v6578_v0 = vmul.f32 -1.442695, %v5511_v39  ;;  %v10478_v24 = vld [vmem:[#allocation177_spill] sm:$0xff]  ;;  %v10480_v39 = vld [vmem:[#allocation178_spill] sm:$0xff] }
 0xa49   :  { %7087 = vpow2.f32 %v6575_v34  ;;  %v10481_v51 = vld [vmem:[#allocation190_spill] sm:$0xff] }
 0xa4a   :  { %7089 = vpow2.f32 %v6577_v61 }
 0xa4b   :  { %7091 = vpow2.f32 %v6576_v52 }
 0xa4c   :  { %7093 = vpow2.f32 %v6578_v0 }
 0xa53   :  { %v7088_v17 = vpop.eup %7087 }
 0xa54   :  { %v7090_v29 = vpop.eup %7089  ;;  %v5522_v59 = vadd.f32 1.0, %v7088_v17 }
 0xa55   :  { %v7092_v6 = vpop.eup %7091  ;;  %v5534_v44 = vadd.f32 1.0, %v7090_v29 }
 0xa56   :  { %v7094_v36 = vpop.eup %7093  ;;  %v5523_v53 = vadd.f32 1.0, %v7092_v6  ;;  %7095 = vrcp.f32 %v5522_v59 }
 0xa57   :  { %v5535_v19 = vadd.f32 1.0, %v7094_v36  ;;  %7097 = vrcp.f32 %v5534_v44 }
 0xa58   :  { %7099 = vrcp.f32 %v5523_v53 }
 0xa59   :  { %7101 = vrcp.f32 %v5535_v19 }
 0xa60   :  { %v7096_v44 = vpop.eup %7095 }
 0xa61   :  { %v7098_v53 = vpop.eup %7097 }
 0xa84   :  { %v5460_v55 = vpop.f32.mrb[84].mxu0  ;;  %v5501_v37 = vpop.f32.mrb[100].mxu1 }
 0xa85   :  { %v5512_v9 = vadd.f32 %v10478_v24, %v5460_v55  ;;  %v5514_v34 = vadd.f32 %v10479_v54, %v5501_v37  ;;  %v5462_v10 = vpop.f32.mrb[85].mxu0  ;;  %v5503_v52 = vpop.f32.mrb[101].mxu1  ;;  %v5554_v54 = vmul.f32 %v7098_v53, %v9220_v1 }
 0xa86   :  { %v5513_v35 = vadd.f32 %v10480_v39, %v5462_v10  ;;  %v5515_v61 = vadd.f32 %v10481_v51, %v5503_v52  ;;  %v5464_v0 = vpop.f32.mrb[86].mxu0  ;;  %v5505_v17 = vpop.f32.mrb[102].mxu1 }
 0xa87   :  { %7103 = vtanh.f32 %v5512_v9  ;;  %v6579_v29 = vmul.f32 -1.442695, %v5514_v34  ;;  %v5465_v59 = vpop.f32.mrb[87].mxu0  ;;  %v5506_v6 = vpop.f32.mrb[103].mxu1 }
 0xa88   :  { %7105 = vtanh.f32 %v5513_v35  ;;  %v6580_v36 = vmul.f32 -1.442695, %v5515_v61  ;;  %v7100_v55 = vpop.eup %7099 }
 0xa89   :  { %7107 = vpow2.f32 %v6579_v29  ;;  %v7102_v37 = vpop.eup %7101 }
 0xa8a   :  { %7109 = vpow2.f32 %v6580_v36  ;;  %v5555_v39 = vmul.f32 %v7102_v37, %v9222_v43  ;;  %v10504_v37 = vld [vmem:[#allocation149_spill] sm:$0xff] }
 0xa91   :  { %v7104_v24 = vpop.eup %7103 }
 0xa92   :  { %v7106_v19 = vpop.eup %7105  ;;  %v5556_v10 = vmul.f32 %v7104_v24, %v7096_v44 }
 0xa93   :  { %v7108_v52 = vpop.eup %7107  ;;  %v5557_v9 = vmul.f32 %v7106_v19, %v7100_v55 }
 0xa94   :  { %v7110_v34 = vpop.eup %7109  ;;  %v9370_v51 = vadd.f32 %v5556_v10, %v5554_v54  ;;  %v5548_v35 = vadd.f32 1.0, %v7108_v52  ;;  %v10505_v10 = vld [vmem:[#allocation92_spill] sm:$0xff] }
 0xa95   :  { %v9372_v61 = vadd.f32 %v5557_v9, %v5555_v39  ;;  %v5549_v0 = vadd.f32 1.0, %v7110_v34  ;;  %v10506_v39 = vld [vmem:[#allocation150_spill] sm:$0xff] }
 0xa96   :  { %7111 = vtanh.f32 %v9370_v51 }
 0xa97   :  { %7113 = vrcp.f32 %v5548_v35 }
 0xa98   :  { %7115 = vtanh.f32 %v9372_v61 }
 0xa99   :  { %7117 = vrcp.f32 %v5549_v0 }
 0xaa0   :  { %v7112_v17 = vpop.eup %7111 }
 0xaa1   :  { %v7114_v1 = vpop.eup %7113 }
 0xaa2   :  { %v7116_v29 = vpop.eup %7115  ;;  %v5562_v59 = vmul.f32 %v7114_v1, %v7112_v17 }
 0xaa3   :  { %v7118_v6 = vpop.eup %7117 }
 0xaa4   :  { %v5563_v43 = vmul.f32 %v7118_v6, %v7116_v29  ;;  %v5564_v36 = vmax.f32 %v5562_v59, 0.0  ;;  %v9376_v55 = vpack.c.bf16 %v5562_v59, %v5562_v59 }
 0xaa6   :  { %v5565_v44 = vmax.f32 %v5563_v43, 0.0  ;;  %v5579_v53 = vpack.c.bf16 %v5563_v43, %v5563_v43  ;;  %5567 = vst [vmem:[#allocation3 + $0x60] sm:$0xff] %v5564_v36 }
 0xaa8   :  { %5568 = vst [vmem:[#allocation3 + $0x68] sm:$0xff] %v5565_v44  ;;  %5612 = vmatprep.mubr.bf16.mxu0 %v5579_v53  ;;  %5653 = vmatprep.mubr.bf16.mxu1 %v5579_v53 }
 0xaa9   :  { %5613 = vmatmul.mubr.bf16.vlgmr.msra.gmra.mrb[88].mxu0 %v9376_v55  ;;  %5654 = vmatmul.mubr.bf16.vlgmr.msra.gmra.mrb[104].mxu1 %v9376_v55 }
 0xaaa   :  { %5663 = vmatpush1.bf16.msra.mxu0 %v9909_v5  ;;  %5704 = vmatpush1.bf16.msra.mxu1 %v8156_v56  ;;  %v10484_v56 = vld [vmem:[#allocation157_spill] sm:$0xff]  ;;  %v10497_v5 = vld [vmem:[#allocation130_spill] sm:$0xff] }
 0xaab   :  { %5694 = vmatprep.mubr.bf16.mxu0 %v5579_v53  ;;  %5735 = vmatprep.mubr.bf16.mxu1 %v5579_v53 }
 0xaac   :  { %5664 = vmatprep.subr.bf16.mxu0 %v9910_v60  ;;  %5705 = vmatprep.subr.bf16.mxu1 %v8163_v14  ;;  %v10485_v14 = vld [vmem:[#allocation116_spill] sm:$0xff] }
 0xaad   :  { %v10498_v60 = vld [vmem:[#allocation164_spill] sm:$0xff] }
 0xaae   :  { %5665 = vmatpush1.bf16.msra.mxu0 %v9911_v30  ;;  %5706 = vmatpush1.bf16.msra.mxu1 %v8172_v8  ;;  %v10486_v8 = vld [vmem:[#allocation158_spill] sm:$0xff]  ;;  %v10499_v30 = vld [vmem:[#allocation132_spill] sm:$0xff] }
 0xaaf   :  { %5666 = vmatprep.subr.bf16.mxu0 %v9912_v3  ;;  %5707 = vmatprep.subr.bf16.mxu1 %v8176_v42  ;;  %v10487_v42 = vld [vmem:[#allocation118_spill] sm:$0xff]  ;;  %v10500_v3 = vld [vmem:[#allocation165_spill] sm:$0xff] }
 0xab2   :  { %5667 = vmatpush1.bf16.msra.mxu0 %v9913_v50  ;;  %5708 = vmatpush1.bf16.msra.mxu1 %v8187_v47  ;;  %v10482_v47 = vld [vmem:[#allocation156_spill] sm:$0xff] }
 0xab3   :  { %5668 = vmatprep.subr.bf16.mxu0 %v9914_v20  ;;  %5709 = vmatprep.subr.bf16.mxu1 %v8194_v41  ;;  %v10488_v41 = vld [vmem:[#allocation159_spill] sm:$0xff]  ;;  %v10501_v50 = vld [vmem:[#allocation136_spill] sm:$0xff]  ;;  %v10502_v20 = vld [vmem:[#allocation166_spill] sm:$0xff] }
 0xab6   :  { %5669 = vmatpush1.bf16.msra.mxu0 %v9915_v12  ;;  %5710 = vmatpush1.bf16.msra.mxu1 %v8201_v23  ;;  %v10489_v23 = vld [vmem:[#allocation120_spill] sm:$0xff]  ;;  %v6879_v12 = vld [vmem:[#allocation12 + $0x40] sm:$0xff]  }
 0xab7   :  { %5670 = vmatprep.subr.bf16.mxu0 %v9916_v13  ;;  %5711 = vmatprep.subr.bf16.mxu1 %v8205_v40  ;;  %v10490_v40 = vld [vmem:[#allocation160_spill] sm:$0xff]  ;;  %v6880_v13 = vld [vmem:[#allocation12] sm:$0xff]  }
 0xaba   :  { %5671 = vmatpush1.bf16.msra.mxu0 %v9917_v2  ;;  %5712 = vmatpush1.bf16.msra.mxu1 %v8215_v38  ;;  %v10491_v38 = vld [vmem:[#allocation122_spill] sm:$0xff] }
 0xabb   :  { %5672 = vmatprep.subr.bf16.mxu0 %v9918_v16  ;;  %5713 = vmatprep.subr.bf16.mxu1 %v8222_v46  ;;  %v10492_v46 = vld [vmem:[#allocation161_spill] sm:$0xff]  ;;  %v6881_v2 = vld [vmem:[#allocation12 + $0x48] sm:$0xff]  }
 0xabc   :  { %v6882_v16 = vld [vmem:[#allocation12 + $0x8] sm:$0xff]  }
 0xabe   :  { %5673 = vmatpush1.bf16.msra.mxu0 %v9919_v58  ;;  %5714 = vmatpush1.bf16.msra.mxu1 %v8229_v4  ;;  %v10493_v4 = vld [vmem:[#allocation124_spill] sm:$0xff] }
 0xabf   :  { %5674 = vmatprep.subr.bf16.mxu0 %v9920_v62  ;;  %5715 = vmatprep.subr.bf16.mxu1 %v8233_v57  ;;  %v10494_v57 = vld [vmem:[#allocation162_spill] sm:$0xff]  ;;  %v6883_v58 = vld [vmem:[#allocation12 + $0x50] sm:$0xff]  }
 0xac0   :  { %v6884_v62 = vld [vmem:[#allocation12 + $0x10] sm:$0xff]  }
 0xac2   :  { %5675 = vmatpush1.bf16.msra.mxu0 %v9921_v18  ;;  %5716 = vmatpush1.bf16.msra.mxu1 %v8237_v21  ;;  %v10495_v21 = vld [vmem:[#allocation126_spill] sm:$0xff]  ;;  %v6885_v18 = vld [vmem:[#allocation12 + $0x58] sm:$0xff]  }
 0xac3   :  { %5676 = vmatprep.subr.bf16.mxu0 %v9922_v33  ;;  %5717 = vmatprep.subr.bf16.mxu1 %v8241_v49  ;;  %v10496_v49 = vld [vmem:[#allocation163_spill] sm:$0xff]  ;;  %v6886_v33 = vld [vmem:[#allocation12 + $0x18] sm:$0xff]  }
 0xac6   :  { %5677 = vmatpush1.bf16.msra.mxu0 %v9923_v11  ;;  %5718 = vmatpush1.bf16.msra.mxu1 %v8245_v28  ;;  %v10483_v28 = vld [vmem:[#allocation114_spill] sm:$0xff] }
 0xac7   :  { %5678 = vmatprep.subr.bf16.mxu0 %v9924_v48  ;;  %5719 = vmatprep.subr.bf16.mxu1 %v10007_v63  ;;  %v6887_v11 = vld [vmem:[#allocation12 + $0x60] sm:$0xff]   ;;  %v6892_v63 = vld [vmem:[#allocation12 + $0x30] sm:$0xff]  }
 0xac8   :  { %v6888_v48 = vld [vmem:[#allocation12 + $0x20] sm:$0xff]  }
 0xaca   :  { %5679 = vmatpush1.bf16.msra.mxu0 %v10008_v45  ;;  %5720 = vmatpush1.bf16.msra.mxu1 %v10009_v27  ;;  %v6893_v45 = vld [vmem:[#allocation12 + $0x78] sm:$0xff]  }
 0xacb   :  { %5680 = vmatprep.subr.bf16.mxu0 %v9926_v31  ;;  %5721 = vmatprep.subr.bf16.mxu1 %v10010_v22  ;;  %v6889_v31 = vld [vmem:[#allocation12 + $0x68] sm:$0xff]   ;;  %v6894_v27 = vld [vmem:[#allocation12 + $0x38] sm:$0xff]  }
 0xace   :  { %5681 = vmatpush1.bf16.msra.mxu0 %v10011_v26  ;;  %5722 = vmatpush1.bf16.msra.mxu1 %v10012_v25  ;;  %v10503_v25 = vld [vmem:[#allocation90_spill] sm:$0xff] }
 0xacf   :  { %5682 = vmatprep.subr.bf16.mxu0 %v9928_v15  ;;  %5723 = vmatprep.subr.bf16.mxu1 %v10013_v7  ;;  %v6890_v15 = vld [vmem:[#allocation12 + $0x28] sm:$0xff]  }
 0xad2   :  { %5683 = vmatpush1.bf16.msra.mxu0 %v9930_v32  ;;  %5724 = vmatpush1.bf16.msra.mxu1 %v10482_v47  ;;  %v6891_v32 = vld [vmem:[#allocation12 + $0x70] sm:$0xff]  }
 0xad3   :  { %5684 = vmatprep.subr.bf16.mxu0 %v10483_v28  ;;  %5725 = vmatprep.subr.bf16.mxu1 %v10484_v56 }
 0xad6   :  { %5685 = vmatpush1.bf16.msra.mxu0 %v10485_v14  ;;  %5726 = vmatpush1.bf16.msra.mxu1 %v10486_v8 }
 0xad7   :  { %5686 = vmatprep.subr.bf16.mxu0 %v10487_v42  ;;  %5727 = vmatprep.subr.bf16.mxu1 %v10488_v41  ;;  %v10507_v42 = vld [vmem:[#allocation179_spill] sm:$0xff] }
 0xada   :  { %5687 = vmatpush1.bf16.msra.mxu0 %v10489_v23  ;;  %5728 = vmatpush1.bf16.msra.mxu1 %v10490_v40  ;;  %v10508_v23 = vld [vmem:[#allocation191_spill] sm:$0xff] }
 0xadb   :  { %5688 = vmatprep.subr.bf16.mxu0 %v10491_v38  ;;  %5729 = vmatprep.subr.bf16.mxu1 %v10492_v46 }
 0xade   :  { %5689 = vmatpush1.bf16.msra.mxu0 %v10493_v4  ;;  %5730 = vmatpush1.bf16.msra.mxu1 %v10494_v57  ;;  %v10509_v4 = vld [vmem:[#allocation180_spill] sm:$0xff] }
 0xadf   :  { %5690 = vmatprep.subr.bf16.mxu0 %v10495_v21  ;;  %5731 = vmatprep.subr.bf16.mxu1 %v10496_v49  ;;  %v10510_v21 = vld [vmem:[#allocation192_spill] sm:$0xff] }
 0xae2   :  { %5691 = vmatpush1.bf16.msra.mxu0 %v10497_v5  ;;  %5732 = vmatpush1.bf16.msra.mxu1 %v10498_v60 }
 0xae3   :  { %5692 = vmatprep.subr.bf16.mxu0 %v10499_v30  ;;  %5733 = vmatprep.subr.bf16.mxu1 %v10500_v3 }
 0xae6   :  { %5693 = vmatpush1.bf16.msra.mxu0 %v10501_v50  ;;  %5734 = vmatpush1.bf16.msra.mxu1 %v10502_v20 }
 0xae7   :  { %6619 = vmatprep.subr.bf16.mxu0 %v6879_v12 }
 0xae9   :  { %5695 = vmatmul.mubr.bf16.vlgmr.msra.gmra.mrb[92].mxu0 %v9376_v55  ;;  %5736 = vmatmul.mubr.bf16.vlgmr.msra.gmra.mrb[108].mxu1 %v9376_v55 }
 0xaea   :  { %6620 = vmatpush3.bf16.msra.mxu0 %v6880_v13 }
 0xaeb   :  { %6621 = vmatprep.subr.bf16.mxu0 %v6881_v2 }
 0xaee   :  { %6622 = vmatpush3.bf16.msra.mxu0 %v6882_v16 }
 0xaef   :  { %6623 = vmatprep.subr.bf16.mxu0 %v6883_v58 }
 0xaf2   :  { %6624 = vmatpush3.bf16.msra.mxu0 %v6884_v62 }
 0xaf3   :  { %6625 = vmatprep.subr.bf16.mxu0 %v6885_v18 }
 0xaf6   :  { %6626 = vmatpush3.bf16.msra.mxu0 %v6886_v33 }
 0xaf7   :  { %6627 = vmatprep.subr.bf16.mxu0 %v6887_v11 }
 0xafa   :  { %6628 = vmatpush3.bf16.msra.mxu0 %v6888_v48 }
 0xafb   :  { %6629 = vmatprep.subr.bf16.mxu0 %v6889_v31 }
 0xafe   :  { %6630 = vmatpush3.bf16.msra.mxu0 %v6890_v15 }
 0xaff   :  { %6631 = vmatprep.subr.bf16.mxu0 %v6891_v32 }
 0xb02   :  { %6632 = vmatpush3.bf16.msra.mxu0 %v6892_v63 }
 0xb03   :  { %6633 = vmatprep.subr.bf16.mxu0 %v6893_v45 }
 0xb06   :  { %6634 = vmatpush3.bf16.msra.mxu0 %v6894_v27 }
 0xb7c   :  { %v5614_v22 = vpop.f32.mrb[88].mxu0  ;;  %v5655_v26 = vpop.f32.mrb[104].mxu1 }
 0xb7d   :  { %v5744_v7 = vadd.f32 %v10503_v25, %v5614_v22  ;;  %v5746_v24 = vadd.f32 %v10504_v37, %v5655_v26  ;;  %v5616_v19 = vpop.f32.mrb[89].mxu0  ;;  %v5657_v54 = vpop.f32.mrb[105].mxu1 }
 0xb7e   :  { %v5745_v52 = vadd.f32 %v10505_v10, %v5616_v19  ;;  %v5747_v9 = vadd.f32 %v10506_v39, %v5657_v54  ;;  %v5618_v34 = vpop.f32.mrb[90].mxu0  ;;  %v5659_v35 = vpop.f32.mrb[106].mxu1 }
 0xb7f   :  { %v5619_v0 = vpop.f32.mrb[91].mxu0  ;;  %v5660_v17 = vpop.f32.mrb[107].mxu1  ;;  %v6581_v1 = vmul.f32 -1.442695, %v5744_v7  ;;  %v6583_v29 = vmul.f32 -1.442695, %v5746_v24 }
 0xb80   :  { %v6582_v59 = vmul.f32 -1.442695, %v5745_v52  ;;  %v6584_v6 = vmul.f32 -1.442695, %v5747_v9 }
 0xb81   :  { %7119 = vpow2.f32 %v6581_v1 }
 0xb82   :  { %7121 = vpow2.f32 %v6583_v29 }
 0xb83   :  { %7123 = vpow2.f32 %v6582_v59  ;;  %v6595_v59 = vld [vmem:[#allocation14] ss:$0 sm:$0xff] }
 0xb84   :  { %7125 = vpow2.f32 %v6584_v6 }
 0xb8b   :  { %v7120_v43 = vpop.eup %7119 }
 0xb8c   :  { %v7122_v36 = vpop.eup %7121  ;;  %v5758_v55 = vadd.f32 1.0, %v7120_v43 }
 0xb8d   :  { %v7124_v44 = vpop.eup %7123  ;;  %v5770_v47 = vadd.f32 1.0, %v7122_v36 }
 0xb8e   :  { %v7126_v53 = vpop.eup %7125  ;;  %v5759_v28 = vadd.f32 1.0, %v7124_v44  ;;  %7127 = vrcp.f32 %v5758_v55  ;;  %v6612_v55 = vld [vmem:[#allocation15] ss:$0 sm:$0xff] }
 0xb8f   :  { %v5771_v56 = vadd.f32 1.0, %v7126_v53  ;;  %7129 = vrcp.f32 %v5770_v47 }
 0xb90   :  { %7131 = vrcp.f32 %v5759_v28 }
 0xb91   :  { %7133 = vrcp.f32 %v5771_v56 }
 0xb98   :  { %v7128_v12 = vpop.eup %7127 }
 0xb99   :  { %v7130_v13 = vpop.eup %7129 }
 0xb9a   :  { %v7132_v2 = vpop.eup %7131  ;;  %v5790_v18 = vmul.f32 %v7130_v13, %v9370_v51 }
 0xb9b   :  { %v7134_v16 = vpop.eup %7133 }
 0xb9c   :  { %v5791_v48 = vmul.f32 %v7134_v16, %v9372_v61 }
 0xbbc   :  { %v5696_v14 = vpop.f32.mrb[92].mxu0  ;;  %v5737_v8 = vpop.f32.mrb[108].mxu1 }
 0xbbd   :  { %v5748_v41 = vadd.f32 %v10507_v42, %v5696_v14  ;;  %v5750_v40 = vadd.f32 %v10508_v23, %v5737_v8  ;;  %v5698_v38 = vpop.f32.mrb[93].mxu0  ;;  %v5739_v46 = vpop.f32.mrb[109].mxu1 }
 0xbbe   :  { %v5749_v57 = vadd.f32 %v10509_v4, %v5698_v38  ;;  %v5751_v49 = vadd.f32 %v10510_v21, %v5739_v46  ;;  %v5700_v5 = vpop.f32.mrb[94].mxu0  ;;  %v5741_v60 = vpop.f32.mrb[110].mxu1  ;;  %v6030_v21 = vstv %s9467_s1 }
 0xbbf   :  { %7135 = vtanh.f32 %v5748_v41  ;;  %v6585_v30 = vmul.f32 -1.442695, %v5750_v40  ;;  %v5701_v3 = vpop.f32.mrb[95].mxu0  ;;  %v5742_v50 = vpop.f32.mrb[111].mxu1 }
 0xbc0   :  { %7137 = vtanh.f32 %v5749_v57  ;;  %v6586_v20 = vmul.f32 -1.442695, %v5751_v49 }
 0xbc1   :  { %7139 = vpow2.f32 %v6585_v30 }
 0xbc2   :  { %7141 = vpow2.f32 %v6586_v20 }
 0xbc9   :  { %v7136_v58 = vpop.eup %7135 }
 0xbca   :  { %v7138_v62 = vpop.eup %7137  ;;  %v5792_v33 = vmul.f32 %v7136_v58, %v7128_v12 }
 0xbcb   :  { %v7140_v11 = vpop.eup %7139  ;;  %v5793_v31 = vmul.f32 %v7138_v62, %v7132_v2 }
 0xbcc   :  { %v7142_v15 = vpop.eup %7141  ;;  %v5794_v32 = vadd.f32 %v5792_v33, %v5790_v18  ;;  %v5784_v63 = vadd.f32 1.0, %v7140_v11 }
 0xbcd   :  { %v5795_v45 = vadd.f32 %v5793_v31, %v5791_v48  ;;  %v5785_v27 = vadd.f32 1.0, %v7142_v15 }
 0xbce   :  { %7143 = vtanh.f32 %v5794_v32 }
 0xbcf   :  { %7145 = vrcp.f32 %v5784_v63 }
 0xbd0   :  { %7147 = vtanh.f32 %v5795_v45 }
 0xbd1   :  { %7149 = vrcp.f32 %v5785_v27 }
 0xbd8   :  { %v7144_v22 = vpop.eup %7143 }
 0xbd9   :  { %v7146_v26 = vpop.eup %7145 }
 0xbda   :  { %v7148_v25 = vpop.eup %7147  ;;  %v5798_v51 = vmul.f32 %v7146_v26, %v7144_v22 }
 0xbdb   :  { %v7150_v7 = vpop.eup %7149 }
 0xbdc   :  { %v5800_v37 = vmax.f32 %v5798_v51, 0.0  ;;  %v5799_v61 = vmul.f32 %v7150_v7, %v7148_v25 }
 0xbde   :  { %5803 = vst [vmem:[#allocation3 + $0x70] sm:$0xff] %v5800_v37  ;;  %v5801_v24 = vmax.f32 %v5799_v61, 0.0 }
 0xbe0   :  { %5804 = vst [vmem:[#allocation3 + $0x78] sm:$0xff] %v5801_v24 }
 0xbe7   :  { %v5810_v19 = vld [vmem:[%s5808_s24 + $0x8] sm:$0xff]  ;;  %v5809_v10 = vld [vmem:[%s5808_s24] sm:$0xff] }
 0xbe8   :  { %v5816_v54 = vld [vmem:[%s5814_s25 + $0x8] sm:$0xff]  ;;  %v5815_v39 = vld [vmem:[%s5814_s25] sm:$0xff] }
 0xbe9   :  { %v5824_v52 = vpack.c.bf16 %v5816_v54, %v5810_v19  ;;  %v5822_v9 = vld [vmem:[%s5820_s28 + $0x8] sm:$0xff]  ;;  %v5823_v34 = vpack.c.bf16 %v5815_v39, %v5809_v10  ;;  %v5821_v0 = vld [vmem:[%s5820_s28] sm:$0xff] }
 0xbea   :  { %v5826_v35 = vpack.c.bf16 %v5822_v9, %v5822_v9  ;;  %v5825_v17 = vpack.c.bf16 %v5821_v0, %v5821_v0 }
 0xbeb   :  { %5994 = vmatprep.mubr.bf16.mxu0 %v5824_v52 }
 0xbec   :  { %5995 = vmatmul.mubr.bf16.vlgmr.msra.gmra.mrb[96].mxu0 %v5823_v34 }
 0xbed   :  { %6002 = vmatprep.mubr.bf16.mxu0 %v5826_v35 }
 0xbf4   :  { %6003 = vmatmul.mubr.bf16.gmra.mrb[100].mxu0 %v5825_v17 }
 0xcbf   :  { %v6635_v1 = vpop.f32.mrb[96].mxu0 }
 0xcc0   :  { %v6636_v29 = vpop.f32.mrb[97].mxu0 }
 0xcc1   :  { %v6637_v6 = vadd.f32 %v6636_v29, %v6635_v1  ;;  %v6638_v43 = vpop.f32.mrb[98].mxu0 }
 0xcc2   :  { %v6639_v36 = vpop.f32.mrb[99].mxu0 }
 0xcc3   :  { %v6640_v44 = vadd.f32 %v6639_v36, %v6638_v43  ;;  %v5997_v53 = vadd.f32 %v6637_v6, %v6595_v59 }
 0xcc5   :  { %v6000_v47 = vadd.f32 %v6640_v44, %v6595_v59  ;;  %v6010_v28 = vmax.f32 %v5997_v53, 0.0 }
 0xcc7   :  { %v6011_v56 = vmax.f32 %v6000_v47, 0.0  ;;  %v6641_v14 = vpop.f32.mrb[100].mxu0  ;;  %v6020_v8 = vmul.f32 %v6612_v55, %v6010_v28 }
 0xcc8   :  { %v6642_v42 = vpop.f32.mrb[101].mxu0 }
 0xcc9   :  { %v6643_v41 = vadd.f32 %v6642_v42, %v6641_v14  ;;  %v6644_v23 = vpop.f32.mrb[102].mxu0  ;;  %6023 = vadd.xlane.f32.xlu0 %v6020_v8  ;;  %v6021_v38 = vmul.f32 %v6612_v55, %v6011_v56 }
 0xcca   :  { %v6645_v40 = vpop.f32.mrb[103].mxu0 }
 0xccb   :  { %v6005_v46 = vadd.f32 %v6643_v41, %v6595_v59 }
 0xccd   :  { %6025 = vadd.xlane.f32.xlu0 %v6021_v38  ;;  %v6012_v4 = vmax.f32 %v6005_v46, 0.0 }
 0xccf   :  { %v6022_v57 = vmul.f32 %v6612_v55, %v6012_v4 }
 0xcd1   :  { %6027 = vadd.xlane.f32.xlu1 %v6022_v57 }
 0xd56   :  { %v6024_v49 = vpop.xlane.xlu0 %6023 }
 0xd57   :  { %v6031_v5 = vadd.f32 %v6030_v21, %v6024_v49 }
 0xd59   :  { %v6613_v60 = vmul.f32 -1.442695, %v6031_v5 }
 0xd5a   :  { %v6026_v30 = vpop.xlane.xlu0 %6025 }
 0xd5b   :  { %7151 = vpow2.f32 %v6613_v60  ;;  %v6032_v3 = vadd.f32 %v6030_v21, %v6026_v30 }
 0xd5d   :  { %v6614_v50 = vmul.f32 -1.442695, %v6032_v3 }
 0xd5e   :  { %v6028_v20 = vpop.xlane.xlu1 %6027 }
 0xd5f   :  { %7153 = vpow2.f32 %v6614_v50  ;;  %v6033_v12 = vadd.f32 %v6030_v21, %v6028_v20 }
 0xd61   :  { %v6615_v13 = vmul.f32 -1.442695, %v6033_v12 }
 0xd63   :  { %7155 = vpow2.f32 %v6615_v13 }
 0xd65   :  { %v7152_v2 = vpop.eup %7151 }
 0xd66   :  { %v6043_v16 = vadd.f32 1.0, %v7152_v2 }
 0xd68   :  { %7157 = vrcp.f32 %v6043_v16 }
 0xd69   :  { %v7154_v58 = vpop.eup %7153 }
 0xd6a   :  { %v6044_v62 = vadd.f32 1.0, %v7154_v58 }
 0xd6c   :  { %7159 = vrcp.f32 %v6044_v62 }
 0xd6d   :  { %v7156_v18 = vpop.eup %7155 }
 0xd6e   :  { %v6045_v33 = vadd.f32 1.0, %v7156_v18 }
 0xd70   :  { %7161 = vrcp.f32 %v6045_v33 }
 0xd72   :  { %v7158_v11 = vpop.eup %7157 }
 0xd73   :  { %6053 = vst.msk [vmem:[%s9475_s9] sm:$0xff] %vm6052_vm0, %v7158_v11 }
 0xd76   :  { %v7160_v48 = vpop.eup %7159 }
 0xd77   :  { %6054 = vst.msk [vmem:[%s9475_s9 + $0x8] sm:$0xff] %vm6052_vm0, %v7160_v48 }
 0xd7a   :  { %v7162_v31 = vpop.eup %7161 }
 0xd7b   :  { %6055 = vst.msk [vmem:[%s9475_s9 + $0x10] sm:$0xff] %vm6052_vm0, %v7162_v31 }
 0xd7c   :  { %6060 = vsyncpa [#allocation6], 1 }
 0xd7d   :  { %6061 = vsyncpa [#allocation10], 1 }
 0xd7e   :  { %6062 = vsyncpa [#allocation13], 1 }
 0xd7f   :  { %6063 = vsyncpa [#allocation16], 1 }
 0xd80   :  { %6064 = vsyncpa [#allocation7], 1 }

</bundles_post_ra>
